<compile_context>
chip_gen: v6e
topology: v6e:2x2x1
jax: 0.10.0
libtpu: 0.0.40
codegen_flags: <defaults>
</compile_context>

<pallas_src>
import functools

import jax
import jax.numpy as jnp
from jax.experimental import pallas as pl
from jax.experimental.pallas import tpu as pltpu


# ----------------------------------------------------------------------------
# In-kernel helpers
# ----------------------------------------------------------------------------
def _leaky(v):
    return jnp.where(v > 0, v, 0.2 * v)


def _bn_leaky_masked(y, mask, count, gamma, beta):
    """Train-mode BatchNorm2d (biased var, eps=1e-5) + LeakyReLU(0.2).

    `mask` marks the rows that are real (N*H*W) samples; padded/junk rows are
    zeroed before the statistics so they contribute nothing, and their outputs
    are finite garbage that is never consumed by any valid row downstream.
    """
    yz = jnp.where(mask, y, 0.0)
    mean = jnp.sum(yz, axis=0, keepdims=True) / count
    diff = jnp.where(mask, yz - mean, 0.0)
    var = jnp.sum(diff * diff, axis=0, keepdims=True) / count
    out = (yz - mean) * jax.lax.rsqrt(var + 1e-5) * gamma + beta
    return _leaky(out)


# ----------------------------------------------------------------------------
# The single fused Pallas kernel
# ----------------------------------------------------------------------------
def disc_kernel(p1_ref, w1_ref, w2_ref, w3_ref, w4_ref,
                g2_ref, b2_ref, g3_ref, b3_ref,
                out_ref,
                h1_ref, s2_ref, h2_ref, s3_ref, *, batch):
    f32 = jnp.float32
    bf16 = jnp.bfloat16

    # ---- layer 1: Conv(1->64, k4, s2, p1) + LeakyReLU ------------------------
    # p1 is pre-padded + parity-split im2col (built in the wrapper), so this is
    # one bf16 MXU dot and one full-block store; halo rows stay exactly zero.
    # h1 row = b*256 + (pc%2)*128 + pr*8 + pc//2 on the padded 16x16 grid.
    h1_ref[...] = _leaky(jnp.dot(p1_ref[...], w1_ref[...],
                                 preferred_element_type=f32))

    # ---- layer 2: Conv(64->128, k4, s2, p1) + BN + LeakyReLU -----------------
    # One bulk contiguous copy per (tap, image) builds the (B*128, 1024) bf16
    # im2col (tap t in lane columns [t*64, t*64+64)); dest row m = oh*16 + ow.
    for i in range(4):
        for j in range(4):
            t = i * 4 + j
            jq, jp = j // 2, j % 2
            for b in range(batch):
                src = b * 256 + jp * 128 + i * 8 + jq
                s2_ref[pl.ds(b * 128, 103), pl.ds(t * 64, 64)] = (
                    h1_ref[pl.ds(src, 103), :].astype(bf16))
    acc2 = jnp.dot(s2_ref[...], w2_ref[...], preferred_element_type=f32)
    m2 = jax.lax.broadcasted_iota(jnp.int32, (batch * 128, 1), 0) & 127
    mask2 = ((m2 & 15) < 7) & (m2 < 112)          # the 49 real rows per image
    h2_ref[...] = _bn_leaky_masked(acc2, mask2, batch * 49.0,
                                   g2_ref[...], b2_ref[...])

    # ---- layer 3: Conv(128->256, k3, s2, p0) + BN + LeakyReLU ----------------
    # Same bulk-copy trick: dest row m = 32*oh2 + 2*ow2, pitch 128 per image.
    for i in range(3):
        for j in range(3):
            t = i * 3 + j
            for b in range(batch):
                src = b * 128 + i * 16 + j
                s3_ref[pl.ds(b * 128, 69), pl.ds(t * 128, 128)] = (
                    h2_ref[pl.ds(src, 69), :].astype(bf16))
    acc3 = jnp.dot(s3_ref[...], w3_ref[...], preferred_element_type=f32)
    m3 = jax.lax.broadcasted_iota(jnp.int32, (batch * 128, 1), 0) & 127
    mask3 = ((m3 & 1) == 0) & ((m3 & 31) < 6) & (m3 < 96)   # 9 real rows / image
    y3 = _bn_leaky_masked(acc3, mask3, batch * 9.0,
                          g3_ref[...], b3_ref[...])

    # ---- layer 4: Conv(256->1, k3, s1, p0) + Sigmoid (vectorized) ------------
    # w4_ref is zero except at the 9 valid spatial rows of each image block, so
    # junk rows contribute exactly 0; per-image reduce via a 0/1 selection dot.
    prod = y3 * w4_ref[...]                                      # (B*128, 256)
    r = jax.lax.broadcasted_iota(jnp.int32, (batch, batch * 128), 1)
    bidx = jax.lax.broadcasted_iota(jnp.int32, (batch, batch * 128), 0)
    sel = ((r >= bidx * 128) & (r < bidx * 128 + 128)).astype(f32)
    grp = jnp.dot(sel, prod, preferred_element_type=f32)         # (B, 256)
    logits = jnp.sum(grp, axis=1, keepdims=True)                 # (B, 1)
    out_ref[...] = jax.nn.sigmoid(logits).astype(out_ref.dtype)


# ----------------------------------------------------------------------------
# Wrapper glue
# ----------------------------------------------------------------------------
def _layer1_patches(x):
    """x: (B,1,28,28) NCHW -> layer-1 im2col, pre-padded for layer 2's halo and
    column-parity-split so every in-kernel gather is a contiguous row slice.

    Row index = b*256 + (pc % 2)*128 + pr*8 + pc//2 on the padded 16x16 grid
    (pr/pc include the 1-pixel halo layer 2 needs; halo rows are zero).
    Column k = kh*4 + kw (Cin == 1).  Tiny XLA glue feeding the fused kernel.
    """
    B = x.shape[0]
    xp = jnp.pad(x[:, 0], ((0, 0), (1, 1), (1, 1)))              # (B, 30, 30)
    taps = [xp[:, i:i + 28:2, j:j + 28:2] for i in range(4) for j in range(4)]
    p = jnp.stack(taps, axis=-1)                                 # (B, 14, 14, 16)
    p = jnp.pad(p, ((0, 0), (1, 1), (1, 1), (0, 0)))             # (B, 16, 16, 16)
    p = p.reshape(B, 16, 8, 2, 16).transpose(0, 3, 1, 2, 4)      # (B, 2, 16, 8, 16)
    return p.reshape(B * 256, 16).astype(jnp.bfloat16)


def init_params(key):
    k1, k2, k3, k4 = jax.random.split(key, 4)
    std = 0.02  # DCGAN-style init, deterministic from the key
    w1 = jax.random.normal(k1, (64, 1, 4, 4), jnp.float32) * std
    w2 = jax.random.normal(k2, (128, 64, 4, 4), jnp.float32) * std
    w3 = jax.random.normal(k3, (256, 128, 3, 3), jnp.float32) * std
    w4 = jax.random.normal(k4, (1, 256, 3, 3), jnp.float32) * std

    # Layer-4 weights scattered onto the padded 128-row-per-image pitch:
    # row 32*kh + 2*kw holds w4[0, :, kh, kw]; every other row is exactly zero.
    w4r = jnp.transpose(w4[0], (1, 2, 0))                        # (3, 3, 256)
    w4m = jnp.zeros((128, 256), jnp.float32)
    for i in range(3):
        for j in range(3):
            w4m = w4m.at[32 * i + 2 * j].set(w4r[i, j])

    return {
        # (K, Cout) layouts the kernel wants, K ordered (kh, kw, Cin).
        # bf16 so the MXU sees bf16 operands on every generation (incl. v5e).
        "w1m": w1.transpose(2, 3, 1, 0).reshape(16, 64).astype(jnp.bfloat16),
        "w2m": w2.transpose(2, 3, 1, 0).reshape(1024, 128).astype(jnp.bfloat16),
        "w3m": w3.transpose(2, 3, 1, 0).reshape(1152, 256).astype(jnp.bfloat16),
        "w4m": w4m,                                              # (128, 256) f32
        # BatchNorm affine params at PyTorch default init (gamma=1, beta=0).
        "g2": jnp.ones((1, 128), jnp.float32),
        "b2": jnp.zeros((1, 128), jnp.float32),
        "g3": jnp.ones((1, 256), jnp.float32),
        "b3": jnp.zeros((1, 256), jnp.float32),
        # Raw f32 conv weights, only used by the pure-JAX reference check.
        "w1": w1, "w2": w2, "w3": w3, "w4": w4,
    }


@jax.jit
def discriminator_forward(x, params):
    B = x.shape[0]
    p1 = _layer1_patches(x)                                      # (B*256, 16) bf16
    w4t = jnp.tile(params["w4m"], (B, 1))                        # (B*128, 256) f32
    kern = functools.partial(disc_kernel, batch=B)

    out = pl.pallas_call(
        kern,
        out_shape=jax.ShapeDtypeStruct((B, 1), jnp.float32),
        grid=(1,),
        in_specs=[
            pl.BlockSpec((B * 256, 16), lambda i: (0, 0)),       # layer-1 im2col
            pl.BlockSpec((16, 64), lambda i: (0, 0)),            # w1 (bf16)
            pl.BlockSpec((1024, 128), lambda i: (0, 0)),         # w2 (bf16)
            pl.BlockSpec((1152, 256), lambda i: (0, 0)),         # w3 (bf16)
            pl.BlockSpec((B * 128, 256), lambda i: (0, 0)),      # w4 (zero-padded rows)
            pl.BlockSpec((1, 128), lambda i: (0, 0)),            # gamma2
            pl.BlockSpec((1, 128), lambda i: (0, 0)),            # beta2
            pl.BlockSpec((1, 256), lambda i: (0, 0)),            # gamma3
            pl.BlockSpec((1, 256), lambda i: (0, 0)),            # beta3
        ],
        out_specs=pl.BlockSpec((B, 1), lambda i: (0, 0)),
        scratch_shapes=[
            pltpu.VMEM((B * 256, 64), jnp.float32),    # h1: padded, parity-split
            pltpu.VMEM((B * 128, 1024), jnp.bfloat16), # layer-2 im2col (bf16)
            pltpu.VMEM((B * 128, 128), jnp.float32),   # h2: padded pitch 16/row
            pltpu.VMEM((B * 128, 1152), jnp.bfloat16), # layer-3 im2col (bf16)
        ],
        compiler_params=pltpu.CompilerParams(
            dimension_semantics=("arbitrary",)),
    )(p1, params["w1m"], params["w2m"], params["w3m"], w4t,
      params["g2"], params["b2"], params["g3"], params["b3"])

    return out.reshape(B, 1, 1, 1)


def reference_forward(x, params):
    """Pure-JAX f32 reference (train-mode BatchNorm, gamma=1 / beta=0)."""
    dn = ("NCHW", "OIHW", "NCHW")

    def conv(h, w, stride, pad):
        return jax.lax.conv_general_dilated(
            h, w, (stride, stride), [(pad, pad), (pad, pad)],
            dimension_numbers=dn)

    def bn(h):
        mean = jnp.mean(h, axis=(0, 2, 3), keepdims=True)
        var = jnp.mean(jnp.square(h - mean), axis=(0, 2, 3), keepdims=True)
        return (h - mean) * jax.lax.rsqrt(var + 1e-5)

    h = _leaky(conv(x, params["w1"], 2, 1))
    h = _leaky(bn(conv(h, params["w2"], 2, 1)))
    h = _leaky(bn(conv(h, params["w3"], 2, 0)))
    return jax.nn.sigmoid(conv(h, params["w4"], 1, 0))


if __name__ == "__main__":
    key = jax.random.PRNGKey(0)
    kx, kp = jax.random.split(key)
    # MNIST-shaped input: batch=2, 1 channel, 28x28 (NCHW, like the PyTorch module)
    x = jax.random.normal(kx, (2, 1, 28, 28), jnp.float32)
    params = init_params(kp)

    out = discriminator_forward(x, params)
    out = jax.block_until_ready(out)

    assert out.shape == (2, 1, 1, 1), out.shape
    assert bool(jnp.all((out > 0.0) & (out < 1.0)))

    # Loose tolerance: conv operands are intentionally bf16 in the kernel.
    ref = reference_forward(x, params)
    err = float(jnp.max(jnp.abs(out - ref)))
    assert err < 5e-2, f"max |pallas - reference| = {err}"
    print("KERNEL_OK")
</pallas_src>

<mosaic_0001>
module attributes {stable_mosaic.version = 11 : i64} {
  func.func @disc_kernel(%arg0: i32, %arg1: memref<512x16xbf16, #tpu.memory_space<vmem>>, %arg2: memref<16x64xbf16, #tpu.memory_space<vmem>>, %arg3: memref<1024x128xbf16, #tpu.memory_space<vmem>>, %arg4: memref<1152x256xbf16, #tpu.memory_space<vmem>>, %arg5: memref<256x256xf32, #tpu.memory_space<vmem>>, %arg6: memref<1x128xf32, #tpu.memory_space<vmem>>, %arg7: memref<1x128xf32, #tpu.memory_space<vmem>>, %arg8: memref<1x256xf32, #tpu.memory_space<vmem>>, %arg9: memref<1x256xf32, #tpu.memory_space<vmem>>, %arg10: memref<2x1xf32, #tpu.memory_space<vmem>>, %arg11: memref<512x64xf32, #tpu.memory_space<vmem>>, %arg12: memref<256x1024xbf16, #tpu.memory_space<vmem>>, %arg13: memref<256x128xf32, #tpu.memory_space<vmem>>, %arg14: memref<256x1152xbf16, #tpu.memory_space<vmem>>) attributes {dimension_semantics = [#tpu.dimension_semantics<arbitrary>], iteration_bounds = array<i64: 1>, scalar_prefetch = 0 : i64, scratch_operands = 4 : i64, tpu.core_type = #tpu.core_type<tc>, window_params = [{pipeline_mode = #tpu.pipeline_mode<synchronous>, transform_indices = @transform_0, window_bounds = array<i64: 512, 16>}, {pipeline_mode = #tpu.pipeline_mode<synchronous>, transform_indices = @transform_1, window_bounds = array<i64: 16, 64>}, {pipeline_mode = #tpu.pipeline_mode<synchronous>, transform_indices = @transform_2, window_bounds = array<i64: 1024, 128>}, {pipeline_mode = #tpu.pipeline_mode<synchronous>, transform_indices = @transform_3, window_bounds = array<i64: 1152, 256>}, {pipeline_mode = #tpu.pipeline_mode<synchronous>, transform_indices = @transform_4, window_bounds = array<i64: 256, 256>}, {pipeline_mode = #tpu.pipeline_mode<synchronous>, transform_indices = @transform_5, window_bounds = array<i64: 1, 128>}, {pipeline_mode = #tpu.pipeline_mode<synchronous>, transform_indices = @transform_6, window_bounds = array<i64: 1, 128>}, {pipeline_mode = #tpu.pipeline_mode<synchronous>, transform_indices = @transform_7, window_bounds = array<i64: 1, 256>}, {pipeline_mode = #tpu.pipeline_mode<synchronous>, transform_indices = @transform_8, window_bounds = array<i64: 1, 256>}, {pipeline_mode = #tpu.pipeline_mode<synchronous>, transform_indices = @transform_9, window_bounds = array<i64: 2, 1>}]} {
    %c0 = arith.constant 0 : index
    %c0_0 = arith.constant 0 : index
    %0 = vector.load %arg1[%c0, %c0_0] : memref<512x16xbf16, #tpu.memory_space<vmem>>, vector<512x16xbf16>
    %c0_1 = arith.constant 0 : index
    %c0_2 = arith.constant 0 : index
    %1 = vector.load %arg2[%c0_1, %c0_2] : memref<16x64xbf16, #tpu.memory_space<vmem>>, vector<16x64xbf16>
    %cst = arith.constant dense<0.000000e+00> : vector<512x64xf32>
    %2 = tpu.matmul %0, %1, %cst {dimension_numbers = #tpu.dot_dimension_numbers<[1], [0], [0], [1], [0, 0, 1, 1], [], []>} : vector<512x16xbf16>, vector<16x64xbf16>, vector<512x64xf32> -> vector<512x64xf32>
    %cst_3 = arith.constant 0.000000e+00 : f32
    %3 = vector.broadcast %cst_3 : f32 to vector<512x64xf32>
    %4 = arith.cmpf ogt, %2, %3 : vector<512x64xf32>
    %cst_4 = arith.constant 2.000000e-01 : f32
    %5 = vector.broadcast %cst_4 : f32 to vector<512x64xf32>
    %6 = arith.mulf %5, %2 : vector<512x64xf32>
    %7 = arith.select %4, %2, %6 : vector<512x64xi1>, vector<512x64xf32>
    %c0_5 = arith.constant 0 : index
    %c0_6 = arith.constant 0 : index
    %8 = vector.load %arg11[%c0_5, %c0_6] : memref<512x64xf32, #tpu.memory_space<vmem>>, vector<512x64xf32>
    tpu.vector_store %arg11[%c0_5, %c0_6], %7 {strides = array<i32>} : memref<512x64xf32, #tpu.memory_space<vmem>>, vector<512x64xf32>,
    %c0_7 = arith.constant 0 : index
    %c0_8 = arith.constant 0 : index
    %9 = vector.load %arg11[%c0_7, %c0_8] : memref<512x64xf32, #tpu.memory_space<vmem>>, vector<103x64xf32>
    %10 = arith.truncf %9 : vector<103x64xf32> to vector<103x64xbf16>
    %c0_9 = arith.constant 0 : index
    %c0_10 = arith.constant 0 : index
    %11 = vector.load %arg12[%c0_9, %c0_10] : memref<256x1024xbf16, #tpu.memory_space<vmem>>, vector<103x64xbf16>
    tpu.vector_store %arg12[%c0_9, %c0_10], %10 {strides = array<i32>} : memref<256x1024xbf16, #tpu.memory_space<vmem>>, vector<103x64xbf16>,
    %c256 = arith.constant 256 : index
    %c0_11 = arith.constant 0 : index
    %12 = vector.load %arg11[%c256, %c0_11] : memref<512x64xf32, #tpu.memory_space<vmem>>, vector<103x64xf32>
    %13 = arith.truncf %12 : vector<103x64xf32> to vector<103x64xbf16>
    %c128 = arith.constant 128 : index
    %c0_12 = arith.constant 0 : index
    %14 = vector.load %arg12[%c128, %c0_12] : memref<256x1024xbf16, #tpu.memory_space<vmem>>, vector<103x64xbf16>
    tpu.vector_store %arg12[%c128, %c0_12], %13 {strides = array<i32>} : memref<256x1024xbf16, #tpu.memory_space<vmem>>, vector<103x64xbf16>,
    %c128_13 = arith.constant 128 : index
    %c0_14 = arith.constant 0 : index
    %15 = vector.load %arg11[%c128_13, %c0_14] : memref<512x64xf32, #tpu.memory_space<vmem>>, vector<103x64xf32>
    %16 = arith.truncf %15 : vector<103x64xf32> to vector<103x64xbf16>
    %c0_15 = arith.constant 0 : index
    %c64 = arith.constant 64 : index
    %17 = vector.load %arg12[%c0_15, %c64] : memref<256x1024xbf16, #tpu.memory_space<vmem>>, vector<103x64xbf16>
    tpu.vector_store %arg12[%c0_15, %c64], %16 {strides = array<i32>} : memref<256x1024xbf16, #tpu.memory_space<vmem>>, vector<103x64xbf16>,
    %c384 = arith.constant 384 : index
    %c0_16 = arith.constant 0 : index
    %18 = vector.load %arg11[%c384, %c0_16] : memref<512x64xf32, #tpu.memory_space<vmem>>, vector<103x64xf32>
    %19 = arith.truncf %18 : vector<103x64xf32> to vector<103x64xbf16>
    %c128_17 = arith.constant 128 : index
    %c64_18 = arith.constant 64 : index
    %20 = vector.load %arg12[%c128_17, %c64_18] : memref<256x1024xbf16, #tpu.memory_space<vmem>>, vector<103x64xbf16>
    tpu.vector_store %arg12[%c128_17, %c64_18], %19 {strides = array<i32>} : memref<256x1024xbf16, #tpu.memory_space<vmem>>, vector<103x64xbf16>,
    %c1 = arith.constant 1 : index
    %c0_19 = arith.constant 0 : index
    %21 = vector.load %arg11[%c1, %c0_19] : memref<512x64xf32, #tpu.memory_space<vmem>>, vector<103x64xf32>
    %22 = arith.truncf %21 : vector<103x64xf32> to vector<103x64xbf16>
    %c0_20 = arith.constant 0 : index
    %c128_21 = arith.constant 128 : index
    %23 = vector.load %arg12[%c0_20, %c128_21] : memref<256x1024xbf16, #tpu.memory_space<vmem>>, vector<103x64xbf16>
    tpu.vector_store %arg12[%c0_20, %c128_21], %22 {strides = array<i32>} : memref<256x1024xbf16, #tpu.memory_space<vmem>>, vector<103x64xbf16>,
    %c257 = arith.constant 257 : index
    %c0_22 = arith.constant 0 : index
    %24 = vector.load %arg11[%c257, %c0_22] : memref<512x64xf32, #tpu.memory_space<vmem>>, vector<103x64xf32>
    %25 = arith.truncf %24 : vector<103x64xf32> to vector<103x64xbf16>
    %c128_23 = arith.constant 128 : index
    %c128_24 = arith.constant 128 : index
    %26 = vector.load %arg12[%c128_23, %c128_24] : memref<256x1024xbf16, #tpu.memory_space<vmem>>, vector<103x64xbf16>
    tpu.vector_store %arg12[%c128_23, %c128_24], %25 {strides = array<i32>} : memref<256x1024xbf16, #tpu.memory_space<vmem>>, vector<103x64xbf16>,
    %c129 = arith.constant 129 : index
    %c0_25 = arith.constant 0 : index
    %27 = vector.load %arg11[%c129, %c0_25] : memref<512x64xf32, #tpu.memory_space<vmem>>, vector<103x64xf32>
    %28 = arith.truncf %27 : vector<103x64xf32> to vector<103x64xbf16>
    %c0_26 = arith.constant 0 : index
    %c192 = arith.constant 192 : index
    %29 = vector.load %arg12[%c0_26, %c192] : memref<256x1024xbf16, #tpu.memory_space<vmem>>, vector<103x64xbf16>
    tpu.vector_store %arg12[%c0_26, %c192], %28 {strides = array<i32>} : memref<256x1024xbf16, #tpu.memory_space<vmem>>, vector<103x64xbf16>,
    %c385 = arith.constant 385 : index
    %c0_27 = arith.constant 0 : index
    %30 = vector.load %arg11[%c385, %c0_27] : memref<512x64xf32, #tpu.memory_space<vmem>>, vector<103x64xf32>
    %31 = arith.truncf %30 : vector<103x64xf32> to vector<103x64xbf16>
    %c128_28 = arith.constant 128 : index
    %c192_29 = arith.constant 192 : index
    %32 = vector.load %arg12[%c128_28, %c192_29] : memref<256x1024xbf16, #tpu.memory_space<vmem>>, vector<103x64xbf16>
    tpu.vector_store %arg12[%c128_28, %c192_29], %31 {strides = array<i32>} : memref<256x1024xbf16, #tpu.memory_space<vmem>>, vector<103x64xbf16>,
    %c8 = arith.constant 8 : index
    %c0_30 = arith.constant 0 : index
    %33 = vector.load %arg11[%c8, %c0_30] : memref<512x64xf32, #tpu.memory_space<vmem>>, vector<103x64xf32>
    %34 = arith.truncf %33 : vector<103x64xf32> to vector<103x64xbf16>
    %c0_31 = arith.constant 0 : index
    %c256_32 = arith.constant 256 : index
    %35 = vector.load %arg12[%c0_31, %c256_32] : memref<256x1024xbf16, #tpu.memory_space<vmem>>, vector<103x64xbf16>
    tpu.vector_store %arg12[%c0_31, %c256_32], %34 {strides = array<i32>} : memref<256x1024xbf16, #tpu.memory_space<vmem>>, vector<103x64xbf16>,
    %c264 = arith.constant 264 : index
    %c0_33 = arith.constant 0 : index
    %36 = vector.load %arg11[%c264, %c0_33] : memref<512x64xf32, #tpu.memory_space<vmem>>, vector<103x64xf32>
    %37 = arith.truncf %36 : vector<103x64xf32> to vector<103x64xbf16>
    %c128_34 = arith.constant 128 : index
    %c256_35 = arith.constant 256 : index
    %38 = vector.load %arg12[%c128_34, %c256_35] : memref<256x1024xbf16, #tpu.memory_space<vmem>>, vector<103x64xbf16>
    tpu.vector_store %arg12[%c128_34, %c256_35], %37 {strides = array<i32>} : memref<256x1024xbf16, #tpu.memory_space<vmem>>, vector<103x64xbf16>,
    %c136 = arith.constant 136 : index
    %c0_36 = arith.constant 0 : index
    %39 = vector.load %arg11[%c136, %c0_36] : memref<512x64xf32, #tpu.memory_space<vmem>>, vector<103x64xf32>
    %40 = arith.truncf %39 : vector<103x64xf32> to vector<103x64xbf16>
    %c0_37 = arith.constant 0 : index
    %c320 = arith.constant 320 : index
    %41 = vector.load %arg12[%c0_37, %c320] : memref<256x1024xbf16, #tpu.memory_space<vmem>>, vector<103x64xbf16>
    tpu.vector_store %arg12[%c0_37, %c320], %40 {strides = array<i32>} : memref<256x1024xbf16, #tpu.memory_space<vmem>>, vector<103x64xbf16>,
    %c392 = arith.constant 392 : index
    %c0_38 = arith.constant 0 : index
    %42 = vector.load %arg11[%c392, %c0_38] : memref<512x64xf32, #tpu.memory_space<vmem>>, vector<103x64xf32>
    %43 = arith.truncf %42 : vector<103x64xf32> to vector<103x64xbf16>
    %c128_39 = arith.constant 128 : index
    %c320_40 = arith.constant 320 : index
    %44 = vector.load %arg12[%c128_39, %c320_40] : memref<256x1024xbf16, #tpu.memory_space<vmem>>, vector<103x64xbf16>
    tpu.vector_store %arg12[%c128_39, %c320_40], %43 {strides = array<i32>} : memref<256x1024xbf16, #tpu.memory_space<vmem>>, vector<103x64xbf16>,
    %c9 = arith.constant 9 : index
    %c0_41 = arith.constant 0 : index
    %45 = vector.load %arg11[%c9, %c0_41] : memref<512x64xf32, #tpu.memory_space<vmem>>, vector<103x64xf32>
    %46 = arith.truncf %45 : vector<103x64xf32> to vector<103x64xbf16>
    %c0_42 = arith.constant 0 : index
    %c384_43 = arith.constant 384 : index
    %47 = vector.load %arg12[%c0_42, %c384_43] : memref<256x1024xbf16, #tpu.memory_space<vmem>>, vector<103x64xbf16>
    tpu.vector_store %arg12[%c0_42, %c384_43], %46 {strides = array<i32>} : memref<256x1024xbf16, #tpu.memory_space<vmem>>, vector<103x64xbf16>,
    %c265 = arith.constant 265 : index
    %c0_44 = arith.constant 0 : index
    %48 = vector.load %arg11[%c265, %c0_44] : memref<512x64xf32, #tpu.memory_space<vmem>>, vector<103x64xf32>
    %49 = arith.truncf %48 : vector<103x64xf32> to vector<103x64xbf16>
    %c128_45 = arith.constant 128 : index
    %c384_46 = arith.constant 384 : index
    %50 = vector.load %arg12[%c128_45, %c384_46] : memref<256x1024xbf16, #tpu.memory_space<vmem>>, vector<103x64xbf16>
    tpu.vector_store %arg12[%c128_45, %c384_46], %49 {strides = array<i32>} : memref<256x1024xbf16, #tpu.memory_space<vmem>>, vector<103x64xbf16>,
    %c137 = arith.constant 137 : index
    %c0_47 = arith.constant 0 : index
    %51 = vector.load %arg11[%c137, %c0_47] : memref<512x64xf32, #tpu.memory_space<vmem>>, vector<103x64xf32>
    %52 = arith.truncf %51 : vector<103x64xf32> to vector<103x64xbf16>
    %c0_48 = arith.constant 0 : index
    %c448 = arith.constant 448 : index
    %53 = vector.load %arg12[%c0_48, %c448] : memref<256x1024xbf16, #tpu.memory_space<vmem>>, vector<103x64xbf16>
    tpu.vector_store %arg12[%c0_48, %c448], %52 {strides = array<i32>} : memref<256x1024xbf16, #tpu.memory_space<vmem>>, vector<103x64xbf16>,
    %c393 = arith.constant 393 : index
    %c0_49 = arith.constant 0 : index
    %54 = vector.load %arg11[%c393, %c0_49] : memref<512x64xf32, #tpu.memory_space<vmem>>, vector<103x64xf32>
    %55 = arith.truncf %54 : vector<103x64xf32> to vector<103x64xbf16>
    %c128_50 = arith.constant 128 : index
    %c448_51 = arith.constant 448 : index
    %56 = vector.load %arg12[%c128_50, %c448_51] : memref<256x1024xbf16, #tpu.memory_space<vmem>>, vector<103x64xbf16>
    tpu.vector_store %arg12[%c128_50, %c448_51], %55 {strides = array<i32>} : memref<256x1024xbf16, #tpu.memory_space<vmem>>, vector<103x64xbf16>,
    %c16 = arith.constant 16 : index
    %c0_52 = arith.constant 0 : index
    %57 = vector.load %arg11[%c16, %c0_52] : memref<512x64xf32, #tpu.memory_space<vmem>>, vector<103x64xf32>
    %58 = arith.truncf %57 : vector<103x64xf32> to vector<103x64xbf16>
    %c0_53 = arith.constant 0 : index
    %c512 = arith.constant 512 : index
    %59 = vector.load %arg12[%c0_53, %c512] : memref<256x1024xbf16, #tpu.memory_space<vmem>>, vector<103x64xbf16>
    tpu.vector_store %arg12[%c0_53, %c512], %58 {strides = array<i32>} : memref<256x1024xbf16, #tpu.memory_space<vmem>>, vector<103x64xbf16>,
    %c272 = arith.constant 272 : index
    %c0_54 = arith.constant 0 : index
    %60 = vector.load %arg11[%c272, %c0_54] : memref<512x64xf32, #tpu.memory_space<vmem>>, vector<103x64xf32>
    %61 = arith.truncf %60 : vector<103x64xf32> to vector<103x64xbf16>
    %c128_55 = arith.constant 128 : index
    %c512_56 = arith.constant 512 : index
    %62 = vector.load %arg12[%c128_55, %c512_56] : memref<256x1024xbf16, #tpu.memory_space<vmem>>, vector<103x64xbf16>
    tpu.vector_store %arg12[%c128_55, %c512_56], %61 {strides = array<i32>} : memref<256x1024xbf16, #tpu.memory_space<vmem>>, vector<103x64xbf16>,
    %c144 = arith.constant 144 : index
    %c0_57 = arith.constant 0 : index
    %63 = vector.load %arg11[%c144, %c0_57] : memref<512x64xf32, #tpu.memory_space<vmem>>, vector<103x64xf32>
    %64 = arith.truncf %63 : vector<103x64xf32> to vector<103x64xbf16>
    %c0_58 = arith.constant 0 : index
    %c576 = arith.constant 576 : index
    %65 = vector.load %arg12[%c0_58, %c576] : memref<256x1024xbf16, #tpu.memory_space<vmem>>, vector<103x64xbf16>
    tpu.vector_store %arg12[%c0_58, %c576], %64 {strides = array<i32>} : memref<256x1024xbf16, #tpu.memory_space<vmem>>, vector<103x64xbf16>,
    %c400 = arith.constant 400 : index
    %c0_59 = arith.constant 0 : index
    %66 = vector.load %arg11[%c400, %c0_59] : memref<512x64xf32, #tpu.memory_space<vmem>>, vector<103x64xf32>
    %67 = arith.truncf %66 : vector<103x64xf32> to vector<103x64xbf16>
    %c128_60 = arith.constant 128 : index
    %c576_61 = arith.constant 576 : index
    %68 = vector.load %arg12[%c128_60, %c576_61] : memref<256x1024xbf16, #tpu.memory_space<vmem>>, vector<103x64xbf16>
    tpu.vector_store %arg12[%c128_60, %c576_61], %67 {strides = array<i32>} : memref<256x1024xbf16, #tpu.memory_space<vmem>>, vector<103x64xbf16>,
    %c17 = arith.constant 17 : index
    %c0_62 = arith.constant 0 : index
    %69 = vector.load %arg11[%c17, %c0_62] : memref<512x64xf32, #tpu.memory_space<vmem>>, vector<103x64xf32>
    %70 = arith.truncf %69 : vector<103x64xf32> to vector<103x64xbf16>
    %c0_63 = arith.constant 0 : index
    %c640 = arith.constant 640 : index
    %71 = vector.load %arg12[%c0_63, %c640] : memref<256x1024xbf16, #tpu.memory_space<vmem>>, vector<103x64xbf16>
    tpu.vector_store %arg12[%c0_63, %c640], %70 {strides = array<i32>} : memref<256x1024xbf16, #tpu.memory_space<vmem>>, vector<103x64xbf16>,
    %c273 = arith.constant 273 : index
    %c0_64 = arith.constant 0 : index
    %72 = vector.load %arg11[%c273, %c0_64] : memref<512x64xf32, #tpu.memory_space<vmem>>, vector<103x64xf32>
    %73 = arith.truncf %72 : vector<103x64xf32> to vector<103x64xbf16>
    %c128_65 = arith.constant 128 : index
    %c640_66 = arith.constant 640 : index
    %74 = vector.load %arg12[%c128_65, %c640_66] : memref<256x1024xbf16, #tpu.memory_space<vmem>>, vector<103x64xbf16>
    tpu.vector_store %arg12[%c128_65, %c640_66], %73 {strides = array<i32>} : memref<256x1024xbf16, #tpu.memory_space<vmem>>, vector<103x64xbf16>,
    %c145 = arith.constant 145 : index
    %c0_67 = arith.constant 0 : index
    %75 = vector.load %arg11[%c145, %c0_67] : memref<512x64xf32, #tpu.memory_space<vmem>>, vector<103x64xf32>
    %76 = arith.truncf %75 : vector<103x64xf32> to vector<103x64xbf16>
    %c0_68 = arith.constant 0 : index
    %c704 = arith.constant 704 : index
    %77 = vector.load %arg12[%c0_68, %c704] : memref<256x1024xbf16, #tpu.memory_space<vmem>>, vector<103x64xbf16>
    tpu.vector_store %arg12[%c0_68, %c704], %76 {strides = array<i32>} : memref<256x1024xbf16, #tpu.memory_space<vmem>>, vector<103x64xbf16>,
    %c401 = arith.constant 401 : index
    %c0_69 = arith.constant 0 : index
    %78 = vector.load %arg11[%c401, %c0_69] : memref<512x64xf32, #tpu.memory_space<vmem>>, vector<103x64xf32>
    %79 = arith.truncf %78 : vector<103x64xf32> to vector<103x64xbf16>
    %c128_70 = arith.constant 128 : index
    %c704_71 = arith.constant 704 : index
    %80 = vector.load %arg12[%c128_70, %c704_71] : memref<256x1024xbf16, #tpu.memory_space<vmem>>, vector<103x64xbf16>
    tpu.vector_store %arg12[%c128_70, %c704_71], %79 {strides = array<i32>} : memref<256x1024xbf16, #tpu.memory_space<vmem>>, vector<103x64xbf16>,
    %c24 = arith.constant 24 : index
    %c0_72 = arith.constant 0 : index
    %81 = vector.load %arg11[%c24, %c0_72] : memref<512x64xf32, #tpu.memory_space<vmem>>, vector<103x64xf32>
    %82 = arith.truncf %81 : vector<103x64xf32> to vector<103x64xbf16>
    %c0_73 = arith.constant 0 : index
    %c768 = arith.constant 768 : index
    %83 = vector.load %arg12[%c0_73, %c768] : memref<256x1024xbf16, #tpu.memory_space<vmem>>, vector<103x64xbf16>
    tpu.vector_store %arg12[%c0_73, %c768], %82 {strides = array<i32>} : memref<256x1024xbf16, #tpu.memory_space<vmem>>, vector<103x64xbf16>,
    %c280 = arith.constant 280 : index
    %c0_74 = arith.constant 0 : index
    %84 = vector.load %arg11[%c280, %c0_74] : memref<512x64xf32, #tpu.memory_space<vmem>>, vector<103x64xf32>
    %85 = arith.truncf %84 : vector<103x64xf32> to vector<103x64xbf16>
    %c128_75 = arith.constant 128 : index
    %c768_76 = arith.constant 768 : index
    %86 = vector.load %arg12[%c128_75, %c768_76] : memref<256x1024xbf16, #tpu.memory_space<vmem>>, vector<103x64xbf16>
    tpu.vector_store %arg12[%c128_75, %c768_76], %85 {strides = array<i32>} : memref<256x1024xbf16, #tpu.memory_space<vmem>>, vector<103x64xbf16>,
    %c152 = arith.constant 152 : index
    %c0_77 = arith.constant 0 : index
    %87 = vector.load %arg11[%c152, %c0_77] : memref<512x64xf32, #tpu.memory_space<vmem>>, vector<103x64xf32>
    %88 = arith.truncf %87 : vector<103x64xf32> to vector<103x64xbf16>
    %c0_78 = arith.constant 0 : index
    %c832 = arith.constant 832 : index
    %89 = vector.load %arg12[%c0_78, %c832] : memref<256x1024xbf16, #tpu.memory_space<vmem>>, vector<103x64xbf16>
    tpu.vector_store %arg12[%c0_78, %c832], %88 {strides = array<i32>} : memref<256x1024xbf16, #tpu.memory_space<vmem>>, vector<103x64xbf16>,
    %c408 = arith.constant 408 : index
    %c0_79 = arith.constant 0 : index
    %90 = vector.load %arg11[%c408, %c0_79] : memref<512x64xf32, #tpu.memory_space<vmem>>, vector<103x64xf32>
    %91 = arith.truncf %90 : vector<103x64xf32> to vector<103x64xbf16>
    %c128_80 = arith.constant 128 : index
    %c832_81 = arith.constant 832 : index
    %92 = vector.load %arg12[%c128_80, %c832_81] : memref<256x1024xbf16, #tpu.memory_space<vmem>>, vector<103x64xbf16>
    tpu.vector_store %arg12[%c128_80, %c832_81], %91 {strides = array<i32>} : memref<256x1024xbf16, #tpu.memory_space<vmem>>, vector<103x64xbf16>,
    %c25 = arith.constant 25 : index
    %c0_82 = arith.constant 0 : index
    %93 = vector.load %arg11[%c25, %c0_82] : memref<512x64xf32, #tpu.memory_space<vmem>>, vector<103x64xf32>
    %94 = arith.truncf %93 : vector<103x64xf32> to vector<103x64xbf16>
    %c0_83 = arith.constant 0 : index
    %c896 = arith.constant 896 : index
    %95 = vector.load %arg12[%c0_83, %c896] : memref<256x1024xbf16, #tpu.memory_space<vmem>>, vector<103x64xbf16>
    tpu.vector_store %arg12[%c0_83, %c896], %94 {strides = array<i32>} : memref<256x1024xbf16, #tpu.memory_space<vmem>>, vector<103x64xbf16>,
    %c281 = arith.constant 281 : index
    %c0_84 = arith.constant 0 : index
    %96 = vector.load %arg11[%c281, %c0_84] : memref<512x64xf32, #tpu.memory_space<vmem>>, vector<103x64xf32>
    %97 = arith.truncf %96 : vector<103x64xf32> to vector<103x64xbf16>
    %c128_85 = arith.constant 128 : index
    %c896_86 = arith.constant 896 : index
    %98 = vector.load %arg12[%c128_85, %c896_86] : memref<256x1024xbf16, #tpu.memory_space<vmem>>, vector<103x64xbf16>
    tpu.vector_store %arg12[%c128_85, %c896_86], %97 {strides = array<i32>} : memref<256x1024xbf16, #tpu.memory_space<vmem>>, vector<103x64xbf16>,
    %c153 = arith.constant 153 : index
    %c0_87 = arith.constant 0 : index
    %99 = vector.load %arg11[%c153, %c0_87] : memref<512x64xf32, #tpu.memory_space<vmem>>, vector<103x64xf32>
    %100 = arith.truncf %99 : vector<103x64xf32> to vector<103x64xbf16>
    %c0_88 = arith.constant 0 : index
    %c960 = arith.constant 960 : index
    %101 = vector.load %arg12[%c0_88, %c960] : memref<256x1024xbf16, #tpu.memory_space<vmem>>, vector<103x64xbf16>
    tpu.vector_store %arg12[%c0_88, %c960], %100 {strides = array<i32>} : memref<256x1024xbf16, #tpu.memory_space<vmem>>, vector<103x64xbf16>,
    %c409 = arith.constant 409 : index
    %c0_89 = arith.constant 0 : index
    %102 = vector.load %arg11[%c409, %c0_89] : memref<512x64xf32, #tpu.memory_space<vmem>>, vector<103x64xf32>
    %103 = arith.truncf %102 : vector<103x64xf32> to vector<103x64xbf16>
    %c128_90 = arith.constant 128 : index
    %c960_91 = arith.constant 960 : index
    %104 = vector.load %arg12[%c128_90, %c960_91] : memref<256x1024xbf16, #tpu.memory_space<vmem>>, vector<103x64xbf16>
    tpu.vector_store %arg12[%c128_90, %c960_91], %103 {strides = array<i32>} : memref<256x1024xbf16, #tpu.memory_space<vmem>>, vector<103x64xbf16>,
    %c0_92 = arith.constant 0 : index
    %c0_93 = arith.constant 0 : index
    %105 = vector.load %arg12[%c0_92, %c0_93] : memref<256x1024xbf16, #tpu.memory_space<vmem>>, vector<256x1024xbf16>
    %c0_94 = arith.constant 0 : index
    %c0_95 = arith.constant 0 : index
    %106 = vector.load %arg3[%c0_94, %c0_95] : memref<1024x128xbf16, #tpu.memory_space<vmem>>, vector<1024x128xbf16>
    %cst_96 = arith.constant dense<0.000000e+00> : vector<256x128xf32>
    %107 = tpu.matmul %105, %106, %cst_96 {dimension_numbers = #tpu.dot_dimension_numbers<[1], [0], [0], [1], [0, 0, 1, 1], [], []>} : vector<256x1024xbf16>, vector<1024x128xbf16>, vector<256x128xf32> -> vector<256x128xf32>
    %108 = tpu.iota {dimensions = array<i32: 0>} : vector<256x1xi32>
    %c127_i32 = arith.constant 127 : i32
    %109 = vector.broadcast %c127_i32 : i32 to vector<256x1xi32>
    %110 = arith.andi %108, %109 : vector<256x1xi32>
    %c15_i32 = arith.constant 15 : i32
    %111 = vector.broadcast %c15_i32 : i32 to vector<256x1xi32>
    %112 = arith.andi %110, %111 : vector<256x1xi32>
    %c7_i32 = arith.constant 7 : i32
    %113 = vector.broadcast %c7_i32 : i32 to vector<256x1xi32>
    %114 = arith.cmpi slt, %112, %113 : vector<256x1xi32>
    %c112_i32 = arith.constant 112 : i32
    %115 = vector.broadcast %c112_i32 : i32 to vector<256x1xi32>
    %116 = arith.cmpi slt, %110, %115 : vector<256x1xi32>
    %117 = arith.andi %114, %116 : vector<256x1xi1>
    %c0_97 = arith.constant 0 : index
    %c0_98 = arith.constant 0 : index
    %118 = vector.load %arg6[%c0_97, %c0_98] : memref<1x128xf32, #tpu.memory_space<vmem>>, vector<1x128xf32>
    %c0_99 = arith.constant 0 : index
    %c0_100 = arith.constant 0 : index
    %119 = vector.load %arg7[%c0_99, %c0_100] : memref<1x128xf32, #tpu.memory_space<vmem>>, vector<1x128xf32>
    %cst_101 = arith.constant 0.000000e+00 : f32
    %120 = vector.shape_cast %117 : vector<256x1xi1> to vector<256x1xi1>
    %121 = vector.broadcast %120 : vector<256x1xi1> to vector<256x128xi1>
    %122 = vector.broadcast %cst_101 : f32 to vector<256x128xf32>
    %123 = arith.select %121, %107, %122 : vector<256x128xi1>, vector<256x128xf32>
    %cst_102 = arith.constant dense<0.000000e+00> : vector<128xf32>
    %124 = vector.multi_reduction <add>, %123, %cst_102 [0] : vector<256x128xf32> to vector<128xf32>
    %125 = vector.shape_cast %124 : vector<128xf32> to vector<1x128xf32>
    %cst_103 = arith.constant 9.800000e+01 : f32
    %126 = vector.broadcast %cst_103 : f32 to vector<1x128xf32>
    %127 = arith.divf %125, %126 : vector<1x128xf32>
    %128 = vector.broadcast %127 : vector<1x128xf32> to vector<256x128xf32>
    %129 = arith.subf %123, %128 : vector<256x128xf32>
    %cst_104 = arith.constant 0.000000e+00 : f32
    %130 = vector.shape_cast %117 : vector<256x1xi1> to vector<256x1xi1>
    %131 = vector.broadcast %130 : vector<256x1xi1> to vector<256x128xi1>
    %132 = vector.broadcast %cst_104 : f32 to vector<256x128xf32>
    %133 = arith.select %131, %129, %132 : vector<256x128xi1>, vector<256x128xf32>
    %134 = arith.mulf %133, %133 : vector<256x128xf32>
    %cst_105 = arith.constant dense<0.000000e+00> : vector<128xf32>
    %135 = vector.multi_reduction <add>, %134, %cst_105 [0] : vector<256x128xf32> to vector<128xf32>
    %136 = vector.shape_cast %135 : vector<128xf32> to vector<1x128xf32>
    %cst_106 = arith.constant 9.800000e+01 : f32
    %137 = vector.broadcast %cst_106 : f32 to vector<1x128xf32>
    %138 = arith.divf %136, %137 : vector<1x128xf32>
    %139 = vector.broadcast %127 : vector<1x128xf32> to vector<256x128xf32>
    %140 = arith.subf %123, %139 : vector<256x128xf32>
    %cst_107 = arith.constant 9.99999974E-6 : f32
    %141 = vector.broadcast %cst_107 : f32 to vector<1x128xf32>
    %142 = arith.addf %138, %141 : vector<1x128xf32>
    %143 = math.rsqrt %142 : vector<1x128xf32>
    %144 = vector.broadcast %143 : vector<1x128xf32> to vector<256x128xf32>
    %145 = arith.mulf %140, %144 : vector<256x128xf32>
    %146 = vector.broadcast %118 : vector<1x128xf32> to vector<256x128xf32>
    %147 = arith.mulf %145, %146 : vector<256x128xf32>
    %148 = vector.broadcast %119 : vector<1x128xf32> to vector<256x128xf32>
    %149 = arith.addf %147, %148 : vector<256x128xf32>
    %cst_108 = arith.constant 0.000000e+00 : f32
    %150 = vector.broadcast %cst_108 : f32 to vector<256x128xf32>
    %151 = arith.cmpf ogt, %149, %150 : vector<256x128xf32>
    %cst_109 = arith.constant 2.000000e-01 : f32
    %152 = vector.broadcast %cst_109 : f32 to vector<256x128xf32>
    %153 = arith.mulf %152, %149 : vector<256x128xf32>
    %154 = arith.select %151, %149, %153 : vector<256x128xi1>, vector<256x128xf32>
    %c0_110 = arith.constant 0 : index
    %c0_111 = arith.constant 0 : index
    %155 = vector.load %arg13[%c0_110, %c0_111] : memref<256x128xf32, #tpu.memory_space<vmem>>, vector<256x128xf32>
    tpu.vector_store %arg13[%c0_110, %c0_111], %154 {strides = array<i32>} : memref<256x128xf32, #tpu.memory_space<vmem>>, vector<256x128xf32>,
    %c0_112 = arith.constant 0 : index
    %c0_113 = arith.constant 0 : index
    %156 = vector.load %arg13[%c0_112, %c0_113] : memref<256x128xf32, #tpu.memory_space<vmem>>, vector<69x128xf32>
    %157 = arith.truncf %156 : vector<69x128xf32> to vector<69x128xbf16>
    %c0_114 = arith.constant 0 : index
    %c0_115 = arith.constant 0 : index
    %158 = vector.load %arg14[%c0_114, %c0_115] : memref<256x1152xbf16, #tpu.memory_space<vmem>>, vector<69x128xbf16>
    tpu.vector_store %arg14[%c0_114, %c0_115], %157 {strides = array<i32>} : memref<256x1152xbf16, #tpu.memory_space<vmem>>, vector<69x128xbf16>,
    %c128_116 = arith.constant 128 : index
    %c0_117 = arith.constant 0 : index
    %159 = vector.load %arg13[%c128_116, %c0_117] : memref<256x128xf32, #tpu.memory_space<vmem>>, vector<69x128xf32>
    %160 = arith.truncf %159 : vector<69x128xf32> to vector<69x128xbf16>
    %c128_118 = arith.constant 128 : index
    %c0_119 = arith.constant 0 : index
    %161 = vector.load %arg14[%c128_118, %c0_119] : memref<256x1152xbf16, #tpu.memory_space<vmem>>, vector<69x128xbf16>
    tpu.vector_store %arg14[%c128_118, %c0_119], %160 {strides = array<i32>} : memref<256x1152xbf16, #tpu.memory_space<vmem>>, vector<69x128xbf16>,
    %c1_120 = arith.constant 1 : index
    %c0_121 = arith.constant 0 : index
    %162 = vector.load %arg13[%c1_120, %c0_121] : memref<256x128xf32, #tpu.memory_space<vmem>>, vector<69x128xf32>
    %163 = arith.truncf %162 : vector<69x128xf32> to vector<69x128xbf16>
    %c0_122 = arith.constant 0 : index
    %c128_123 = arith.constant 128 : index
    %164 = vector.load %arg14[%c0_122, %c128_123] : memref<256x1152xbf16, #tpu.memory_space<vmem>>, vector<69x128xbf16>
    tpu.vector_store %arg14[%c0_122, %c128_123], %163 {strides = array<i32>} : memref<256x1152xbf16, #tpu.memory_space<vmem>>, vector<69x128xbf16>,
    %c129_124 = arith.constant 129 : index
    %c0_125 = arith.constant 0 : index
    %165 = vector.load %arg13[%c129_124, %c0_125] : memref<256x128xf32, #tpu.memory_space<vmem>>, vector<69x128xf32>
    %166 = arith.truncf %165 : vector<69x128xf32> to vector<69x128xbf16>
    %c128_126 = arith.constant 128 : index
    %c128_127 = arith.constant 128 : index
    %167 = vector.load %arg14[%c128_126, %c128_127] : memref<256x1152xbf16, #tpu.memory_space<vmem>>, vector<69x128xbf16>
    tpu.vector_store %arg14[%c128_126, %c128_127], %166 {strides = array<i32>} : memref<256x1152xbf16, #tpu.memory_space<vmem>>, vector<69x128xbf16>,
    %c2 = arith.constant 2 : index
    %c0_128 = arith.constant 0 : index
    %168 = vector.load %arg13[%c2, %c0_128] : memref<256x128xf32, #tpu.memory_space<vmem>>, vector<69x128xf32>
    %169 = arith.truncf %168 : vector<69x128xf32> to vector<69x128xbf16>
    %c0_129 = arith.constant 0 : index
    %c256_130 = arith.constant 256 : index
    %170 = vector.load %arg14[%c0_129, %c256_130] : memref<256x1152xbf16, #tpu.memory_space<vmem>>, vector<69x128xbf16>
    tpu.vector_store %arg14[%c0_129, %c256_130], %169 {strides = array<i32>} : memref<256x1152xbf16, #tpu.memory_space<vmem>>, vector<69x128xbf16>,
    %c130 = arith.constant 130 : index
    %c0_131 = arith.constant 0 : index
    %171 = vector.load %arg13[%c130, %c0_131] : memref<256x128xf32, #tpu.memory_space<vmem>>, vector<69x128xf32>
    %172 = arith.truncf %171 : vector<69x128xf32> to vector<69x128xbf16>
    %c128_132 = arith.constant 128 : index
    %c256_133 = arith.constant 256 : index
    %173 = vector.load %arg14[%c128_132, %c256_133] : memref<256x1152xbf16, #tpu.memory_space<vmem>>, vector<69x128xbf16>
    tpu.vector_store %arg14[%c128_132, %c256_133], %172 {strides = array<i32>} : memref<256x1152xbf16, #tpu.memory_space<vmem>>, vector<69x128xbf16>,
    %c16_134 = arith.constant 16 : index
    %c0_135 = arith.constant 0 : index
    %174 = vector.load %arg13[%c16_134, %c0_135] : memref<256x128xf32, #tpu.memory_space<vmem>>, vector<69x128xf32>
    %175 = arith.truncf %174 : vector<69x128xf32> to vector<69x128xbf16>
    %c0_136 = arith.constant 0 : index
    %c384_137 = arith.constant 384 : index
    %176 = vector.load %arg14[%c0_136, %c384_137] : memref<256x1152xbf16, #tpu.memory_space<vmem>>, vector<69x128xbf16>
    tpu.vector_store %arg14[%c0_136, %c384_137], %175 {strides = array<i32>} : memref<256x1152xbf16, #tpu.memory_space<vmem>>, vector<69x128xbf16>,
    %c144_138 = arith.constant 144 : index
    %c0_139 = arith.constant 0 : index
    %177 = vector.load %arg13[%c144_138, %c0_139] : memref<256x128xf32, #tpu.memory_space<vmem>>, vector<69x128xf32>
    %178 = arith.truncf %177 : vector<69x128xf32> to vector<69x128xbf16>
    %c128_140 = arith.constant 128 : index
    %c384_141 = arith.constant 384 : index
    %179 = vector.load %arg14[%c128_140, %c384_141] : memref<256x1152xbf16, #tpu.memory_space<vmem>>, vector<69x128xbf16>
    tpu.vector_store %arg14[%c128_140, %c384_141], %178 {strides = array<i32>} : memref<256x1152xbf16, #tpu.memory_space<vmem>>, vector<69x128xbf16>,
    %c17_142 = arith.constant 17 : index
    %c0_143 = arith.constant 0 : index
    %180 = vector.load %arg13[%c17_142, %c0_143] : memref<256x128xf32, #tpu.memory_space<vmem>>, vector<69x128xf32>
    %181 = arith.truncf %180 : vector<69x128xf32> to vector<69x128xbf16>
    %c0_144 = arith.constant 0 : index
    %c512_145 = arith.constant 512 : index
    %182 = vector.load %arg14[%c0_144, %c512_145] : memref<256x1152xbf16, #tpu.memory_space<vmem>>, vector<69x128xbf16>
    tpu.vector_store %arg14[%c0_144, %c512_145], %181 {strides = array<i32>} : memref<256x1152xbf16, #tpu.memory_space<vmem>>, vector<69x128xbf16>,
    %c145_146 = arith.constant 145 : index
    %c0_147 = arith.constant 0 : index
    %183 = vector.load %arg13[%c145_146, %c0_147] : memref<256x128xf32, #tpu.memory_space<vmem>>, vector<69x128xf32>
    %184 = arith.truncf %183 : vector<69x128xf32> to vector<69x128xbf16>
    %c128_148 = arith.constant 128 : index
    %c512_149 = arith.constant 512 : index
    %185 = vector.load %arg14[%c128_148, %c512_149] : memref<256x1152xbf16, #tpu.memory_space<vmem>>, vector<69x128xbf16>
    tpu.vector_store %arg14[%c128_148, %c512_149], %184 {strides = array<i32>} : memref<256x1152xbf16, #tpu.memory_space<vmem>>, vector<69x128xbf16>,
    %c18 = arith.constant 18 : index
    %c0_150 = arith.constant 0 : index
    %186 = vector.load %arg13[%c18, %c0_150] : memref<256x128xf32, #tpu.memory_space<vmem>>, vector<69x128xf32>
    %187 = arith.truncf %186 : vector<69x128xf32> to vector<69x128xbf16>
    %c0_151 = arith.constant 0 : index
    %c640_152 = arith.constant 640 : index
    %188 = vector.load %arg14[%c0_151, %c640_152] : memref<256x1152xbf16, #tpu.memory_space<vmem>>, vector<69x128xbf16>
    tpu.vector_store %arg14[%c0_151, %c640_152], %187 {strides = array<i32>} : memref<256x1152xbf16, #tpu.memory_space<vmem>>, vector<69x128xbf16>,
    %c146 = arith.constant 146 : index
    %c0_153 = arith.constant 0 : index
    %189 = vector.load %arg13[%c146, %c0_153] : memref<256x128xf32, #tpu.memory_space<vmem>>, vector<69x128xf32>
    %190 = arith.truncf %189 : vector<69x128xf32> to vector<69x128xbf16>
    %c128_154 = arith.constant 128 : index
    %c640_155 = arith.constant 640 : index
    %191 = vector.load %arg14[%c128_154, %c640_155] : memref<256x1152xbf16, #tpu.memory_space<vmem>>, vector<69x128xbf16>
    tpu.vector_store %arg14[%c128_154, %c640_155], %190 {strides = array<i32>} : memref<256x1152xbf16, #tpu.memory_space<vmem>>, vector<69x128xbf16>,
    %c32 = arith.constant 32 : index
    %c0_156 = arith.constant 0 : index
    %192 = vector.load %arg13[%c32, %c0_156] : memref<256x128xf32, #tpu.memory_space<vmem>>, vector<69x128xf32>
    %193 = arith.truncf %192 : vector<69x128xf32> to vector<69x128xbf16>
    %c0_157 = arith.constant 0 : index
    %c768_158 = arith.constant 768 : index
    %194 = vector.load %arg14[%c0_157, %c768_158] : memref<256x1152xbf16, #tpu.memory_space<vmem>>, vector<69x128xbf16>
    tpu.vector_store %arg14[%c0_157, %c768_158], %193 {strides = array<i32>} : memref<256x1152xbf16, #tpu.memory_space<vmem>>, vector<69x128xbf16>,
    %c160 = arith.constant 160 : index
    %c0_159 = arith.constant 0 : index
    %195 = vector.load %arg13[%c160, %c0_159] : memref<256x128xf32, #tpu.memory_space<vmem>>, vector<69x128xf32>
    %196 = arith.truncf %195 : vector<69x128xf32> to vector<69x128xbf16>
    %c128_160 = arith.constant 128 : index
    %c768_161 = arith.constant 768 : index
    %197 = vector.load %arg14[%c128_160, %c768_161] : memref<256x1152xbf16, #tpu.memory_space<vmem>>, vector<69x128xbf16>
    tpu.vector_store %arg14[%c128_160, %c768_161], %196 {strides = array<i32>} : memref<256x1152xbf16, #tpu.memory_space<vmem>>, vector<69x128xbf16>,
    %c33 = arith.constant 33 : index
    %c0_162 = arith.constant 0 : index
    %198 = vector.load %arg13[%c33, %c0_162] : memref<256x128xf32, #tpu.memory_space<vmem>>, vector<69x128xf32>
    %199 = arith.truncf %198 : vector<69x128xf32> to vector<69x128xbf16>
    %c0_163 = arith.constant 0 : index
    %c896_164 = arith.constant 896 : index
    %200 = vector.load %arg14[%c0_163, %c896_164] : memref<256x1152xbf16, #tpu.memory_space<vmem>>, vector<69x128xbf16>
    tpu.vector_store %arg14[%c0_163, %c896_164], %199 {strides = array<i32>} : memref<256x1152xbf16, #tpu.memory_space<vmem>>, vector<69x128xbf16>,
    %c161 = arith.constant 161 : index
    %c0_165 = arith.constant 0 : index
    %201 = vector.load %arg13[%c161, %c0_165] : memref<256x128xf32, #tpu.memory_space<vmem>>, vector<69x128xf32>
    %202 = arith.truncf %201 : vector<69x128xf32> to vector<69x128xbf16>
    %c128_166 = arith.constant 128 : index
    %c896_167 = arith.constant 896 : index
    %203 = vector.load %arg14[%c128_166, %c896_167] : memref<256x1152xbf16, #tpu.memory_space<vmem>>, vector<69x128xbf16>
    tpu.vector_store %arg14[%c128_166, %c896_167], %202 {strides = array<i32>} : memref<256x1152xbf16, #tpu.memory_space<vmem>>, vector<69x128xbf16>,
    %c34 = arith.constant 34 : index
    %c0_168 = arith.constant 0 : index
    %204 = vector.load %arg13[%c34, %c0_168] : memref<256x128xf32, #tpu.memory_space<vmem>>, vector<69x128xf32>
    %205 = arith.truncf %204 : vector<69x128xf32> to vector<69x128xbf16>
    %c0_169 = arith.constant 0 : index
    %c1024 = arith.constant 1024 : index
    %206 = vector.load %arg14[%c0_169, %c1024] : memref<256x1152xbf16, #tpu.memory_space<vmem>>, vector<69x128xbf16>
    tpu.vector_store %arg14[%c0_169, %c1024], %205 {strides = array<i32>} : memref<256x1152xbf16, #tpu.memory_space<vmem>>, vector<69x128xbf16>,
    %c162 = arith.constant 162 : index
    %c0_170 = arith.constant 0 : index
    %207 = vector.load %arg13[%c162, %c0_170] : memref<256x128xf32, #tpu.memory_space<vmem>>, vector<69x128xf32>
    %208 = arith.truncf %207 : vector<69x128xf32> to vector<69x128xbf16>
    %c128_171 = arith.constant 128 : index
    %c1024_172 = arith.constant 1024 : index
    %209 = vector.load %arg14[%c128_171, %c1024_172] : memref<256x1152xbf16, #tpu.memory_space<vmem>>, vector<69x128xbf16>
    tpu.vector_store %arg14[%c128_171, %c1024_172], %208 {strides = array<i32>} : memref<256x1152xbf16, #tpu.memory_space<vmem>>, vector<69x128xbf16>,
    %c0_173 = arith.constant 0 : index
    %c0_174 = arith.constant 0 : index
    %210 = vector.load %arg14[%c0_173, %c0_174] : memref<256x1152xbf16, #tpu.memory_space<vmem>>, vector<256x1152xbf16>
    %c0_175 = arith.constant 0 : index
    %c0_176 = arith.constant 0 : index
    %211 = vector.load %arg4[%c0_175, %c0_176] : memref<1152x256xbf16, #tpu.memory_space<vmem>>, vector<1152x256xbf16>
    %cst_177 = arith.constant dense<0.000000e+00> : vector<256x256xf32>
    %212 = tpu.matmul %210, %211, %cst_177 {dimension_numbers = #tpu.dot_dimension_numbers<[1], [0], [0], [1], [0, 0, 1, 1], [], []>} : vector<256x1152xbf16>, vector<1152x256xbf16>, vector<256x256xf32> -> vector<256x256xf32>
    %213 = tpu.iota {dimensions = array<i32: 0>} : vector<256x1xi32>
    %c127_i32_178 = arith.constant 127 : i32
    %214 = vector.broadcast %c127_i32_178 : i32 to vector<256x1xi32>
    %215 = arith.andi %213, %214 : vector<256x1xi32>
    %c1_i32 = arith.constant 1 : i32
    %216 = vector.broadcast %c1_i32 : i32 to vector<256x1xi32>
    %217 = arith.andi %215, %216 : vector<256x1xi32>
    %c0_i32 = arith.constant 0 : i32
    %218 = vector.broadcast %c0_i32 : i32 to vector<256x1xi32>
    %219 = arith.cmpi eq, %217, %218 : vector<256x1xi32>
    %c31_i32 = arith.constant 31 : i32
    %220 = vector.broadcast %c31_i32 : i32 to vector<256x1xi32>
    %221 = arith.andi %215, %220 : vector<256x1xi32>
    %c6_i32 = arith.constant 6 : i32
    %222 = vector.broadcast %c6_i32 : i32 to vector<256x1xi32>
    %223 = arith.cmpi slt, %221, %222 : vector<256x1xi32>
    %224 = arith.andi %219, %223 : vector<256x1xi1>
    %c96_i32 = arith.constant 96 : i32
    %225 = vector.broadcast %c96_i32 : i32 to vector<256x1xi32>
    %226 = arith.cmpi slt, %215, %225 : vector<256x1xi32>
    %227 = arith.andi %224, %226 : vector<256x1xi1>
    %c0_179 = arith.constant 0 : index
    %c0_180 = arith.constant 0 : index
    %228 = vector.load %arg8[%c0_179, %c0_180] : memref<1x256xf32, #tpu.memory_space<vmem>>, vector<1x256xf32>
    %c0_181 = arith.constant 0 : index
    %c0_182 = arith.constant 0 : index
    %229 = vector.load %arg9[%c0_181, %c0_182] : memref<1x256xf32, #tpu.memory_space<vmem>>, vector<1x256xf32>
    %cst_183 = arith.constant 0.000000e+00 : f32
    %230 = vector.shape_cast %227 : vector<256x1xi1> to vector<256x1xi1>
    %231 = vector.broadcast %230 : vector<256x1xi1> to vector<256x256xi1>
    %232 = vector.broadcast %cst_183 : f32 to vector<256x256xf32>
    %233 = arith.select %231, %212, %232 : vector<256x256xi1>, vector<256x256xf32>
    %cst_184 = arith.constant dense<0.000000e+00> : vector<256xf32>
    %234 = vector.multi_reduction <add>, %233, %cst_184 [0] : vector<256x256xf32> to vector<256xf32>
    %235 = vector.shape_cast %234 : vector<256xf32> to vector<1x256xf32>
    %cst_185 = arith.constant 1.800000e+01 : f32
    %236 = vector.broadcast %cst_185 : f32 to vector<1x256xf32>
    %237 = arith.divf %235, %236 : vector<1x256xf32>
    %238 = vector.broadcast %237 : vector<1x256xf32> to vector<256x256xf32>
    %239 = arith.subf %233, %238 : vector<256x256xf32>
    %cst_186 = arith.constant 0.000000e+00 : f32
    %240 = vector.shape_cast %227 : vector<256x1xi1> to vector<256x1xi1>
    %241 = vector.broadcast %240 : vector<256x1xi1> to vector<256x256xi1>
    %242 = vector.broadcast %cst_186 : f32 to vector<256x256xf32>
    %243 = arith.select %241, %239, %242 : vector<256x256xi1>, vector<256x256xf32>
    %244 = arith.mulf %243, %243 : vector<256x256xf32>
    %cst_187 = arith.constant dense<0.000000e+00> : vector<256xf32>
    %245 = vector.multi_reduction <add>, %244, %cst_187 [0] : vector<256x256xf32> to vector<256xf32>
    %246 = vector.shape_cast %245 : vector<256xf32> to vector<1x256xf32>
    %cst_188 = arith.constant 1.800000e+01 : f32
    %247 = vector.broadcast %cst_188 : f32 to vector<1x256xf32>
    %248 = arith.divf %246, %247 : vector<1x256xf32>
    %249 = vector.broadcast %237 : vector<1x256xf32> to vector<256x256xf32>
    %250 = arith.subf %233, %249 : vector<256x256xf32>
    %cst_189 = arith.constant 9.99999974E-6 : f32
    %251 = vector.broadcast %cst_189 : f32 to vector<1x256xf32>
    %252 = arith.addf %248, %251 : vector<1x256xf32>
    %253 = math.rsqrt %252 : vector<1x256xf32>
    %254 = vector.broadcast %253 : vector<1x256xf32> to vector<256x256xf32>
    %255 = arith.mulf %250, %254 : vector<256x256xf32>
    %256 = vector.broadcast %228 : vector<1x256xf32> to vector<256x256xf32>
    %257 = arith.mulf %255, %256 : vector<256x256xf32>
    %258 = vector.broadcast %229 : vector<1x256xf32> to vector<256x256xf32>
    %259 = arith.addf %257, %258 : vector<256x256xf32>
    %cst_190 = arith.constant 0.000000e+00 : f32
    %260 = vector.broadcast %cst_190 : f32 to vector<256x256xf32>
    %261 = arith.cmpf ogt, %259, %260 : vector<256x256xf32>
    %cst_191 = arith.constant 2.000000e-01 : f32
    %262 = vector.broadcast %cst_191 : f32 to vector<256x256xf32>
    %263 = arith.mulf %262, %259 : vector<256x256xf32>
    %264 = arith.select %261, %259, %263 : vector<256x256xi1>, vector<256x256xf32>
    %c0_192 = arith.constant 0 : index
    %c0_193 = arith.constant 0 : index
    %265 = vector.load %arg5[%c0_192, %c0_193] : memref<256x256xf32, #tpu.memory_space<vmem>>, vector<256x256xf32>
    %266 = arith.mulf %264, %265 : vector<256x256xf32>
    %267 = tpu.iota {dimensions = array<i32: 1>} : vector<2x256xi32>
    %268 = tpu.iota {dimensions = array<i32: 0>} : vector<2x256xi32>
    %c128_i32 = arith.constant 128 : i32
    %269 = vector.broadcast %c128_i32 : i32 to vector<2x256xi32>
    %270 = arith.muli %268, %269 : vector<2x256xi32>
    %271 = arith.cmpi sge, %267, %270 : vector<2x256xi32>
    %c128_i32_194 = arith.constant 128 : i32
    %272 = vector.broadcast %c128_i32_194 : i32 to vector<2x256xi32>
    %273 = arith.muli %268, %272 : vector<2x256xi32>
    %c128_i32_195 = arith.constant 128 : i32
    %274 = vector.broadcast %c128_i32_195 : i32 to vector<2x256xi32>
    %275 = arith.addi %273, %274 : vector<2x256xi32>
    %276 = arith.cmpi slt, %267, %275 : vector<2x256xi32>
    %277 = arith.andi %271, %276 : vector<2x256xi1>
    %278 = arith.extui %277 : vector<2x256xi1> to vector<2x256xi32>
    %279 = arith.sitofp %278 : vector<2x256xi32> to vector<2x256xf32>
    %cst_196 = arith.constant dense<0.000000e+00> : vector<2x256xf32>
    %280 = tpu.matmul %279, %266, %cst_196 {dimension_numbers = #tpu.dot_dimension_numbers<[1], [0], [0], [1], [0, 0, 1, 1], [], []>} : vector<2x256xf32>, vector<256x256xf32>, vector<2x256xf32> -> vector<2x256xf32>
    %cst_197 = arith.constant dense<0.000000e+00> : vector<2xf32>
    %281 = vector.multi_reduction <add>, %280, %cst_197 [1] : vector<2x256xf32> to vector<2xf32>
    %282 = vector.shape_cast %281 : vector<2xf32> to vector<2x1xf32>
    %283 = arith.negf %282 : vector<2x1xf32>
    %284 = math.exp %283 : vector<2x1xf32>
    %cst_198 = arith.constant 1.000000e+00 : f32
    %285 = vector.broadcast %cst_198 : f32 to vector<2x1xf32>
    %286 = arith.addf %285, %284 : vector<2x1xf32>
    %287 = arith.divf %285, %286 : vector<2x1xf32>
    %c0_199 = arith.constant 0 : index
    %c0_200 = arith.constant 0 : index
    %288 = vector.load %arg10[%c0_199, %c0_200] : memref<2x1xf32, #tpu.memory_space<vmem>>, vector<2x1xf32>
    tpu.vector_store %arg10[%c0_199, %c0_200], %287 {strides = array<i32>} : memref<2x1xf32, #tpu.memory_space<vmem>>, vector<2x1xf32>,
    return
  }
  func.func @transform_0(%arg0: i32) -> (i32, i32) {
    %c0_i32 = arith.constant 0 : i32
    %c0_i32_0 = arith.constant 0 : i32
    %c0_i32_1 = arith.constant 0 : i32
    return %c0_i32, %c0_i32_0 : i32, i32
  }
  func.func @transform_1(%arg0: i32) -> (i32, i32) {
    %c0_i32 = arith.constant 0 : i32
    %c0_i32_0 = arith.constant 0 : i32
    %c0_i32_1 = arith.constant 0 : i32
    return %c0_i32, %c0_i32_0 : i32, i32
  }
  func.func @transform_2(%arg0: i32) -> (i32, i32) {
    %c0_i32 = arith.constant 0 : i32
    %c0_i32_0 = arith.constant 0 : i32
    %c0_i32_1 = arith.constant 0 : i32
    return %c0_i32, %c0_i32_0 : i32, i32
  }
  func.func @transform_3(%arg0: i32) -> (i32, i32) {
    %c0_i32 = arith.constant 0 : i32
    %c0_i32_0 = arith.constant 0 : i32
    %c0_i32_1 = arith.constant 0 : i32
    return %c0_i32, %c0_i32_0 : i32, i32
  }
  func.func @transform_4(%arg0: i32) -> (i32, i32) {
    %c0_i32 = arith.constant 0 : i32
    %c0_i32_0 = arith.constant 0 : i32
    %c0_i32_1 = arith.constant 0 : i32
    return %c0_i32, %c0_i32_0 : i32, i32
  }
  func.func @transform_5(%arg0: i32) -> (i32, i32) {
    %c0_i32 = arith.constant 0 : i32
    %c0_i32_0 = arith.constant 0 : i32
    %c0_i32_1 = arith.constant 0 : i32
    return %c0_i32, %c0_i32_0 : i32, i32
  }
  func.func @transform_6(%arg0: i32) -> (i32, i32) {
    %c0_i32 = arith.constant 0 : i32
    %c0_i32_0 = arith.constant 0 : i32
    %c0_i32_1 = arith.constant 0 : i32
    return %c0_i32, %c0_i32_0 : i32, i32
  }
  func.func @transform_7(%arg0: i32) -> (i32, i32) {
    %c0_i32 = arith.constant 0 : i32
    %c0_i32_0 = arith.constant 0 : i32
    %c0_i32_1 = arith.constant 0 : i32
    return %c0_i32, %c0_i32_0 : i32, i32
  }
  func.func @transform_8(%arg0: i32) -> (i32, i32) {
    %c0_i32 = arith.constant 0 : i32
    %c0_i32_0 = arith.constant 0 : i32
    %c0_i32_1 = arith.constant 0 : i32
    return %c0_i32, %c0_i32_0 : i32, i32
  }
  func.func @transform_9(%arg0: i32) -> (i32, i32) {
    %c0_i32 = arith.constant 0 : i32
    %c0_i32_0 = arith.constant 0 : i32
    %c0_i32_1 = arith.constant 0 : i32
    return %c0_i32, %c0_i32_0 : i32, i32
  }
}

</mosaic_0001>

<bundles_post_ra>
// kernel: discriminator_forward.1
= control target key start
LH: loop header
LB: loop body
LE: loop exit
PB: predicated region body
PF: predicated region fallthrough
CT: control target
= control target key end

     0   :  { %vm265_vm0 = vcmask 130048   ;;  %vm843_vm2 = vcmask 523264   ;;  %vm974_vm8 = vcmask 519168   ;;  %s14433_s16 = smov 64   ;;  %s17151_s1 = inlined_call_operand.vmem [shape: bf16[16,64], index: 1, kind: input, shape index: {}]   ;;  %s17152_s0 = inlined_call_operand.vmem [shape: bf16[512,16], index: 0, kind: input, shape index: {}]   ;;  %s17153_s2 = inlined_call_operand.vmem [shape: bf16[1024,128], index: 2, kind: input, shape index: {}]   ;;  %s17154_s3 = inlined_call_operand.vmem [shape: bf16[1152,256], index: 3, kind: input, shape index: {}]   ;;  %s17155_s5 = inlined_call_operand.vmem [shape: f32[1,128], index: 5, kind: input, shape index: {}]   ;;  %s17156_s6 = inlined_call_operand.vmem [shape: f32[1,128], index: 6, kind: input, shape index: {}]   ;;  %s17157_s7 = inlined_call_operand.vmem [shape: f32[1,256], index: 7, kind: input, shape index: {}]   ;;  %s17158_s8 = inlined_call_operand.vmem [shape: f32[1,256], index: 8, kind: input, shape index: {}]   ;;  %s17159_s4 = inlined_call_operand.vmem [shape: f32[256,256], index: 4, kind: input, shape index: {}]   ;;  %s17160_s9 = inlined_call_operand.vmem [shape: f32[2,1], index: 9, kind: output, shape index: {}]  }
   0x1   :  { %v13902_v0 = vld [vmem:[%s17151_s1] sm:$0xff]   ;;  %v13904_v2 = vld [vmem:[%s17152_s0 + $0x8] sm:$0xff]   ;;  %v13905_v3 = vld [vmem:[%s17152_s0 + $0x10] sm:$0xff]  }
   0x2   :  { %v13903_v1 = vld [vmem:[%s17152_s0] sm:$0xff]   ;;  %13833 = vmatprep.subr.bf16.mxu0 %v13902_v0  ;;  %v13906_v4 = vld [vmem:[%s17152_s0 + $0x18] sm:$0xff]   ;;  %v13908_v6 = vld [vmem:[%s17152_s0 + $0x28] sm:$0xff]  }
   0x3   :  { %13834 = vmatpush3.bf16.msra.mxu0 %v13902_v0  ;;  %13835 = vmatprep.mubr.msk.bf16.mxu0 %vm265_vm0, %v13903_v1  ;;  %v13907_v5 = vld [vmem:[%s17152_s0 + $0x20] sm:$0xff]   ;;  %v13909_v7 = vld [vmem:[%s17152_s0 + $0x30] sm:$0xff]   ;;  %v13910_v8 = vld [vmem:[%s17152_s0 + $0x38] sm:$0xff]  }
   0x4   :  { %v13911_v9 = vld [vmem:[%s17152_s0 + $0x40] sm:$0xff]   ;;  %v13912_v10 = vld [vmem:[%s17152_s0 + $0x48] sm:$0xff]   ;;  %v13913_v11 = vld [vmem:[%s17152_s0 + $0x50] sm:$0xff]  }
   0x5   :  { %v13914_v12 = vld [vmem:[%s17152_s0 + $0x58] sm:$0xff]   ;;  %v13915_v13 = vld [vmem:[%s17152_s0 + $0x60] sm:$0xff]   ;;  %v13916_v14 = vld [vmem:[%s17152_s0 + $0x68] sm:$0xff]  }
   0x6   :  { %13836 = vmatmul.mubr.msk.bf16.vlgmr.msra.gmra.mxu0 %vm265_vm0, %v13904_v2  ;;  %v13917_v15 = vld [vmem:[%s17152_s0 + $0x70] sm:$0xff]   ;;  %v13918_v16 = vld [vmem:[%s17152_s0 + $0x78] sm:$0xff]   ;;  %v13919_v17 = vld [vmem:[%s17152_s0 + $0x80] sm:$0xff]  }
   0x7   :  { %13839 = vmatprep.mubr.msk.bf16.mxu0 %vm265_vm0, %v13905_v3  ;;  %v13920_v18 = vld [vmem:[%s17152_s0 + $0x88] sm:$0xff]   ;;  %v13921_v19 = vld [vmem:[%s17152_s0 + $0x90] sm:$0xff]   ;;  %v13922_v20 = vld [vmem:[%s17152_s0 + $0x98] sm:$0xff]  }
   0x8   :  { %v13923_v21 = vld [vmem:[%s17152_s0 + $0xa0] sm:$0xff]   ;;  %v13924_v22 = vld [vmem:[%s17152_s0 + $0xa8] sm:$0xff]   ;;  %v13925_v23 = vld [vmem:[%s17152_s0 + $0xb0] sm:$0xff]  }
   0x9   :  { %v13926_v24 = vld [vmem:[%s17152_s0 + $0xb8] sm:$0xff]   ;;  %v13927_v25 = vld [vmem:[%s17152_s0 + $0xc0] sm:$0xff]   ;;  %v13928_v26 = vld [vmem:[%s17152_s0 + $0xc8] sm:$0xff]  }
   0xa   :  { %v13929_v27 = vld [vmem:[%s17152_s0 + $0xd0] sm:$0xff]   ;;  %v13930_v28 = vld [vmem:[%s17152_s0 + $0xd8] sm:$0xff]   ;;  %v13931_v29 = vld [vmem:[%s17152_s0 + $0xe0] sm:$0xff]  }
   0xb   :  { %v13932_v30 = vld [vmem:[%s17152_s0 + $0xe8] sm:$0xff]   ;;  %v13933_v31 = vld [vmem:[%s17152_s0 + $0xf0] sm:$0xff]   ;;  %v13934_v32 = vld [vmem:[%s17152_s0 + $0xf8] sm:$0xff]  }
   0xe   :  { %13840 = vmatmul.mubr.msk.bf16.gmra.mxu0 %vm265_vm0, %v13906_v4 }
   0xf   :  { %13843 = vmatprep.mubr.msk.bf16.mxu0 %vm265_vm0, %v13907_v5 }
  0x16   :  { %13844 = vmatmul.mubr.msk.bf16.gmra.mxu0 %vm265_vm0, %v13908_v6 }
  0x17   :  { %13847 = vmatprep.mubr.msk.bf16.mxu0 %vm265_vm0, %v13909_v7 }
  0x1e   :  { %13848 = vmatmul.mubr.msk.bf16.gmra.mxu0 %vm265_vm0, %v13910_v8 }
  0x1f   :  { %13851 = vmatprep.mubr.msk.bf16.mxu0 %vm265_vm0, %v13911_v9 }
  0x26   :  { %13852 = vmatmul.mubr.msk.bf16.gmra.mxu0 %vm265_vm0, %v13912_v10 }
  0x27   :  { %13855 = vmatprep.mubr.msk.bf16.mxu0 %vm265_vm0, %v13913_v11 }
  0x2e   :  { %13856 = vmatmul.mubr.msk.bf16.gmra.mxu0 %vm265_vm0, %v13914_v12 }
  0x2f   :  { %13859 = vmatprep.mubr.msk.bf16.mxu0 %vm265_vm0, %v13915_v13 }
  0x36   :  { %13860 = vmatmul.mubr.msk.bf16.gmra.mxu0 %vm265_vm0, %v13916_v14 }
  0x37   :  { %13863 = vmatprep.mubr.msk.bf16.mxu0 %vm265_vm0, %v13917_v15 }
  0x3e   :  { %13864 = vmatmul.mubr.msk.bf16.gmra.mxu0 %vm265_vm0, %v13918_v16 }
  0x3f   :  { %13867 = vmatprep.mubr.msk.bf16.mxu0 %vm265_vm0, %v13919_v17 }
  0x46   :  { %13868 = vmatmul.mubr.msk.bf16.gmra.mxu0 %vm265_vm0, %v13920_v18 }
  0x47   :  { %13871 = vmatprep.mubr.msk.bf16.mxu0 %vm265_vm0, %v13921_v19 }
  0x4e   :  { %13872 = vmatmul.mubr.msk.bf16.gmra.mxu0 %vm265_vm0, %v13922_v20 }
  0x4f   :  { %13875 = vmatprep.mubr.msk.bf16.mxu0 %vm265_vm0, %v13923_v21 }
  0x56   :  { %13876 = vmatmul.mubr.msk.bf16.gmra.mxu0 %vm265_vm0, %v13924_v22 }
  0x57   :  { %13879 = vmatprep.mubr.msk.bf16.mxu0 %vm265_vm0, %v13925_v23 }
  0x5e   :  { %13880 = vmatmul.mubr.msk.bf16.gmra.mxu0 %vm265_vm0, %v13926_v24 }
  0x5f   :  { %13883 = vmatprep.mubr.msk.bf16.mxu0 %vm265_vm0, %v13927_v25 }
  0x66   :  { %13884 = vmatmul.mubr.msk.bf16.gmra.mxu0 %vm265_vm0, %v13928_v26 }
  0x67   :  { %13887 = vmatprep.mubr.msk.bf16.mxu0 %vm265_vm0, %v13929_v27 }
  0x6e   :  { %13888 = vmatmul.mubr.msk.bf16.gmra.mxu0 %vm265_vm0, %v13930_v28 }
  0x6f   :  { %13891 = vmatprep.mubr.msk.bf16.mxu0 %vm265_vm0, %v13931_v29 }
  0x76   :  { %13892 = vmatmul.mubr.msk.bf16.gmra.mxu0 %vm265_vm0, %v13932_v30 }
  0x77   :  { %13895 = vmatprep.mubr.msk.bf16.mxu0 %vm265_vm0, %v13933_v31 }
  0x7e   :  { %13896 = vmatmul.mubr.msk.bf16.gmra.mxu0 %vm265_vm0, %v13934_v32 }
  0xc6   :  { %v13837_v33 = vpop.f32.mrf.mxu0 }
  0xc7   :  { %vm653_vm1 = vcmp.gt.f32.partialorder %v13837_v33, 0.0  ;;  %v717_v34 = vmul.f32 0.2, %v13837_v33 }
  0xc8   :  { %v396_v35 = vpop.f32.mrf.mxu0 }
  0xc9   :  { %v781_v36 = vsel %vm653_vm1, %v13837_v33, %v717_v34  ;;  %vm651_vm3 = vcmp.gt.f32.partialorder %v396_v35, 0.0  ;;  %v715_v37 = vmul.f32 0.2, %v396_v35 }
  0xca   :  { %846 = vst.msk [vmem:[#allocation2 + $0x10] sm:$0xff] %vm843_vm2, %v781_v36  ;;  %v13838_v38 = vpop.f32.mrf.mxu0 }
  0xcb   :  { %v779_v39 = vsel %vm651_vm3, %v396_v35, %v715_v37  ;;  %vm654_vm4 = vcmp.gt.f32.partialorder %v13838_v38, 0.0  ;;  %v718_v40 = vmul.f32 0.2, %v13838_v38 }
  0xcc   :  { %844 = vst.msk [vmem:[#allocation2] sm:$0xff] %vm843_vm2, %v779_v39  ;;  %v399_v41 = vpop.f32.mrf.mxu0 }
  0xcd   :  { %v782_v42 = vsel %vm654_vm4, %v13838_v38, %v718_v40  ;;  %vm652_vm5 = vcmp.gt.f32.partialorder %v399_v41, 0.0  ;;  %v716_v43 = vmul.f32 0.2, %v399_v41  ;;  %vm988_vm4 = vsmask.f32 3328 }
  0xce   :  { %847 = vst.msk [vmem:[#allocation2 + $0x18] sm:$0xff] %vm843_vm2, %v782_v42  ;;  %v13841_v44 = vpop.f32.mrf.mxu0 }
  0xcf   :  { %v780_v45 = vsel %vm652_vm5, %v399_v41, %v716_v43  ;;  %vm657_vm6 = vcmp.gt.f32.partialorder %v13841_v44, 0.0  ;;  %v721_v46 = vmul.f32 0.2, %v13841_v44 }
  0xd0   :  { %845 = vst.msk [vmem:[#allocation2 + $0x8] sm:$0xff] %vm843_vm2, %v780_v45  ;;  %v412_v47 = vpop.f32.mrf.mxu0 }
  0xd1   :  { %v785_v48 = vsel %vm657_vm6, %v13841_v44, %v721_v46  ;;  %vm655_vm7 = vcmp.gt.f32.partialorder %v412_v47, 0.0  ;;  %v719_v49 = vmul.f32 0.2, %v412_v47  ;;  %v1668_v50 = vld [vmem:[#allocation2 + $0x10] sm:$0xff] }
  0xd2   :  { %850 = vst.msk [vmem:[#allocation2 + $0x30] sm:$0xff] %vm843_vm2, %v785_v48  ;;  %v13842_v51 = vpop.f32.mrf.mxu0  ;;  %v12879_v52 = vpack.c.bf16 %v1668_v50, %v1668_v50 }
  0xd3   :  { %v783_v53 = vsel %vm655_vm7, %v412_v47, %v719_v49  ;;  %vm658_vm9 = vcmp.gt.f32.partialorder %v13842_v51, 0.0  ;;  %v722_v54 = vmul.f32 0.2, %v13842_v51  ;;  %v908_v55 = vld [vmem:[#allocation2] sm:$0xff]  ;;  %vm14709_vm7 = vmand %vm974_vm8, %vm988_vm4 }
  0xd4   :  { %848 = vst.msk [vmem:[#allocation2 + $0x20] sm:$0xff] %vm843_vm2, %v783_v53  ;;  %v415_v56 = vpop.f32.mrf.mxu0  ;;  %v12774_v57 = vpack.c.bf16 %v908_v55, %v908_v55 }
  0xd5   :  { %1734 = vst.msk [vmem:[#allocation3 + $0x28] sm:$0xf] %vm974_vm8, %v12879_v52  ;;  %977 = vst.msk [vmem:[#allocation3 + $0x40] sm:$0xf] %vm974_vm8, %v12879_v52  ;;  %v786_v58 = vsel %vm658_vm9, %v13842_v51, %v722_v54  ;;  %vm656_vm10 = vcmp.gt.f32.partialorder %v415_v56, 0.0  ;;  %v2044_v60 = vld [vmem:[#allocation2 + $0x11] sm:$0xff] }
  0xd6   :  { %2485 = vst.msk [vmem:[#allocation3 + $0x10] sm:$0xf] %vm974_vm8, %v12879_v52  ;;  %v720_v59 = vmul.f32 0.2, %v415_v56  ;;  %v911_v61 = vld [vmem:[#allocation2 + $0x18] sm:$0xff]  ;;  %v13845_v62 = vpop.f32.mrf.mxu0  ;;  %v12931_v63 = vpack.c.bf16 %v2044_v60, %v2044_v60 }
  0xd7   :  { %851 = vst.msk [vmem:[#allocation2 + $0x38] sm:$0xff] %vm843_vm2, %v786_v58  ;;  %v12777_v0 = vpack.c.bf16 %v911_v61, %v911_v61  ;;  %vm661_vm11 = vcmp.gt.f32.partialorder %v13845_v62, 0.0  ;;  %v725_v2 = vmul.f32 0.2, %v13845_v62  ;;  %v1291_v3 = vld [vmem:[#allocation2 + $0x1] sm:$0xff]  ;;  %v1292_v4 = vld [vmem:[#allocation2 + $0x9] sm:$0xff] }
  0xd8   :  { %975 = vst.msk [vmem:[#allocation3] sm:$0xf] %vm974_vm8, %v12774_v57  ;;  %v784_v1 = vsel %vm656_vm10, %v415_v56, %v720_v59  ;;  %v909_v5 = vld [vmem:[#allocation2 + $0x8] sm:$0xff]  ;;  %v428_v6 = vpop.f32.mrf.mxu0  ;;  %2110 = vst.msk [vmem:[#allocation3 + $0x2c] sm:$0xf] %vm974_vm8, %v12931_v63  ;;  %v12826_v7 = vpack.c.bf16 %v1291_v3, %v1291_v3  ;;  %v12827_v8 = vpack.c.bf16 %v1292_v4, %v1292_v4 }
  0xd9   :  { %849 = vst.msk [vmem:[#allocation2 + $0x28] sm:$0xff] %vm843_vm2, %v784_v1  ;;  %v12775_v9 = vpack.c.bf16 %v909_v5, %v909_v5  ;;  %v789_v10 = vsel %vm661_vm11, %v13845_v62, %v725_v2  ;;  %vm659_vm12 = vcmp.gt.f32.partialorder %v428_v6, 0.0  ;;  %v723_v11 = vmul.f32 0.2, %v428_v6  ;;  %v1672_v12 = vld [vmem:[#allocation2 + $0x30] sm:$0xff] }
  0xda   :  { %978 = vst.msk [vmem:[#allocation3 + $0x60] sm:$0xf] %vm974_vm8, %v12777_v0  ;;  %1359 = vst.msk [vmem:[#allocation3 + $0x44] sm:$0xf] %vm974_vm8, %v12931_v63  ;;  %v13846_v13 = vpop.f32.mrf.mxu0  ;;  %v12883_v14 = vpack.c.bf16 %v1672_v12, %v1672_v12  ;;  %v2873_v2 = vld [vmem:[#allocation3 + $0x194] sm:$0xf] }
  0xdb   :  { %2486 = vst.msk [vmem:[#allocation3 + $0x30] sm:$0xf] %vm974_vm8, %v12777_v0  ;;  %1735 = vst.msk [vmem:[#allocation3 + $0x48] sm:$0xf] %vm974_vm8, %v12777_v0  ;;  %v787_v15 = vsel %vm659_vm12, %v428_v6, %v723_v11  ;;  %vm662_vm13 = vcmp.gt.f32.partialorder %v13846_v13, 0.0  ;;  %v1294_v17 = vld [vmem:[#allocation2 + $0x19] sm:$0xff] }
  0xdc   :  { %2861 = vst.msk [vmem:[#allocation3 + $0x14] sm:$0xf] %vm974_vm8, %v12931_v63  ;;  %3237 = vst.msk [vmem:[#allocation3 + $0x18] sm:$0xf] %vm974_vm8, %v12777_v0  ;;  %v726_v16 = vmul.f32 0.2, %v13846_v13  ;;  %v431_v19 = vpop.f32.mrf.mxu0  ;;  %v12829_v20 = vpack.c.bf16 %v1294_v17, %v1294_v17 }
  0xdd   :  { %854 = vst.msk [vmem:[#allocation2 + $0x50] sm:$0xff] %vm843_vm2, %v789_v10  ;;  %v1670_v18 = vld [vmem:[#allocation2 + $0x20] sm:$0xff]  ;;  %852 = vst.msk [vmem:[#allocation2 + $0x40] sm:$0xff] %vm843_vm2, %v787_v15  ;;  %vm660_vm14 = vcmp.gt.f32.partialorder %v431_v19, 0.0  ;;  %v724_v23 = vmul.f32 0.2, %v431_v19 }
  0xde   :  { %1357 = vst.msk [vmem:[#allocation3 + $0x4] sm:$0xf] %vm974_vm8, %v12826_v7  ;;  %1358 = vst.msk [vmem:[#allocation3 + $0x24] sm:$0xf] %vm974_vm8, %v12827_v8  ;;  %v12881_v21 = vpack.c.bf16 %v1670_v18, %v1670_v18  ;;  %v790_v22 = vsel %vm662_vm13, %v13846_v13, %v726_v16  ;;  %v2048_v24 = vld [vmem:[#allocation2 + $0x31] sm:$0xff]  ;;  %v13849_v26 = vpop.f32.mrf.mxu0 }
  0xdf   :  { %976 = vst.msk [vmem:[#allocation3 + $0x20] sm:$0xf] %vm974_vm8, %v12775_v9  ;;  %1733 = vst.msk [vmem:[#allocation3 + $0x8] sm:$0xf] %vm974_vm8, %v12775_v9  ;;  %v915_v25 = vld [vmem:[#allocation2 + $0x38] sm:$0xff]  ;;  %v12935_v27 = vpack.c.bf16 %v2048_v24, %v2048_v24  ;;  %v788_v29 = vsel %vm660_vm14, %v431_v19, %v724_v23  ;;  %vm665_vm15 = vcmp.gt.f32.partialorder %v13849_v26, 0.0 }
  0xe0   :  { %2109 = vst.msk [vmem:[#allocation3 + $0xc] sm:$0xf] %vm974_vm8, %v12827_v8  ;;  %1738 = vst.msk [vmem:[#allocation3 + $0xa8] sm:$0xf] %vm974_vm8, %v12883_v14  ;;  %v12781_v28 = vpack.c.bf16 %v915_v25, %v915_v25  ;;  %v729_v30 = vmul.f32 0.2, %v13849_v26  ;;  %v444_v34 = vpop.f32.mrf.mxu0 }
  0xe1   :  { %3240 = vst.msk [vmem:[#allocation3 + $0x78] sm:$0xf] %vm974_vm8, %v12883_v14  ;;  %981 = vst.msk [vmem:[#allocation3 + $0xc0] sm:$0xf] %vm974_vm8, %v12883_v14  ;;  %v2046_v31 = vld [vmem:[#allocation2 + $0x21] sm:$0xff]  ;;  %v1296_v33 = vld [vmem:[#allocation2 + $0x29] sm:$0xff] }
  0xe2   :  { %2489 = vst.msk [vmem:[#allocation3 + $0x90] sm:$0xf] %vm974_vm8, %v12883_v14  ;;  %1360 = vst.msk [vmem:[#allocation3 + $0x64] sm:$0xf] %vm974_vm8, %v12829_v20  ;;  %v913_v32 = vld [vmem:[#allocation2 + $0x28] sm:$0xff]  ;;  %v12933_v35 = vpack.c.bf16 %v2046_v31, %v2046_v31  ;;  %v12831_v37 = vpack.c.bf16 %v1296_v33, %v1296_v33  ;;  %v793_v38 = vsel %vm665_vm15, %v13849_v26, %v729_v30  ;;  %vm663_vm0 = vcmp.gt.f32.partialorder %v444_v34, 0.0  ;;  %v13850_v41 = vpop.f32.mrf.mxu0 }
  0xe3   :  { %855 = vst.msk [vmem:[#allocation2 + $0x58] sm:$0xff] %vm843_vm2, %v790_v22  ;;  %853 = vst.msk [vmem:[#allocation2 + $0x48] sm:$0xff] %vm843_vm2, %v788_v29  ;;  %v12779_v36 = vpack.c.bf16 %v913_v32, %v913_v32  ;;  %v727_v39 = vmul.f32 0.2, %v444_v34  ;;  %vm666_vm1 = vcmp.gt.f32.partialorder %v13850_v41, 0.0 }
  0xe4   :  { %1736 = vst.msk [vmem:[#allocation3 + $0x68] sm:$0xf] %vm974_vm8, %v12881_v21  ;;  %2862 = vst.msk [vmem:[#allocation3 + $0x34] sm:$0xf] %vm974_vm8, %v12829_v20  ;;  %v1676_v40 = vld [vmem:[#allocation2 + $0x50] sm:$0xff]  ;;  %v1298_v45 = vld [vmem:[#allocation2 + $0x39] sm:$0xff]  ;;  %v447_v47 = vpop.f32.mrf.mxu0 }
  0xe5   :  { %3238 = vst.msk [vmem:[#allocation3 + $0x38] sm:$0xf] %vm974_vm8, %v12881_v21  ;;  %2111 = vst.msk [vmem:[#allocation3 + $0x4c] sm:$0xf] %vm974_vm8, %v12829_v20  ;;  %v12887_v42 = vpack.c.bf16 %v1676_v40, %v1676_v40  ;;  %v791_v43 = vsel %vm663_vm0, %v444_v34, %v727_v39  ;;  %v730_v44 = vmul.f32 0.2, %v13850_v41  ;;  %v12833_v48 = vpack.c.bf16 %v1298_v45, %v1298_v45 }
  0xe6   :  { %979 = vst.msk [vmem:[#allocation3 + $0x80] sm:$0xf] %vm974_vm8, %v12881_v21  ;;  %3613 = vst.msk [vmem:[#allocation3 + $0x1c] sm:$0xf] %vm974_vm8, %v12829_v20  ;;  %v1674_v46 = vld [vmem:[#allocation2 + $0x40] sm:$0xff]  ;;  %vm664_vm3 = vcmp.gt.f32.partialorder %v447_v47, 0.0  ;;  %v13853_v54 = vpop.f32.mrf.mxu0 }
  0xe7   :  { %2487 = vst.msk [vmem:[#allocation3 + $0x50] sm:$0xf] %vm974_vm8, %v12881_v21  ;;  %2114 = vst.msk [vmem:[#allocation3 + $0xac] sm:$0xf] %vm974_vm8, %v12935_v27  ;;  %v12885_v49 = vpack.c.bf16 %v1674_v46, %v1674_v46  ;;  %v794_v50 = vsel %vm666_vm1, %v13850_v41, %v730_v44  ;;  %v728_v51 = vmul.f32 0.2, %v447_v47 }
  0xe8   :  { %982 = vst.msk [vmem:[#allocation3 + $0xe0] sm:$0xf] %vm974_vm8, %v12781_v28  ;;  %3616 = vst.msk [vmem:[#allocation3 + $0x7c] sm:$0xf] %vm974_vm8, %v12935_v27  ;;  %vm669_vm5 = vcmp.gt.f32.partialorder %v13853_v54, 0.0  ;;  %v460_v62 = vpop.f32.mrf.mxu0  ;;  %v13935_v20 = vld [vmem:[%s17153_s2 + $0x78] sm:$0xff]  }
  0xe9   :  { %2490 = vst.msk [vmem:[#allocation3 + $0xb0] sm:$0xf] %vm974_vm8, %v12781_v28  ;;  %1363 = vst.msk [vmem:[#allocation3 + $0xc4] sm:$0xf] %vm974_vm8, %v12935_v27  ;;  %v792_v57 = vsel %vm664_vm3, %v447_v47, %v728_v51  ;;  %v733_v58 = vmul.f32 0.2, %v13853_v54  ;;  %13385 = vmatprep.subr.bf16.mxu1 %v13935_v20 }
  0xea   :  { %1739 = vst.msk [vmem:[#allocation3 + $0xc8] sm:$0xf] %vm974_vm8, %v12781_v28  ;;  %2865 = vst.msk [vmem:[#allocation3 + $0x94] sm:$0xf] %vm974_vm8, %v12935_v27  ;;  %v2052_v52 = vld [vmem:[#allocation2 + $0x51] sm:$0xff]  ;;  %v2050_v59 = vld [vmem:[#allocation2 + $0x41] sm:$0xff]  ;;  %v13854_v8 = vpop.f32.mrf.mxu0 }
  0xeb   :  { %3241 = vst.msk [vmem:[#allocation3 + $0x98] sm:$0xf] %vm974_vm8, %v12781_v28  ;;  %2112 = vst.msk [vmem:[#allocation3 + $0x6c] sm:$0xf] %vm974_vm8, %v12933_v35  ;;  %v919_v53 = vld [vmem:[#allocation2 + $0x58] sm:$0xff]  ;;  %v12939_v55 = vpack.c.bf16 %v2052_v52, %v2052_v52  ;;  %v917_v60 = vld [vmem:[#allocation2 + $0x48] sm:$0xff]  ;;  %v12937_v63 = vpack.c.bf16 %v2050_v59, %v2050_v59  ;;  %v797_v3 = vsel %vm669_vm5, %v13853_v54, %v733_v58 }
  0xec   :  { %858 = vst.msk [vmem:[#allocation2 + $0x70] sm:$0xff] %vm843_vm2, %v793_v38  ;;  %856 = vst.msk [vmem:[#allocation2 + $0x60] sm:$0xff] %vm843_vm2, %v791_v43  ;;  %v12785_v56 = vpack.c.bf16 %v919_v53, %v919_v53  ;;  %v1300_v61 = vld [vmem:[#allocation2 + $0x49] sm:$0xff]  ;;  %v12783_v0 = vpack.c.bf16 %v917_v60, %v917_v60  ;;  %vm667_vm6 = vcmp.gt.f32.partialorder %v460_v62, 0.0  ;;  %v731_v4 = vmul.f32 0.2, %v460_v62  ;;  %v463_v19 = vpop.f32.mrf.mxu0 }
  0xed   :  { %980 = vst.msk [vmem:[#allocation3 + $0xa0] sm:$0xf] %vm974_vm8, %v12779_v36  ;;  %1362 = vst.msk [vmem:[#allocation3 + $0xa4] sm:$0xf] %vm974_vm8, %v12831_v37  ;;  %v12835_v1 = vpack.c.bf16 %v1300_v61, %v1300_v61  ;;  %v2497_v12 = vld [vmem:[#allocation3 + $0x190] sm:$0xf] }
  0xee   :  { %3614 = vst.msk [vmem:[#allocation3 + $0x3c] sm:$0xf] %vm974_vm8, %v12933_v35  ;;  %1361 = vst.msk [vmem:[#allocation3 + $0x84] sm:$0xf] %vm974_vm8, %v12933_v35  ;;  %v795_v13 = vsel %vm667_vm6, %v460_v62, %v731_v4  ;;  %vm670_vm9 = vcmp.gt.f32.partialorder %v13854_v8, 0.0  ;;  %vm668_vm10 = vcmp.gt.f32.partialorder %v463_v19, 0.0  ;;  %v13857_v29 = vpop.f32.mrf.mxu0 }
  0xef   :  { %2488 = vst.msk [vmem:[#allocation3 + $0x70] sm:$0xf] %vm974_vm8, %v12779_v36  ;;  %1737 = vst.msk [vmem:[#allocation3 + $0x88] sm:$0xf] %vm974_vm8, %v12779_v36  ;;  %v734_v14 = vmul.f32 0.2, %v13854_v8 }
  0xf0   :  { %2864 = vst.msk [vmem:[#allocation3 + $0x74] sm:$0xf] %vm974_vm8, %v12831_v37  ;;  %2113 = vst.msk [vmem:[#allocation3 + $0x8c] sm:$0xf] %vm974_vm8, %v12831_v37  ;;  %v732_v26 = vmul.f32 0.2, %v463_v19  ;;  %v476_v33 = vpop.f32.mrf.mxu0 }
  0xf1   :  { %2863 = vst.msk [vmem:[#allocation3 + $0x54] sm:$0xf] %vm974_vm8, %v12933_v35  ;;  %3239 = vst.msk [vmem:[#allocation3 + $0x58] sm:$0xf] %vm974_vm8, %v12779_v36  ;;  %v798_v25 = vsel %vm670_vm9, %v13854_v8, %v734_v14  ;;  %v13936_v27 = vld [vmem:[%s17153_s2 + $0x38] sm:$0xff]   ;;  %vm673_vm11 = vcmp.gt.f32.partialorder %v13857_v29, 0.0 }
  0xf2   :  { %3615 = vst.msk [vmem:[#allocation3 + $0x5c] sm:$0xf] %vm974_vm8, %v12831_v37  ;;  %1742 = vst.msk [vmem:[#allocation3 + $0x128] sm:$0xf] %vm974_vm8, %v12887_v42  ;;  %v796_v30 = vsel %vm668_vm10, %v463_v19, %v732_v26  ;;  %v737_v31 = vmul.f32 0.2, %v13857_v29  ;;  %13386 = vmatpush3.bf16.msra.mxu1 %v13936_v27 }
  0xf3   :  { %3244 = vst.msk [vmem:[#allocation3 + $0xf8] sm:$0xf] %vm974_vm8, %v12887_v42  ;;  %985 = vst.msk [vmem:[#allocation3 + $0x140] sm:$0xf] %vm974_vm8, %v12887_v42  ;;  %v3182_v6 = vld [vmem:[#allocation2 + $0x70] sm:$0xff]  ;;  %v1302_v15 = vld [vmem:[#allocation2 + $0x59] sm:$0xff] }
  0xf4   :  { %2493 = vst.msk [vmem:[#allocation3 + $0x110] sm:$0xf] %vm974_vm8, %v12887_v42  ;;  %1364 = vst.msk [vmem:[#allocation3 + $0xe4] sm:$0xf] %vm974_vm8, %v12833_v48  ;;  %v2807_v7 = vld [vmem:[#allocation2 + $0x71] sm:$0x7f]  ;;  %v13097_v9 = vpack.c.bf16 %v3182_v6, %v3182_v6  ;;  %v12837_v21 = vpack.c.bf16 %v1302_v15, %v1302_v15  ;;  %v801_v36 = vsel %vm673_vm11, %v13857_v29, %v737_v31  ;;  %v13858_v42 = vpop.f32.mrf.mxu0 }
  0xf5   :  { %859 = vst.msk [vmem:[#allocation2 + $0x78] sm:$0xff] %vm843_vm2, %v794_v50  ;;  %857 = vst.msk [vmem:[#allocation2 + $0x68] sm:$0xff] %vm843_vm2, %v792_v57  ;;  %v13046_v10 = vpack.c.bf16 %v2807_v7, %v2807_v7  ;;  %v2431_v11 = vld [vmem:[#allocation2 + $0x70] sm:$0x7f]  ;;  %v1678_v16 = vld [vmem:[#allocation2 + $0x60] sm:$0xff]  ;;  %vm671_vm12 = vcmp.gt.f32.partialorder %v476_v33, 0.0 }
  0xf6   :  { %1740 = vst.msk [vmem:[#allocation3 + $0xe8] sm:$0xf] %vm974_vm8, %v12885_v49  ;;  %2866 = vst.msk [vmem:[#allocation3 + $0xb4] sm:$0xf] %vm974_vm8, %v12833_v48  ;;  %v3555_v17 = vld [vmem:[#allocation2 + $0x59] sm:$0xff]  ;;  %v12994_v18 = vpack.c.bf16 %v2431_v11, %v2431_v11  ;;  %v12889_v22 = vpack.c.bf16 %v1678_v16, %v1678_v16  ;;  %v13937_v34 = vld [vmem:[%s17153_s2 + $0x70] sm:$0xff]   ;;  %v479_v47 = vpop.f32.mrf.mxu0 }
  0xf7   :  { %3242 = vst.msk [vmem:[#allocation3 + $0xb8] sm:$0xf] %vm974_vm8, %v12885_v49  ;;  %2115 = vst.msk [vmem:[#allocation3 + $0xcc] sm:$0xf] %vm974_vm8, %v12833_v48  ;;  %v13146_v23 = vpack.c.bf16 %v3555_v17, %v3555_v17  ;;  %v2874_v24 = vsel %vm14709_vm7, %v13046_v10, %v2873_v2  ;;  %v735_v37 = vmul.f32 0.2, %v476_v33  ;;  %13387 = vmatprep.subr.bf16.mxu1 %v13937_v34 }
  0xf8   :  { %983 = vst.msk [vmem:[#allocation3 + $0x100] sm:$0xf] %vm974_vm8, %v12885_v49  ;;  %3617 = vst.msk [vmem:[#allocation3 + $0x9c] sm:$0xf] %vm974_vm8, %v12833_v48  ;;  %v2498_v28 = vsel %vm14709_vm7, %v12994_v18, %v2497_v12  ;;  %v13938_v39 = vld [vmem:[%s17153_s2 + $0x30] sm:$0xff]   ;;  %vm674_vm13 = vcmp.gt.f32.partialorder %v13858_v42, 0.0  ;;  %v13861_v57 = vpop.f32.mrf.mxu0 }
  0xf9   :  { %2491 = vst.msk [vmem:[#allocation3 + $0xd0] sm:$0xf] %vm974_vm8, %v12885_v49  ;;  %2118 = vst.msk [vmem:[#allocation3 + $0x12c] sm:$0xf] %vm974_vm8, %v12939_v55  ;;  %v1369_v43 = vld [vmem:[#allocation3 + $0x184] sm:$0xf]  ;;  %v799_v45 = vsel %vm671_vm12, %v476_v33, %v735_v37  ;;  %13388 = vmatpush3.bf16.msra.mxu1 %v13938_v39 }
  0xfa   :  { %986 = vst.msk [vmem:[#allocation3 + $0x160] sm:$0xf] %vm974_vm8, %v12785_v56  ;;  %3620 = vst.msk [vmem:[#allocation3 + $0xfc] sm:$0xf] %vm974_vm8, %v12939_v55  ;;  %v738_v46 = vmul.f32 0.2, %v13858_v42 }
  0xfb   :  { %2494 = vst.msk [vmem:[#allocation3 + $0x130] sm:$0xf] %vm974_vm8, %v12785_v56  ;;  %1367 = vst.msk [vmem:[#allocation3 + $0x144] sm:$0xf] %vm974_vm8, %v12939_v55  ;;  %v13939_v48 = vld [vmem:[%s17153_s2 + $0x68] sm:$0xff]   ;;  %v13940_v49 = vld [vmem:[%s17153_s2 + $0xf8] sm:$0xff]  }
  0xfc   :  { %1743 = vst.msk [vmem:[#allocation3 + $0x148] sm:$0xf] %vm974_vm8, %v12785_v56  ;;  %2869 = vst.msk [vmem:[#allocation3 + $0x114] sm:$0xf] %vm974_vm8, %v12939_v55  ;;  %v2054_v32 = vld [vmem:[#allocation2 + $0x61] sm:$0xff]  ;;  %v802_v51 = vsel %vm674_vm13, %v13858_v42, %v738_v46  ;;  %vm672_vm14 = vcmp.gt.f32.partialorder %v479_v47, 0.0  ;;  %13389 = vmatprep.subr.bf16.mxu1 %v13939_v48  ;;  %13497 = vmatprep.subr.bf16.mxu0 %v13940_v49 }
  0xfd   :  { %3245 = vst.msk [vmem:[#allocation3 + $0x118] sm:$0xf] %vm974_vm8, %v12785_v56  ;;  %2116 = vst.msk [vmem:[#allocation3 + $0xec] sm:$0xf] %vm974_vm8, %v12937_v63  ;;  %v12941_v35 = vpack.c.bf16 %v2054_v32, %v2054_v32  ;;  %v3556_v40 = vld [vmem:[#allocation2 + $0x61] sm:$0xff]  ;;  %vm677_vm15 = vcmp.gt.f32.partialorder %v13861_v57, 0.0 }
  0xfe   :  { %862 = vst.msk [vmem:[#allocation2 + $0x90] sm:$0xff] %vm843_vm2, %v797_v3  ;;  %860 = vst.msk [vmem:[#allocation2 + $0x80] sm:$0xff] %vm843_vm2, %v795_v13  ;;  %v13147_v44 = vpack.c.bf16 %v3556_v40, %v3556_v40  ;;  %v1303_v50 = vld [vmem:[#allocation2 + $0x61] sm:$0x7f]  ;;  %v736_v53 = vmul.f32 0.2, %v479_v47 }
  0xff   :  { %984 = vst.msk [vmem:[#allocation3 + $0x120] sm:$0xf] %vm974_vm8, %v12783_v0  ;;  %1366 = vst.msk [vmem:[#allocation3 + $0x124] sm:$0xf] %vm974_vm8, %v12835_v1  ;;  %v13941_v54 = vld [vmem:[%s17153_s2 + $0x28] sm:$0xff]   ;;  %v12838_v55 = vpack.c.bf16 %v1303_v50, %v1303_v50  ;;  %v13943_v10 = vld [vmem:[%s17153_s2 + $0x60] sm:$0xff]  }
 0x100   :  { %3618 = vst.msk [vmem:[#allocation3 + $0xbc] sm:$0xf] %vm974_vm8, %v12937_v63  ;;  %1365 = vst.msk [vmem:[#allocation3 + $0x104] sm:$0xf] %vm974_vm8, %v12937_v63  ;;  %v990_v58 = vld [vmem:[#allocation3 + $0x180] sm:$0xf]  ;;  %v800_v59 = vsel %vm672_vm14, %v479_v47, %v736_v53  ;;  %13390 = vmatpush3.bf16.msra.mxu1 %v13941_v54 }
 0x101   :  { %2492 = vst.msk [vmem:[#allocation3 + $0xf0] sm:$0xf] %vm974_vm8, %v12783_v0  ;;  %1741 = vst.msk [vmem:[#allocation3 + $0x108] sm:$0xf] %vm974_vm8, %v12783_v0  ;;  %v741_v60 = vmul.f32 0.2, %v13861_v57  ;;  %13391 = vmatprep.subr.bf16.mxu1 %v13943_v10 }
 0x102   :  { %2868 = vst.msk [vmem:[#allocation3 + $0xf4] sm:$0xf] %vm974_vm8, %v12835_v1  ;;  %2117 = vst.msk [vmem:[#allocation3 + $0x10c] sm:$0xf] %vm974_vm8, %v12835_v1  ;;  %v920_v2 = vld [vmem:[#allocation2 + $0x60] sm:$0x7f] }
 0x103   :  { %2867 = vst.msk [vmem:[#allocation3 + $0xd4] sm:$0xf] %vm974_vm8, %v12937_v63  ;;  %3243 = vst.msk [vmem:[#allocation3 + $0xd8] sm:$0xf] %vm974_vm8, %v12783_v0  ;;  %v1370_v63 = vsel %vm14709_vm7, %v12838_v55, %v1369_v43  ;;  %v492_v0 = vpop.f32.mrf.mxu0  ;;  %v805_v3 = vsel %vm677_vm15, %v13861_v57, %v741_v60  ;;  %v12786_v6 = vpack.c.bf16 %v920_v2, %v920_v2  ;;  %v13944_v13 = vld [vmem:[%s17153_s2 + $0xf0] sm:$0xff]   ;;  %v13945_v20 = vld [vmem:[%s17153_s2 + $0x20] sm:$0xff]  }
 0x104   :  { %3619 = vst.msk [vmem:[#allocation3 + $0xdc] sm:$0xf] %vm974_vm8, %v12835_v1  ;;  %3248 = vst.msk [vmem:[#allocation3 + $0x178] sm:$0xf] %vm974_vm8, %v13097_v9  ;;  %v13942_v1 = vld [vmem:[%s17153_s2 + $0xb8] sm:$0xff]   ;;  %vm675_vm0 = vcmp.gt.f32.partialorder %v492_v0, 0.0  ;;  %13392 = vmatpush3.bf16.msra.mxu1 %v13945_v20 }
 0x105   :  { %2875 = vst [vmem:[#allocation3 + $0x194] sm:$0xf] %v2874_v24  ;;  %863 = vst.msk [vmem:[#allocation2 + $0x98] sm:$0xff] %vm843_vm2, %v798_v25  ;;  %v1830_v38 = vld [vmem:[#allocation2 + $0x90] sm:$0xff]  ;;  %v1074_v61 = vld [vmem:[#allocation2 + $0x80] sm:$0xff]  ;;  %v13862_v9 = vpop.f32.mrf.mxu0  ;;  %13498 = vmatpush3.bf16.msra.mxu0 %v13942_v1  ;;  %v991_v14 = vsel %vm14709_vm7, %v12786_v6, %v990_v58 }
 0x106   :  { %1368 = vst.msk [vmem:[#allocation3 + $0x164] sm:$0xf] %vm974_vm8, %v12837_v21  ;;  %1744 = vst.msk [vmem:[#allocation3 + $0x168] sm:$0xf] %vm974_vm8, %v12889_v22  ;;  %v12905_v41 = vpack.c.bf16 %v1830_v38, %v1830_v38  ;;  %v739_v4 = vmul.f32 0.2, %v492_v0  ;;  %v12800_v7 = vpack.c.bf16 %v1074_v61, %v1074_v61  ;;  %13499 = vmatprep.subr.bf16.mxu0 %v13944_v13 }
 0x107   :  { %2870 = vst.msk [vmem:[#allocation3 + $0x134] sm:$0xf] %vm974_vm8, %v12837_v21  ;;  %2119 = vst.msk [vmem:[#allocation3 + $0x14c] sm:$0xf] %vm974_vm8, %v12837_v21  ;;  %vm678_vm1 = vcmp.gt.f32.partialorder %v13862_v9, 0.0  ;;  %v495_v16 = vpop.f32.mrf.mxu0  ;;  %v13947_v31 = vld [vmem:[%s17153_s2 + $0x58] sm:$0xff]  }
 0x108   :  { %3246 = vst.msk [vmem:[#allocation3 + $0x138] sm:$0xf] %vm974_vm8, %v12889_v22  ;;  %3621 = vst.msk [vmem:[#allocation3 + $0x11c] sm:$0xf] %vm974_vm8, %v13146_v23  ;;  %1884 = vrot.lane.b32.xlu1 %v12905_v41, %s14433_s16  ;;  %1131 = vrot.lane.b32.xlu0 %v12905_v41, %s14433_s16  ;;  %v803_v11 = vsel %vm675_vm0, %v492_v0, %v739_v4  ;;  %v742_v12 = vmul.f32 0.2, %v13862_v9 }
 0x109   :  { %2499 = vst [vmem:[#allocation3 + $0x190] sm:$0xf] %v2498_v28  ;;  %861 = vst.msk [vmem:[#allocation2 + $0x88] sm:$0xff] %vm843_vm2, %v796_v30  ;;  %v2121_v15 = vld [vmem:[#allocation3 + $0x18c] sm:$0xf]  ;;  %vm676_vm3 = vcmp.gt.f32.partialorder %v495_v16, 0.0  ;;  %v13865_v22 = vpop.f32.mrf.mxu0  ;;  %13393 = vmatprep.subr.bf16.mxu1 %v13947_v31 }
 0x10a   :  { %866 = vst.msk [vmem:[#allocation2 + $0xb0] sm:$0xff] %vm843_vm2, %v801_v36  ;;  %864 = vst.msk [vmem:[#allocation2 + $0xa0] sm:$0xff] %vm843_vm2, %v799_v45  ;;  %v2055_v17 = vld [vmem:[#allocation2 + $0x69] sm:$0x7f]  ;;  %v806_v18 = vsel %vm678_vm1, %v13862_v9, %v742_v12  ;;  %v740_v19 = vmul.f32 0.2, %v495_v16 }
 0x10b   :  { %2120 = vst.msk [vmem:[#allocation3 + $0x16c] sm:$0xf] %vm974_vm8, %v12941_v35  ;;  %3622 = vst.msk [vmem:[#allocation3 + $0x13c] sm:$0xf] %vm974_vm8, %v13147_v44  ;;  %v12942_v21 = vpack.c.bf16 %v2055_v17, %v2055_v17  ;;  %v13946_v23 = vld [vmem:[%s17153_s2 + $0xb0] sm:$0xff]   ;;  %vm681_vm5 = vcmp.gt.f32.partialorder %v13865_v22, 0.0  ;;  %v508_v28 = vpop.f32.mrf.mxu0 }
 0x10c   :  { %2871 = vst.msk [vmem:[#allocation3 + $0x154] sm:$0xf] %vm974_vm8, %v13147_v44  ;;  %v2206_v52 = vld [vmem:[#allocation2 + $0x91] sm:$0xff]  ;;  %2634 = vrot.lane.b32.xlu0 %v12905_v41, %s14433_s16  ;;  %1371 = vst [vmem:[#allocation3 + $0x184] sm:$0xf] %v1370_v63  ;;  %v804_v25 = vsel %vm676_vm3, %v495_v16, %v740_v19  ;;  %vm679_vm6 = vcmp.gt.f32.partialorder %v508_v28, 0.0  ;;  %13500 = vmatpush3.bf16.msra.mxu0 %v13946_v23 }
 0x10d   :  { %867 = vst.msk [vmem:[#allocation2 + $0xb8] sm:$0xff] %vm843_vm2, %v802_v51  ;;  %v14770_v56 = vpack.c.bf16 %v2206_v52, %v2206_v52  ;;  %v1077_v62 = vld [vmem:[#allocation2 + $0x98] sm:$0xff]  ;;  %865 = vst.msk [vmem:[#allocation2 + $0xa8] sm:$0xff] %vm843_vm2, %v800_v59  ;;  %v745_v26 = vmul.f32 0.2, %v13865_v22  ;;  %v2122_v27 = vsel %vm14709_vm7, %v12942_v21, %v2121_v15  ;;  %v13948_v32 = vld [vmem:[%s17153_s2 + $0xe8] sm:$0xff]   ;;  %v13866_v34 = vpop.f32.mrf.mxu0 }
 0x10e   :  { %870 = vst.msk [vmem:[#allocation2 + $0xd0] sm:$0xff] %vm843_vm2, %v805_v3  ;;  %v14782_v8 = vpack.c.bf16 %v1077_v62, %v1077_v62  ;;  %868 = vst.msk [vmem:[#allocation2 + $0xc0] sm:$0xff] %vm843_vm2, %v803_v11  ;;  %v743_v30 = vmul.f32 0.2, %v508_v28  ;;  %vm682_vm9 = vcmp.gt.f32.partialorder %v13866_v34, 0.0  ;;  %13501 = vmatprep.subr.bf16.mxu0 %v13948_v32  ;;  %v13949_v38 = vld [vmem:[%s17153_s2 + $0x18] sm:$0xff]  }
 0x10f   :  { %2260 = vrot.lane.b32.xlu1 %v14770_v56, %s14433_s16  ;;  %992 = vst [vmem:[#allocation3 + $0x180] sm:$0xf] %v991_v14  ;;  %871 = vst.msk [vmem:[#allocation2 + $0xd8] sm:$0xff] %vm843_vm2, %v806_v18  ;;  %v809_v29 = vsel %vm681_vm5, %v13865_v22, %v745_v26  ;;  %v746_v37 = vmul.f32 0.2, %v13866_v34  ;;  %v511_v39 = vpop.f32.mrf.mxu0  ;;  %13394 = vmatpush3.bf16.msra.mxu1 %v13949_v38  ;;  %v13950_v42 = vld [vmem:[%s17153_s2 + $0xa8] sm:$0xff]  }
 0x110   :  { %1127 = vrot.lane.b32.xlu0 %v12800_v7, %s14433_s16  ;;  %v1453_v24 = vld [vmem:[#allocation2 + $0x81] sm:$0xff]  ;;  %869 = vst.msk [vmem:[#allocation2 + $0xc8] sm:$0xff] %vm843_vm2, %v804_v25  ;;  %2123 = vst [vmem:[#allocation3 + $0x18c] sm:$0xf] %v2122_v27  ;;  %v1454_v35 = vld [vmem:[#allocation2 + $0x89] sm:$0xff]  ;;  %v807_v36 = vsel %vm679_vm6, %v508_v28, %v743_v30  ;;  %vm680_vm10 = vcmp.gt.f32.partialorder %v511_v39, 0.0  ;;  %13502 = vmatpush3.bf16.msra.mxu0 %v13950_v42 }
 0x111   :  { %v12852_v33 = vpack.c.bf16 %v1453_v24, %v1453_v24  ;;  %874 = vst.msk [vmem:[#allocation2 + $0xf0] sm:$0xff] %vm843_vm2, %v809_v29  ;;  %872 = vst.msk [vmem:[#allocation2 + $0xe0] sm:$0xff] %vm843_vm2, %v807_v36  ;;  %v810_v40 = vsel %vm682_vm9, %v13866_v34, %v746_v37  ;;  %v744_v41 = vmul.f32 0.2, %v511_v39  ;;  %v14827_v43 = vpack.c.bf16 %v1454_v35, %v1454_v35  ;;  %v13869_v44 = vpop.f32.mrf.mxu0  ;;  %v1834_v45 = vld [vmem:[#allocation2 + $0xb0] sm:$0xff]  ;;  %v1075_v50 = vld [vmem:[#allocation2 + $0x88] sm:$0xff] }
 0x112   :  { %875 = vst.msk [vmem:[#allocation2 + $0xf8] sm:$0xff] %vm843_vm2, %v810_v40  ;;  %vm685_vm11 = vcmp.gt.f32.partialorder %v13869_v44, 0.0  ;;  %v749_v47 = vmul.f32 0.2, %v13869_v44  ;;  %v13951_v49 = vld [vmem:[%s17153_s2 + $0x50] sm:$0xff]   ;;  %v13952_v53 = vld [vmem:[%s17153_s2 + $0xe0] sm:$0xff]   ;;  %v14841_v54 = vpack.c.bf16 %v1834_v45, %v1834_v45  ;;  %v12801_v1 = vpack.c.bf16 %v1075_v50, %v1075_v50 }
 0x113   :  { %1133 = vrot.lane.b32.xlu1 %v14782_v8, %s14433_s16  ;;  %v808_v46 = vsel %vm680_vm10, %v511_v39, %v744_v41  ;;  %v524_v48 = vpop.f32.mrf.mxu0  ;;  %13395 = vmatprep.subr.bf16.mxu1 %v13951_v49  ;;  %v13954_v59 = vld [vmem:[%s17153_s2 + $0xa0] sm:$0xff]   ;;  %v13955_v0 = vld [vmem:[%s17153_s2 + $0x48] sm:$0xff]   ;;  %v13956_v3 = vld [vmem:[%s17153_s2 + $0xd8] sm:$0xff]  }
 0x114   :  { %1510 = vrot.lane.b32.xlu0 %v14770_v56, %s14433_s16  ;;  %873 = vst.msk [vmem:[#allocation2 + $0xe8] sm:$0xff] %vm843_vm2, %v808_v46  ;;  %v813_v51 = vsel %vm685_vm11, %v13869_v44, %v749_v47  ;;  %vm683_vm12 = vcmp.gt.f32.partialorder %v524_v48, 0.0  ;;  %v747_v52 = vmul.f32 0.2, %v524_v48  ;;  %13503 = vmatprep.subr.bf16.mxu0 %v13952_v53  ;;  %v1456_v61 = vld [vmem:[#allocation2 + $0x99] sm:$0xff]  ;;  %v13957_v7 = vld [vmem:[%s17153_s2 + $0x8] sm:$0xff]  }
 0x115   :  { %878 = vst.msk [vmem:[#allocation2 + $0x110] sm:$0xff] %vm843_vm2, %v813_v51  ;;  %v13870_v55 = vpop.f32.mrf.mxu0  ;;  %13504 = vmatpush3.bf16.msra.mxu0 %v13954_v59  ;;  %v1832_v9 = vld [vmem:[#allocation2 + $0xa0] sm:$0xff]  ;;  %v13958_v12 = vld [vmem:[%s17153_s2 + $0x98] sm:$0xff]   ;;  %v14872_v13 = vpack.c.bf16 %v1456_v61, %v1456_v61  ;;  %v13960_v18 = vld [vmem:[%s17153_s2 + $0xd0] sm:$0xff]  }
 0x116   :  { %v811_v57 = vsel %vm683_vm12, %v524_v48, %v747_v52  ;;  %vm686_vm13 = vcmp.gt.f32.partialorder %v13870_v55, 0.0  ;;  %v750_v58 = vmul.f32 0.2, %v13870_v55  ;;  %13505 = vmatprep.subr.bf16.mxu0 %v13956_v3  ;;  %v13959_v15 = vld [vmem:[%s17153_s2 + $0x40] sm:$0xff]   ;;  %v14888_v23 = vpack.c.bf16 %v1832_v9, %v1832_v9  ;;  %v13962_v25 = vld [vmem:[%s17153_s2 + $0x90] sm:$0xff]   ;;  %v13963_v28 = vld [vmem:[%s17153_s2 + $0xc8] sm:$0xff]  }
 0x117   :  { %2636 = vrot.lane.b32.xlu1 %v14782_v8, %s14433_s16  ;;  %876 = vst.msk [vmem:[#allocation2 + $0x100] sm:$0xff] %vm843_vm2, %v811_v57  ;;  %v527_v60 = vpop.f32.mrf.mxu0  ;;  %v13961_v22 = vld [vmem:[%s17153_s2] sm:$0xff]   ;;  %v13964_v32 = vld [vmem:[%s17153_s2 + $0x88] sm:$0xff]   ;;  %v2210_v41 = vld [vmem:[#allocation2 + $0xb1] sm:$0xff] }
 0x118   :  { %1886 = vrot.lane.b32.xlu0 %v14782_v8, %s14433_s16  ;;  %v814_v62 = vsel %vm686_vm13, %v13870_v55, %v750_v58  ;;  %vm684_vm14 = vcmp.gt.f32.partialorder %v527_v60, 0.0  ;;  %v748_v63 = vmul.f32 0.2, %v527_v60  ;;  %v13965_v34 = vld [vmem:[%s17153_s2 + $0xc0] sm:$0xff]   ;;  %v1679_v46 = vld [vmem:[#allocation2 + $0x68] sm:$0x7f]  ;;  %v14923_v57 = vpack.c.bf16 %v2210_v41, %v2210_v41 }
 0x119   :  { %879 = vst.msk [vmem:[#allocation2 + $0x118] sm:$0xff] %vm843_vm2, %v814_v62  ;;  %v13873_v2 = vpop.f32.mrf.mxu0  ;;  %13506 = vmatpush3.bf16.msra.mxu0 %v13958_v12  ;;  %v13966_v40 = vld [vmem:[%s17153_s2 + $0x80] sm:$0xff]   ;;  %v2430_v47 = vld [vmem:[#allocation2 + $0x68] sm:$0xff]  ;;  %v12890_v49 = vpack.c.bf16 %v1679_v46, %v1679_v46  ;;  %v1081_v51 = vld [vmem:[#allocation2 + $0xb8] sm:$0xff] }
 0x11a   :  { %v812_v4 = vsel %vm684_vm14, %v527_v60, %v748_v63  ;;  %vm689_vm15 = vcmp.gt.f32.partialorder %v13873_v2, 0.0  ;;  %v753_v6 = vmul.f32 0.2, %v13873_v2  ;;  %13507 = vmatprep.subr.bf16.mxu0 %v13960_v18  ;;  %v2429_v50 = vld [vmem:[#allocation2 + $0x60] sm:$0xff]  ;;  %v12993_v55 = vpack.c.bf16 %v2430_v47, %v2430_v47  ;;  %v3558_v63 = vld [vmem:[#allocation2 + $0x71] sm:$0xff]  ;;  %v1462_v5 = vld [vmem:[#allocation2 + $0xc9] sm:$0xff] }
 0x11b   :  { %1506 = vrot.lane.b32.xlu1 %v12852_v33, %s14433_s16  ;;  %877 = vst.msk [vmem:[#allocation2 + $0x108] sm:$0xff] %vm843_vm2, %v812_v4  ;;  %v12992_v59 = vpack.c.bf16 %v2429_v50, %v2429_v50  ;;  %v14938_v4 = vpack.c.bf16 %v1081_v51, %v1081_v51  ;;  %v1458_v51 = vld [vmem:[#allocation2 + $0xa9] sm:$0xff] }
 0x11c   :  { %3010 = vrot.lane.b32.xlu0 %v14770_v56, %s14433_s16  ;;  %v13953_v56 = vld [vmem:[%s17153_s2 + $0x10] sm:$0xff]   ;;  %v817_v10 = vsel %vm689_vm15, %v13873_v2, %v753_v6  ;;  %2496 = vst.msk [vmem:[#allocation3 + $0x170] sm:$0xf] %vm974_vm8, %v12993_v55  ;;  %3247 = vst.msk [vmem:[#allocation3 + $0x158] sm:$0xf] %vm974_vm8, %v12993_v55 }
 0x11d   :  { %13396 = vmatpush3.bf16.msra.mxu1 %v13953_v56  ;;  %882 = vst.msk [vmem:[#allocation2 + $0x130] sm:$0xff] %vm843_vm2, %v817_v10  ;;  %13508 = vmatpush3.bf16.msra.mxu0 %v13962_v25  ;;  %v2806_v56 = vld [vmem:[#allocation2 + $0x69] sm:$0xff]  ;;  %v3559_v25 = vld [vmem:[#allocation2 + $0x79] sm:$0x7f] }
 0x11e   :  { %13397 = vmatprep.subr.bf16.mxu1 %v13955_v0  ;;  %13509 = vmatprep.subr.bf16.mxu0 %v13963_v28  ;;  %v13045_v60 = vpack.c.bf16 %v2806_v56, %v2806_v56  ;;  %2495 = vst.msk [vmem:[#allocation3 + $0x150] sm:$0xf] %vm974_vm8, %v12992_v59  ;;  %v13150_v28 = vpack.c.bf16 %v3559_v25, %v3559_v25  ;;  %v3249_v59 = vld [vmem:[#allocation3 + $0x198] sm:$0xf] }
 0x11f   :  { %1508 = vrot.lane.b32.xlu1 %v14827_v43, %s14433_s16 }
 0x120   :  { %3386 = vrot.lane.b32.xlu0 %v14782_v8, %s14433_s16  ;;  %v540_v8 = vpop.f32.mrf.mxu0  ;;  %2872 = vst.msk [vmem:[#allocation3 + $0x174] sm:$0xf] %vm974_vm8, %v13045_v60  ;;  %3623 = vst.msk [vmem:[#allocation3 + $0x15c] sm:$0xf] %vm974_vm8, %v13045_v60 }
 0x121   :  { %vm687_vm0 = vcmp.gt.f32.partialorder %v540_v8, 0.0  ;;  %v751_v11 = vmul.f32 0.2, %v540_v8  ;;  %13398 = vmatpush3.bf16.msra.mxu1 %v13957_v7  ;;  %13510 = vmatpush3.bf16.msra.mxu0 %v13964_v32 }
 0x122   :  { %v13874_v14 = vpop.f32.mrf.mxu0  ;;  %13399 = vmatprep.subr.bf16.mxu1 %v13959_v15  ;;  %13511 = vmatprep.subr.bf16.mxu0 %v13965_v34  ;;  %v993_v34 = vld [vmem:[#allocation2 + $0x100] sm:$0xff]  ;;  %v994_v41 = vld [vmem:[#allocation2 + $0x108] sm:$0xff] }
 0x123   :  { %1892 = vrot.lane.b32.xlu1 %v14841_v54, %s14433_s16  ;;  %v815_v16 = vsel %vm687_vm0, %v540_v8, %v751_v11  ;;  %vm690_vm1 = vcmp.gt.f32.partialorder %v13874_v14, 0.0  ;;  %v754_v17 = vmul.f32 0.2, %v13874_v14  ;;  %v1373_v50 = vld [vmem:[#allocation2 + $0x109] sm:$0xff] }
 0x124   :  { %1129 = vrot.lane.b32.xlu0 %v12801_v1, %s14433_s16  ;;  %880 = vst.msk [vmem:[#allocation2 + $0x120] sm:$0xff] %vm843_vm2, %v815_v16  ;;  %v543_v19 = vpop.f32.mrf.mxu0 }
 0x125   :  { %v818_v20 = vsel %vm690_vm1, %v13874_v14, %v754_v17  ;;  %vm688_vm3 = vcmp.gt.f32.partialorder %v543_v19, 0.0  ;;  %v752_v21 = vmul.f32 0.2, %v543_v19  ;;  %13400 = vmatpush3.bf16.msra.mxu1 %v13961_v22  ;;  %13512 = vmatpush3.bf16.msra.mxu0 %v13966_v40  ;;  %v996_v40 = vld [vmem:[#allocation2 + $0x118] sm:$0xff] }
 0x126   :  { %883 = vst.msk [vmem:[#allocation2 + $0x138] sm:$0xff] %vm843_vm2, %v818_v20  ;;  %v13877_v24 = vpop.f32.mrf.mxu0  ;;  %v3625_v20 = vld [vmem:[#allocation3 + $0x19c] sm:$0xf] }
 0x127   :  { %3392 = vrot.lane.b32.xlu1 %v14841_v54, %s14433_s16  ;;  %v816_v26 = vsel %vm688_vm3, %v543_v19, %v752_v21  ;;  %vm693_vm5 = vcmp.gt.f32.partialorder %v13877_v24, 0.0  ;;  %v757_v27 = vmul.f32 0.2, %v13877_v24  ;;  %v2208_v21 = vld [vmem:[#allocation2 + $0xa1] sm:$0xff] }
 0x128   :  { %1882 = vrot.lane.b32.xlu0 %v12801_v1, %s14433_s16  ;;  %881 = vst.msk [vmem:[#allocation2 + $0x128] sm:$0xff] %vm843_vm2, %v816_v26  ;;  %v556_v29 = vpop.f32.mrf.mxu0  ;;  %v13149_v1 = vpack.c.bf16 %v3558_v63, %v3558_v63  ;;  %v14988_v63 = vpack.c.bf16 %v1458_v51, %v1458_v51 }
 0x129   :  { %v821_v30 = vsel %vm693_vm5, %v13877_v24, %v757_v27  ;;  %vm691_vm6 = vcmp.gt.f32.partialorder %v556_v29, 0.0  ;;  %v755_v31 = vmul.f32 0.2, %v556_v29 }
 0x12a   :  { %886 = vst.msk [vmem:[#allocation2 + $0x150] sm:$0xff] %vm843_vm2, %v821_v30  ;;  %v13878_v33 = vpop.f32.mrf.mxu0 }
 0x12b   :  { %1512 = vrot.lane.b32.xlu1 %v14872_v13, %s14433_s16  ;;  %v819_v35 = vsel %vm691_vm6, %v556_v29, %v755_v31  ;;  %vm694_vm9 = vcmp.gt.f32.partialorder %v13878_v33, 0.0  ;;  %v758_v36 = vmul.f32 0.2, %v13878_v33  ;;  %3624 = vst.msk [vmem:[#allocation3 + $0x17c] sm:$0xf] %vm974_vm8, %v13149_v1  ;;  %v14959_v29 = vpack.c.bf16 %v2208_v21, %v2208_v21  ;;  %v1079_v31 = vld [vmem:[#allocation2 + $0xa8] sm:$0xff] }
 0x12c   :  { %2258 = vrot.lane.b32.xlu0 %v14827_v43, %s14433_s16  ;;  %884 = vst.msk [vmem:[#allocation2 + $0x140] sm:$0xff] %vm843_vm2, %v819_v35  ;;  %v559_v37 = vpop.f32.mrf.mxu0  ;;  %v1745_v43 = vld [vmem:[#allocation3 + $0x188] sm:$0xf]  ;;  %v3626_v35 = vsel %vm14709_vm7, %v13150_v28, %v3625_v20  ;;  %v14969_v46 = vpack.c.bf16 %v1079_v31, %v1079_v31  ;;  %v1375_v56 = vld [vmem:[#allocation2 + $0x119] sm:$0xff] }
 0x12d   :  { %v822_v38 = vsel %vm694_vm9, %v13878_v33, %v758_v36  ;;  %vm692_vm10 = vcmp.gt.f32.partialorder %v559_v37, 0.0  ;;  %v756_v39 = vmul.f32 0.2, %v559_v37  ;;  %v1746_v58 = vsel %vm14709_vm7, %v12890_v49, %v1745_v43  ;;  %v1749_v33 = vld [vmem:[#allocation2 + $0x110] sm:$0xff]  ;;  %3627 = vst [vmem:[#allocation3 + $0x19c] sm:$0xf] %v3626_v35 }
 0x12e   :  { %887 = vst.msk [vmem:[#allocation2 + $0x158] sm:$0xff] %vm843_vm2, %v822_v38  ;;  %v13881_v42 = vpop.f32.mrf.mxu0  ;;  %1747 = vst [vmem:[#allocation3 + $0x188] sm:$0xf] %v1746_v58  ;;  %v12787_v38 = vpack.c.bf16 %v993_v34, %v993_v34  ;;  %v12788_v49 = vpack.c.bf16 %v994_v41, %v994_v41  ;;  %v3183_v58 = vld [vmem:[#allocation2 + $0x78] sm:$0x7f] }
 0x12f   :  { %1888 = vrot.lane.b32.xlu1 %v14888_v23, %s14433_s16  ;;  %v820_v44 = vsel %vm692_vm10, %v559_v37, %v756_v39  ;;  %vm697_vm11 = vcmp.gt.f32.partialorder %v13881_v42, 0.0  ;;  %v761_v45 = vmul.f32 0.2, %v13881_v42  ;;  %v12892_v37 = vpack.c.bf16 %v1749_v33, %v1749_v33  ;;  %v2125_v39 = vld [vmem:[#allocation2 + $0x111] sm:$0xff] }
 0x130   :  { %1139 = vrot.lane.b32.xlu0 %v14841_v54, %s14433_s16  ;;  %885 = vst.msk [vmem:[#allocation2 + $0x148] sm:$0xff] %vm843_vm2, %v820_v44  ;;  %v572_v48 = vpop.f32.mrf.mxu0  ;;  %v12944_v44 = vpack.c.bf16 %v2125_v39, %v2125_v39  ;;  %v13098_v1 = vpack.c.bf16 %v3183_v58, %v3183_v58 }
 0x131   :  { %v825_v52 = vsel %vm697_vm11, %v13881_v42, %v761_v45  ;;  %vm695_vm12 = vcmp.gt.f32.partialorder %v572_v48, 0.0  ;;  %v759_v53 = vmul.f32 0.2, %v572_v48  ;;  %v1372_v45 = vld [vmem:[#allocation2 + $0x101] sm:$0xff]  ;;  %1815 = vst.msk [vmem:[#allocation3 + $0x228] sm:$0xf] %vm974_vm8, %v12892_v37 }
 0x132   :  { %890 = vst.msk [vmem:[#allocation2 + $0x170] sm:$0xff] %vm843_vm2, %v825_v52  ;;  %v12839_v55 = vpack.c.bf16 %v1372_v45, %v1372_v45 }
 0x133   :  { %3012 = vrot.lane.b32.xlu1 %v14872_v13, %s14433_s16  ;;  %v823_v61 = vsel %vm695_vm12, %v572_v48, %v759_v53  ;;  %1061 = vst.msk [vmem:[#allocation3 + $0x240] sm:$0xf] %vm974_vm8, %v12892_v37  ;;  %1059 = vst.msk [vmem:[#allocation3 + $0x200] sm:$0xf] %vm974_vm8, %v12787_v38  ;;  %v12790_v48 = vpack.c.bf16 %v996_v40, %v996_v40  ;;  %v1838_v38 = vld [vmem:[#allocation2 + $0xd0] sm:$0xff] }
 0x134   :  { %2642 = vrot.lane.b32.xlu0 %v14841_v54, %s14433_s16  ;;  %v13882_v54 = vpop.f32.mrf.mxu0  ;;  %888 = vst.msk [vmem:[#allocation2 + $0x160] sm:$0xff] %vm843_vm2, %v823_v61 }
 0x135   :  { %vm698_vm13 = vcmp.gt.f32.partialorder %v13882_v54, 0.0  ;;  %v762_v62 = vmul.f32 0.2, %v13882_v54  ;;  %2191 = vst.msk [vmem:[#allocation3 + $0x22c] sm:$0xf] %vm974_vm8, %v12944_v44  ;;  %v2133_v25 = vld [vmem:[#allocation2 + $0x151] sm:$0xff] }
 0x136   :  { %v575_v0 = vpop.f32.mrf.mxu0  ;;  %1440 = vst.msk [vmem:[#allocation3 + $0x244] sm:$0xf] %vm974_vm8, %v12944_v44  ;;  %1062 = vst.msk [vmem:[#allocation3 + $0x260] sm:$0xf] %vm974_vm8, %v12790_v48  ;;  %v12952_v28 = vpack.c.bf16 %v2133_v25, %v2133_v25 }
 0x137   :  { %3388 = vrot.lane.b32.xlu1 %v14888_v23, %s14433_s16  ;;  %v826_v2 = vsel %vm698_vm13, %v13882_v54, %v762_v62  ;;  %vm696_vm14 = vcmp.gt.f32.partialorder %v575_v0, 0.0  ;;  %v760_v3 = vmul.f32 0.2, %v575_v0  ;;  %1816 = vst.msk [vmem:[#allocation3 + $0x248] sm:$0xf] %vm974_vm8, %v12790_v48  ;;  %v12840_v62 = vpack.c.bf16 %v1373_v50, %v1373_v50 }
 0x138   :  { %2262 = vrot.lane.b32.xlu0 %v14872_v13, %s14433_s16  ;;  %891 = vst.msk [vmem:[#allocation2 + $0x178] sm:$0xff] %vm843_vm2, %v826_v2  ;;  %v13885_v6 = vpop.f32.mrf.mxu0 }
 0x139   :  { %v824_v7 = vsel %vm696_vm14, %v575_v0, %v760_v3  ;;  %vm701_vm15 = vcmp.gt.f32.partialorder %v13885_v6, 0.0  ;;  %v765_v8 = vmul.f32 0.2, %v13885_v6  ;;  %1060 = vst.msk [vmem:[#allocation3 + $0x220] sm:$0xf] %vm974_vm8, %v12788_v49  ;;  %v12842_v0 = vpack.c.bf16 %v1375_v56, %v1375_v56  ;;  %v1753_v3 = vld [vmem:[#allocation2 + $0x130] sm:$0xff] }
 0x13a   :  { %889 = vst.msk [vmem:[#allocation2 + $0x168] sm:$0xff] %vm843_vm2, %v824_v7  ;;  %v588_v9 = vpop.f32.mrf.mxu0  ;;  %v1751_v7 = vld [vmem:[#allocation2 + $0x120] sm:$0xff] }
 0x13b   :  { %2268 = vrot.lane.b32.xlu1 %v14923_v57, %s14433_s16  ;;  %v829_v10 = vsel %vm701_vm15, %v13885_v6, %v765_v8  ;;  %vm699_vm0 = vcmp.gt.f32.partialorder %v588_v9, 0.0  ;;  %v763_v11 = vmul.f32 0.2, %v588_v9  ;;  %1814 = vst.msk [vmem:[#allocation3 + $0x208] sm:$0xf] %vm974_vm8, %v12788_v49  ;;  %v12896_v6 = vpack.c.bf16 %v1753_v3, %v1753_v3  ;;  %v2129_v8 = vld [vmem:[#allocation2 + $0x131] sm:$0xff] }
 0x13c   :  { %1135 = vrot.lane.b32.xlu0 %v14888_v23, %s14433_s16  ;;  %894 = vst.msk [vmem:[#allocation2 + $0x190] sm:$0xff] %vm843_vm2, %v829_v10  ;;  %v13886_v12 = vpop.f32.mrf.mxu0  ;;  %v12894_v10 = vpack.c.bf16 %v1751_v7, %v1751_v7  ;;  %v1383_v33 = vld [vmem:[#allocation2 + $0x159] sm:$0xff]  ;;  %v1384_v49 = vld [vmem:[#allocation2 + $0x161] sm:$0x7f]  ;;  %v2202_v3 = vld [vmem:[#allocation3 + $0x38c] sm:$0xf] }
 0x13d   :  { %v827_v14 = vsel %vm699_vm0, %v588_v9, %v763_v11  ;;  %vm702_vm1 = vcmp.gt.f32.partialorder %v13886_v12, 0.0  ;;  %v766_v15 = vmul.f32 0.2, %v13886_v12  ;;  %1438 = vst.msk [vmem:[#allocation3 + $0x204] sm:$0xf] %vm974_vm8, %v12839_v55  ;;  %v1000_v9 = vld [vmem:[#allocation2 + $0x138] sm:$0xff]  ;;  %v12948_v11 = vpack.c.bf16 %v2129_v8, %v2129_v8 }
 0x13e   :  { %892 = vst.msk [vmem:[#allocation2 + $0x180] sm:$0xff] %vm843_vm2, %v827_v14  ;;  %v591_v16 = vpop.f32.mrf.mxu0  ;;  %v2127_v14 = vld [vmem:[#allocation2 + $0x121] sm:$0xff]  ;;  %v12850_v37 = vpack.c.bf16 %v1383_v33, %v1383_v33  ;;  %v2881_v33 = vld [vmem:[#allocation2 + $0x139] sm:$0xff] }
 0x13f   :  { %1141 = vrot.lane.b32.xlu1 %v14938_v4, %s14433_s16  ;;  %v830_v17 = vsel %vm702_vm1, %v13886_v12, %v766_v15  ;;  %vm700_vm3 = vcmp.gt.f32.partialorder %v591_v16, 0.0  ;;  %v764_v18 = vmul.f32 0.2, %v591_v16  ;;  %1439 = vst.msk [vmem:[#allocation3 + $0x224] sm:$0xf] %vm974_vm8, %v12840_v62  ;;  %v12794_v12 = vpack.c.bf16 %v1000_v9, %v1000_v9  ;;  %v1759_v48 = vld [vmem:[#allocation2 + $0x160] sm:$0xff] }
 0x140   :  { %3762 = vrot.lane.b32.xlu0 %v14872_v13, %s14433_s16  ;;  %895 = vst.msk [vmem:[#allocation2 + $0x198] sm:$0xff] %vm843_vm2, %v830_v17  ;;  %v13889_v19 = vpop.f32.mrf.mxu0  ;;  %v12946_v15 = vpack.c.bf16 %v2127_v14, %v2127_v14  ;;  %v1377_v17 = vld [vmem:[#allocation2 + $0x129] sm:$0xff]  ;;  %v12902_v51 = vpack.c.bf16 %v1759_v48, %v1759_v48  ;;  %v1005_v55 = vld [vmem:[#allocation2 + $0x160] sm:$0x7f]  ;;  %vm1166_vm1 = vcmask 1043968   ;;  %v3635_v48 = vld [vmem:[#allocation2 + $0x151] sm:$0xff] }
 0x141   :  { %v828_v22 = vsel %vm700_vm3, %v591_v16, %v764_v18  ;;  %vm705_vm5 = vcmp.gt.f32.partialorder %v13889_v19, 0.0  ;;  %v769_v24 = vmul.f32 0.2, %v13889_v19  ;;  %2190 = vst.msk [vmem:[#allocation3 + $0x20c] sm:$0xf] %vm974_vm8, %v12840_v62  ;;  %v998_v16 = vld [vmem:[#allocation2 + $0x128] sm:$0xff]  ;;  %v12844_v20 = vpack.c.bf16 %v1377_v17, %v1377_v17 }
 0x142   :  { %893 = vst.msk [vmem:[#allocation2 + $0x188] sm:$0xff] %vm843_vm2, %v828_v22  ;;  %v604_v13 = vpop.f32.mrf.mxu0  ;;  %v1379_v18 = vld [vmem:[#allocation2 + $0x139] sm:$0xff]  ;;  %v2136_v56 = vld [vmem:[#allocation2 + $0x169] sm:$0x7f] }
 0x143   :  { %3768 = vrot.lane.b32.xlu1 %v14923_v57, %s14433_s16  ;;  %v833_v26 = vsel %vm705_vm5, %v13889_v19, %v769_v24  ;;  %vm703_vm6 = vcmp.gt.f32.partialorder %v604_v13, 0.0  ;;  %v767_v27 = vmul.f32 0.2, %v604_v13  ;;  %1441 = vst.msk [vmem:[#allocation3 + $0x264] sm:$0xf] %vm974_vm8, %v12842_v0  ;;  %v12792_v19 = vpack.c.bf16 %v998_v16, %v998_v16  ;;  %v1755_v22 = vld [vmem:[#allocation2 + $0x140] sm:$0xff] }
 0x144   :  { %2638 = vrot.lane.b32.xlu0 %v14888_v23, %s14433_s16  ;;  %898 = vst.msk [vmem:[#allocation2 + $0x1b0] sm:$0xff] %vm843_vm2, %v833_v26  ;;  %v13890_v30 = vpop.f32.mrf.mxu0  ;;  %v12846_v21 = vpack.c.bf16 %v1379_v18, %v1379_v18  ;;  %v1004_v26 = vld [vmem:[#allocation2 + $0x158] sm:$0xff]  ;;  %v1826_v9 = vld [vmem:[#allocation3 + $0x388] sm:$0xf] }
 0x145   :  { %v831_v32 = vsel %vm703_vm6, %v604_v13, %v767_v27  ;;  %vm706_vm9 = vcmp.gt.f32.partialorder %v13890_v30, 0.0  ;;  %v770_v23 = vmul.f32 0.2, %v13890_v30  ;;  %2192 = vst.msk [vmem:[#allocation3 + $0x24c] sm:$0xf] %vm974_vm8, %v12842_v0  ;;  %v12898_v13 = vpack.c.bf16 %v1755_v22, %v1755_v22  ;;  %v2131_v27 = vld [vmem:[#allocation2 + $0x141] sm:$0xff] }
 0x146   :  { %896 = vst.msk [vmem:[#allocation2 + $0x1a0] sm:$0xff] %vm843_vm2, %v831_v32  ;;  %v607_v36 = vpop.f32.mrf.mxu0  ;;  %v12950_v31 = vpack.c.bf16 %v2131_v27, %v2131_v27  ;;  %v1002_v32 = vld [vmem:[#allocation2 + $0x148] sm:$0xff]  ;;  %v12799_v0 = vpack.c.bf16 %v1005_v55, %v1005_v55  ;;  %v2877_v18 = vld [vmem:[#allocation2 + $0x119] sm:$0xff]  ;;  %v3255_v27 = vld [vmem:[#allocation2 + $0x130] sm:$0xff] }
 0x147   :  { %2644 = vrot.lane.b32.xlu1 %v14938_v4, %s14433_s16  ;;  %v834_v42 = vsel %vm706_vm9, %v13890_v30, %v770_v23  ;;  %vm704_vm10 = vcmp.gt.f32.partialorder %v607_v36, 0.0  ;;  %v768_v43 = vmul.f32 0.2, %v607_v36  ;;  %1819 = vst.msk [vmem:[#allocation3 + $0x2a8] sm:$0xf] %vm974_vm8, %v12896_v6  ;;  %v12798_v30 = vpack.c.bf16 %v1004_v26, %v1004_v26  ;;  %v1381_v23 = vld [vmem:[#allocation2 + $0x149] sm:$0xff] }
 0x148   :  { %1518 = vrot.lane.b32.xlu0 %v14923_v57, %s14433_s16  ;;  %899 = vst.msk [vmem:[#allocation2 + $0x1b8] sm:$0xff] %vm843_vm2, %v834_v42  ;;  %v13893_v47 = vpop.f32.mrf.mxu0  ;;  %v12796_v35 = vpack.c.bf16 %v1002_v32, %v1002_v32  ;;  %v3629_v22 = vld [vmem:[#allocation2 + $0x121] sm:$0xff]  ;;  %v2879_v26 = vld [vmem:[#allocation2 + $0x129] sm:$0xff] }
 0x149   :  { %v832_v52 = vsel %vm704_vm10, %v607_v36, %v768_v43  ;;  %vm709_vm11 = vcmp.gt.f32.partialorder %v13893_v47, 0.0  ;;  %v773_v53 = vmul.f32 0.2, %v13893_v47  ;;  %1065 = vst.msk [vmem:[#allocation3 + $0x2c0] sm:$0xf] %vm974_vm8, %v12896_v6  ;;  %v12848_v36 = vpack.c.bf16 %v1381_v23, %v1381_v23  ;;  %v2505_v23 = vld [vmem:[#allocation2 + $0x138] sm:$0xff] }
 0x14a   :  { %897 = vst.msk [vmem:[#allocation2 + $0x1a8] sm:$0xff] %vm843_vm2, %v832_v52  ;;  %v620_v54 = vpop.f32.mrf.mxu0  ;;  %v15047_v43 = vpack.c.bf16 %v1838_v38, %v1838_v38  ;;  %v12851_v52 = vpack.c.bf16 %v1384_v49, %v1384_v49  ;;  %v1760_v6 = vld [vmem:[#allocation2 + $0x168] sm:$0x7f]  ;;  %v1085_v38 = vld [vmem:[#allocation2 + $0xd8] sm:$0xff] }
 0x14b   :  { %2264 = vrot.lane.b32.xlu1 %v14959_v29, %s14433_s16  ;;  %v837_v60 = vsel %vm709_vm11, %v13893_v47, %v773_v53  ;;  %vm707_vm12 = vcmp.gt.f32.partialorder %v620_v54, 0.0  ;;  %v771_v61 = vmul.f32 0.2, %v620_v54  ;;  %1817 = vst.msk [vmem:[#allocation3 + $0x268] sm:$0xf] %vm974_vm8, %v12894_v10  ;;  %v2135_v53 = vld [vmem:[#allocation2 + $0x161] sm:$0xff]  ;;  %v12903_v8 = vpack.c.bf16 %v1760_v6, %v1760_v6 }
 0x14c   :  { %1894 = vrot.lane.b32.xlu0 %v14938_v4, %s14433_s16  ;;  %902 = vst.msk [vmem:[#allocation2 + $0x1d0] sm:$0xff] %vm843_vm2, %v837_v60  ;;  %v13894_v34 = vpop.f32.mrf.mxu0  ;;  %v1450_v60 = vld [vmem:[#allocation3 + $0x384] sm:$0xf] }
 0x14d   :  { %v835_v2 = vsel %vm707_vm12, %v620_v54, %v771_v61  ;;  %2195 = vst.msk [vmem:[#allocation3 + $0x2ac] sm:$0xf] %vm974_vm8, %v12948_v11  ;;  %1063 = vst.msk [vmem:[#allocation3 + $0x280] sm:$0xf] %vm974_vm8, %v12894_v10  ;;  %vm710_vm13 = vcmp.gt.f32.partialorder %v13894_v34, 0.0  ;;  %v1460_v54 = vld [vmem:[#allocation2 + $0xb9] sm:$0xff]  ;;  %v12954_v61 = vpack.c.bf16 %v2135_v53, %v2135_v53  ;;  %v1451_v62 = vsel %vm14709_vm7, %v12851_v52, %v1450_v60 }
 0x14e   :  { %900 = vst.msk [vmem:[#allocation2 + $0x1c0] sm:$0xff] %vm843_vm2, %v835_v2  ;;  %v774_v39 = vmul.f32 0.2, %v13894_v34  ;;  %v623_v40 = vpop.f32.mrf.mxu0  ;;  %v12955_v2 = vpack.c.bf16 %v2136_v56, %v2136_v56  ;;  %1452 = vst [vmem:[#allocation3 + $0x384] sm:$0xf] %v1451_v62  ;;  %v15071_v14 = vpack.c.bf16 %v1460_v54, %v1460_v54  ;;  %v2509_v52 = vld [vmem:[#allocation2 + $0x158] sm:$0xff]  ;;  %v15119_v54 = vpack.c.bf16 %v1085_v38, %v1085_v38 }
 0x14f   :  { %1137 = vrot.lane.b32.xlu1 %v14969_v46, %s14433_s16  ;;  %1066 = vst.msk [vmem:[#allocation3 + $0x2e0] sm:$0xf] %vm974_vm8, %v12794_v12  ;;  %1444 = vst.msk [vmem:[#allocation3 + $0x2c4] sm:$0xf] %vm974_vm8, %v12948_v11  ;;  %vm708_vm14 = vcmp.gt.f32.partialorder %v623_v40, 0.0  ;;  %v2885_v53 = vld [vmem:[#allocation2 + $0x159] sm:$0xff] }
 0x150   :  { %3018 = vrot.lane.b32.xlu0 %v14923_v57, %s14433_s16  ;;  %v3250_v57 = vsel %vm14709_vm7, %v13098_v1, %v3249_v59  ;;  %1820 = vst.msk [vmem:[#allocation3 + $0x2c8] sm:$0xf] %vm974_vm8, %v12794_v12  ;;  %2193 = vst.msk [vmem:[#allocation3 + $0x26c] sm:$0xf] %vm974_vm8, %v12946_v15  ;;  %v838_v41 = vsel %vm710_vm13, %v13894_v34, %v774_v39  ;;  %v772_v42 = vmul.f32 0.2, %v623_v40  ;;  %v13897_v44 = vpop.f32.mrf.mxu0 }
 0x151   :  { %3251 = vst [vmem:[#allocation3 + $0x198] sm:$0xf] %v3250_v57  ;;  %1442 = vst.msk [vmem:[#allocation3 + $0x284] sm:$0xf] %vm974_vm8, %v12946_v15  ;;  %vm713_vm15 = vcmp.gt.f32.partialorder %v13897_v44, 0.0  ;;  %v2203_v11 = vsel %vm14709_vm7, %v12955_v2, %v2202_v3  ;;  %v1827_v12 = vsel %vm14709_vm7, %v12903_v8, %v1826_v9  ;;  %v2501_v57 = vld [vmem:[#allocation2 + $0x118] sm:$0xff]  ;;  %v13000_v34 = vpack.c.bf16 %v2505_v23, %v2505_v23 }
 0x152   :  { %1064 = vst.msk [vmem:[#allocation3 + $0x2a0] sm:$0xf] %vm974_vm8, %v12792_v19  ;;  %1443 = vst.msk [vmem:[#allocation3 + $0x2a4] sm:$0xf] %vm974_vm8, %v12844_v20  ;;  %v836_v45 = vsel %vm708_vm14, %v623_v40, %v772_v42  ;;  %v777_v47 = vmul.f32 0.2, %v13897_v44  ;;  %v636_v50 = vpop.f32.mrf.mxu0  ;;  %v12996_v16 = vpack.c.bf16 %v2501_v57, %v2501_v57 }
 0x153   :  { %1516 = vrot.lane.b32.xlu1 %v14988_v63, %s14433_s16  ;;  %1818 = vst.msk [vmem:[#allocation3 + $0x288] sm:$0xf] %vm974_vm8, %v12792_v19  ;;  %2194 = vst.msk [vmem:[#allocation3 + $0x28c] sm:$0xf] %vm974_vm8, %v12844_v20  ;;  %vm711_vm0 = vcmp.gt.f32.partialorder %v636_v50, 0.0  ;;  %v2500_v15 = vld [vmem:[#allocation2 + $0x110] sm:$0xff] }
 0x154   :  { %3394 = vrot.lane.b32.xlu0 %v14938_v4, %s14433_s16  ;;  %1445 = vst.msk [vmem:[#allocation3 + $0x2e4] sm:$0xf] %vm974_vm8, %v12846_v21  ;;  %2196 = vst.msk [vmem:[#allocation3 + $0x2cc] sm:$0xf] %vm974_vm8, %v12846_v21  ;;  %v1757_v4 = vld [vmem:[#allocation2 + $0x150] sm:$0xff]  ;;  %v841_v58 = vsel %vm713_vm15, %v13897_v44, %v777_v47  ;;  %v12995_v17 = vpack.c.bf16 %v2500_v15, %v2500_v15  ;;  %v13048_v21 = vpack.c.bf16 %v2877_v18, %v2877_v18  ;;  %v3257_v39 = vld [vmem:[#allocation2 + $0x140] sm:$0xff]  ;;  %v13898_v60 = vpop.f32.mrf.mxu0 }
 0x155   :  { %v12900_v24 = vpack.c.bf16 %v1757_v4, %v1757_v4  ;;  %1821 = vst.msk [vmem:[#allocation3 + $0x2e8] sm:$0xf] %vm974_vm8, %v12898_v13  ;;  %1067 = vst.msk [vmem:[#allocation3 + $0x300] sm:$0xf] %vm974_vm8, %v12898_v13  ;;  %v775_v59 = vmul.f32 0.2, %v636_v50  ;;  %v13104_v42 = vpack.c.bf16 %v3257_v39, %v3257_v39 }
 0x156   :  { %2199 = vst.msk [vmem:[#allocation3 + $0x32c] sm:$0xf] %vm974_vm8, %v12952_v28  ;;  %1070 = vst.msk [vmem:[#allocation3 + $0x360] sm:$0xf] %vm974_vm8, %v12798_v30  ;;  %v1071_v1 = vld [vmem:[#allocation3 + $0x380] sm:$0xf]  ;;  %v639_v2 = vpop.f32.mrf.mxu0 }
 0x157   :  { %3764 = vrot.lane.b32.xlu1 %v14959_v29, %s14433_s16  ;;  %1823 = vst.msk [vmem:[#allocation3 + $0x328] sm:$0xf] %vm974_vm8, %v12900_v24  ;;  %1069 = vst.msk [vmem:[#allocation3 + $0x340] sm:$0xf] %vm974_vm8, %v12900_v24  ;;  %v839_v7 = vsel %vm711_vm0, %v636_v50, %v775_v59  ;;  %v1072_v10 = vsel %vm14709_vm7, %v12799_v0, %v1071_v1  ;;  %v2876_v19 = vld [vmem:[#allocation2 + $0x111] sm:$0xff]  ;;  %v2503_v24 = vld [vmem:[#allocation2 + $0x128] sm:$0xff]  ;;  %v13056_v59 = vpack.c.bf16 %v2885_v53, %v2885_v53 }
 0x158   :  { %1514 = vrot.lane.b32.xlu0 %v14959_v29, %s14433_s16  ;;  %1448 = vst.msk [vmem:[#allocation3 + $0x344] sm:$0xf] %vm974_vm8, %v12952_v28  ;;  %2197 = vst.msk [vmem:[#allocation3 + $0x2ec] sm:$0xf] %vm974_vm8, %v12950_v31  ;;  %v13047_v4 = vpack.c.bf16 %v2876_v19, %v2876_v19  ;;  %v12998_v25 = vpack.c.bf16 %v2503_v24, %v2503_v24  ;;  %v3631_v28 = vld [vmem:[#allocation2 + $0x131] sm:$0xff]  ;;  %v3633_v40 = vld [vmem:[#allocation2 + $0x141] sm:$0xff] }
 0x159   :  { %1824 = vst.msk [vmem:[#allocation3 + $0x348] sm:$0xf] %vm974_vm8, %v12798_v30  ;;  %1446 = vst.msk [vmem:[#allocation3 + $0x304] sm:$0xf] %vm974_vm8, %v12950_v31  ;;  %v13050_v30 = vpack.c.bf16 %v2879_v26, %v2879_v26  ;;  %v13102_v31 = vpack.c.bf16 %v3255_v27, %v3255_v27  ;;  %v13154_v32 = vpack.c.bf16 %v3631_v28, %v3631_v28  ;;  %v3259_v47 = vld [vmem:[#allocation2 + $0x150] sm:$0xff]  ;;  %vm714_vm3 = vcmp.gt.f32.partialorder %v13898_v60, 0.0 }
 0x15a   :  { %1068 = vst.msk [vmem:[#allocation3 + $0x320] sm:$0xf] %vm974_vm8, %v12796_v35  ;;  %1447 = vst.msk [vmem:[#allocation3 + $0x324] sm:$0xf] %vm974_vm8, %v12848_v36  ;;  %v13106_v50 = vpack.c.bf16 %v3259_v47, %v3259_v47  ;;  %v3261_v3 = vld [vmem:[#allocation2 + $0x160] sm:$0xff]  ;;  %vm712_vm5 = vcmp.gt.f32.partialorder %v639_v2, 0.0 }
 0x15b   :  { %2640 = vrot.lane.b32.xlu1 %v14969_v46, %s14433_s16  ;;  %1822 = vst.msk [vmem:[#allocation3 + $0x308] sm:$0xf] %vm974_vm8, %v12796_v35  ;;  %1449 = vst.msk [vmem:[#allocation3 + $0x364] sm:$0xf] %vm974_vm8, %v12850_v37  ;;  %v13052_v35 = vpack.c.bf16 %v2881_v33, %v2881_v33  ;;  %v3637_v6 = vld [vmem:[#allocation2 + $0x161] sm:$0xff]  ;;  %v13108_v9 = vpack.c.bf16 %v3261_v3, %v3261_v3 }
 0x15c   :  { %1890 = vrot.lane.b32.xlu0 %v14969_v46, %s14433_s16  ;;  %2198 = vst.msk [vmem:[#allocation3 + $0x30c] sm:$0xf] %vm974_vm8, %v12848_v36  ;;  %2200 = vst.msk [vmem:[#allocation3 + $0x34c] sm:$0xf] %vm974_vm8, %v12850_v37  ;;  %v2214_v36 = vld [vmem:[#allocation2 + $0xd1] sm:$0xff]  ;;  %v2212_v26 = vld [vmem:[#allocation2 + $0xc1] sm:$0xff] }
 0x15d   :  { %903 = vst.msk [vmem:[#allocation2 + $0x1d8] sm:$0xff] %vm843_vm2, %v838_v41  ;;  %901 = vst.msk [vmem:[#allocation2 + $0x1c8] sm:$0xff] %vm843_vm2, %v836_v45  ;;  %v15113_v37 = vpack.c.bf16 %v2214_v36, %v2214_v36  ;;  %v2507_v41 = vld [vmem:[#allocation2 + $0x148] sm:$0xff]  ;;  %v776_v8 = vmul.f32 0.2, %v639_v2  ;;  %v15174_v36 = vpack.c.bf16 %v2212_v26, %v2212_v26 }
 0x15e   :  { %906 = vst.msk [vmem:[#allocation2 + $0x1f0] sm:$0xff] %vm843_vm2, %v841_v58  ;;  %904 = vst.msk [vmem:[#allocation2 + $0x1e0] sm:$0xff] %vm843_vm2, %v839_v7  ;;  %v13002_v44 = vpack.c.bf16 %v2507_v41, %v2507_v41  ;;  %v2883_v45 = vld [vmem:[#allocation2 + $0x149] sm:$0xff]  ;;  %v13004_v58 = vpack.c.bf16 %v2509_v52, %v2509_v52  ;;  %v2888_v18 = vld [vmem:[#allocation2 + $0x171] sm:$0x7f] }
 0x15f   :  { %3016 = vrot.lane.b32.xlu1 %v14988_v63, %s14433_s16  ;;  %1825 = vst.msk [vmem:[#allocation3 + $0x368] sm:$0xf] %vm974_vm8, %v12902_v51  ;;  %2201 = vst.msk [vmem:[#allocation3 + $0x36c] sm:$0xf] %vm974_vm8, %v12954_v61  ;;  %v13054_v49 = vpack.c.bf16 %v2883_v45, %v2883_v45  ;;  %v13158_v51 = vpack.c.bf16 %v3635_v48, %v3635_v48  ;;  %v778_v61 = vmul.f32 0.2, %v13898_v60 }
 0x160   :  { %2266 = vrot.lane.b32.xlu0 %v14988_v63, %s14433_s16  ;;  %1073 = vst [vmem:[#allocation3 + $0x380] sm:$0xf] %v1072_v10  ;;  %2204 = vst [vmem:[#allocation3 + $0x38c] sm:$0xf] %v2203_v11  ;;  %v2511_v7 = vld [vmem:[#allocation2 + $0x168] sm:$0xff]  ;;  %v13160_v10 = vpack.c.bf16 %v3637_v6, %v3637_v6 }
 0x161   :  { %1828 = vst [vmem:[#allocation3 + $0x388] sm:$0xf] %v1827_v12  ;;  %2567 = vst.msk [vmem:[#allocation3 + $0x230] sm:$0xf] %vm974_vm8, %v12996_v16  ;;  %v842_v1 = vsel %vm714_vm3, %v13898_v60, %v778_v61  ;;  %v2887_v11 = vld [vmem:[#allocation2 + $0x169] sm:$0xff]  ;;  %v13006_v57 = vpack.c.bf16 %v2511_v7, %v2511_v7  ;;  %v1840_v60 = vld [vmem:[#allocation2 + $0xe0] sm:$0xff] }
 0x162   :  { %2566 = vst.msk [vmem:[#allocation3 + $0x210] sm:$0xf] %vm974_vm8, %v12995_v17  ;;  %3318 = vst.msk [vmem:[#allocation3 + $0x218] sm:$0xf] %vm974_vm8, %v12996_v16  ;;  %v3263_v12 = vld [vmem:[#allocation2 + $0x170] sm:$0xff]  ;;  %v13058_v15 = vpack.c.bf16 %v2887_v11, %v2887_v11  ;;  %v1083_v38 = vld [vmem:[#allocation2 + $0xc8] sm:$0xff] }
 0x163   :  { %1900 = vrot.lane.b32.xlu1 %v15047_v43, %s14433_s16  ;;  %2943 = vst.msk [vmem:[#allocation3 + $0x234] sm:$0xf] %vm974_vm8, %v13048_v21  ;;  %2942 = vst.msk [vmem:[#allocation3 + $0x214] sm:$0xf] %vm974_vm8, %v13047_v4  ;;  %v13110_v16 = vpack.c.bf16 %v3263_v12, %v3263_v12  ;;  %v2954_v19 = vld [vmem:[#allocation3 + $0x394] sm:$0xf]  ;;  %v15184_v41 = vpack.c.bf16 %v1083_v38, %v1083_v38 }
 0x164   :  { %3014 = vrot.lane.b32.xlu0 %v14959_v29, %s14433_s16  ;;  %v1836_v29 = vld [vmem:[#allocation2 + $0xc0] sm:$0xff]  ;;  %3694 = vst.msk [vmem:[#allocation3 + $0x21c] sm:$0xf] %vm974_vm8, %v13048_v21  ;;  %2569 = vst.msk [vmem:[#allocation3 + $0x270] sm:$0xf] %vm974_vm8, %v12998_v25  ;;  %v1187_v38 = vld [vmem:[#allocation2 + $0x198] sm:$0xff] }
 0x165   :  { %v15077_v20 = vpack.c.bf16 %v1836_v29, %v1836_v29  ;;  %3320 = vst.msk [vmem:[#allocation3 + $0x258] sm:$0xf] %vm974_vm8, %v12998_v25  ;;  %2945 = vst.msk [vmem:[#allocation3 + $0x274] sm:$0xf] %vm974_vm8, %v13050_v30  ;;  %v3639_v29 = vld [vmem:[#allocation2 + $0x171] sm:$0xff] }
 0x166   :  { %3321 = vst.msk [vmem:[#allocation3 + $0x278] sm:$0xf] %vm974_vm8, %v13102_v31  ;;  %3697 = vst.msk [vmem:[#allocation3 + $0x27c] sm:$0xf] %vm974_vm8, %v13154_v32  ;;  %v13162_v17 = vpack.c.bf16 %v3639_v29, %v3639_v29  ;;  %v2512_v21 = vld [vmem:[#allocation2 + $0x170] sm:$0x7f] }
 0x167   :  { %3400 = vrot.lane.b32.xlu1 %v15047_v43, %s14433_s16  ;;  %3696 = vst.msk [vmem:[#allocation3 + $0x25c] sm:$0xf] %vm974_vm8, %v13050_v30  ;;  %2570 = vst.msk [vmem:[#allocation3 + $0x290] sm:$0xf] %vm974_vm8, %v13102_v31  ;;  %v13007_v24 = vpack.c.bf16 %v2512_v21, %v2512_v21  ;;  %v3706_v25 = vld [vmem:[#allocation3 + $0x39c] sm:$0xf] }
 0x168   :  { %3390 = vrot.lane.b32.xlu0 %v14969_v46, %s14433_s16  ;;  %v3253_v46 = vld [vmem:[#allocation2 + $0x120] sm:$0xff]  ;;  %2946 = vst.msk [vmem:[#allocation3 + $0x294] sm:$0xf] %vm974_vm8, %v13154_v32  ;;  %2571 = vst.msk [vmem:[#allocation3 + $0x2b0] sm:$0xf] %vm974_vm8, %v13000_v34 }
 0x169   :  { %v13100_v13 = vpack.c.bf16 %v3253_v46, %v3253_v46  ;;  %2947 = vst.msk [vmem:[#allocation3 + $0x2b4] sm:$0xf] %vm974_vm8, %v13052_v35  ;;  %3322 = vst.msk [vmem:[#allocation3 + $0x298] sm:$0xf] %vm974_vm8, %v13000_v34  ;;  %v840_v46 = vsel %vm712_vm5, %v639_v2, %v776_v8  ;;  %v3264_v28 = vld [vmem:[#allocation2 + $0x178] sm:$0x7f] }
 0x16a   :  { %3698 = vst.msk [vmem:[#allocation3 + $0x29c] sm:$0xf] %vm974_vm8, %v13052_v35  ;;  %3323 = vst.msk [vmem:[#allocation3 + $0x2b8] sm:$0xf] %vm974_vm8, %v13104_v42  ;;  %v3330_v30 = vld [vmem:[#allocation3 + $0x398] sm:$0xf]  ;;  %v13111_v23 = vpack.c.bf16 %v3264_v28, %v3264_v28 }
 0x16b   :  { %1520 = vrot.lane.b32.xlu1 %v15071_v14, %s14433_s16  ;;  %3319 = vst.msk [vmem:[#allocation3 + $0x238] sm:$0xf] %vm974_vm8, %v13100_v13  ;;  %2568 = vst.msk [vmem:[#allocation3 + $0x250] sm:$0xf] %vm974_vm8, %v13100_v13  ;;  %v2578_v13 = vld [vmem:[#allocation3 + $0x390] sm:$0xf] }
 0x16c   :  { %3766 = vrot.lane.b32.xlu0 %v14988_v63, %s14433_s16  ;;  %v13152_v63 = vpack.c.bf16 %v3629_v22, %v3629_v22  ;;  %2573 = vst.msk [vmem:[#allocation3 + $0x2f0] sm:$0xf] %vm974_vm8, %v13002_v44  ;;  %2572 = vst.msk [vmem:[#allocation3 + $0x2d0] sm:$0xf] %vm974_vm8, %v13104_v42  ;;  %v13059_v22 = vpack.c.bf16 %v2888_v18, %v2888_v18  ;;  %v2579_v32 = vsel %vm14709_vm7, %v13007_v24, %v2578_v13  ;;  %v1465_v6 = vld [vmem:[#allocation2 + $0xe1] sm:$0x7f] }
 0x16d   :  { %3324 = vst.msk [vmem:[#allocation3 + $0x2d8] sm:$0xf] %vm974_vm8, %v13002_v44  ;;  %2949 = vst.msk [vmem:[#allocation3 + $0x2f4] sm:$0xf] %vm974_vm8, %v13054_v49  ;;  %v15192_v44 = vpack.c.bf16 %v1462_v5, %v1462_v5  ;;  %v2216_v21 = vld [vmem:[#allocation2 + $0xe1] sm:$0xff]  ;;  %v1937_v28 = vld [vmem:[#allocation2 + $0x190] sm:$0xff] }
 0x16e   :  { %3695 = vst.msk [vmem:[#allocation3 + $0x23c] sm:$0xf] %vm974_vm8, %v13152_v63  ;;  %2944 = vst.msk [vmem:[#allocation3 + $0x254] sm:$0xf] %vm974_vm8, %v13152_v63  ;;  %v3640_v63 = vld [vmem:[#allocation2 + $0x179] sm:$0x7f]  ;;  %v2955_v31 = vsel %vm14709_vm7, %v13059_v22, %v2954_v19  ;;  %v12967_v22 = vpack.c.bf16 %v2216_v21, %v2216_v21 }
 0x16f   :  { %1896 = vrot.lane.b32.xlu1 %v15077_v20, %s14433_s16  ;;  %3325 = vst.msk [vmem:[#allocation3 + $0x2f8] sm:$0xf] %vm974_vm8, %v13106_v50  ;;  %3701 = vst.msk [vmem:[#allocation3 + $0x2fc] sm:$0xf] %vm974_vm8, %v13158_v51  ;;  %v13163_v27 = vpack.c.bf16 %v3640_v63, %v3640_v63  ;;  %v1086_v19 = vld [vmem:[#allocation2 + $0xe0] sm:$0x7f] }
 0x170   :  { %1147 = vrot.lane.b32.xlu0 %v15047_v43, %s14433_s16  ;;  %3700 = vst.msk [vmem:[#allocation3 + $0x2dc] sm:$0xf] %vm974_vm8, %v13054_v49  ;;  %2574 = vst.msk [vmem:[#allocation3 + $0x310] sm:$0xf] %vm974_vm8, %v13106_v50  ;;  %v2217_v24 = vld [vmem:[#allocation2 + $0xe9] sm:$0x7f] }
 0x171   :  { %2950 = vst.msk [vmem:[#allocation3 + $0x314] sm:$0xf] %vm974_vm8, %v13158_v51  ;;  %2575 = vst.msk [vmem:[#allocation3 + $0x330] sm:$0xf] %vm974_vm8, %v13004_v58  ;;  %v3707_v33 = vsel %vm14709_vm7, %v13163_v27, %v3706_v25  ;;  %v1464_v51 = vld [vmem:[#allocation2 + $0xd9] sm:$0xff]  ;;  %v12968_v26 = vpack.c.bf16 %v2217_v24, %v2217_v24 }
 0x172   :  { %2951 = vst.msk [vmem:[#allocation3 + $0x334] sm:$0xf] %vm974_vm8, %v13056_v59  ;;  %3326 = vst.msk [vmem:[#allocation3 + $0x318] sm:$0xf] %vm974_vm8, %v13004_v58  ;;  %v1841_v13 = vld [vmem:[#allocation2 + $0xe8] sm:$0x7f] }
 0x173   :  { %3020 = vrot.lane.b32.xlu1 %v15071_v14, %s14433_s16  ;;  %3702 = vst.msk [vmem:[#allocation3 + $0x31c] sm:$0xf] %vm974_vm8, %v13056_v59  ;;  %3327 = vst.msk [vmem:[#allocation3 + $0x338] sm:$0xf] %vm974_vm8, %v13108_v9  ;;  %v12916_v27 = vpack.c.bf16 %v1841_v13, %v1841_v13  ;;  %vm6604_vm5 = vsmask.f32 2304 }
 0x174   :  { %2650 = vrot.lane.b32.xlu0 %v15047_v43, %s14433_s16  ;;  %v13156_v43 = vpack.c.bf16 %v3633_v40, %v3633_v40  ;;  %907 = vst.msk [vmem:[#allocation2 + $0x1f8] sm:$0xff] %vm843_vm2, %v842_v1  ;;  %905 = vst.msk [vmem:[#allocation2 + $0x1e8] sm:$0xff] %vm843_vm2, %v840_v46  ;;  %v12812_v46 = vpack.c.bf16 %v1086_v19, %v1086_v19  ;;  %v1191_v19 = vld [vmem:[#allocation2 + $0x1b8] sm:$0xff] }
 0x175   :  { %3703 = vst.msk [vmem:[#allocation3 + $0x33c] sm:$0xf] %vm974_vm8, %v13160_v10  ;;  %2576 = vst.msk [vmem:[#allocation3 + $0x350] sm:$0xf] %vm974_vm8, %v13108_v9  ;;  %v12864_v9 = vpack.c.bf16 %v1465_v6, %v1465_v6 }
 0x176   :  { %3699 = vst.msk [vmem:[#allocation3 + $0x2bc] sm:$0xf] %vm974_vm8, %v13156_v43  ;;  %2948 = vst.msk [vmem:[#allocation3 + $0x2d4] sm:$0xf] %vm974_vm8, %v13156_v43 }
 0x177   :  { %3396 = vrot.lane.b32.xlu1 %v15077_v20, %s14433_s16  ;;  %2952 = vst.msk [vmem:[#allocation3 + $0x354] sm:$0xf] %vm974_vm8, %v13160_v10  ;;  %2577 = vst.msk [vmem:[#allocation3 + $0x370] sm:$0xf] %vm974_vm8, %v13006_v57 }
 0x178   :  { %2270 = vrot.lane.b32.xlu0 %v15071_v14, %s14433_s16  ;;  %2953 = vst.msk [vmem:[#allocation3 + $0x374] sm:$0xf] %vm974_vm8, %v13058_v15  ;;  %3329 = vst.msk [vmem:[#allocation3 + $0x378] sm:$0xf] %vm974_vm8, %v13110_v16 }
 0x179   :  { %3328 = vst.msk [vmem:[#allocation3 + $0x358] sm:$0xf] %vm974_vm8, %v13006_v57  ;;  %3705 = vst.msk [vmem:[#allocation3 + $0x37c] sm:$0xf] %vm974_vm8, %v13162_v17 }
 0x17a   :  { %v1885_v55 = vpop.permute.xlu1 %1884  ;;  %v1132_v56 = vpop.permute.xlu0 %1131  ;;  %3704 = vst.msk [vmem:[#allocation3 + $0x35c] sm:$0xf] %vm974_vm8, %v13058_v15  ;;  %2956 = vst [vmem:[#allocation3 + $0x394] sm:$0xf] %v2955_v31 }
 0x17b   :  { %2276 = vrot.lane.b32.xlu1 %v15113_v37, %s14433_s16  ;;  %1922 = vst.msk [vmem:[#allocation3 + $0x28] sm:$0xf] %vm1166_vm1, %v1885_v55  ;;  %1169 = vst.msk [vmem:[#allocation3 + $0x40] sm:$0xf] %vm1166_vm1, %v1132_v56  ;;  %v12863_v55 = vpack.c.bf16 %v1464_v51, %v1464_v51 }
 0x17c   :  { %1143 = vrot.lane.b32.xlu0 %v15077_v20, %s14433_s16  ;;  %2580 = vst [vmem:[#allocation3 + $0x390] sm:$0xf] %v2579_v32  ;;  %3708 = vst [vmem:[#allocation3 + $0x39c] sm:$0xf] %v3707_v33  ;;  %v12918_v32 = vpack.c.bf16 %v1937_v28, %v1937_v28  ;;  %v2313_v33 = vld [vmem:[#allocation2 + $0x191] sm:$0xff]  ;;  %v1189_v28 = vld [vmem:[#allocation2 + $0x1a8] sm:$0xff] }
 0x17d   :  { %vm15392_vm2 = vmand %vm1166_vm1, %vm988_vm4 }
 0x17e   :  { %v2635_v62 = vpop.permute.xlu0 %2634 }
 0x17f   :  { %1149 = vrot.lane.b32.xlu1 %v15119_v54, %s14433_s16  ;;  %2673 = vst.msk [vmem:[#allocation3 + $0x10] sm:$0xf] %vm1166_vm1, %v2635_v62 }
 0x180   :  { %3770 = vrot.lane.b32.xlu0 %v15071_v14, %s14433_s16 }
 0x181   :  { %v2261_v0 = vpop.permute.xlu1 %2260 }
 0x182   :  { %2298 = vst.msk [vmem:[#allocation3 + $0x2c] sm:$0xf] %vm1166_vm1, %v2261_v0  ;;  %v1128_v14 = vpop.permute.xlu0 %1127  ;;  %v12915_v0 = vpack.c.bf16 %v1840_v60, %v1840_v60  ;;  %v1563_v60 = vld [vmem:[#allocation2 + $0x199] sm:$0xff] }
 0x183   :  { %3776 = vrot.lane.b32.xlu1 %v15113_v37, %s14433_s16  ;;  %1167 = vst.msk [vmem:[#allocation3] sm:$0xf] %vm1166_vm1, %v1128_v14 }
 0x184   :  { %2646 = vrot.lane.b32.xlu0 %v15077_v20, %s14433_s16  ;;  %v3331_v20 = vsel %vm14709_vm7, %v13111_v23, %v3330_v30  ;;  %v1184_v23 = vld [vmem:[#allocation2 + $0x180] sm:$0xff] }
 0x185   :  { %v1134_v4 = vpop.permute.xlu1 %1133  ;;  %3332 = vst [vmem:[#allocation3 + $0x398] sm:$0xf] %v3331_v20  ;;  %v12970_v20 = vpack.c.bf16 %v2313_v33, %v2313_v33 }
 0x186   :  { %1170 = vst.msk [vmem:[#allocation3 + $0x60] sm:$0xf] %vm1166_vm1, %v1134_v4  ;;  %v1511_v34 = vpop.permute.xlu0 %1510 }
 0x187   :  { %2652 = vrot.lane.b32.xlu1 %v15119_v54, %s14433_s16  ;;  %1547 = vst.msk [vmem:[#allocation3 + $0x44] sm:$0xf] %vm1166_vm1, %v1511_v34 }
 0x188   :  { %1526 = vrot.lane.b32.xlu0 %v15113_v37, %s14433_s16 }
 0x189   :  { %v2637_v35 = vpop.permute.xlu1 %2636  ;;  %v3928_v11 = vld [vmem:[#allocation3 + $0x28] sm:$0xff] }
 0x18a   :  { %2674 = vst.msk [vmem:[#allocation3 + $0x30] sm:$0xf] %vm1166_vm1, %v2637_v35  ;;  %v1887_v39 = vpop.permute.xlu0 %1886 }
 0x18b   :  { %2272 = vrot.lane.b32.xlu1 %v15174_v36, %s14433_s16  ;;  %1923 = vst.msk [vmem:[#allocation3 + $0x48] sm:$0xf] %vm1166_vm1, %v1887_v39 }
 0x18c   :  { %1902 = vrot.lane.b32.xlu0 %v15119_v54, %s14433_s16 }
 0x18d   :  { %v1507_v40 = vpop.permute.xlu1 %1506 }
 0x18e   :  { %1545 = vst.msk [vmem:[#allocation3 + $0x4] sm:$0xf] %vm1166_vm1, %v1507_v40  ;;  %v3011_v42 = vpop.permute.xlu0 %3010  ;;  %v3931_v1 = vld [vmem:[#allocation3 + $0x40] sm:$0xff] }
 0x18f   :  { %1145 = vrot.lane.b32.xlu1 %v15184_v41, %s14433_s16  ;;  %3049 = vst.msk [vmem:[#allocation3 + $0x14] sm:$0xf] %vm1166_vm1, %v3011_v42 }
 0x190   :  { %3026 = vrot.lane.b32.xlu0 %v15113_v37, %s14433_s16 }
 0x191   :  { %v1509_v43 = vpop.permute.xlu1 %1508 }
 0x192   :  { %1546 = vst.msk [vmem:[#allocation3 + $0x24] sm:$0xf] %vm1166_vm1, %v1509_v43  ;;  %v3387_v45 = vpop.permute.xlu0 %3386 }
 0x193   :  { %1524 = vrot.lane.b32.xlu1 %v15192_v44, %s14433_s16  ;;  %3425 = vst.msk [vmem:[#allocation3 + $0x18] sm:$0xf] %vm1166_vm1, %v3387_v45  ;;  %v1185_v45 = vld [vmem:[#allocation2 + $0x188] sm:$0xff] }
 0x194   :  { %3402 = vrot.lane.b32.xlu0 %v15119_v54, %s14433_s16 }
 0x195   :  { %v1893_v47 = vpop.permute.xlu1 %1892  ;;  %v3923_v56 = vld [vmem:[#allocation3] sm:$0xff] }
 0x196   :  { %1926 = vst.msk [vmem:[#allocation3 + $0xa8] sm:$0xf] %vm1166_vm1, %v1893_v47  ;;  %v1130_v48 = vpop.permute.xlu0 %1129 }
 0x197   :  { %3772 = vrot.lane.b32.xlu1 %v15174_v36, %s14433_s16  ;;  %1168 = vst.msk [vmem:[#allocation3 + $0x20] sm:$0xf] %vm1166_vm1, %v1130_v48 }
 0x198   :  { %1522 = vrot.lane.b32.xlu0 %v15174_v36, %s14433_s16 }
 0x199   :  { %v3393_v49 = vpop.permute.xlu1 %3392 }
 0x19a   :  { %3428 = vst.msk [vmem:[#allocation3 + $0x78] sm:$0xf] %vm1166_vm1, %v3393_v49  ;;  %v1883_v37 = vpop.permute.xlu0 %1882  ;;  %v12814_v49 = vpack.c.bf16 %v1185_v45, %v1185_v45  ;;  %v13968_v45 = vld [vmem:[%s17153_s2 + $0x138] sm:$0xff]  }
 0x19b   :  { %2648 = vrot.lane.b32.xlu1 %v15184_v41, %s14433_s16  ;;  %1921 = vst.msk [vmem:[#allocation3 + $0x8] sm:$0xf] %vm1166_vm1, %v1883_v37  ;;  %v1560_v37 = vld [vmem:[#allocation2 + $0x181] sm:$0xff] }
 0x19c   :  { %1898 = vrot.lane.b32.xlu0 %v15184_v41, %s14433_s16 }
 0x19d   :  { %v1513_v50 = vpop.permute.xlu1 %1512 }
 0x19e   :  { %1548 = vst.msk [vmem:[#allocation3 + $0x64] sm:$0xf] %vm1166_vm1, %v1513_v50  ;;  %v2259_v52 = vpop.permute.xlu0 %2258  ;;  %v3927_v54 = vld [vmem:[#allocation3 + $0x20] sm:$0xff]  ;;  %v1561_v50 = vld [vmem:[#allocation2 + $0x189] sm:$0xff] }
 0x19f   :  { %3024 = vrot.lane.b32.xlu1 %v15192_v44, %s14433_s16  ;;  %2297 = vst.msk [vmem:[#allocation3 + $0xc] sm:$0xf] %vm1166_vm1, %v2259_v52  ;;  %v12125_v58 = vcombine.low %v3923_v56, %v3927_v54  ;;  %v12126_v59 = vcombine.high %v3923_v56, %v3927_v54  ;;  %v1941_v56 = vld [vmem:[#allocation2 + $0x1b0] sm:$0xff] }
 0x1a0   :  { %2274 = vrot.lane.b32.xlu0 %v15192_v44, %s14433_s16 }
 0x1a1   :  { %v1889_v53 = vpop.permute.xlu1 %1888  ;;  %5235 = vmatprep.mubr.bf16.mxu1 %v12126_v59  ;;  %v12922_v59 = vpack.c.bf16 %v1941_v56, %v1941_v56  ;;  %v1195_v56 = vld [vmem:[#allocation2 + $0x1d8] sm:$0xff] }
 0x1a2   :  { %1924 = vst.msk [vmem:[#allocation3 + $0x68] sm:$0xf] %vm1166_vm1, %v1889_v53  ;;  %5236 = vmatmul.mubr.bf16.vlgmr.msra.gmra.mxu1 %v12125_v58  ;;  %v1140_v61 = vpop.permute.xlu0 %1139  ;;  %v12865_v53 = vpack.c.bf16 %v1560_v37, %v1560_v37 }
 0x1a3   :  { %1528 = vrot.lane.b32.xlu1 %v12863_v55, %s14433_s16  ;;  %1173 = vst.msk [vmem:[#allocation3 + $0xc0] sm:$0xf] %vm1166_vm1, %v1140_v61 }
 0x1a4   :  { %3022 = vrot.lane.b32.xlu0 %v15174_v36, %s14433_s16  ;;  %v12813_v36 = vpack.c.bf16 %v1184_v23, %v1184_v23  ;;  %v1565_v23 = vld [vmem:[#allocation2 + $0x1a9] sm:$0xff] }
 0x1a5   :  { %v3013_v62 = vpop.permute.xlu1 %3012  ;;  %v3935_v2 = vld [vmem:[#allocation3 + $0x60] sm:$0xff] }
 0x1a6   :  { %3050 = vst.msk [vmem:[#allocation3 + $0x34] sm:$0xf] %vm1166_vm1, %v3013_v62  ;;  %v12134_v3 = vcombine.high %v3931_v1, %v3935_v2  ;;  %v2643_v7 = vpop.permute.xlu0 %2642  ;;  %v3924_v10 = vld [vmem:[#allocation3 + $0x8] sm:$0xff]  ;;  %v12133_v57 = vcombine.low %v3931_v1, %v3935_v2 }
 0x1a7   :  { %1904 = vrot.lane.b32.xlu1 %v12915_v0, %s14433_s16  ;;  %2677 = vst.msk [vmem:[#allocation3 + $0x90] sm:$0xf] %vm1166_vm1, %v2643_v7  ;;  %v12127_v12 = vcombine.low %v3924_v10, %v3928_v11  ;;  %v12128_v29 = vcombine.high %v3924_v10, %v3928_v11  ;;  %v1939_v7 = vld [vmem:[#allocation2 + $0x1a0] sm:$0xff]  ;;  %v2317_v11 = vld [vmem:[#allocation2 + $0x1b1] sm:$0xff] }
 0x1a8   :  { %5243 = vmatprep.mubr.bf16.mxu1 %v12134_v3  ;;  %3398 = vrot.lane.b32.xlu0 %v15184_v41, %s14433_s16  ;;  %v12816_v41 = vpack.c.bf16 %v1187_v38, %v1187_v38  ;;  %v12920_v10 = vpack.c.bf16 %v1939_v7, %v1939_v7 }
 0x1a9   :  { %v3389_v8 = vpop.permute.xlu1 %3388  ;;  %5396 = vmatprep.mubr.bf16.mxu0 %v12128_v29 }
 0x1aa   :  { %3426 = vst.msk [vmem:[#allocation3 + $0x38] sm:$0xf] %vm1166_vm1, %v3389_v8  ;;  %5397 = vmatmul.mubr.bf16.vlgmr.msra.gmra.mxu0 %v12127_v12  ;;  %v2263_v15 = vpop.permute.xlu0 %2262  ;;  %5244 = vmatmul.mubr.bf16.gmra.mxu1 %v12133_v57  ;;  %v12974_v57 = vpack.c.bf16 %v2317_v11, %v2317_v11  ;;  %v13974_v11 = vld [vmem:[%s17153_s2 + $0x1b0] sm:$0xff]  }
 0x1ab   :  { %1530 = vrot.lane.b32.xlu1 %v12864_v9, %s14433_s16  ;;  %2299 = vst.msk [vmem:[#allocation3 + $0x4c] sm:$0xf] %vm1166_vm1, %v2263_v15 }
 0x1ac   :  { %3774 = vrot.lane.b32.xlu0 %v15192_v44, %s14433_s16 }
 0x1ad   :  { %v2269_v16 = vpop.permute.xlu1 %2268 }
 0x1ae   :  { %2302 = vst.msk [vmem:[#allocation3 + $0xac] sm:$0xf] %vm1166_vm1, %v2269_v16  ;;  %v1136_v17 = vpop.permute.xlu0 %1135 }
 0x1af   :  { %3028 = vrot.lane.b32.xlu1 %v12863_v55, %s14433_s16  ;;  %1171 = vst.msk [vmem:[#allocation3 + $0x80] sm:$0xf] %vm1166_vm1, %v1136_v17 }
 0x1b0   :  { %2278 = vrot.lane.b32.xlu0 %v12863_v55, %s14433_s16  ;;  %v12866_v55 = vpack.c.bf16 %v1561_v50, %v1561_v50 }
 0x1b1   :  { %v1142_v18 = vpop.permute.xlu1 %1141 }
 0x1b2   :  { %1174 = vst.msk [vmem:[#allocation3 + $0xe0] sm:$0xf] %vm1166_vm1, %v1142_v18  ;;  %v3763_v14 = vpop.permute.xlu0 %3762  ;;  %v3932_v5 = vld [vmem:[#allocation3 + $0x48] sm:$0xff] }
 0x1b3   :  { %3404 = vrot.lane.b32.xlu1 %v12915_v0, %s14433_s16  ;;  %3801 = vst.msk [vmem:[#allocation3 + $0x1c] sm:$0xf] %vm1166_vm1, %v3763_v14  ;;  %v12868_v0 = vpack.c.bf16 %v1563_v60, %v1563_v60  ;;  %v2319_v60 = vld [vmem:[#allocation2 + $0x1c1] sm:$0xff] }
 0x1b4   :  { %1151 = vrot.lane.b32.xlu0 %v12812_v46, %s14433_s16  ;;  %v2315_v46 = vld [vmem:[#allocation2 + $0x1a1] sm:$0xff] }
 0x1b5   :  { %v3769_v4 = vpop.permute.xlu1 %3768  ;;  %v3944_v16 = vld [vmem:[#allocation3 + $0xa8] sm:$0xff]  ;;  %v15290_v13 = vpack.c.bf16 %v2315_v46, %v2315_v46  ;;  %v1947_v46 = vld [vmem:[#allocation2 + $0x1e0] sm:$0xff] }
 0x1b6   :  { %3804 = vst.msk [vmem:[#allocation3 + $0x7c] sm:$0xf] %vm1166_vm1, %v3769_v4  ;;  %v2639_v63 = vpop.permute.xlu0 %2638  ;;  %v12820_v4 = vpack.c.bf16 %v1191_v19, %v1191_v19  ;;  %v1571_v19 = vld [vmem:[#allocation2 + $0x1d9] sm:$0xff] }
 0x1b7   :  { %2280 = vrot.lane.b32.xlu1 %v12967_v22, %s14433_s16  ;;  %2675 = vst.msk [vmem:[#allocation3 + $0x50] sm:$0xf] %vm1166_vm1, %v2639_v63 }
 0x1b8   :  { %1906 = vrot.lane.b32.xlu0 %v12916_v27, %s14433_s16 }
 0x1b9   :  { %v2645_v25 = vpop.permute.xlu1 %2644 }
 0x1ba   :  { %2678 = vst.msk [vmem:[#allocation3 + $0xb0] sm:$0xf] %vm1166_vm1, %v2645_v25  ;;  %v1519_v30 = vpop.permute.xlu0 %1518 }
 0x1bb   :  { %2282 = vrot.lane.b32.xlu1 %v12968_v26, %s14433_s16  ;;  %1551 = vst.msk [vmem:[#allocation3 + $0xc4] sm:$0xf] %vm1166_vm1, %v1519_v30 }
 0x1bc   :  { %1241 = vrot.lane.b32.xlu0 %v12918_v32, %s14433_s16 }
 0x1bd   :  { %v2265_v31 = vpop.permute.xlu1 %2264 }
 0x1be   :  { %2300 = vst.msk [vmem:[#allocation3 + $0x6c] sm:$0xf] %vm1166_vm1, %v2265_v31  ;;  %v1895_v34 = vpop.permute.xlu0 %1894 }
 0x1bf   :  { %1991 = vrot.lane.b32.xlu1 %v12918_v32, %s14433_s16  ;;  %1927 = vst.msk [vmem:[#allocation3 + $0xc8] sm:$0xf] %vm1166_vm1, %v1895_v34  ;;  %v15297_v32 = vpack.c.bf16 %v1189_v28, %v1189_v28 }
 0x1c0   :  { %1237 = vrot.lane.b32.xlu0 %v12813_v36, %s14433_s16  ;;  %v1945_v36 = vld [vmem:[#allocation2 + $0x1d0] sm:$0xff] }
 0x1c1   :  { %v1138_v35 = vpop.permute.xlu1 %1137 }
 0x1c2   :  { %1172 = vst.msk [vmem:[#allocation3 + $0xa0] sm:$0xf] %vm1166_vm1, %v1138_v35  ;;  %v3019_v39 = vpop.permute.xlu0 %3018  ;;  %v3947_v63 = vld [vmem:[#allocation3 + $0xc0] sm:$0xff]  ;;  %v12870_v35 = vpack.c.bf16 %v1565_v23, %v1565_v23 }
 0x1c3   :  { %2367 = vrot.lane.b32.xlu1 %v12970_v20, %s14433_s16  ;;  %3053 = vst.msk [vmem:[#allocation3 + $0x94] sm:$0xf] %vm1166_vm1, %v3019_v39  ;;  %v12926_v39 = vpack.c.bf16 %v1945_v36, %v1945_v36  ;;  %v1572_v23 = vld [vmem:[#allocation2 + $0x1e1] sm:$0x7f] }
 0x1c4   :  { %1617 = vrot.lane.b32.xlu0 %v12970_v20, %s14433_s16 }
 0x1c5   :  { %v1517_v40 = vpop.permute.xlu1 %1516  ;;  %v3936_v42 = vld [vmem:[#allocation3 + $0x68] sm:$0xff] }
 0x1c6   :  { %1550 = vst.msk [vmem:[#allocation3 + $0xa4] sm:$0xf] %vm1166_vm1, %v1517_v40  ;;  %v12136_v43 = vcombine.high %v3932_v5, %v3936_v42  ;;  %v12135_v44 = vcombine.low %v3932_v5, %v3936_v42  ;;  %v3395_v47 = vpop.permute.xlu0 %3394  ;;  %v1567_v40 = vld [vmem:[#allocation2 + $0x1b9] sm:$0xff] }
 0x1c7   :  { %1243 = vrot.lane.b32.xlu1 %v12816_v41, %s14433_s16  ;;  %3429 = vst.msk [vmem:[#allocation3 + $0x98] sm:$0xf] %vm1166_vm1, %v3395_v47  ;;  %v12872_v42 = vpack.c.bf16 %v1567_v40, %v1567_v40  ;;  %v13969_v47 = vld [vmem:[%s17153_s2 + $0x1f8] sm:$0xff]   ;;  %v2323_v40 = vld [vmem:[#allocation2 + $0x1e1] sm:$0xff] }
 0x1c8   :  { %5404 = vmatprep.mubr.bf16.mxu0 %v12136_v43  ;;  %1993 = vrot.lane.b32.xlu0 %v12816_v41, %s14433_s16  ;;  %v13967_v43 = vld [vmem:[%s17153_s2 + $0x178] sm:$0xff]  }
 0x1c9   :  { %5405 = vmatmul.mubr.bf16.gmra.mxu0 %v12135_v44  ;;  %v3765_v48 = vpop.permute.xlu1 %3764  ;;  %v1943_v44 = vld [vmem:[#allocation2 + $0x1c0] sm:$0xff]  ;;  %13609 = vmatprep.subr.bf16.mxu1 %v13967_v43 }
 0x1ca   :  { %3802 = vst.msk [vmem:[#allocation3 + $0x3c] sm:$0xf] %vm1166_vm1, %v3765_v48  ;;  %v1515_v51 = vpop.permute.xlu0 %1514  ;;  %v13970_v48 = vld [vmem:[%s17153_s2 + $0x1b8] sm:$0xff]   ;;  %v12924_v50 = vpack.c.bf16 %v1943_v44, %v1943_v44  ;;  %13610 = vmatpush3.bf16.msra.mxu1 %v13968_v45  ;;  %13721 = vmatprep.subr.bf16.mxu0 %v13969_v47  ;;  %v12980_v45 = vpack.c.bf16 %v2323_v40, %v2323_v40 }
 0x1cb   :  { %1239 = vrot.lane.b32.xlu1 %v12814_v49, %s14433_s16  ;;  %1549 = vst.msk [vmem:[#allocation3 + $0x84] sm:$0xf] %vm1166_vm1, %v1515_v51  ;;  %v2321_v51 = vld [vmem:[#allocation2 + $0x1d1] sm:$0xff]  ;;  %13722 = vmatpush3.bf16.msra.mxu0 %v13970_v48 }
 0x1cc   :  { %1613 = vrot.lane.b32.xlu0 %v12865_v53, %s14433_s16 }
 0x1cd   :  { %v2641_v52 = vpop.permute.xlu1 %2640  ;;  %v3943_v2 = vld [vmem:[#allocation3 + $0xa0] sm:$0xff] }
 0x1ce   :  { %2676 = vst.msk [vmem:[#allocation3 + $0x70] sm:$0xf] %vm1166_vm1, %v2641_v52  ;;  %v1891_v54 = vpop.permute.xlu0 %1890 }
 0x1cf   :  { %1615 = vrot.lane.b32.xlu1 %v12866_v55, %s14433_s16  ;;  %1925 = vst.msk [vmem:[#allocation3 + $0x88] sm:$0xf] %vm1166_vm1, %v1891_v54 }
 0x1d0   :  { %1989 = vrot.lane.b32.xlu0 %v12814_v49, %s14433_s16 }
 0x1d1   :  { %v3017_v58 = vpop.permute.xlu1 %3016 }
 0x1d2   :  { %3052 = vst.msk [vmem:[#allocation3 + $0x74] sm:$0xf] %vm1166_vm1, %v3017_v58  ;;  %v2267_v61 = vpop.permute.xlu0 %2266  ;;  %v3939_v1 = vld [vmem:[#allocation3 + $0x80] sm:$0xff] }
 0x1d3   :  { %1999 = vrot.lane.b32.xlu1 %v12922_v59, %s14433_s16  ;;  %2301 = vst.msk [vmem:[#allocation3 + $0x8c] sm:$0xf] %vm1166_vm1, %v2267_v61  ;;  %v12142_v3 = vcombine.high %v3939_v1, %v3943_v2  ;;  %v12141_v6 = vcombine.low %v3939_v1, %v3943_v2 }
 0x1d4   :  { %2365 = vrot.lane.b32.xlu0 %v12866_v55, %s14433_s16  ;;  %v12978_v55 = vpack.c.bf16 %v2321_v51, %v2321_v51 }
 0x1d5   :  { %v1901_v62 = vpop.permute.xlu1 %1900  ;;  %5251 = vmatprep.mubr.bf16.mxu1 %v12142_v3  ;;  %v13971_v3 = vld [vmem:[%s17153_s2 + $0x170] sm:$0xff]  }
 0x1d6   :  { %1930 = vst.msk [vmem:[#allocation3 + $0x128] sm:$0xf] %vm1166_vm1, %v1901_v62  ;;  %v3015_v8 = vpop.permute.xlu0 %3014  ;;  %5252 = vmatmul.mubr.bf16.gmra.mxu1 %v12141_v6  ;;  %13611 = vmatprep.subr.bf16.mxu1 %v13971_v3  ;;  %v13982_v3 = vld [vmem:[%s17153_s2 + $0x1e0] sm:$0xff]  }
 0x1d7   :  { %1619 = vrot.lane.b32.xlu1 %v12868_v0, %s14433_s16  ;;  %3051 = vst.msk [vmem:[#allocation3 + $0x54] sm:$0xf] %vm1166_vm1, %v3015_v8  ;;  %v1193_v8 = vld [vmem:[#allocation2 + $0x1c8] sm:$0xff] }
 0x1d8   :  { %1249 = vrot.lane.b32.xlu0 %v12922_v59, %s14433_s16  ;;  %v12824_v59 = vpack.c.bf16 %v1195_v56, %v1195_v56 }
 0x1d9   :  { %v3401_v9 = vpop.permute.xlu1 %3400 }
 0x1da   :  { %3432 = vst.msk [vmem:[#allocation3 + $0xf8] sm:$0xf] %vm1166_vm1, %v3401_v9  ;;  %v3391_v12 = vpop.permute.xlu0 %3390  ;;  %v3940_v15 = vld [vmem:[#allocation3 + $0x88] sm:$0xff]  ;;  %v13972_v9 = vld [vmem:[%s17153_s2 + $0x130] sm:$0xff]  }
 0x1db   :  { %1995 = vrot.lane.b32.xlu1 %v12920_v10, %s14433_s16  ;;  %3427 = vst.msk [vmem:[#allocation3 + $0x58] sm:$0xf] %vm1166_vm1, %v3391_v12  ;;  %v12144_v17 = vcombine.high %v3940_v15, %v3944_v16  ;;  %v12143_v18 = vcombine.low %v3940_v15, %v3944_v16  ;;  %13612 = vmatpush3.bf16.msra.mxu1 %v13972_v9  ;;  %v1569_v15 = vld [vmem:[#allocation2 + $0x1c9] sm:$0xff] }
 0x1dc   :  { %2369 = vrot.lane.b32.xlu0 %v12868_v0, %s14433_s16  ;;  %v12976_v0 = vpack.c.bf16 %v2319_v60, %v2319_v60 }
 0x1dd   :  { %v1521_v29 = vpop.permute.xlu1 %1520  ;;  %5412 = vmatprep.mubr.bf16.mxu0 %v12144_v17 }
 0x1de   :  { %1552 = vst.msk [vmem:[#allocation3 + $0xe4] sm:$0xf] %vm1166_vm1, %v1521_v29  ;;  %5413 = vmatmul.mubr.bf16.gmra.mxu0 %v12143_v18  ;;  %v3767_v21 = vpop.permute.xlu0 %3766  ;;  %v12874_v18 = vpack.c.bf16 %v1569_v15, %v1569_v15  ;;  %v13986_v15 = vld [vmem:[%s17153_s2 + $0x1d8] sm:$0xff]  }
 0x1df   :  { %2375 = vrot.lane.b32.xlu1 %v12974_v57, %s14433_s16  ;;  %3803 = vst.msk [vmem:[#allocation3 + $0x5c] sm:$0xf] %vm1166_vm1, %v3767_v21 }
 0x1e0   :  { %1245 = vrot.lane.b32.xlu0 %v12920_v10, %s14433_s16  ;;  %v13973_v10 = vld [vmem:[%s17153_s2 + $0x1f0] sm:$0xff]  }
 0x1e1   :  { %v1897_v14 = vpop.permute.xlu1 %1896  ;;  %13723 = vmatprep.subr.bf16.mxu0 %v13973_v10  ;;  %v2592_v10 = vld [vmem:[#allocation2 + $0xe8] sm:$0xff] }
 0x1e2   :  { %1928 = vst.msk [vmem:[#allocation3 + $0xe8] sm:$0xf] %vm1166_vm1, %v1897_v14  ;;  %v1148_v22 = vpop.permute.xlu0 %1147  ;;  %13724 = vmatpush3.bf16.msra.mxu0 %v13974_v11  ;;  %v2591_v11 = vld [vmem:[#allocation2 + $0xe0] sm:$0xff] }
 0x1e3   :  { %1251 = vrot.lane.b32.xlu1 %v12820_v4, %s14433_s16  ;;  %1177 = vst.msk [vmem:[#allocation3 + $0x140] sm:$0xf] %vm1166_vm1, %v1148_v22  ;;  %v13975_v22 = vld [vmem:[%s17153_s2 + $0x168] sm:$0xff]  }
 0x1e4   :  { %1625 = vrot.lane.b32.xlu0 %v12974_v57, %s14433_s16  ;;  %v12822_v57 = vpack.c.bf16 %v1193_v8, %v1193_v8  ;;  %13613 = vmatprep.subr.bf16.mxu1 %v13975_v22  ;;  %v2968_v22 = vld [vmem:[#allocation2 + $0xe9] sm:$0xff] }
 0x1e5   :  { %v3021_v24 = vpop.permute.xlu1 %3020  ;;  %v3951_v25 = vld [vmem:[#allocation3 + $0xe0] sm:$0xff] }
 0x1e6   :  { %3054 = vst.msk [vmem:[#allocation3 + $0xb4] sm:$0xf] %vm1166_vm1, %v3021_v24  ;;  %v12150_v26 = vcombine.high %v3947_v63, %v3951_v25  ;;  %v12149_v27 = vcombine.low %v3947_v63, %v3951_v25  ;;  %v2651_v30 = vpop.permute.xlu0 %2650  ;;  %v12928_v25 = vpack.c.bf16 %v1947_v46, %v1947_v46 }
 0x1e7   :  { %2371 = vrot.lane.b32.xlu1 %v15290_v13, %s14433_s16  ;;  %2681 = vst.msk [vmem:[#allocation3 + $0x110] sm:$0xf] %vm1166_vm1, %v2651_v30 }
 0x1e8   :  { %5259 = vmatprep.mubr.bf16.mxu1 %v12150_v26  ;;  %2001 = vrot.lane.b32.xlu0 %v12820_v4, %s14433_s16  ;;  %v12876_v4 = vpack.c.bf16 %v1571_v19, %v1571_v19 }
 0x1e9   :  { %5260 = vmatmul.mubr.bf16.gmra.mxu1 %v12149_v27  ;;  %v3397_v31 = vpop.permute.xlu1 %3396 }
 0x1ea   :  { %3430 = vst.msk [vmem:[#allocation3 + $0xb8] sm:$0xf] %vm1166_vm1, %v3397_v31  ;;  %v2271_v33 = vpop.permute.xlu0 %2270  ;;  %v3717_v31 = vld [vmem:[#allocation2 + $0xd9] sm:$0xff] }
 0x1eb   :  { %1247 = vrot.lane.b32.xlu1 %v15297_v32, %s14433_s16  ;;  %2303 = vst.msk [vmem:[#allocation3 + $0xcc] sm:$0xf] %vm1166_vm1, %v2271_v33  ;;  %v13976_v33 = vld [vmem:[%s17153_s2 + $0x128] sm:$0xff]  }
 0x1ec   :  { %1621 = vrot.lane.b32.xlu0 %v15290_v13, %s14433_s16  ;;  %13614 = vmatpush3.bf16.msra.mxu1 %v13976_v33 }
 0x1ed   :  { %v2277_v34 = vpop.permute.xlu1 %2276 }
 0x1ee   :  { %2306 = vst.msk [vmem:[#allocation3 + $0x12c] sm:$0xf] %vm1166_vm1, %v2277_v34  ;;  %v1144_v20 = vpop.permute.xlu0 %1143  ;;  %v13977_v34 = vld [vmem:[%s17153_s2 + $0x1e8] sm:$0xff]  }
 0x1ef   :  { %1623 = vrot.lane.b32.xlu1 %v12870_v35, %s14433_s16  ;;  %1175 = vst.msk [vmem:[#allocation3 + $0x100] sm:$0xf] %vm1166_vm1, %v1144_v20  ;;  %13725 = vmatprep.subr.bf16.mxu0 %v13977_v34 }
 0x1f0   :  { %1997 = vrot.lane.b32.xlu0 %v15297_v32, %s14433_s16 }
 0x1f1   :  { %v1150_v38 = vpop.permute.xlu1 %1149 }
 0x1f2   :  { %1178 = vst.msk [vmem:[#allocation3 + $0x160] sm:$0xf] %vm1166_vm1, %v1150_v38  ;;  %v3771_v41 = vpop.permute.xlu0 %3770  ;;  %v3948_v1 = vld [vmem:[#allocation3 + $0xc8] sm:$0xff]  ;;  %v13172_v38 = vpack.c.bf16 %v3717_v31, %v3717_v31 }
 0x1f3   :  { %2007 = vrot.lane.b32.xlu1 %v12926_v39, %s14433_s16  ;;  %3805 = vst.msk [vmem:[#allocation3 + $0x9c] sm:$0xf] %vm1166_vm1, %v3771_v41 }
 0x1f4   :  { %2373 = vrot.lane.b32.xlu0 %v12870_v35, %s14433_s16  ;;  %v13978_v35 = vld [vmem:[%s17153_s2 + $0x1a8] sm:$0xff]  }
 0x1f5   :  { %v3777_v5 = vpop.permute.xlu1 %3776  ;;  %13726 = vmatpush3.bf16.msra.mxu0 %v13978_v35  ;;  %v3344_v35 = vld [vmem:[#allocation2 + $0xf0] sm:$0xff] }
 0x1f6   :  { %3808 = vst.msk [vmem:[#allocation3 + $0xfc] sm:$0xf] %vm1166_vm1, %v3777_v5  ;;  %v2647_v49 = vpop.permute.xlu0 %2646  ;;  %v1557_v5 = vld [vmem:[#allocation3 + $0x184] sm:$0xf]  ;;  %13727 = vmatprep.subr.bf16.mxu0 %v13982_v3  ;;  %v3980_v3 = vld [vmem:[#allocation3 + $0x1c8] sm:$0xff] }
 0x1f7   :  { %1627 = vrot.lane.b32.xlu1 %v12872_v42, %s14433_s16  ;;  %2679 = vst.msk [vmem:[#allocation3 + $0xd0] sm:$0xf] %vm1166_vm1, %v2647_v49 }
 0x1f8   :  { %1257 = vrot.lane.b32.xlu0 %v12926_v39, %s14433_s16  ;;  %v12877_v39 = vpack.c.bf16 %v1572_v23, %v1572_v23  ;;  %v13071_v23 = vpack.c.bf16 %v2968_v22, %v2968_v22 }
 0x1f9   :  { %v2653_v37 = vpop.permute.xlu1 %2652 }
 0x1fa   :  { %2682 = vst.msk [vmem:[#allocation3 + $0x130] sm:$0xf] %vm1166_vm1, %v2653_v37  ;;  %v1527_v52 = vpop.permute.xlu0 %1526 }
 0x1fb   :  { %2003 = vrot.lane.b32.xlu1 %v12924_v50, %s14433_s16  ;;  %1555 = vst.msk [vmem:[#allocation3 + $0x144] sm:$0xf] %vm1166_vm1, %v1527_v52 }
 0x1fc   :  { %2377 = vrot.lane.b32.xlu0 %v12872_v42, %s14433_s16  ;;  %v3960_v42 = vld [vmem:[#allocation3 + $0x128] sm:$0xff] }
 0x1fd   :  { %v2273_v53 = vpop.permute.xlu1 %2272 }
 0x1fe   :  { %2304 = vst.msk [vmem:[#allocation3 + $0xec] sm:$0xf] %vm1166_vm1, %v2273_v53  ;;  %v1903_v54 = vpop.permute.xlu0 %1902  ;;  %v1196_v53 = vld [vmem:[#allocation2 + $0x1e0] sm:$0x7f] }
 0x1ff   :  { %2383 = vrot.lane.b32.xlu1 %v12978_v55, %s14433_s16  ;;  %1931 = vst.msk [vmem:[#allocation3 + $0x148] sm:$0xf] %vm1166_vm1, %v1903_v54  ;;  %v13979_v54 = vld [vmem:[%s17153_s2 + $0x160] sm:$0xff]  }
 0x200   :  { %1253 = vrot.lane.b32.xlu0 %v12924_v50, %s14433_s16  ;;  %13615 = vmatprep.subr.bf16.mxu1 %v13979_v54 }
 0x201   :  { %v1146_v58 = vpop.permute.xlu1 %1145 }
 0x202   :  { %1176 = vst.msk [vmem:[#allocation3 + $0x120] sm:$0xf] %vm1166_vm1, %v1146_v58  ;;  %v3027_v61 = vpop.permute.xlu0 %3026  ;;  %v3963_v47 = vld [vmem:[#allocation3 + $0x140] sm:$0xff] }
 0x203   :  { %1259 = vrot.lane.b32.xlu1 %v12824_v59, %s14433_s16  ;;  %3057 = vst.msk [vmem:[#allocation3 + $0x114] sm:$0xf] %vm1166_vm1, %v3027_v61  ;;  %v13980_v58 = vld [vmem:[%s17153_s2 + $0x120] sm:$0xff]   ;;  %v12825_v61 = vpack.c.bf16 %v1196_v53, %v1196_v53  ;;  %v3976_v53 = vld [vmem:[#allocation3 + $0x1a8] sm:$0xff] }
 0x204   :  { %1633 = vrot.lane.b32.xlu0 %v12978_v55, %s14433_s16  ;;  %v3718_v55 = vld [vmem:[#allocation2 + $0xe1] sm:$0xff]  ;;  %13616 = vmatpush3.bf16.msra.mxu1 %v13980_v58 }
 0x205   :  { %v1525_v62 = vpop.permute.xlu1 %1524  ;;  %v3952_v2 = vld [vmem:[#allocation3 + $0xe8] sm:$0xff] }
 0x206   :  { %1554 = vst.msk [vmem:[#allocation3 + $0x124] sm:$0xf] %vm1166_vm1, %v1525_v62  ;;  %v12152_v6 = vcombine.high %v3948_v1, %v3952_v2  ;;  %v12151_v7 = vcombine.low %v3948_v1, %v3952_v2  ;;  %v3403_v12 = vpop.permute.xlu0 %3402  ;;  %v13173_v62 = vpack.c.bf16 %v3718_v55, %v3718_v55  ;;  %v1948_v1 = vld [vmem:[#allocation2 + $0x1e8] sm:$0x7f]  ;;  %v13981_v2 = vld [vmem:[%s17153_s2 + $0x158] sm:$0xff]  }
 0x207   :  { %2379 = vrot.lane.b32.xlu1 %v12976_v0, %s14433_s16  ;;  %3433 = vst.msk [vmem:[#allocation3 + $0x118] sm:$0xf] %vm1166_vm1, %v3403_v12  ;;  %v12929_v9 = vpack.c.bf16 %v1948_v1, %v1948_v1  ;;  %13617 = vmatprep.subr.bf16.mxu1 %v13981_v2  ;;  %v13983_v12 = vld [vmem:[%s17153_s2 + $0x118] sm:$0xff]   ;;  %v13998_v1 = vld [vmem:[%s17153_s2 + $0x180] sm:$0xff]  }
 0x208   :  { %5420 = vmatprep.mubr.bf16.mxu0 %v12152_v6  ;;  %2009 = vrot.lane.b32.xlu0 %v12824_v59, %s14433_s16 }
 0x209   :  { %5421 = vmatmul.mubr.bf16.gmra.mxu0 %v12151_v7  ;;  %v3773_v29 = vpop.permute.xlu1 %3772  ;;  %13618 = vmatpush3.bf16.msra.mxu1 %v13983_v12  ;;  %v3345_v12 = vld [vmem:[#allocation2 + $0xf8] sm:$0x7f] }
 0x20a   :  { %3806 = vst.msk [vmem:[#allocation3 + $0xbc] sm:$0xf] %vm1166_vm1, %v3773_v29  ;;  %v1523_v16 = vpop.permute.xlu0 %1522  ;;  %v13984_v29 = vld [vmem:[%s17153_s2 + $0x1a0] sm:$0xff]  }
 0x20b   :  { %1255 = vrot.lane.b32.xlu1 %v12822_v57, %s14433_s16  ;;  %1553 = vst.msk [vmem:[#allocation3 + $0x104] sm:$0xf] %vm1166_vm1, %v1523_v16  ;;  %13728 = vmatpush3.bf16.msra.mxu0 %v13984_v29  ;;  %v13987_v16 = vld [vmem:[%s17153_s2 + $0x110] sm:$0xff]  }
 0x20c   :  { %1629 = vrot.lane.b32.xlu0 %v12976_v0, %s14433_s16  ;;  %v2324_v0 = vld [vmem:[#allocation2 + $0x1e9] sm:$0x7f]  ;;  %13729 = vmatprep.subr.bf16.mxu0 %v13986_v15 }
 0x20d   :  { %v2649_v17 = vpop.permute.xlu1 %2648  ;;  %v3959_v27 = vld [vmem:[#allocation3 + $0x120] sm:$0xff]  ;;  %v12981_v8 = vpack.c.bf16 %v2324_v0, %v2324_v0  ;;  %v2593_v0 = vld [vmem:[#allocation2 + $0xf0] sm:$0x7f] }
 0x20e   :  { %2680 = vst.msk [vmem:[#allocation3 + $0xf0] sm:$0xf] %vm1166_vm1, %v2649_v17  ;;  %v1899_v21 = vpop.permute.xlu0 %1898  ;;  %v13988_v17 = vld [vmem:[%s17153_s2 + $0x198] sm:$0xff]  }
 0x20f   :  { %1631 = vrot.lane.b32.xlu1 %v12874_v18, %s14433_s16  ;;  %1929 = vst.msk [vmem:[#allocation3 + $0x108] sm:$0xf] %vm1166_vm1, %v1899_v21  ;;  %13730 = vmatpush3.bf16.msra.mxu0 %v13988_v17 }
 0x210   :  { %2005 = vrot.lane.b32.xlu0 %v12822_v57, %s14433_s16  ;;  %v13985_v57 = vld [vmem:[%s17153_s2 + $0x150] sm:$0xff]  }
 0x211   :  { %v3025_v14 = vpop.permute.xlu1 %3024  ;;  %13619 = vmatprep.subr.bf16.mxu1 %v13985_v57 }
 0x212   :  { %3056 = vst.msk [vmem:[#allocation3 + $0xf4] sm:$0xf] %vm1166_vm1, %v3025_v14  ;;  %v2275_v24 = vpop.permute.xlu0 %2274  ;;  %v3955_v26 = vld [vmem:[#allocation3 + $0x100] sm:$0xff]  ;;  %v13019_v14 = vpack.c.bf16 %v2592_v10, %v2592_v10  ;;  %13620 = vmatpush3.bf16.msra.mxu1 %v13987_v16  ;;  %v13020_v10 = vpack.c.bf16 %v2593_v0, %v2593_v0  ;;  %v3819_v0 = vld [vmem:[#allocation2 + $0x1b1] sm:$0xff] }
 0x213   :  { %1635 = vrot.lane.b32.xlu1 %v12876_v4, %s14433_s16  ;;  %2305 = vst.msk [vmem:[#allocation3 + $0x10c] sm:$0xf] %vm1166_vm1, %v2275_v24  ;;  %v12158_v28 = vcombine.high %v3955_v26, %v3959_v27  ;;  %v12157_v30 = vcombine.low %v3955_v26, %v3959_v27  ;;  %v13989_v24 = vld [vmem:[%s17153_s2 + $0x148] sm:$0xff]   ;;  %v13992_v26 = vld [vmem:[%s17153_s2 + $0x190] sm:$0xff]  }
 0x214   :  { %2381 = vrot.lane.b32.xlu0 %v12874_v18, %s14433_s16  ;;  %v1181_v18 = vld [vmem:[#allocation3 + $0x180] sm:$0xf]  ;;  %v2309_v27 = vld [vmem:[#allocation3 + $0x18c] sm:$0xf]  ;;  %13621 = vmatprep.subr.bf16.mxu1 %v13989_v24 }
 0x215   :  { %v1529_v63 = vpop.permute.xlu1 %1528  ;;  %5267 = vmatprep.mubr.bf16.mxu1 %v12158_v28 }
 0x216   :  { %1556 = vst.msk [vmem:[#allocation3 + $0x164] sm:$0xf] %vm1166_vm1, %v1529_v63  ;;  %v3023_v36 = vpop.permute.xlu0 %3022  ;;  %5268 = vmatmul.mubr.bf16.gmra.mxu1 %v12157_v30  ;;  %v13990_v63 = vld [vmem:[%s17153_s2 + $0x1d0] sm:$0xff]   ;;  %v1933_v30 = vld [vmem:[#allocation3 + $0x188] sm:$0xf] }
 0x217   :  { %2011 = vrot.lane.b32.xlu1 %v12928_v25, %s14433_s16  ;;  %3055 = vst.msk [vmem:[#allocation3 + $0xd4] sm:$0xf] %vm1166_vm1, %v3023_v36  ;;  %v13991_v25 = vld [vmem:[%s17153_s2 + $0x108] sm:$0xff]   ;;  %13731 = vmatprep.subr.bf16.mxu0 %v13990_v63  ;;  %v3975_v36 = vld [vmem:[#allocation3 + $0x1a0] sm:$0xff] }
 0x218   :  { %3778 = vrot.lane.b32.xlu0 %v13172_v38, %s14433_s16  ;;  %v15464_v38 = vld [vmem:[#allocation3 + $0x1e0] sm:$0xff]  ;;  %13622 = vmatpush3.bf16.msra.mxu1 %v13991_v25 }
 0x219   :  { %v1905_v20 = vpop.permute.xlu1 %1904  ;;  %13732 = vmatpush3.bf16.msra.mxu0 %v13992_v26  ;;  %v3065_v25 = vld [vmem:[#allocation2 + $0x199] sm:$0xff]  ;;  %v3064_v26 = vld [vmem:[#allocation2 + $0x191] sm:$0xff] }
 0x21a   :  { %1932 = vst.msk [vmem:[#allocation3 + $0x168] sm:$0xf] %vm1166_vm1, %v1905_v20  ;;  %v3399_v43 = vpop.permute.xlu0 %3398  ;;  %v3956_v49 = vld [vmem:[#allocation3 + $0x108] sm:$0xff]  ;;  %v15462_v20 = vld [vmem:[#allocation3 + $0x1c0] sm:$0xff] }
 0x21b   :  { %1637 = vrot.lane.b32.xlu1 %v12877_v39, %s14433_s16  ;;  %3431 = vst.msk [vmem:[#allocation3 + $0xd8] sm:$0xf] %vm1166_vm1, %v3399_v43  ;;  %v12160_v51 = vcombine.high %v3956_v49, %v3960_v42  ;;  %v12159_v52 = vcombine.low %v3956_v49, %v3960_v42  ;;  %v13993_v39 = vld [vmem:[%s17153_s2 + $0x140] sm:$0xff]   ;;  %v13123_v42 = vpack.c.bf16 %v3344_v35, %v3344_v35 }
 0x21c   :  { %2385 = vrot.lane.b32.xlu0 %v12876_v4, %s14433_s16  ;;  %v13018_v4 = vpack.c.bf16 %v2591_v11, %v2591_v11  ;;  %13623 = vmatprep.subr.bf16.mxu1 %v13993_v39  ;;  %v12182_v55 = vcombine.high %v15462_v20, %v15464_v38  ;;  %v3721_v11 = vld [vmem:[#allocation2 + $0xf9] sm:$0x7f]  ;;  %v12181_v29 = vcombine.low %v15462_v20, %v15464_v38 }
 0x21d   :  { %v1531_v44 = vpop.permute.xlu1 %1530  ;;  %v3967_v48 = vld [vmem:[#allocation3 + $0x160] sm:$0xff]  ;;  %5428 = vmatprep.mubr.bf16.mxu0 %v12160_v51 }
 0x21e   :  { %v1558_v37 = vsel %vm15392_vm2, %v1531_v44, %v1557_v5  ;;  %v12166_v50 = vcombine.high %v3963_v47, %v3967_v48  ;;  %v12165_v56 = vcombine.low %v3963_v47, %v3967_v48  ;;  %5429 = vmatmul.mubr.bf16.gmra.mxu0 %v12159_v52  ;;  %v3775_v59 = vpop.permute.xlu0 %3774 }
 0x21f   :  { %1559 = vst [vmem:[#allocation3 + $0x184] sm:$0xf] %v1558_v37  ;;  %2387 = vrot.lane.b32.xlu1 %v12980_v45, %s14433_s16  ;;  %3807 = vst.msk [vmem:[#allocation3 + $0xdc] sm:$0xf] %vm1166_vm1, %v3775_v59  ;;  %v13994_v45 = vld [vmem:[%s17153_s2 + $0x1c8] sm:$0xff]   ;;  %v3720_v37 = vld [vmem:[#allocation2 + $0xf1] sm:$0xff] }
 0x220   :  { %5275 = vmatprep.mubr.bf16.mxu1 %v12166_v50  ;;  %1261 = vrot.lane.b32.xlu0 %v12825_v61, %s14433_s16  ;;  %v13996_v50 = vld [vmem:[%s17153_s2 + $0x188] sm:$0xff]   ;;  %v13175_v59 = vpack.c.bf16 %v3720_v37, %v3720_v37  ;;  %v13997_v61 = vld [vmem:[%s17153_s2 + $0x1c0] sm:$0xff]  }
 0x221   :  { %5276 = vmatmul.mubr.bf16.gmra.mxu1 %v12165_v56  ;;  %v3029_v60 = vpop.permute.xlu1 %3028  ;;  %13733 = vmatprep.subr.bf16.mxu0 %v13994_v45  ;;  %v13995_v56 = vld [vmem:[%s17153_s2 + $0x100] sm:$0xff]  }
 0x222   :  { %3058 = vst.msk [vmem:[#allocation3 + $0x134] sm:$0xf] %vm1166_vm1, %v3029_v60  ;;  %v2279_v6 = vpop.permute.xlu0 %2278  ;;  %v2969_v60 = vld [vmem:[#allocation2 + $0xf1] sm:$0x7f]  ;;  %13734 = vmatpush3.bf16.msra.mxu0 %v13996_v50  ;;  %13624 = vmatpush3.bf16.msra.mxu1 %v13995_v56 }
 0x223   :  { %3780 = vrot.lane.b32.xlu1 %v13173_v62, %s14433_s16  ;;  %2307 = vst.msk [vmem:[#allocation3 + $0x14c] sm:$0xf] %vm1166_vm1, %v2279_v6  ;;  %v3984_v6 = vld [vmem:[#allocation3 + $0x1e8] sm:$0xff]  ;;  %13735 = vmatprep.subr.bf16.mxu0 %v13997_v61 }
 0x224   :  { %2013 = vrot.lane.b32.xlu0 %v12929_v9, %s14433_s16  ;;  %v13072_v9 = vpack.c.bf16 %v2969_v60, %v2969_v60  ;;  %v12184_v57 = vcombine.high %v3980_v3, %v3984_v6  ;;  %v12183_v63 = vcombine.low %v3980_v3, %v3984_v6  ;;  %v13180_v3 = vpack.c.bf16 %v3819_v0, %v3819_v0  ;;  %v2693_v6 = vld [vmem:[#allocation2 + $0x1b8] sm:$0xff] }
 0x225   :  { %v3405_v7 = vpop.permute.xlu1 %3404 }
 0x226   :  { %3434 = vst.msk [vmem:[#allocation3 + $0x138] sm:$0xf] %vm1166_vm1, %v3405_v7  ;;  %v1152_v19 = vpop.permute.xlu0 %1151  ;;  %13736 = vmatpush3.bf16.msra.mxu0 %v13998_v1 }
 0x227   :  { %2389 = vrot.lane.b32.xlu1 %v12981_v8, %s14433_s16  ;;  %v1182_v46 = vsel %vm15392_vm2, %v1152_v19, %v1181_v18  ;;  %v13176_v18 = vpack.c.bf16 %v3721_v11, %v3721_v11  ;;  %v13124_v19 = vpack.c.bf16 %v3345_v12, %v3345_v12 }
 0x228   :  { %1183 = vst [vmem:[#allocation3 + $0x180] sm:$0xf] %v1182_v46  ;;  %2654 = vrot.lane.b32.xlu0 %v13018_v4, %s14433_s16 }
 0x229   :  { %v2281_v21 = vpop.permute.xlu1 %2280 }
 0x22a   :  { %2308 = vst.msk [vmem:[#allocation3 + $0x16c] sm:$0xf] %vm1166_vm1, %v2281_v21  ;;  %v1907_v31 = vpop.permute.xlu0 %1906  ;;  %v3964_v43 = vld [vmem:[#allocation3 + $0x148] sm:$0xff]  ;;  %v2689_v21 = vld [vmem:[#allocation2 + $0x198] sm:$0xff] }
 0x22b   :  { %2656 = vrot.lane.b32.xlu1 %v13019_v14, %s14433_s16  ;;  %v1934_v34 = vsel %vm15392_vm2, %v1907_v31, %v1933_v30  ;;  %v13022_v22 = vpack.c.bf16 %v2689_v21, %v2689_v21  ;;  %v13074_v30 = vpack.c.bf16 %v3065_v25, %v3065_v25  ;;  %v13073_v31 = vpack.c.bf16 %v3064_v26, %v3064_v26 }
 0x22c   :  { %1935 = vst [vmem:[#allocation3 + $0x188] sm:$0xf] %v1934_v34  ;;  %3030 = vrot.lane.b32.xlu0 %v13173_v62, %s14433_s16 }
 0x22d   :  { %v2283_v28 = vpop.permute.xlu1 %2282 }
 0x22e   :  { %v2310_v33 = vsel %vm15392_vm2, %v2283_v28, %v2309_v27  ;;  %v1242_v5 = vpop.permute.xlu0 %1241 }
 0x22f   :  { %2311 = vst [vmem:[#allocation3 + $0x18c] sm:$0xf] %v2310_v33  ;;  %3032 = vrot.lane.b32.xlu1 %v13071_v23, %s14433_s16  ;;  %1278 = vst.msk [vmem:[#allocation3 + $0x240] sm:$0xf] %vm1166_vm1, %v1242_v5  ;;  %v3971_v48 = vld [vmem:[#allocation3 + $0x180] sm:$0xff] }
 0x230   :  { %3406 = vrot.lane.b32.xlu0 %v13019_v14, %s14433_s16  ;;  %v12174_v51 = vcombine.high %v3971_v48, %v3975_v36  ;;  %v12173_v52 = vcombine.low %v3971_v48, %v3975_v36  ;;  %v2688_v14 = vld [vmem:[#allocation2 + $0x190] sm:$0xff] }
 0x231   :  { %v1992_v40 = vpop.permute.xlu1 %1991  ;;  %v3968_v44 = vld [vmem:[#allocation3 + $0x168] sm:$0xff]  ;;  %v13021_v24 = vpack.c.bf16 %v2688_v14, %v2688_v14 }
 0x232   :  { %2029 = vst.msk [vmem:[#allocation3 + $0x228] sm:$0xf] %vm1166_vm1, %v1992_v40  ;;  %v12168_v47 = vcombine.high %v3964_v43, %v3968_v44  ;;  %v12167_v49 = vcombine.low %v3964_v43, %v3968_v44  ;;  %5283 = vmatprep.mubr.bf16.mxu1 %v12174_v51  ;;  %v1238_v54 = vpop.permute.xlu0 %1237 }
 0x233   :  { %3408 = vrot.lane.b32.xlu1 %v13123_v42, %s14433_s16  ;;  %1276 = vst.msk [vmem:[#allocation3 + $0x200] sm:$0xf] %vm1166_vm1, %v1238_v54  ;;  %5284 = vmatmul.mubr.bf16.gmra.mxu1 %v12173_v52  ;;  %v3067_v52 = vld [vmem:[#allocation2 + $0x1a9] sm:$0xff] }
 0x234   :  { %5436 = vmatprep.mubr.bf16.mxu0 %v12168_v47  ;;  %3782 = vrot.lane.b32.xlu0 %v13071_v23, %s14433_s16  ;;  %v3441_v23 = vld [vmem:[#allocation2 + $0x1a0] sm:$0xff]  ;;  %v13076_v56 = vpack.c.bf16 %v3067_v52, %v3067_v52  ;;  %v3071_v52 = vld [vmem:[#allocation2 + $0x1c9] sm:$0xff] }
 0x235   :  { %5437 = vmatmul.mubr.bf16.gmra.mxu0 %v12167_v49  ;;  %v2368_v58 = vpop.permute.xlu1 %2367  ;;  %5291 = vmatprep.mubr.bf16.mxu1 %v12182_v55  ;;  %v13126_v35 = vpack.c.bf16 %v3441_v23, %v3441_v23 }
 0x236   :  { %2405 = vst.msk [vmem:[#allocation3 + $0x22c] sm:$0xf] %vm1166_vm1, %v2368_v58  ;;  %v3972_v62 = vld [vmem:[#allocation3 + $0x188] sm:$0xff]  ;;  %v1618_v7 = vpop.permute.xlu0 %1617  ;;  %v3443_v58 = vld [vmem:[#allocation2 + $0x1b0] sm:$0xff] }
 0x237   :  { %3784 = vrot.lane.b32.xlu1 %v13175_v59, %s14433_s16  ;;  %v12176_v2 = vcombine.high %v3972_v62, %v3976_v53  ;;  %1654 = vst.msk [vmem:[#allocation3 + $0x244] sm:$0xf] %vm1166_vm1, %v1618_v7  ;;  %v12175_v15 = vcombine.low %v3972_v62, %v3976_v53  ;;  %v3066_v53 = vld [vmem:[#allocation2 + $0x1a1] sm:$0xff]  ;;  %v13128_v61 = vpack.c.bf16 %v3443_v58, %v3443_v58 }
 0x238   :  { %2658 = vrot.lane.b32.xlu0 %v13020_v10, %s14433_s16  ;;  %v13075_v54 = vpack.c.bf16 %v3066_v53, %v3066_v53  ;;  %v3442_v59 = vld [vmem:[#allocation2 + $0x1a8] sm:$0xff] }
 0x239   :  { %5444 = vmatprep.mubr.bf16.mxu0 %v12176_v2  ;;  %v1244_v8 = vpop.permute.xlu1 %1243  ;;  %v13127_v62 = vpack.c.bf16 %v3442_v59, %v3442_v59  ;;  %v13080_v59 = vpack.c.bf16 %v3071_v52, %v3071_v52 }
 0x23a   :  { %1279 = vst.msk [vmem:[#allocation3 + $0x260] sm:$0xf] %vm1166_vm1, %v1244_v8  ;;  %v1994_v16 = vpop.permute.xlu0 %1993 }
 0x23b   :  { %3034 = vrot.lane.b32.xlu1 %v13072_v9, %s14433_s16  ;;  %2030 = vst.msk [vmem:[#allocation3 + $0x248] sm:$0xf] %vm1166_vm1, %v1994_v16  ;;  %5292 = vmatmul.mubr.bf16.gmra.mxu1 %v12181_v29  ;;  %v13026_v9 = vpack.c.bf16 %v2693_v6, %v2693_v6 }
 0x23c   :  { %3410 = vrot.lane.b32.xlu0 %v13124_v19, %s14433_s16  ;;  %v3445_v19 = vld [vmem:[#allocation2 + $0x1c0] sm:$0xff] }
 0x23d   :  { %5445 = vmatmul.mubr.bf16.gmra.mxu0 %v12175_v15  ;;  %v1240_v17 = vpop.permute.xlu1 %1239  ;;  %v3992_v42 = vld [vmem:[#allocation3 + $0x228] sm:$0xff] }
 0x23e   :  { %1277 = vst.msk [vmem:[#allocation3 + $0x220] sm:$0xf] %vm1166_vm1, %v1240_v17  ;;  %5452 = vmatprep.mubr.bf16.mxu0 %v12184_v57  ;;  %v1614_v4 = vpop.permute.xlu0 %1613  ;;  %v3995_v45 = vld [vmem:[#allocation3 + $0x240] sm:$0xff] }
 0x23f   :  { %3786 = vrot.lane.b32.xlu1 %v13176_v18, %s14433_s16  ;;  %1652 = vst.msk [vmem:[#allocation3 + $0x204] sm:$0xf] %vm1166_vm1, %v1614_v4  ;;  %v3069_v57 = vld [vmem:[#allocation2 + $0x1b9] sm:$0xff] }
 0x240   :  { %2741 = vrot.lane.b32.xlu0 %v13021_v24, %s14433_s16  ;;  %v13078_v17 = vpack.c.bf16 %v3069_v57, %v3069_v57 }
 0x241   :  { %v1616_v46 = vpop.permute.xlu1 %1615 }
 0x242   :  { %1653 = vst.msk [vmem:[#allocation3 + $0x224] sm:$0xf] %vm1166_vm1, %v1616_v46  ;;  %v1990_v27 = vpop.permute.xlu0 %1989 }
 0x243   :  { %2743 = vrot.lane.b32.xlu1 %v13022_v22, %s14433_s16  ;;  %2028 = vst.msk [vmem:[#allocation3 + $0x208] sm:$0xf] %vm1166_vm1, %v1990_v27 }
 0x244   :  { %3117 = vrot.lane.b32.xlu0 %v13073_v31, %s14433_s16 }
 0x245   :  { %v2000_v28 = vpop.permute.xlu1 %1999  ;;  %5453 = vmatmul.mubr.bf16.gmra.mxu0 %v12183_v63 }
 0x246   :  { %2033 = vst.msk [vmem:[#allocation3 + $0x2a8] sm:$0xf] %vm1166_vm1, %v2000_v28  ;;  %v2366_v33 = vpop.permute.xlu0 %2365  ;;  %v3987_v36 = vld [vmem:[#allocation3 + $0x200] sm:$0xff] }
 0x247   :  { %3119 = vrot.lane.b32.xlu1 %v13074_v30, %s14433_s16  ;;  %2404 = vst.msk [vmem:[#allocation3 + $0x20c] sm:$0xf] %vm1166_vm1, %v2366_v33  ;;  %v3821_v28 = vld [vmem:[#allocation2 + $0x1c1] sm:$0xff] }
 0x248   :  { %3493 = vrot.lane.b32.xlu0 %v13022_v22, %s14433_s16  ;;  %v13130_v22 = vpack.c.bf16 %v3445_v19, %v3445_v19  ;;  %v13182_v33 = vpack.c.bf16 %v3821_v28, %v3821_v28  ;;  %v3449_v19 = vld [vmem:[#allocation2 + $0x1e0] sm:$0xff] }
 0x249   :  { %v1620_v34 = vpop.permute.xlu1 %1619  ;;  %v3991_v20 = vld [vmem:[#allocation3 + $0x220] sm:$0xff] }
 0x24a   :  { %1655 = vst.msk [vmem:[#allocation3 + $0x264] sm:$0xf] %vm1166_vm1, %v1620_v34  ;;  %v12190_v38 = vcombine.high %v3987_v36, %v3991_v20  ;;  %v12189_v39 = vcombine.low %v3987_v36, %v3991_v20  ;;  %v1250_v40 = vpop.permute.xlu0 %1249  ;;  %v2695_v36 = vld [vmem:[#allocation2 + $0x1c8] sm:$0xff] }
 0x24b   :  { %3495 = vrot.lane.b32.xlu1 %v13126_v35, %s14433_s16  ;;  %1282 = vst.msk [vmem:[#allocation3 + $0x2c0] sm:$0xf] %vm1166_vm1, %v1250_v40 }
 0x24c   :  { %5299 = vmatprep.mubr.bf16.mxu1 %v12190_v38  ;;  %3869 = vrot.lane.b32.xlu0 %v13074_v30, %s14433_s16 }
 0x24d   :  { %5300 = vmatmul.mubr.bf16.gmra.mxu1 %v12189_v39  ;;  %v1996_v5 = vpop.permute.xlu1 %1995 }
 0x24e   :  { %2031 = vst.msk [vmem:[#allocation3 + $0x268] sm:$0xf] %vm1166_vm1, %v1996_v5  ;;  %v2370_v43 = vpop.permute.xlu0 %2369  ;;  %v3988_v48 = vld [vmem:[#allocation3 + $0x208] sm:$0xff] }
 0x24f   :  { %3871 = vrot.lane.b32.xlu1 %v15290_v13, %s14433_s16  ;;  %2406 = vst.msk [vmem:[#allocation3 + $0x24c] sm:$0xf] %vm1166_vm1, %v2370_v43  ;;  %v12192_v37 = vcombine.high %v3988_v48, %v3992_v42  ;;  %v12191_v51 = vcombine.low %v3988_v48, %v3992_v42  ;;  %v13028_v43 = vpack.c.bf16 %v2695_v36, %v2695_v36 }
 0x250   :  { %2745 = vrot.lane.b32.xlu0 %v13126_v35, %s14433_s16 }
 0x251   :  { %v2376_v44 = vpop.permute.xlu1 %2375  ;;  %v3999_v47 = vld [vmem:[#allocation3 + $0x260] sm:$0xff]  ;;  %5460 = vmatprep.mubr.bf16.mxu0 %v12192_v37 }
 0x252   :  { %2409 = vst.msk [vmem:[#allocation3 + $0x2ac] sm:$0xf] %vm1166_vm1, %v2376_v44  ;;  %v12198_v49 = vcombine.high %v3995_v45, %v3999_v47  ;;  %v12197_v50 = vcombine.low %v3995_v45, %v3999_v47  ;;  %5461 = vmatmul.mubr.bf16.gmra.mxu0 %v12191_v51  ;;  %v1246_v13 = vpop.permute.xlu0 %1245 }
 0x253   :  { %2747 = vrot.lane.b32.xlu1 %v15297_v32, %s14433_s16  ;;  %1280 = vst.msk [vmem:[#allocation3 + $0x280] sm:$0xf] %vm1166_vm1, %v1246_v13 }
 0x254   :  { %5307 = vmatprep.mubr.bf16.mxu1 %v12198_v49  ;;  %3121 = vrot.lane.b32.xlu0 %v13075_v54, %s14433_s16 }
 0x255   :  { %5308 = vmatmul.mubr.bf16.gmra.mxu1 %v12197_v50  ;;  %v1252_v55 = vpop.permute.xlu1 %1251 }
 0x256   :  { %1283 = vst.msk [vmem:[#allocation3 + $0x2e0] sm:$0xf] %vm1166_vm1, %v1252_v55  ;;  %v1626_v32 = vpop.permute.xlu0 %1625  ;;  %v3996_v10 = vld [vmem:[#allocation3 + $0x248] sm:$0xff] }
 0x257   :  { %3123 = vrot.lane.b32.xlu1 %v13076_v56, %s14433_s16  ;;  %1658 = vst.msk [vmem:[#allocation3 + $0x2c4] sm:$0xf] %vm1166_vm1, %v1626_v32 }
 0x258   :  { %3497 = vrot.lane.b32.xlu0 %v13127_v62, %s14433_s16 }
 0x259   :  { %v2372_v60 = vpop.permute.xlu1 %2371  ;;  %v4008_v45 = vld [vmem:[#allocation3 + $0x2a8] sm:$0xff] }
 0x25a   :  { %2407 = vst.msk [vmem:[#allocation3 + $0x26c] sm:$0xf] %vm1166_vm1, %v2372_v60  ;;  %v2002_v1 = vpop.permute.xlu0 %2001  ;;  %v3447_v60 = vld [vmem:[#allocation2 + $0x1d0] sm:$0xff] }
 0x25b   :  { %3499 = vrot.lane.b32.xlu1 %v13128_v61, %s14433_s16  ;;  %2034 = vst.msk [vmem:[#allocation3 + $0x2c8] sm:$0xf] %vm1166_vm1, %v2002_v1  ;;  %v13132_v62 = vpack.c.bf16 %v3447_v60, %v3447_v60  ;;  %v3823_v1 = vld [vmem:[#allocation2 + $0x1d1] sm:$0xff] }
 0x25c   :  { %3873 = vrot.lane.b32.xlu0 %v13076_v56, %s14433_s16 }
 0x25d   :  { %v1248_v2 = vpop.permute.xlu1 %1247 }
 0x25e   :  { %1281 = vst.msk [vmem:[#allocation3 + $0x2a0] sm:$0xf] %vm1166_vm1, %v1248_v2  ;;  %v1622_v7 = vpop.permute.xlu0 %1621  ;;  %v4011_v49 = vld [vmem:[#allocation3 + $0x2c0] sm:$0xff] }
 0x25f   :  { %3875 = vrot.lane.b32.xlu1 %v13180_v3, %s14433_s16  ;;  %1656 = vst.msk [vmem:[#allocation3 + $0x284] sm:$0xf] %vm1166_vm1, %v1622_v7  ;;  %v2697_v7 = vld [vmem:[#allocation2 + $0x1d8] sm:$0xff] }
 0x260   :  { %2749 = vrot.lane.b32.xlu0 %v13128_v61, %s14433_s16 }
 0x261   :  { %v1624_v8 = vpop.permute.xlu1 %1623  ;;  %v4000_v11 = vld [vmem:[#allocation3 + $0x268] sm:$0xff] }
 0x262   :  { %1657 = vst.msk [vmem:[#allocation3 + $0x2a4] sm:$0xf] %vm1166_vm1, %v1624_v8  ;;  %v12200_v12 = vcombine.high %v3996_v10, %v4000_v11  ;;  %v12199_v29 = vcombine.low %v3996_v10, %v4000_v11  ;;  %v13401_v15 = vpop.f32.mrf.mxu1  ;;  %v1998_v16 = vpop.permute.xlu0 %1997 }
 0x263   :  { %2751 = vrot.lane.b32.xlu1 %v13026_v9, %s14433_s16  ;;  %2032 = vst.msk [vmem:[#allocation3 + $0x288] sm:$0xf] %vm1166_vm1, %v1998_v16 }
 0x264   :  { %5468 = vmatprep.mubr.bf16.mxu0 %v12200_v12  ;;  %v13402_v21 = vpop.f32.mrf.mxu1  ;;  %3125 = vrot.lane.b32.xlu0 %v13180_v3, %s14433_s16  ;;  %v13184_v3 = vpack.c.bf16 %v3823_v1, %v3823_v1 }
 0x265   :  { %5469 = vmatmul.mubr.bf16.gmra.mxu0 %v12199_v29  ;;  %v2008_v18 = vpop.permute.xlu1 %2007  ;;  %v13403_v14 = vadd.f32 %v13402_v21, %v13401_v15  ;;  %v3073_v29 = vld [vmem:[#allocation2 + $0x1d9] sm:$0xff] }
 0x266   :  { %2037 = vst.msk [vmem:[#allocation3 + $0x328] sm:$0xf] %vm1166_vm1, %v2008_v18  ;;  %v13404_v4 = vpop.f32.mrf.mxu1  ;;  %v2374_v46 = vpop.permute.xlu0 %2373  ;;  %v4003_v24 = vld [vmem:[#allocation3 + $0x280] sm:$0xff] }
 0x267   :  { %3127 = vrot.lane.b32.xlu1 %v13078_v17, %s14433_s16  ;;  %2408 = vst.msk [vmem:[#allocation3 + $0x28c] sm:$0xf] %vm1166_vm1, %v2374_v46  ;;  %v13134_v4 = vpack.c.bf16 %v3449_v19, %v3449_v19  ;;  %v3076_v19 = vld [vmem:[#allocation2 + $0x1f1] sm:$0x7f] }
 0x268   :  { %v13405_v30 = vpop.f32.mrf.mxu1  ;;  %3501 = vrot.lane.b32.xlu0 %v13026_v9, %s14433_s16  ;;  %v13030_v9 = vpack.c.bf16 %v2697_v7, %v2697_v7 }
 0x269   :  { %v4007_v63 = vld [vmem:[#allocation3 + $0x2a0] sm:$0xff]  ;;  %v1628_v25 = vpop.permute.xlu1 %1627 }
 0x26a   :  { %v12206_v26 = vcombine.high %v4003_v24, %v4007_v63  ;;  %v12205_v27 = vcombine.low %v4003_v24, %v4007_v63  ;;  %1659 = vst.msk [vmem:[#allocation3 + $0x2e4] sm:$0xf] %vm1166_vm1, %v1628_v25  ;;  %v13407_v31 = vpop.f32.mrf.mxu1  ;;  %v1258_v23 = vpop.permute.xlu0 %1257  ;;  %v3825_v63 = vld [vmem:[#allocation2 + $0x1e1] sm:$0xff] }
 0x26b   :  { %3503 = vrot.lane.b32.xlu1 %v13130_v22, %s14433_s16  ;;  %1286 = vst.msk [vmem:[#allocation3 + $0x340] sm:$0xf] %vm1166_vm1, %v1258_v23  ;;  %v13513_v35 = vpop.f32.mrf.mxu0 }
 0x26c   :  { %5315 = vmatprep.mubr.bf16.mxu1 %v12206_v26  ;;  %v13408_v20 = vpop.f32.mrf.mxu1  ;;  %3877 = vrot.lane.b32.xlu0 %v13078_v17, %s14433_s16  ;;  %v13082_v17 = vpack.c.bf16 %v3073_v29, %v3073_v29 }
 0x26d   :  { %5316 = vmatmul.mubr.bf16.gmra.mxu1 %v12205_v27  ;;  %v2004_v34 = vpop.permute.xlu1 %2003  ;;  %v15554_v38 = vadd.f32 %v13408_v20, %v13407_v31  ;;  %v13514_v39 = vpop.f32.mrf.mxu0  ;;  %v1664_v31 = vld [vmem:[#allocation3 + $0x384] sm:$0xf] }
 0x26e   :  { %2035 = vst.msk [vmem:[#allocation3 + $0x2e8] sm:$0xf] %vm1166_vm1, %v2004_v34  ;;  %v13515_v40 = vadd.f32 %v13514_v39, %v13513_v35  ;;  %v13410_v5 = vpop.f32.mrf.mxu1  ;;  %v2378_v42 = vpop.permute.xlu0 %2377  ;;  %v4004_v44 = vld [vmem:[#allocation3 + $0x288] sm:$0xff] }
 0x26f   :  { %3879 = vrot.lane.b32.xlu1 %v13182_v33, %s14433_s16  ;;  %2410 = vst.msk [vmem:[#allocation3 + $0x2cc] sm:$0xf] %vm1166_vm1, %v2378_v42  ;;  %v13516_v48 = vpop.f32.mrf.mxu0  ;;  %v12208_v50 = vcombine.high %v4004_v44, %v4008_v45  ;;  %v12207_v51 = vcombine.low %v4004_v44, %v4008_v45  ;;  %v2699_v39 = vld [vmem:[#allocation2 + $0x1e8] sm:$0xff] }
 0x270   :  { %v15557_v53 = vadd.f32 %v13515_v40, %v13403_v14  ;;  %v13411_v13 = vpop.f32.mrf.mxu1  ;;  %2753 = vrot.lane.b32.xlu0 %v13130_v22, %s14433_s16 }
 0x271   :  { %v2384_v47 = vpop.permute.xlu1 %2383  ;;  %v4015_v37 = vld [vmem:[#allocation3 + $0x2e0] sm:$0xff]  ;;  %v13517_v54 = vpop.f32.mrf.mxu0  ;;  %5476 = vmatprep.mubr.bf16.mxu0 %v12208_v50 }
 0x272   :  { %2413 = vst.msk [vmem:[#allocation3 + $0x32c] sm:$0xf] %vm1166_vm1, %v2384_v47  ;;  %v12214_v55 = vcombine.high %v4011_v49, %v4015_v37  ;;  %v12213_v56 = vcombine.low %v4011_v49, %v4015_v37  ;;  %5477 = vmatmul.mubr.bf16.gmra.mxu0 %v12207_v51  ;;  %v1254_v58 = vpop.permute.xlu0 %1253  ;;  %v3075_v37 = vld [vmem:[#allocation2 + $0x1e9] sm:$0xff]  ;;  %v1288_v51 = vld [vmem:[#allocation3 + $0x380] sm:$0xf] }
 0x273   :  { %2755 = vrot.lane.b32.xlu1 %v13028_v43, %s14433_s16  ;;  %1284 = vst.msk [vmem:[#allocation3 + $0x300] sm:$0xf] %vm1166_vm1, %v1254_v58  ;;  %v13084_v13 = vpack.c.bf16 %v3075_v37, %v3075_v37  ;;  %v3451_v54 = vld [vmem:[#allocation2 + $0x1f0] sm:$0xff] }
 0x274   :  { %5323 = vmatprep.mubr.bf16.mxu1 %v12214_v55  ;;  %3129 = vrot.lane.b32.xlu0 %v13182_v33, %s14433_s16  ;;  %v13186_v33 = vpack.c.bf16 %v3825_v63, %v3825_v63  ;;  %v13136_v60 = vpack.c.bf16 %v3451_v54, %v3451_v54 }
 0x275   :  { %5324 = vmatmul.mubr.bf16.gmra.mxu1 %v12213_v56  ;;  %v1260_v32 = vpop.permute.xlu1 %1259 }
 0x276   :  { %1287 = vst.msk [vmem:[#allocation3 + $0x360] sm:$0xf] %vm1166_vm1, %v1260_v32  ;;  %v1634_v61 = vpop.permute.xlu0 %1633  ;;  %v4012_v11 = vld [vmem:[#allocation3 + $0x2c8] sm:$0xff] }
 0x277   :  { %3131 = vrot.lane.b32.xlu1 %v13080_v59, %s14433_s16  ;;  %1662 = vst.msk [vmem:[#allocation3 + $0x344] sm:$0xf] %vm1166_vm1, %v1634_v61 }
 0x278   :  { %3505 = vrot.lane.b32.xlu0 %v13028_v43, %s14433_s16  ;;  %v13032_v43 = vpack.c.bf16 %v2699_v39, %v2699_v39 }
 0x279   :  { %v2380_v0 = vpop.permute.xlu1 %2379  ;;  %v4024_v45 = vld [vmem:[#allocation3 + $0x328] sm:$0xff] }
 0x27a   :  { %2411 = vst.msk [vmem:[#allocation3 + $0x2ec] sm:$0xf] %vm1166_vm1, %v2380_v0  ;;  %v2010_v2 = vpop.permute.xlu0 %2009 }
 0x27b   :  { %3507 = vrot.lane.b32.xlu1 %v13132_v62, %s14433_s16  ;;  %2038 = vst.msk [vmem:[#allocation3 + $0x348] sm:$0xf] %vm1166_vm1, %v2010_v2 }
 0x27c   :  { %3881 = vrot.lane.b32.xlu0 %v13080_v59, %s14433_s16  ;;  %v2040_v59 = vld [vmem:[#allocation3 + $0x388] sm:$0xf] }
 0x27d   :  { %v1256_v6 = vpop.permute.xlu1 %1255 }
 0x27e   :  { %1285 = vst.msk [vmem:[#allocation3 + $0x320] sm:$0xf] %vm1166_vm1, %v1256_v6  ;;  %v1630_v8 = vpop.permute.xlu0 %1629  ;;  %v4027_v36 = vld [vmem:[#allocation3 + $0x340] sm:$0xff] }
 0x27f   :  { %3883 = vrot.lane.b32.xlu1 %v13184_v3, %s14433_s16  ;;  %1660 = vst.msk [vmem:[#allocation3 + $0x304] sm:$0xf] %vm1166_vm1, %v1630_v8 }
 0x280   :  { %2757 = vrot.lane.b32.xlu0 %v13132_v62, %s14433_s16  ;;  %v2416_v62 = vld [vmem:[#allocation3 + $0x38c] sm:$0xf] }
 0x281   :  { %v1632_v10 = vpop.permute.xlu1 %1631  ;;  %v4016_v12 = vld [vmem:[#allocation3 + $0x2e8] sm:$0xff] }
 0x282   :  { %1661 = vst.msk [vmem:[#allocation3 + $0x324] sm:$0xf] %vm1166_vm1, %v1632_v10  ;;  %v12216_v57 = vcombine.high %v4012_v11, %v4016_v12  ;;  %v12215_v15 = vcombine.low %v4012_v11, %v4016_v12  ;;  %v2006_v16 = vpop.permute.xlu0 %2005  ;;  %v4039_v11 = vld [vmem:[#allocation3 + $0x3a0] sm:$0xff] }
 0x283   :  { %2759 = vrot.lane.b32.xlu1 %v13030_v9, %s14433_s16  ;;  %2036 = vst.msk [vmem:[#allocation3 + $0x308] sm:$0xf] %vm1166_vm1, %v2006_v16  ;;  %v4047_v16 = vld [vmem:[#allocation3 + $0x3e0] sm:$0xff] }
 0x284   :  { %5484 = vmatprep.mubr.bf16.mxu0 %v12216_v57  ;;  %3133 = vrot.lane.b32.xlu0 %v13184_v3, %s14433_s16  ;;  %v3827_v3 = vld [vmem:[#allocation2 + $0x1f1] sm:$0xff] }
 0x285   :  { %5485 = vmatmul.mubr.bf16.gmra.mxu0 %v12215_v15  ;;  %v1636_v18 = vpop.permute.xlu1 %1635  ;;  %v13188_v57 = vpack.c.bf16 %v3827_v3, %v3827_v3  ;;  %v4043_v15 = vld [vmem:[#allocation3 + $0x3c0] sm:$0xff] }
 0x286   :  { %1663 = vst.msk [vmem:[#allocation3 + $0x364] sm:$0xf] %vm1166_vm1, %v1636_v18  ;;  %v2382_v21 = vpop.permute.xlu0 %2381  ;;  %v4019_v46 = vld [vmem:[#allocation3 + $0x300] sm:$0xff] }
 0x287   :  { %3135 = vrot.lane.b32.xlu1 %v13082_v17, %s14433_s16  ;;  %2412 = vst.msk [vmem:[#allocation3 + $0x30c] sm:$0xf] %vm1166_vm1, %v2382_v21  ;;  %v2700_v21 = vld [vmem:[#allocation2 + $0x1f0] sm:$0x7f] }
 0x288   :  { %3509 = vrot.lane.b32.xlu0 %v13030_v9, %s14433_s16 }
 0x289   :  { %v13519_v14 = vpop.f32.mrf.mxu0  ;;  %v2012_v22 = vpop.permute.xlu1 %2011  ;;  %v4023_v24 = vld [vmem:[#allocation3 + $0x320] sm:$0xff] }
 0x28a   :  { %2039 = vst.msk [vmem:[#allocation3 + $0x368] sm:$0xf] %vm1166_vm1, %v2012_v22  ;;  %v12222_v26 = vcombine.high %v4019_v46, %v4023_v24  ;;  %v12221_v27 = vcombine.low %v4019_v46, %v4023_v24  ;;  %v3779_v30 = vpop.permute.xlu0 %3778  ;;  %v12246_v22 = vcombine.high %v4043_v15, %v4047_v16 }
 0x28b   :  { %v13520_v25 = vpop.f32.mrf.mxu0  ;;  %3511 = vrot.lane.b32.xlu1 %v13134_v4, %s14433_s16  ;;  %3809 = vst.msk [vmem:[#allocation3 + $0x11c] sm:$0xf] %vm1166_vm1, %v3779_v30  ;;  %v4048_v30 = vld [vmem:[#allocation3 + $0x3e8] sm:$0xff] }
 0x28c   :  { %v13521_v28 = vadd.f32 %v13520_v25, %v13519_v14  ;;  %5331 = vmatprep.mubr.bf16.mxu1 %v12222_v26  ;;  %3885 = vrot.lane.b32.xlu0 %v13082_v17, %s14433_s16  ;;  %v13085_v25 = vpack.c.bf16 %v3076_v19, %v3076_v19  ;;  %v13033_v26 = vpack.c.bf16 %v2700_v21, %v2700_v21 }
 0x28d   :  { %v13522_v23 = vpop.f32.mrf.mxu0  ;;  %5332 = vmatmul.mubr.bf16.gmra.mxu1 %v12221_v27  ;;  %v1638_v35 = vpop.permute.xlu1 %1637  ;;  %v4031_v20 = vld [vmem:[#allocation3 + $0x360] sm:$0xff]  ;;  %v4040_v27 = vld [vmem:[#allocation3 + $0x3a8] sm:$0xff] }
 0x28e   :  { %v15587_v34 = vadd.f32 %v13521_v28, %v15554_v38  ;;  %v1665_v40 = vsel %vm15392_vm2, %v1638_v35, %v1664_v31  ;;  %v12230_v42 = vcombine.high %v4027_v36, %v4031_v20  ;;  %v2386_v38 = vpop.permute.xlu0 %2385  ;;  %v4020_v44 = vld [vmem:[#allocation3 + $0x308] sm:$0xff]  ;;  %v12229_v50 = vcombine.low %v4027_v36, %v4031_v20  ;;  %v3828_v23 = vld [vmem:[#allocation2 + $0x1f9] sm:$0x7f] }
 0x28f   :  { %v13523_v5 = vpop.f32.mrf.mxu0  ;;  %3887 = vrot.lane.b32.xlu1 %v13186_v33, %s14433_s16  ;;  %1666 = vst [vmem:[#allocation3 + $0x384] sm:$0xf] %v1665_v40  ;;  %2414 = vst.msk [vmem:[#allocation3 + $0x34c] sm:$0xf] %vm1166_vm1, %v2386_v38  ;;  %v12223_v48 = vcombine.low %v4020_v44, %v4024_v45  ;;  %v12224_v49 = vcombine.high %v4020_v44, %v4024_v45  ;;  %v4044_v28 = vld [vmem:[#allocation3 + $0x3c8] sm:$0xff] }
 0x290   :  { %5339 = vmatprep.mubr.bf16.mxu1 %v12230_v42  ;;  %2761 = vrot.lane.b32.xlu0 %v13134_v4, %s14433_s16  ;;  %v3452_v36 = vld [vmem:[#allocation2 + $0x1f8] sm:$0x7f]  ;;  %v12248_v5 = vcombine.high %v4044_v28, %v4048_v30  ;;  %v12247_v54 = vcombine.low %v4044_v28, %v4048_v30 }
 0x291   :  { %v2388_v47 = vpop.permute.xlu1 %2387  ;;  %5492 = vmatprep.mubr.bf16.mxu0 %v12224_v49  ;;  %v3929_v49 = vld [vmem:[#allocation3 + $0x30] sm:$0xff]  ;;  %v3946_v28 = vld [vmem:[#allocation3 + $0xb8] sm:$0xff] }
 0x292   :  { %2415 = vst.msk [vmem:[#allocation3 + $0x36c] sm:$0xf] %vm1166_vm1, %v2388_v47  ;;  %5493 = vmatmul.mubr.bf16.gmra.mxu0 %v12223_v48  ;;  %v1262_v52 = vpop.permute.xlu0 %1261  ;;  %v13137_v47 = vpack.c.bf16 %v3452_v36, %v3452_v36  ;;  %v12245_v48 = vcombine.low %v4043_v15, %v4047_v16  ;;  %v3949_v36 = vld [vmem:[#allocation3 + $0xd0] sm:$0xff] }
 0x293   :  { %2763 = vrot.lane.b32.xlu1 %v13032_v43, %s14433_s16  ;;  %v1289_v55 = vsel %vm15392_vm2, %v1262_v52, %v1288_v51 }
 0x294   :  { %1290 = vst [vmem:[#allocation3 + $0x380] sm:$0xf] %v1289_v55  ;;  %3137 = vrot.lane.b32.xlu0 %v13186_v33, %s14433_s16 }
 0x295   :  { %5340 = vmatmul.mubr.bf16.gmra.mxu1 %v12229_v50  ;;  %v3781_v56 = vpop.permute.xlu1 %3780  ;;  %v3925_v50 = vld [vmem:[#allocation3 + $0x10] sm:$0xff] }
 0x296   :  { %3810 = vst.msk [vmem:[#allocation3 + $0x13c] sm:$0xf] %vm1166_vm1, %v3781_v56  ;;  %v13413_v58 = vpop.f32.mrf.mxu1  ;;  %v2014_v32 = vpop.permute.xlu0 %2013  ;;  %v4028_v61 = vld [vmem:[#allocation3 + $0x348] sm:$0xff] }
 0x297   :  { %3139 = vrot.lane.b32.xlu1 %v13084_v13, %s14433_s16  ;;  %v2041_v1 = vsel %vm15392_vm2, %v2014_v32, %v2040_v59 }
 0x298   :  { %2042 = vst [vmem:[#allocation3 + $0x388] sm:$0xf] %v2041_v1  ;;  %v13414_v7 = vpop.f32.mrf.mxu1  ;;  %3513 = vrot.lane.b32.xlu0 %v13032_v43, %s14433_s16  ;;  %v13189_v43 = vpack.c.bf16 %v3828_v23, %v3828_v23  ;;  %v3942_v23 = vld [vmem:[#allocation3 + $0x98] sm:$0xff] }
 0x299   :  { %v2390_v0 = vpop.permute.xlu1 %2389  ;;  %v4032_v2 = vld [vmem:[#allocation3 + $0x368] sm:$0xff]  ;;  %v13415_v10 = vadd.f32 %v13414_v7, %v13413_v58  ;;  %v3930_v58 = vld [vmem:[#allocation3 + $0x38] sm:$0xff] }
 0x29a   :  { %v2417_v6 = vsel %vm15392_vm2, %v2390_v0, %v2416_v62  ;;  %v12231_v8 = vcombine.low %v4028_v61, %v4032_v2  ;;  %v12232_v9 = vcombine.high %v4028_v61, %v4032_v2  ;;  %v13416_v12 = vpop.f32.mrf.mxu1  ;;  %v2655_v29 = vpop.permute.xlu0 %2654  ;;  %v3926_v62 = vld [vmem:[#allocation3 + $0x18] sm:$0xff]  ;;  %v3061_v0 = vld [vmem:[#allocation3 + $0x194] sm:$0xf] }
 0x29b   :  { %3515 = vrot.lane.b32.xlu1 %v13136_v60, %s14433_s16  ;;  %2418 = vst [vmem:[#allocation3 + $0x38c] sm:$0xf] %v2417_v6  ;;  %2683 = vst.msk [vmem:[#allocation3 + $0x150] sm:$0xf] %vm1166_vm1, %v2655_v29  ;;  %v4035_v18 = vld [vmem:[#allocation3 + $0x380] sm:$0xff]  ;;  %v12132_v3 = vcombine.high %v3926_v62, %v3930_v58  ;;  %v3933_v6 = vld [vmem:[#allocation3 + $0x50] sm:$0xff]  ;;  %v12131_v19 = vcombine.low %v3926_v62, %v3930_v58 }
 0x29c   :  { %5500 = vmatprep.mubr.bf16.mxu0 %v12232_v9  ;;  %v13417_v14 = vpop.f32.mrf.mxu1  ;;  %3889 = vrot.lane.b32.xlu0 %v13084_v13, %s14433_s16  ;;  %v12238_v4 = vcombine.high %v4035_v18, %v4039_v11  ;;  %v12237_v46 = vcombine.low %v4035_v18, %v4039_v11  ;;  %v12130_v13 = vcombine.high %v3925_v50, %v3929_v49  ;;  %v2685_v60 = vld [vmem:[#allocation3 + $0x190] sm:$0xf]  ;;  %v3437_v11 = vld [vmem:[#allocation3 + $0x198] sm:$0xf] }
 0x29d   :  { %5501 = vmatmul.mubr.bf16.gmra.mxu0 %v12231_v8  ;;  %v2657_v17 = vpop.permute.xlu1 %2656  ;;  %v12129_v9 = vcombine.low %v3925_v50, %v3929_v49  ;;  %v3934_v18 = vld [vmem:[#allocation3 + $0x58] sm:$0xff] }
 0x29e   :  { %2684 = vst.msk [vmem:[#allocation3 + $0x170] sm:$0xf] %vm1166_vm1, %v2657_v17  ;;  %5347 = vmatprep.mubr.bf16.mxu1 %v12238_v4  ;;  %v13525_v24 = vpop.f32.mrf.mxu0  ;;  %v3031_v63 = vpop.permute.xlu0 %3030  ;;  %v3938_v14 = vld [vmem:[#allocation3 + $0x78] sm:$0xff] }
 0x29f   :  { %3891 = vrot.lane.b32.xlu1 %v13188_v57, %s14433_s16  ;;  %3059 = vst.msk [vmem:[#allocation3 + $0x154] sm:$0xf] %vm1166_vm1, %v3031_v63  ;;  %5348 = vmatmul.mubr.bf16.gmra.mxu1 %v12237_v46  ;;  %v3813_v57 = vld [vmem:[#allocation3 + $0x19c] sm:$0xf]  ;;  %v12140_v46 = vcombine.high %v3934_v18, %v3938_v14  ;;  %v3941_v63 = vld [vmem:[#allocation3 + $0x90] sm:$0xff]  ;;  %v12139_v30 = vcombine.low %v3934_v18, %v3938_v14 }
 0x2a0   :  { %v13526_v33 = vpop.f32.mrf.mxu0  ;;  %2765 = vrot.lane.b32.xlu0 %v13033_v26, %s14433_s16  ;;  %5355 = vmatprep.mubr.bf16.mxu1 %v12246_v22  ;;  %v3945_v22 = vld [vmem:[#allocation3 + $0xb0] sm:$0xff]  ;;  %v3962_v58 = vld [vmem:[#allocation3 + $0x138] sm:$0xff] }
 0x2a1   :  { %v3033_v31 = vpop.permute.xlu1 %3032  ;;  %v13527_v20 = vadd.f32 %v13526_v33, %v13525_v24  ;;  %v12146_v26 = vcombine.high %v3941_v63, %v3945_v22 }
 0x2a2   :  { %3060 = vst.msk [vmem:[#allocation3 + $0x174] sm:$0xf] %vm1166_vm1, %v3033_v31  ;;  %v4036_v35 = vld [vmem:[#allocation3 + $0x388] sm:$0xff]  ;;  %v13528_v42 = vpop.f32.mrf.mxu0  ;;  %v3407_v38 = vpop.permute.xlu0 %3406 }
 0x2a3   :  { %3141 = vrot.lane.b32.xlu1 %v13085_v25, %s14433_s16  ;;  %v12239_v39 = vcombine.low %v4036_v35, %v4040_v27  ;;  %v12240_v40 = vcombine.high %v4036_v35, %v4040_v27  ;;  %v15617_v44 = vadd.f32 %v13527_v20, %v13415_v10  ;;  %3435 = vst.msk [vmem:[#allocation3 + $0x158] sm:$0xf] %vm1166_vm1, %v3407_v38  ;;  %v3937_v10 = vld [vmem:[#allocation3 + $0x70] sm:$0xff]  ;;  %v3950_v38 = vld [vmem:[#allocation3 + $0xd8] sm:$0xff] }
 0x2a4   :  { %v13529_v37 = vpop.f32.mrf.mxu0  ;;  %3517 = vrot.lane.b32.xlu0 %v13137_v47, %s14433_s16  ;;  %v12138_v29 = vcombine.high %v3933_v6, %v3937_v10  ;;  %v12137_v24 = vcombine.low %v3933_v6, %v3937_v10  ;;  %v12148_v35 = vcombine.high %v3942_v23, %v3946_v28  ;;  %v12145_v20 = vcombine.low %v3941_v63, %v3945_v22  ;;  %v3954_v47 = vld [vmem:[#allocation3 + $0xf8] sm:$0xff] }
 0x2a5   :  { %v3409_v45 = vpop.permute.xlu1 %3408  ;;  %5508 = vmatprep.mubr.bf16.mxu0 %v12240_v40  ;;  %v12156_v49 = vcombine.high %v3950_v38, %v3954_v47  ;;  %v3961_v37 = vld [vmem:[#allocation3 + $0x130] sm:$0xff] }
 0x2a6   :  { %3436 = vst.msk [vmem:[#allocation3 + $0x178] sm:$0xf] %vm1166_vm1, %v3409_v45  ;;  %5509 = vmatmul.mubr.bf16.gmra.mxu0 %v12239_v39  ;;  %v3783_v52 = vpop.permute.xlu0 %3782  ;;  %v3953_v39 = vld [vmem:[#allocation3 + $0xf0] sm:$0xff] }
 0x2a7   :  { %3893 = vrot.lane.b32.xlu1 %v13189_v43, %s14433_s16  ;;  %5516 = vmatprep.mubr.bf16.mxu0 %v12248_v5  ;;  %3811 = vst.msk [vmem:[#allocation3 + $0x15c] sm:$0xf] %vm1166_vm1, %v3783_v52  ;;  %v12154_v5 = vcombine.high %v3949_v36, %v3953_v39  ;;  %v12147_v43 = vcombine.low %v3942_v23, %v3946_v28  ;;  %v3965_v6 = vld [vmem:[#allocation3 + $0x150] sm:$0xff] }
 0x2a8   :  { %5356 = vmatmul.mubr.bf16.gmra.mxu1 %v12245_v48  ;;  %v12153_v50 = vcombine.low %v3949_v36, %v3953_v39  ;;  %v3985_v28 = vld [vmem:[#allocation3 + $0x1f0] sm:$0xff] }
 0x2a9   :  { %v13419_v51 = vpop.f32.mrf.mxu1  ;;  %v3785_v55 = vpop.permute.xlu1 %3784  ;;  %5557 = vmatprep.mubr.bf16.mxu1 %v12130_v13 }
 0x2aa   :  { %3812 = vst.msk [vmem:[#allocation3 + $0x17c] sm:$0xf] %vm1166_vm1, %v3785_v55  ;;  %v2659_v61 = vpop.permute.xlu0 %2658 }
 0x2ab   :  { %v13420_v56 = vpop.f32.mrf.mxu1  ;;  %v2686_v2 = vsel %vm15392_vm2, %v2659_v61, %v2685_v60  ;;  %v12155_v60 = vcombine.low %v3950_v38, %v3954_v47  ;;  %v3986_v38 = vld [vmem:[#allocation3 + $0x1f8] sm:$0xff] }
 0x2ac   :  { %v15625_v59 = vadd.f32 %v13420_v56, %v13419_v51  ;;  %2687 = vst [vmem:[#allocation3 + $0x190] sm:$0xf] %v2686_v2  ;;  %v3957_v51 = vld [vmem:[#allocation3 + $0x110] sm:$0xff] }
 0x2ad   :  { %v13422_v32 = vpop.f32.mrf.mxu1  ;;  %v3035_v1 = vpop.permute.xlu1 %3034  ;;  %v12162_v55 = vcombine.high %v3957_v51, %v3961_v37 }
 0x2ae   :  { %v3062_v7 = vsel %vm15392_vm2, %v3035_v1, %v3061_v0  ;;  %5517 = vmatmul.mubr.bf16.gmra.mxu0 %v12247_v54  ;;  %v3411_v12 = vpop.permute.xlu0 %3410  ;;  %v3958_v0 = vld [vmem:[#allocation3 + $0x118] sm:$0xff] }
 0x2af   :  { %v13423_v8 = vpop.f32.mrf.mxu1  ;;  %3063 = vst [vmem:[#allocation3 + $0x194] sm:$0xf] %v3062_v7  ;;  %5718 = vmatprep.mubr.bf16.mxu0 %v12132_v3  ;;  %v3438_v16 = vsel %vm15392_vm2, %v3411_v12, %v3437_v11  ;;  %v12164_v3 = vcombine.high %v3958_v0, %v3962_v58  ;;  %v3969_v7 = vld [vmem:[#allocation3 + $0x170] sm:$0xff] }
 0x2b0   :  { %5558 = vmatmul.mubr.bf16.vlgmr.msra.gmra.mxu1 %v12129_v9  ;;  %3439 = vst [vmem:[#allocation3 + $0x198] sm:$0xf] %v3438_v16  ;;  %v12161_v9 = vcombine.low %v3957_v51, %v3961_v37  ;;  %v12170_v11 = vcombine.high %v3965_v6, %v3969_v7 }
 0x2b1   :  { %v3787_v15 = vpop.permute.xlu1 %3786  ;;  %5565 = vmatprep.mubr.bf16.mxu1 %v12138_v29  ;;  %v3970_v29 = vld [vmem:[#allocation3 + $0x178] sm:$0xff] }
 0x2b2   :  { %v3814_v17 = vsel %vm15392_vm2, %v3787_v15, %v3813_v57  ;;  %v2742_v21 = vpop.permute.xlu0 %2741  ;;  %v12163_v57 = vcombine.low %v3958_v0, %v3962_v58 }
 0x2b3   :  { %3815 = vst [vmem:[#allocation3 + $0x19c] sm:$0xf] %v3814_v17  ;;  %2780 = vst.msk [vmem:[#allocation3 + $0x210] sm:$0xf] %vm1166_vm1, %v2742_v21  ;;  %v12169_v21 = vcombine.low %v3965_v6, %v3969_v7 }
 0x2b5   :  { %v2744_v4 = vpop.permute.xlu1 %2743 }
 0x2b6   :  { %2781 = vst.msk [vmem:[#allocation3 + $0x230] sm:$0xf] %vm1166_vm1, %v2744_v4  ;;  %5719 = vmatmul.mubr.bf16.vlgmr.msra.gmra.mxu0 %v12131_v19  ;;  %v3118_v25 = vpop.permute.xlu0 %3117  ;;  %v3973_v18 = vld [vmem:[#allocation3 + $0x190] sm:$0xff] }
 0x2b7   :  { %5726 = vmatprep.mubr.bf16.mxu0 %v12140_v46  ;;  %3156 = vst.msk [vmem:[#allocation3 + $0x214] sm:$0xf] %vm1166_vm1, %v3118_v25  ;;  %v3977_v19 = vld [vmem:[#allocation3 + $0x1b0] sm:$0xff]  ;;  %v3978_v25 = vld [vmem:[#allocation3 + $0x1b8] sm:$0xff] }
 0x2b8   :  { %5566 = vmatmul.mubr.bf16.gmra.mxu1 %v12137_v24  ;;  %v12178_v46 = vcombine.high %v3973_v18, %v3977_v19  ;;  %v12177_v39 = vcombine.low %v3973_v18, %v3977_v19 }
 0x2b9   :  { %v3120_v27 = vpop.permute.xlu1 %3119  ;;  %5573 = vmatprep.mubr.bf16.mxu1 %v12146_v26 }
 0x2ba   :  { %3157 = vst.msk [vmem:[#allocation3 + $0x234] sm:$0xf] %vm1166_vm1, %v3120_v27  ;;  %v3494_v31 = vpop.permute.xlu0 %3493  ;;  %v3974_v63 = vld [vmem:[#allocation3 + $0x198] sm:$0xff]  ;;  %v3981_v27 = vld [vmem:[#allocation3 + $0x1d0] sm:$0xff] }
 0x2bb   :  { %3532 = vst.msk [vmem:[#allocation3 + $0x218] sm:$0xf] %vm1166_vm1, %v3494_v31  ;;  %v12179_v51 = vcombine.low %v3974_v63, %v3978_v25  ;;  %v12185_v58 = vcombine.low %v3981_v27, %v3985_v28 }
 0x2bd   :  { %v3496_v33 = vpop.permute.xlu1 %3495 }
 0x2be   :  { %3533 = vst.msk [vmem:[#allocation3 + $0x238] sm:$0xf] %vm1166_vm1, %v3496_v33  ;;  %5727 = vmatmul.mubr.bf16.gmra.mxu0 %v12139_v30  ;;  %v3870_v40 = vpop.permute.xlu0 %3869 }
 0x2bf   :  { %5734 = vmatprep.mubr.bf16.mxu0 %v12148_v35  ;;  %3908 = vst.msk [vmem:[#allocation3 + $0x21c] sm:$0xf] %vm1166_vm1, %v3870_v40  ;;  %v12180_v35 = vcombine.high %v3974_v63, %v3978_v25 }
 0x2c0   :  { %5574 = vmatmul.mubr.bf16.gmra.mxu1 %v12145_v20  ;;  %v12186_v20 = vcombine.high %v3981_v27, %v3985_v28 }
 0x2c1   :  { %v3872_v42 = vpop.permute.xlu1 %3871  ;;  %5581 = vmatprep.mubr.bf16.mxu1 %v12154_v5 }
 0x2c2   :  { %3909 = vst.msk [vmem:[#allocation3 + $0x23c] sm:$0xf] %vm1166_vm1, %v3872_v42  ;;  %v2746_v45 = vpop.permute.xlu0 %2745  ;;  %v3982_v42 = vld [vmem:[#allocation3 + $0x1d8] sm:$0xff] }
 0x2c3   :  { %2782 = vst.msk [vmem:[#allocation3 + $0x250] sm:$0xf] %vm1166_vm1, %v2746_v45  ;;  %v12187_v6 = vcombine.low %v3982_v42, %v3986_v38 }
 0x2c5   :  { %v2748_v48 = vpop.permute.xlu1 %2747 }
 0x2c6   :  { %2783 = vst.msk [vmem:[#allocation3 + $0x270] sm:$0xf] %vm1166_vm1, %v2748_v48  ;;  %5735 = vmatmul.mubr.bf16.gmra.mxu0 %v12147_v43  ;;  %v3122_v13 = vpop.permute.xlu0 %3121  ;;  %v3990_v7 = vld [vmem:[#allocation3 + $0x218] sm:$0xff] }
 0x2c7   :  { %5742 = vmatprep.mubr.bf16.mxu0 %v12156_v49  ;;  %3158 = vst.msk [vmem:[#allocation3 + $0x254] sm:$0xf] %vm1166_vm1, %v3122_v13 }
 0x2c8   :  { %5582 = vmatmul.mubr.bf16.gmra.mxu1 %v12153_v50  ;;  %v12188_v50 = vcombine.high %v3982_v42, %v3986_v38 }
 0x2c9   :  { %v13531_v52 = vpop.f32.mrf.mxu0  ;;  %v3124_v56 = vpop.permute.xlu1 %3123  ;;  %5589 = vmatprep.mubr.bf16.mxu1 %v12162_v55 }
 0x2ca   :  { %3159 = vst.msk [vmem:[#allocation3 + $0x274] sm:$0xf] %vm1166_vm1, %v3124_v56  ;;  %v3498_v62 = vpop.permute.xlu0 %3497 }
 0x2cb   :  { %v13532_v54 = vpop.f32.mrf.mxu0  ;;  %3534 = vst.msk [vmem:[#allocation3 + $0x258] sm:$0xf] %vm1166_vm1, %v3498_v62 }
 0x2cc   :  { %v13533_v32 = vadd.f32 %v13532_v54, %v13531_v52 }
 0x2cd   :  { %v13534_v61 = vpop.f32.mrf.mxu0  ;;  %v3500_v2 = vpop.permute.xlu1 %3499 }
 0x2ce   :  { %v15648_v1 = vadd.f32 %v13533_v32, %v15625_v59  ;;  %3535 = vst.msk [vmem:[#allocation3 + $0x278] sm:$0xf] %vm1166_vm1, %v3500_v2  ;;  %5743 = vmatmul.mubr.bf16.gmra.mxu0 %v12155_v60  ;;  %v3874_v10 = vpop.permute.xlu0 %3873  ;;  %v3966_v59 = vld [vmem:[#allocation3 + $0x158] sm:$0xff]  ;;  %v3989_v32 = vld [vmem:[#allocation3 + $0x210] sm:$0xff] }
 0x2cf   :  { %v13535_v8 = vpop.f32.mrf.mxu0  ;;  %5750 = vmatprep.mubr.bf16.mxu0 %v12164_v3  ;;  %3910 = vst.msk [vmem:[#allocation3 + $0x25c] sm:$0xf] %vm1166_vm1, %v3874_v10  ;;  %v12172_v17 = vcombine.high %v3966_v59, %v3970_v29  ;;  %v12171_v30 = vcombine.low %v3966_v59, %v3970_v29  ;;  %v3993_v60 = vld [vmem:[#allocation3 + $0x230] sm:$0xff] }
 0x2d0   :  { %5590 = vmatmul.mubr.bf16.gmra.mxu1 %v12161_v9  ;;  %v12194_v0 = vcombine.high %v3989_v32, %v3993_v60  ;;  %v3994_v8 = vld [vmem:[#allocation3 + $0x238] sm:$0xff]  ;;  %v12193_v29 = vcombine.low %v3989_v32, %v3993_v60 }
 0x2d1   :  { %v3876_v12 = vpop.permute.xlu1 %3875  ;;  %5597 = vmatprep.mubr.bf16.mxu1 %v12170_v11  ;;  %v12196_v11 = vcombine.high %v3990_v7, %v3994_v8  ;;  %v4001_v59 = vld [vmem:[#allocation3 + $0x270] sm:$0xff]  ;;  %v12195_v19 = vcombine.low %v3990_v7, %v3994_v8 }
 0x2d2   :  { %3911 = vst.msk [vmem:[#allocation3 + $0x27c] sm:$0xf] %vm1166_vm1, %v3876_v12  ;;  %v2750_v15 = vpop.permute.xlu0 %2749  ;;  %v3997_v12 = vld [vmem:[#allocation3 + $0x250] sm:$0xff] }
 0x2d3   :  { %2784 = vst.msk [vmem:[#allocation3 + $0x290] sm:$0xf] %vm1166_vm1, %v2750_v15  ;;  %v12201_v27 = vcombine.low %v3997_v12, %v4001_v59 }
 0x2d5   :  { %v2752_v16 = vpop.permute.xlu1 %2751 }
 0x2d6   :  { %2785 = vst.msk [vmem:[#allocation3 + $0x2b0] sm:$0xf] %vm1166_vm1, %v2752_v16  ;;  %5751 = vmatmul.mubr.bf16.gmra.mxu0 %v12163_v57  ;;  %v13425_v14 = vpop.f32.mrf.mxu1  ;;  %v3126_v4 = vpop.permute.xlu0 %3125  ;;  %v12202_v57 = vcombine.high %v3997_v12, %v4001_v59 }
 0x2d7   :  { %5758 = vmatprep.mubr.bf16.mxu0 %v12172_v17  ;;  %3160 = vst.msk [vmem:[#allocation3 + $0x294] sm:$0xf] %vm1166_vm1, %v3126_v4  ;;  %v3998_v17 = vld [vmem:[#allocation3 + $0x258] sm:$0xff] }
 0x2d8   :  { %5598 = vmatmul.mubr.bf16.gmra.mxu1 %v12169_v21  ;;  %v13426_v24 = vpop.f32.mrf.mxu1 }
 0x2d9   :  { %v3128_v22 = vpop.permute.xlu1 %3127  ;;  %5605 = vmatprep.mubr.bf16.mxu1 %v12178_v46  ;;  %v13427_v26 = vadd.f32 %v13426_v24, %v13425_v14  ;;  %v4002_v18 = vld [vmem:[#allocation3 + $0x278] sm:$0xff] }
 0x2da   :  { %3161 = vst.msk [vmem:[#allocation3 + $0x2b4] sm:$0xf] %vm1166_vm1, %v3128_v22  ;;  %v13428_v31 = vpop.f32.mrf.mxu1  ;;  %v3502_v23 = vpop.permute.xlu0 %3501  ;;  %v12204_v46 = vcombine.high %v3998_v17, %v4002_v18  ;;  %v12203_v42 = vcombine.low %v3998_v17, %v4002_v18 }
 0x2db   :  { %3536 = vst.msk [vmem:[#allocation3 + $0x298] sm:$0xf] %vm1166_vm1, %v3502_v23 }
 0x2dc   :  { %v13429_v36 = vpop.f32.mrf.mxu1 }
 0x2dd   :  { %v3504_v33 = vpop.permute.xlu1 %3503 }
 0x2de   :  { %3537 = vst.msk [vmem:[#allocation3 + $0x2b8] sm:$0xf] %vm1166_vm1, %v3504_v33  ;;  %5759 = vmatmul.mubr.bf16.gmra.mxu0 %v12171_v30  ;;  %v13537_v5 = vpop.f32.mrf.mxu0  ;;  %v3878_v45 = vpop.permute.xlu0 %3877  ;;  %v4005_v22 = vld [vmem:[#allocation3 + $0x290] sm:$0xff] }
 0x2df   :  { %5766 = vmatprep.mubr.bf16.mxu0 %v12180_v35  ;;  %3912 = vst.msk [vmem:[#allocation3 + $0x29c] sm:$0xf] %vm1166_vm1, %v3878_v45 }
 0x2e0   :  { %5606 = vmatmul.mubr.bf16.gmra.mxu1 %v12177_v39  ;;  %v13538_v48 = vpop.f32.mrf.mxu0 }
 0x2e1   :  { %v13431_v40 = vpop.f32.mrf.mxu1  ;;  %v3880_v43 = vpop.permute.xlu1 %3879  ;;  %5613 = vmatprep.mubr.bf16.mxu1 %v12186_v20  ;;  %v13539_v37 = vadd.f32 %v13538_v48, %v13537_v5  ;;  %v4009_v24 = vld [vmem:[#allocation3 + $0x2b0] sm:$0xff] }
 0x2e2   :  { %3913 = vst.msk [vmem:[#allocation3 + $0x2bc] sm:$0xf] %vm1166_vm1, %v3880_v43  ;;  %v13540_v13 = vpop.f32.mrf.mxu0  ;;  %v2754_v54 = vpop.permute.xlu0 %2753  ;;  %v12210_v31 = vcombine.high %v4005_v22, %v4009_v24 }
 0x2e3   :  { %v13432_v47 = vpop.f32.mrf.mxu1  ;;  %v15664_v55 = vadd.f32 %v13539_v37, %v13427_v26  ;;  %2786 = vst.msk [vmem:[#allocation3 + $0x2d0] sm:$0xf] %vm1166_vm1, %v2754_v54  ;;  %v12209_v13 = vcombine.low %v4005_v22, %v4009_v24 }
 0x2e4   :  { %v15662_v49 = vadd.f32 %v13432_v47, %v13431_v40  ;;  %v13541_v62 = vpop.f32.mrf.mxu0 }
 0x2e5   :  { %v13434_v52 = vpop.f32.mrf.mxu1  ;;  %v2756_v56 = vpop.permute.xlu1 %2755 }
 0x2e6   :  { %2787 = vst.msk [vmem:[#allocation3 + $0x2f0] sm:$0xf] %vm1166_vm1, %v2756_v56  ;;  %5767 = vmatmul.mubr.bf16.gmra.mxu0 %v12179_v51  ;;  %v3130_v3 = vpop.permute.xlu0 %3129  ;;  %v4006_v40 = vld [vmem:[#allocation3 + $0x298] sm:$0xff] }
 0x2e7   :  { %v13435_v61 = vpop.f32.mrf.mxu1  ;;  %5774 = vmatprep.mubr.bf16.mxu0 %v12188_v50  ;;  %3162 = vst.msk [vmem:[#allocation3 + $0x2d4] sm:$0xf] %vm1166_vm1, %v3130_v3 }
 0x2e8   :  { %5614 = vmatmul.mubr.bf16.gmra.mxu1 %v12185_v58 }
 0x2e9   :  { %v3132_v2 = vpop.permute.xlu1 %3131  ;;  %5621 = vmatprep.mubr.bf16.mxu1 %v12194_v0  ;;  %v4010_v5 = vld [vmem:[#allocation3 + $0x2b8] sm:$0xff] }
 0x2ea   :  { %3163 = vst.msk [vmem:[#allocation3 + $0x2f4] sm:$0xf] %vm1166_vm1, %v3132_v2  ;;  %v3506_v10 = vpop.permute.xlu0 %3505  ;;  %v12212_v48 = vcombine.high %v4006_v40, %v4010_v5 }
 0x2eb   :  { %3538 = vst.msk [vmem:[#allocation3 + $0x2d8] sm:$0xf] %vm1166_vm1, %v3506_v10 }
 0x2ed   :  { %v3508_v9 = vpop.permute.xlu1 %3507 }
 0x2ee   :  { %3539 = vst.msk [vmem:[#allocation3 + $0x2f8] sm:$0xf] %vm1166_vm1, %v3508_v9  ;;  %5775 = vmatmul.mubr.bf16.gmra.mxu0 %v12187_v6  ;;  %v3882_v16 = vpop.permute.xlu0 %3881  ;;  %v12211_v6 = vcombine.low %v4006_v40, %v4010_v5 }
 0x2ef   :  { %5782 = vmatprep.mubr.bf16.mxu0 %v12196_v11  ;;  %3914 = vst.msk [vmem:[#allocation3 + $0x2dc] sm:$0xf] %vm1166_vm1, %v3882_v16 }
 0x2f0   :  { %5622 = vmatmul.mubr.bf16.gmra.mxu1 %v12193_v29 }
 0x2f1   :  { %v3884_v15 = vpop.permute.xlu1 %3883  ;;  %5629 = vmatprep.mubr.bf16.mxu1 %v12202_v57  ;;  %v4017_v37 = vld [vmem:[#allocation3 + $0x2f0] sm:$0xff] }
 0x2f2   :  { %3915 = vst.msk [vmem:[#allocation3 + $0x2fc] sm:$0xf] %vm1166_vm1, %v3884_v15  ;;  %v2758_v4 = vpop.permute.xlu0 %2757 }
 0x2f3   :  { %2788 = vst.msk [vmem:[#allocation3 + $0x310] sm:$0xf] %vm1166_vm1, %v2758_v4  ;;  %v13437_v63 = vpop.f32.mrf.mxu1 }
 0x2f5   :  { %v13543_v21 = vpop.f32.mrf.mxu0  ;;  %v2760_v14 = vpop.permute.xlu1 %2759 }
 0x2f6   :  { %2789 = vst.msk [vmem:[#allocation3 + $0x330] sm:$0xf] %vm1166_vm1, %v2760_v14  ;;  %5783 = vmatmul.mubr.bf16.gmra.mxu0 %v12195_v19  ;;  %v13438_v28 = vpop.f32.mrf.mxu1  ;;  %v3134_v36 = vpop.permute.xlu0 %3133  ;;  %v4014_v0 = vld [vmem:[#allocation3 + $0x2d8] sm:$0xff] }
 0x2f7   :  { %v13544_v25 = vpop.f32.mrf.mxu0  ;;  %5790 = vmatprep.mubr.bf16.mxu0 %v12204_v46  ;;  %v13439_v33 = vadd.f32 %v13438_v28, %v13437_v63  ;;  %3164 = vst.msk [vmem:[#allocation3 + $0x314] sm:$0xf] %vm1166_vm1, %v3134_v36 }
 0x2f8   :  { %v13545_v26 = vadd.f32 %v13544_v25, %v13543_v21  ;;  %5630 = vmatmul.mubr.bf16.gmra.mxu1 %v12201_v27  ;;  %v13440_v20 = vpop.f32.mrf.mxu1 }
 0x2f9   :  { %v13546_v30 = vpop.f32.mrf.mxu0  ;;  %v3136_v35 = vpop.permute.xlu1 %3135  ;;  %5637 = vmatprep.mubr.bf16.mxu1 %v12210_v31  ;;  %v4018_v2 = vld [vmem:[#allocation3 + $0x2f8] sm:$0xff] }
 0x2fa   :  { %v15677_v23 = vadd.f32 %v13545_v26, %v15662_v49  ;;  %3165 = vst.msk [vmem:[#allocation3 + $0x334] sm:$0xf] %vm1166_vm1, %v3136_v35  ;;  %v13441_v38 = vpop.f32.mrf.mxu1  ;;  %v3510_v47 = vpop.permute.xlu0 %3509  ;;  %v4013_v49 = vld [vmem:[#allocation3 + $0x2d0] sm:$0xff]  ;;  %v12220_v11 = vcombine.high %v4014_v0, %v4018_v2  ;;  %v12219_v4 = vcombine.low %v4014_v0, %v4018_v2 }
 0x2fb   :  { %v13547_v39 = vpop.f32.mrf.mxu0  ;;  %3540 = vst.msk [vmem:[#allocation3 + $0x318] sm:$0xf] %vm1166_vm1, %v3510_v47  ;;  %v12218_v54 = vcombine.high %v4013_v49, %v4017_v37  ;;  %v12217_v57 = vcombine.low %v4013_v49, %v4017_v37 }
 0x2fc   :  { %v13443_v51 = vpop.f32.mrf.mxu1 }
 0x2fd   :  { %v13549_v43 = vpop.f32.mrf.mxu0  ;;  %v3512_v45 = vpop.permute.xlu1 %3511 }
 0x2fe   :  { %3541 = vst.msk [vmem:[#allocation3 + $0x338] sm:$0xf] %vm1166_vm1, %v3512_v45  ;;  %5791 = vmatmul.mubr.bf16.gmra.mxu0 %v12203_v42  ;;  %v13444_v58 = vpop.f32.mrf.mxu1  ;;  %v3886_v61 = vpop.permute.xlu0 %3885  ;;  %v4021_v12 = vld [vmem:[#allocation3 + $0x310] sm:$0xff] }
 0x2ff   :  { %v13550_v50 = vpop.f32.mrf.mxu0  ;;  %5798 = vmatprep.mubr.bf16.mxu0 %v12212_v48  ;;  %3916 = vst.msk [vmem:[#allocation3 + $0x31c] sm:$0xf] %vm1166_vm1, %v3886_v61  ;;  %v3168_v42 = vld [vmem:[#allocation3 + $0x394] sm:$0xf]  ;;  %v3544_v61 = vld [vmem:[#allocation3 + $0x398] sm:$0xf] }
 0x300   :  { %v13551_v52 = vadd.f32 %v13550_v50, %v13549_v43  ;;  %5638 = vmatmul.mubr.bf16.gmra.mxu1 %v12209_v13  ;;  %v13446_v3 = vpop.f32.mrf.mxu1  ;;  %v2792_v43 = vld [vmem:[#allocation3 + $0x390] sm:$0xf] }
 0x301   :  { %v13552_v56 = vpop.f32.mrf.mxu0  ;;  %v3888_v60 = vpop.permute.xlu1 %3887  ;;  %5645 = vmatprep.mubr.bf16.mxu1 %v12218_v54  ;;  %v4025_v59 = vld [vmem:[#allocation3 + $0x330] sm:$0xff]  ;;  %v3920_v54 = vld [vmem:[#allocation3 + $0x39c] sm:$0xf] }
 0x302   :  { %v15683_v32 = vadd.f32 %v13551_v52, %v13439_v33  ;;  %3917 = vst.msk [vmem:[#allocation3 + $0x33c] sm:$0xf] %vm1166_vm1, %v3888_v60  ;;  %v13447_v7 = vpop.f32.mrf.mxu1  ;;  %v2762_v10 = vpop.permute.xlu0 %2761  ;;  %v12226_v15 = vcombine.high %v4021_v12, %v4025_v59  ;;  %v12225_v26 = vcombine.low %v4021_v12, %v4025_v59 }
 0x303   :  { %v13553_v62 = vpop.f32.mrf.mxu0  ;;  %2790 = vst.msk [vmem:[#allocation3 + $0x350] sm:$0xf] %vm1166_vm1, %v2762_v10 }
 0x305   :  { %v13555_v8 = vpop.f32.mrf.mxu0  ;;  %v2764_v9 = vpop.permute.xlu1 %2763 }
 0x306   :  { %2791 = vst.msk [vmem:[#allocation3 + $0x370] sm:$0xf] %vm1166_vm1, %v2764_v9  ;;  %5799 = vmatmul.mubr.bf16.gmra.mxu0 %v12211_v6  ;;  %v3138_v18 = vpop.permute.xlu0 %3137  ;;  %v4022_v19 = vld [vmem:[#allocation3 + $0x318] sm:$0xff] }
 0x307   :  { %v13556_v29 = vpop.f32.mrf.mxu0  ;;  %5806 = vmatprep.mubr.bf16.mxu0 %v12220_v11  ;;  %3166 = vst.msk [vmem:[#allocation3 + $0x354] sm:$0xf] %vm1166_vm1, %v3138_v18  ;;  %v4041_v11 = vld [vmem:[#allocation3 + $0x3b0] sm:$0xff] }
 0x308   :  { %5646 = vmatmul.mubr.bf16.gmra.mxu1 %v12217_v57  ;;  %v4042_v57 = vld [vmem:[#allocation3 + $0x3b8] sm:$0xff] }
 0x309   :  { %v13558_v16 = vpop.f32.mrf.mxu0  ;;  %v3140_v17 = vpop.permute.xlu1 %3139  ;;  %5653 = vmatprep.mubr.bf16.mxu1 %v12226_v15  ;;  %v4026_v21 = vld [vmem:[#allocation3 + $0x338] sm:$0xff] }
 0x30a   :  { %3167 = vst.msk [vmem:[#allocation3 + $0x374] sm:$0xf] %vm1166_vm1, %v3140_v17  ;;  %v3514_v24 = vpop.permute.xlu0 %3513  ;;  %v12228_v63 = vcombine.high %v4022_v19, %v4026_v21  ;;  %v12227_v39 = vcombine.low %v4022_v19, %v4026_v21 }
 0x30b   :  { %v13559_v14 = vpop.f32.mrf.mxu0  ;;  %3542 = vst.msk [vmem:[#allocation3 + $0x358] sm:$0xf] %vm1166_vm1, %v3514_v24 }
 0x30d   :  { %v13449_v46 = vpop.f32.mrf.mxu1  ;;  %v3516_v22 = vpop.permute.xlu1 %3515 }
 0x30e   :  { %3543 = vst.msk [vmem:[#allocation3 + $0x378] sm:$0xf] %vm1166_vm1, %v3516_v22  ;;  %5807 = vmatmul.mubr.bf16.gmra.mxu0 %v12219_v4  ;;  %v3890_v31 = vpop.permute.xlu0 %3889  ;;  %v4029_v33 = vld [vmem:[#allocation3 + $0x350] sm:$0xff] }
 0x30f   :  { %v13450_v25 = vpop.f32.mrf.mxu1  ;;  %5814 = vmatprep.mubr.bf16.mxu0 %v12228_v63  ;;  %3918 = vst.msk [vmem:[#allocation3 + $0x35c] sm:$0xf] %vm1166_vm1, %v3890_v31 }
 0x310   :  { %v13451_v27 = vadd.f32 %v13450_v25, %v13449_v46  ;;  %5654 = vmatmul.mubr.bf16.gmra.mxu1 %v12225_v26 }
 0x311   :  { %v13452_v28 = vpop.f32.mrf.mxu1  ;;  %v3892_v30 = vpop.permute.xlu1 %3891  ;;  %v4033_v35 = vld [vmem:[#allocation3 + $0x370] sm:$0xff] }
 0x312   :  { %3919 = vst.msk [vmem:[#allocation3 + $0x37c] sm:$0xf] %vm1166_vm1, %v3892_v30  ;;  %v12234_v20 = vcombine.high %v4029_v33, %v4033_v35  ;;  %v13561_v5 = vpop.f32.mrf.mxu0  ;;  %v2766_v45 = vpop.permute.xlu0 %2765  ;;  %v12233_v50 = vcombine.low %v4029_v33, %v4033_v35 }
 0x313   :  { %v13453_v36 = vpop.f32.mrf.mxu1  ;;  %v2793_v48 = vsel %vm15392_vm2, %v2766_v45, %v2792_v43 }
 0x314   :  { %5661 = vmatprep.mubr.bf16.mxu1 %v12234_v20  ;;  %v13562_v37 = vpop.f32.mrf.mxu0  ;;  %2794 = vst [vmem:[#allocation3 + $0x390] sm:$0xf] %v2793_v48 }
 0x315   :  { %v13455_v40 = vpop.f32.mrf.mxu1  ;;  %v3142_v38 = vpop.permute.xlu1 %3141  ;;  %v13563_v52 = vadd.f32 %v13562_v37, %v13561_v5 }
 0x316   :  { %v3169_v47 = vsel %vm15392_vm2, %v3142_v38, %v3168_v42  ;;  %5815 = vmatmul.mubr.bf16.gmra.mxu0 %v12227_v39  ;;  %v13564_v56 = vpop.f32.mrf.mxu0  ;;  %v3518_v62 = vpop.permute.xlu0 %3517  ;;  %v4030_v0 = vld [vmem:[#allocation3 + $0x358] sm:$0xff] }
 0x317   :  { %v13456_v49 = vpop.f32.mrf.mxu1  ;;  %3170 = vst [vmem:[#allocation3 + $0x394] sm:$0xf] %v3169_v47  ;;  %v15699_v58 = vadd.f32 %v13563_v52, %v13451_v27  ;;  %v3545_v6 = vsel %vm15392_vm2, %v3518_v62, %v3544_v61 }
 0x318   :  { %v13457_v51 = vadd.f32 %v13456_v49, %v13455_v40  ;;  %5662 = vmatmul.mubr.bf16.gmra.mxu1 %v12233_v50  ;;  %v13565_v8 = vpop.f32.mrf.mxu0  ;;  %3546 = vst [vmem:[#allocation3 + $0x398] sm:$0xf] %v3545_v6 }
 0x319   :  { %v13458_v13 = vpop.f32.mrf.mxu1  ;;  %v3894_v60 = vpop.permute.xlu1 %3893  ;;  %v4034_v2 = vld [vmem:[#allocation3 + $0x378] sm:$0xff] }
 0x31a   :  { %v3921_v3 = vsel %vm15392_vm2, %v3894_v60, %v3920_v54  ;;  %v12236_v9 = vcombine.high %v4030_v0, %v4034_v2  ;;  %v12235_v10 = vcombine.low %v4030_v0, %v4034_v2 }
 0x31b   :  { %v13459_v7 = vpop.f32.mrf.mxu1  ;;  %3922 = vst [vmem:[#allocation3 + $0x39c] sm:$0xf] %v3921_v3 }
 0x31c   :  { %5822 = vmatprep.mubr.bf16.mxu0 %v12236_v9 }
 0x31e   :  { %5823 = vmatmul.mubr.bf16.gmra.mxu0 %v12235_v10  ;;  %v4037_v12 = vld [vmem:[#allocation3 + $0x390] sm:$0xff] }
 0x31f   :  { %v12241_v59 = vcombine.low %v4037_v12, %v4041_v11  ;;  %v12242_v29 = vcombine.high %v4037_v12, %v4041_v11 }
 0x321   :  { %5669 = vmatprep.mubr.bf16.mxu1 %v12242_v29 }
 0x322   :  { %5670 = vmatmul.mubr.bf16.gmra.mxu1 %v12241_v59  ;;  %v4038_v15 = vld [vmem:[#allocation3 + $0x398] sm:$0xff] }
 0x323   :  { %v12243_v16 = vcombine.low %v4038_v15, %v4042_v57  ;;  %v12244_v17 = vcombine.high %v4038_v15, %v4042_v57 }
 0x325   :  { %v13567_v41 = vpop.f32.mrf.mxu0  ;;  %5830 = vmatprep.mubr.bf16.mxu0 %v12244_v17 }
 0x326   :  { %5831 = vmatmul.mubr.bf16.gmra.mxu0 %v12243_v16 }
 0x327   :  { %v13568_v18 = vpop.f32.mrf.mxu0 }
 0x328   :  { %v13569_v19 = vadd.f32 %v13568_v18, %v13567_v41 }
 0x329   :  { %v13570_v21 = vpop.f32.mrf.mxu0 }
 0x32a   :  { %v15705_v14 = vadd.f32 %v13569_v19, %v13457_v51 }
 0x32b   :  { %v13571_v4 = vpop.f32.mrf.mxu0 }
 0x32d   :  { %v13461_v46 = vpop.f32.mrf.mxu1 }
 0x32f   :  { %v13462_v22 = vpop.f32.mrf.mxu1 }
 0x330   :  { %v13463_v24 = vadd.f32 %v13462_v22, %v13461_v46 }
 0x331   :  { %v13464_v63 = vpop.f32.mrf.mxu1 }
 0x332   :  { %v13573_v26 = vpop.f32.mrf.mxu0 }
 0x333   :  { %v13465_v25 = vpop.f32.mrf.mxu1 }
 0x334   :  { %v13574_v28 = vpop.f32.mrf.mxu0 }
 0x335   :  { %v13467_v27 = vpop.f32.mrf.mxu1  ;;  %v13575_v31 = vadd.f32 %v13574_v28, %v13573_v26 }
 0x336   :  { %v13576_v35 = vpop.f32.mrf.mxu0 }
 0x337   :  { %v13468_v30 = vpop.f32.mrf.mxu1  ;;  %v15707_v36 = vadd.f32 %v13575_v31, %v13463_v24 }
 0x338   :  { %v13469_v33 = vadd.f32 %v13468_v30, %v13467_v27  ;;  %v13577_v39 = vpop.f32.mrf.mxu0  ;;  %v5847_v27 = vlaneseq }
 0x339   :  { %v13470_v20 = vpop.f32.mrf.mxu1 }
 0x33a   :  { %v15718_v20 = vshrl.u32 %v5847_v27, 7 }
 0x33b   :  { %v13471_v40 = vpop.f32.mrf.mxu1 }
 0x345   :  { %v13579_v5 = vpop.f32.mrf.mxu0 }
 0x347   :  { %v13580_v42 = vpop.f32.mrf.mxu0 }
 0x348   :  { %v13581_v38 = vadd.f32 %v13580_v42, %v13579_v5  ;;  %v5850_v42 = vadd.s32 16, %v15718_v20 }
 0x349   :  { %v13582_v43 = vpop.f32.mrf.mxu0 }
 0x34a   :  { %v15709_v45 = vadd.f32 %v13581_v38, %v13469_v33 }
 0x34b   :  { %v13583_v47 = vpop.f32.mrf.mxu0 }
 0x34d   :  { %v13473_v48 = vpop.f32.mrf.mxu1 }
 0x34f   :  { %v13474_v49 = vpop.f32.mrf.mxu1 }
 0x350   :  { %v13475_v37 = vadd.f32 %v13474_v49, %v13473_v48  ;;  %v15723_v49 = vand.u32 127, %v15718_v20 }
 0x351   :  { %v13476_v50 = vpop.f32.mrf.mxu1 }
 0x352   :  { %v13585_v52 = vpop.f32.mrf.mxu0  ;;  %v5882_v50 = vand.u32 127, %v5850_v42 }
 0x353   :  { %v13477_v51 = vpop.f32.mrf.mxu1 }
 0x354   :  { %v13586_v56 = vpop.f32.mrf.mxu0 }
 0x355   :  { %v13479_v13 = vpop.f32.mrf.mxu1  ;;  %v13587_v60 = vadd.f32 %v13586_v56, %v13585_v52 }
 0x356   :  { %v13588_v62 = vpop.f32.mrf.mxu0 }
 0x357   :  { %v13480_v54 = vpop.f32.mrf.mxu1  ;;  %v15711_v0 = vadd.f32 %v13587_v60, %v13475_v37  ;;  %v5912_v60 = vand.u32 15, %v15723_v49  ;;  %v15727_v62 = vand.u32 15, %v5882_v50 }
 0x358   :  { %v13481_v61 = vadd.f32 %v13480_v54, %v13479_v13  ;;  %v13589_v3 = vpop.f32.mrf.mxu0 }
 0x359   :  { %v13482_v2 = vpop.f32.mrf.mxu1  ;;  %vm15730_vm8 = vcmp.lt.s32.totalorder %v5912_v60, 7  ;;  %vm5946_vm4 = vcmp.lt.s32.totalorder %v15727_v62, 7  ;;  %v14068_v62 = vld [vmem:[%s17154_s3 + $0x1c0] ss:$8 sps:$4 sm:$0xff]  }
 0x35a   :  { %v5852_v2 = vadd.s32 32, %v15718_v20 }
 0x35b   :  { %v13483_v6 = vpop.f32.mrf.mxu1 }
 0x35d   :  { %v13591_v7 = vpop.f32.mrf.mxu0 }
 0x35f   :  { %v13592_v8 = vpop.f32.mrf.mxu0  ;;  %v13485_v11 = vpop.f32.mrf.mxu1 }
 0x360   :  { %v13593_v9 = vadd.f32 %v13592_v8, %v13591_v7 }
 0x361   :  { %v13594_v10 = vpop.f32.mrf.mxu0  ;;  %v13486_v29 = vpop.f32.mrf.mxu1 }
 0x362   :  { %v15713_v12 = vadd.f32 %v13593_v9, %v13481_v61  ;;  %v13487_v57 = vadd.f32 %v13486_v29, %v13485_v11  ;;  %v15735_v11 = vand.u32 127, %v5852_v2 }
 0x363   :  { %v13595_v59 = vpop.f32.mrf.mxu0  ;;  %v13488_v15 = vpop.f32.mrf.mxu1 }
 0x365   :  { %v13489_v17 = vpop.f32.mrf.mxu1 }
 0x366   :  { %v13597_v16 = vpop.f32.mrf.mxu0 }
 0x368   :  { %v13598_v41 = vpop.f32.mrf.mxu0  ;;  %v13491_v19 = vpop.f32.mrf.mxu1 }
 0x369   :  { %v13599_v18 = vadd.f32 %v13598_v41, %v13597_v16 }
 0x36a   :  { %v13600_v21 = vpop.f32.mrf.mxu0  ;;  %v13492_v46 = vpop.f32.mrf.mxu1 }
 0x36b   :  { %v15715_v4 = vadd.f32 %v13599_v18, %v13487_v57  ;;  %v5916_v21 = vand.u32 15, %v15735_v11  ;;  %v5854_v46 = vadd.s32 48, %v15718_v20 }
 0x36c   :  { %v13601_v22 = vpop.f32.mrf.mxu0  ;;  %v13494_v24 = vpop.f32.mrf.mxu1 }
 0x36d   :  { %vm15750_vm7 = vcmp.lt.s32.totalorder %v5916_v21, 7 }
 0x36e   :  { %v13603_v63 = vpop.f32.mrf.mxu0  ;;  %v13495_v25 = vpop.f32.mrf.mxu1 }
 0x370   :  { %v13604_v26 = vpop.f32.mrf.mxu0  ;;  %v13625_v28 = vpop.f32.mrf.mxu1 }
 0x371   :  { %v14076_v26 = vld [vmem:[%s17154_s3 + $0x1b4] ss:$8 sps:$4 sm:$0xff]  }
 0x372   :  { %v13606_v30 = vpop.f32.mrf.mxu0  ;;  %v13626_v31 = vpop.f32.mrf.mxu1 }
 0x373   :  { %v13627_v35 = vadd.f32 %v13626_v31, %v13625_v28  ;;  %v5886_v30 = vand.u32 127, %v5854_v46 }
 0x374   :  { %v13607_v33 = vpop.f32.mrf.mxu0  ;;  %v13628_v39 = vpop.f32.mrf.mxu1 }
 0x375   :  { %v5560_v40 = vadd.f32 %v13627_v35, %v15557_v53 }
 0x376   :  { %v13737_v5 = vpop.f32.mrf.mxu0  ;;  %v13629_v38 = vpop.f32.mrf.mxu1 }
 0x378   :  { %v13738_v43 = vpop.f32.mrf.mxu0  ;;  %v13631_v48 = vpop.f32.mrf.mxu1 }
 0x379   :  { %v13739_v47 = vadd.f32 %v13738_v43, %v13737_v5  ;;  %v15760_v43 = vand.u32 15, %v5886_v30  ;;  %v5860_v30 = vadd.s32 96, %v15718_v20 }
 0x37a   :  { %v13740_v37 = vpop.f32.mrf.mxu0  ;;  %v13632_v52 = vpop.f32.mrf.mxu1 }
 0x37b   :  { %v5721_v51 = vadd.f32 %v13739_v47, %v5560_v40  ;;  %v13633_v13 = vadd.f32 %v13632_v52, %v13631_v48  ;;  %v5856_v47 = vadd.s32 64, %v15718_v20  ;;  %vm5950_vm6 = vcmp.lt.s32.totalorder %v15760_v43, 7 }
 0x37c   :  { %v13741_v56 = vpop.f32.mrf.mxu0  ;;  %v13634_v54 = vpop.f32.mrf.mxu1 }
 0x37d   :  { %v5568_v53 = vadd.f32 %v13633_v13, %v15587_v34  ;;  %v15739_v15 = vsel %vm15730_vm8, %v5721_v51, 0.0  ;;  %v15764_v13 = vand.u32 127, %v5856_v47 }
 0x37e   :  { %v13743_v61 = vpop.f32.mrf.mxu0  ;;  %v13635_v3 = vpop.f32.mrf.mxu1 }
 0x380   :  { %v13744_v6 = vpop.f32.mrf.mxu0  ;;  %v13637_v8 = vpop.f32.mrf.mxu1 }
 0x381   :  { %v13745_v7 = vadd.f32 %v13744_v6, %v13743_v61 }
 0x382   :  { %v13746_v10 = vpop.f32.mrf.mxu0  ;;  %v13638_v34 = vpop.f32.mrf.mxu1 }
 0x383   :  { %v5729_v59 = vadd.f32 %v13745_v7, %v5568_v53  ;;  %v13639_v29 = vadd.f32 %v13638_v34, %v13637_v8  ;;  %v5920_v7 = vand.u32 15, %v15764_v13  ;;  %v5858_v8 = vadd.s32 80, %v15718_v20 }
 0x384   :  { %v13747_v57 = vpop.f32.mrf.mxu0  ;;  %v13640_v17 = vpop.f32.mrf.mxu1 }
 0x385   :  { %v15743_v16 = vsel %vm5946_vm4, %v5729_v59, 0.0  ;;  %v5576_v18 = vadd.f32 %v13639_v29, %v15617_v44  ;;  %vm15774_vm9 = vcmp.lt.s32.totalorder %v5920_v7, 7  ;;  %v14077_v57 = vld [vmem:[%s17154_s3 + $0xa0] ss:$8 sps:$4 sm:$0xff]  }
 0x386   :  { %v6139_v41 = vadd.f32 %v15743_v16, %v15739_v15  ;;  %v13749_v19 = vpop.f32.mrf.mxu0  ;;  %v13641_v22 = vpop.f32.mrf.mxu1 }
 0x388   :  { %v13750_v24 = vpop.f32.mrf.mxu0  ;;  %v13643_v25 = vpop.f32.mrf.mxu1 }
 0x389   :  { %v13751_v63 = vadd.f32 %v13750_v24, %v13749_v19 }
 0x38a   :  { %v13752_v28 = vpop.f32.mrf.mxu0  ;;  %v13644_v33 = vpop.f32.mrf.mxu1 }
 0x38b   :  { %v5737_v31 = vadd.f32 %v13751_v63, %v5576_v18  ;;  %v13645_v35 = vadd.f32 %v13644_v33, %v13643_v25 }
 0x38c   :  { %v13753_v39 = vpop.f32.mrf.mxu0  ;;  %v13646_v40 = vpop.f32.mrf.mxu1 }
 0x38d   :  { %v15756_v44 = vsel %vm15750_vm7, %v5737_v31, 0.0  ;;  %v5584_v42 = vadd.f32 %v13645_v35, %v15648_v1 }
 0x38e   :  { %v6141_v5 = vadd.f32 %v6139_v41, %v15756_v44  ;;  %v13755_v38 = vpop.f32.mrf.mxu0  ;;  %v13647_v48 = vpop.f32.mrf.mxu1  ;;  %v5890_v41 = vand.u32 127, %v5858_v8 }
 0x390   :  { %v13756_v37 = vpop.f32.mrf.mxu0  ;;  %v13649_v51 = vpop.f32.mrf.mxu1  ;;  %v15784_v28 = vand.u32 15, %v5890_v41 }
 0x391   :  { %v13757_v50 = vadd.f32 %v13756_v37, %v13755_v38 }
 0x392   :  { %v13758_v52 = vpop.f32.mrf.mxu0  ;;  %v13650_v54 = vpop.f32.mrf.mxu1  ;;  %vm5954_vm10 = vcmp.lt.s32.totalorder %v15784_v28, 7 }
 0x393   :  { %v5745_v56 = vadd.f32 %v13757_v50, %v5584_v42  ;;  %v13651_v60 = vadd.f32 %v13650_v54, %v13649_v51 }
 0x394   :  { %v13759_v53 = vpop.f32.mrf.mxu0  ;;  %v13652_v61 = vpop.f32.mrf.mxu1 }
 0x395   :  { %v15768_v1 = vsel %vm5950_vm6, %v5745_v56, 0.0  ;;  %v5592_v3 = vadd.f32 %v13651_v60, %v15664_v55 }
 0x396   :  { %v6143_v2 = vadd.f32 %v6141_v5, %v15768_v1  ;;  %v13761_v6 = vpop.f32.mrf.mxu0  ;;  %v13653_v10 = vpop.f32.mrf.mxu1  ;;  %v5892_v5 = vand.u32 127, %v5860_v30  ;;  %v5866_v30 = vadd.s32 144, %v15718_v20 }
 0x398   :  { %v13762_v59 = vpop.f32.mrf.mxu0  ;;  %v13655_v29 = vpop.f32.mrf.mxu1  ;;  %v15794_v56 = vand.u32 15, %v5892_v5 }
 0x399   :  { %v13763_v34 = vadd.f32 %v13762_v59, %v13761_v6 }
 0x39a   :  { %v13764_v17 = vpop.f32.mrf.mxu0  ;;  %v13656_v19 = vpop.f32.mrf.mxu1  ;;  %vm5956_vm11 = vcmp.lt.s32.totalorder %v15794_v56, 7 }
 0x39b   :  { %v5753_v18 = vadd.f32 %v13763_v34, %v5592_v3  ;;  %v13657_v21 = vadd.f32 %v13656_v19, %v13655_v29  ;;  %v5864_v34 = vadd.s32 128, %v15718_v20 }
 0x39c   :  { %v13765_v46 = vpop.f32.mrf.mxu0  ;;  %v13658_v22 = vpop.f32.mrf.mxu1 }
 0x39d   :  { %v15780_v55 = vsel %vm15774_vm9, %v5753_v18, 0.0  ;;  %v5600_v63 = vadd.f32 %v13657_v21, %v15677_v23  ;;  %v15803_v19 = vand.u32 127, %v5864_v34 }
 0x39e   :  { %v6145_v24 = vadd.f32 %v6143_v2, %v15780_v55  ;;  %v13767_v25 = vpop.f32.mrf.mxu0  ;;  %v13659_v31 = vpop.f32.mrf.mxu1 }
 0x3a0   :  { %v13768_v33 = vpop.f32.mrf.mxu0  ;;  %v13661_v39 = vpop.f32.mrf.mxu1 }
 0x3a1   :  { %v13769_v35 = vadd.f32 %v13768_v33, %v13767_v25  ;;  %v5928_v25 = vand.u32 15, %v15803_v19 }
 0x3a2   :  { %v13770_v40 = vpop.f32.mrf.mxu0  ;;  %v13662_v38 = vpop.f32.mrf.mxu1 }
 0x3a3   :  { %v5761_v42 = vadd.f32 %v13769_v35, %v5600_v63  ;;  %v13663_v47 = vadd.f32 %v13662_v38, %v13661_v39  ;;  %vm15808_vm12 = vcmp.lt.s32.totalorder %v5928_v25, 7  ;;  %v5898_v38 = vand.u32 127, %v5866_v30 }
 0x3a4   :  { %v13771_v48 = vpop.f32.mrf.mxu0  ;;  %v13664_v37 = vpop.f32.mrf.mxu1 }
 0x3a5   :  { %v15790_v23 = vsel %vm5954_vm10, %v5761_v42, 0.0  ;;  %v5608_v51 = vadd.f32 %v13663_v47, %v15683_v32 }
 0x3a6   :  { %v6147_v50 = vadd.f32 %v6145_v24, %v15790_v23  ;;  %v13773_v52 = vpop.f32.mrf.mxu0  ;;  %v13665_v54 = vpop.f32.mrf.mxu1 }
 0x3a8   :  { %v13774_v60 = vpop.f32.mrf.mxu0  ;;  %v13667_v61 = vpop.f32.mrf.mxu1 }
 0x3a9   :  { %v13775_v53 = vadd.f32 %v13774_v60, %v13773_v52  ;;  %v15817_v60 = vand.u32 15, %v5898_v38 }
 0x3aa   :  { %v13776_v2 = vpop.f32.mrf.mxu0  ;;  %v13668_v6 = vpop.f32.mrf.mxu1 }
 0x3ab   :  { %v5769_v3 = vadd.f32 %v13775_v53, %v5608_v51  ;;  %v5868_v53 = vadd.s32 160, %v15718_v20  ;;  %vm5962_vm13 = vcmp.lt.s32.totalorder %v15817_v60, 7  ;;  %v14094_v60 = vld [vmem:[%s17154_s3 + $0x184] ss:$8 sps:$4 sm:$0xff]  }
 0x3ac   :  { %v13777_v7 = vpop.f32.mrf.mxu0  ;;  %v13670_v10 = vpop.f32.mrf.mxu1 }
 0x3ad   :  { %v15799_v8 = vsel %vm5956_vm11, %v5769_v3, 0.0 }
 0x3ae   :  { %v6149_v32 = vadd.f32 %v6147_v50, %v15799_v8  ;;  %v13779_v59 = vpop.f32.mrf.mxu0  ;;  %v13671_v29 = vpop.f32.mrf.mxu1 }
 0x3af   :  { %v15822_v59 = vand.u32 127, %v5868_v53 }
 0x3b0   :  { %v13780_v17 = vpop.f32.mrf.mxu0  ;;  %v13673_v41 = vpop.f32.mrf.mxu1 }
 0x3b2   :  { %v13782_v18 = vpop.f32.mrf.mxu0  ;;  %v13674_v21 = vpop.f32.mrf.mxu1 }
 0x3b3   :  { %v13675_v22 = vadd.f32 %v13674_v21, %v13673_v41 }
 0x3b4   :  { %v13783_v46 = vpop.f32.mrf.mxu0  ;;  %v13676_v24 = vpop.f32.mrf.mxu1 }
 0x3b5   :  { %v5624_v35 = vadd.f32 %v13675_v22, %v15699_v58  ;;  %v5870_v22 = vadd.s32 176, %v15718_v20 }
 0x3b6   :  { %v13785_v63 = vpop.f32.mrf.mxu0  ;;  %v13677_v31 = vpop.f32.mrf.mxu1 }
 0x3b8   :  { %v13786_v33 = vpop.f32.mrf.mxu0  ;;  %v13679_v40 = vpop.f32.mrf.mxu1 }
 0x3b9   :  { %v13787_v39 = vadd.f32 %v13786_v33, %v13785_v63 }
 0x3ba   :  { %v13788_v42 = vpop.f32.mrf.mxu0  ;;  %v13680_v48 = vpop.f32.mrf.mxu1 }
 0x3bb   :  { %v5785_v47 = vadd.f32 %v13787_v39, %v5624_v35  ;;  %v13681_v51 = vadd.f32 %v13680_v48, %v13679_v40  ;;  %v5902_v39 = vand.u32 127, %v5870_v22 }
 0x3bc   :  { %v13789_v37 = vpop.f32.mrf.mxu0  ;;  %v13682_v52 = vpop.f32.mrf.mxu1 }
 0x3bd   :  { %v15814_v50 = vsel %vm15808_vm12, %v5785_v47, 0.0  ;;  %v5632_v3 = vadd.f32 %v13681_v51, %v15705_v14  ;;  %v5932_v14 = vand.u32 15, %v15822_v59  ;;  %v5872_v51 = vadd.s32 192, %v15718_v20 }
 0x3be   :  { %v6153_v54 = vadd.f32 %v6149_v32, %v15814_v50  ;;  %v13791_v58 = vpop.f32.mrf.mxu0  ;;  %v13683_v61 = vpop.f32.mrf.mxu1 }
 0x3bf   :  { %vm15832_vm14 = vcmp.lt.s32.totalorder %v5932_v14, 7  ;;  %v5874_v14 = vadd.s32 208, %v15718_v20 }
 0x3c0   :  { %v13792_v2 = vpop.f32.mrf.mxu0  ;;  %v13685_v7 = vpop.f32.mrf.mxu1 }
 0x3c1   :  { %v13793_v6 = vadd.f32 %v13792_v2, %v13791_v58 }
 0x3c2   :  { %v13794_v10 = vpop.f32.mrf.mxu0  ;;  %v13686_v29 = vpop.f32.mrf.mxu1 }
 0x3c3   :  { %v5793_v34 = vadd.f32 %v13793_v6, %v5632_v3  ;;  %v13687_v41 = vadd.f32 %v13686_v29, %v13685_v7  ;;  %v15845_v6 = vand.u32 127, %v5872_v51  ;;  %v5906_v51 = vand.u32 127, %v5874_v14  ;;  %v14013_v14 = vld [vmem:[%s17154_s3 + $0x54] ss:$8 sps:$4 sm:$0xff]  }
 0x3c4   :  { %v13795_v17 = vpop.f32.mrf.mxu0  ;;  %v13688_v18 = vpop.f32.mrf.mxu1 }
 0x3c5   :  { %v15826_v32 = vsel %vm5962_vm13, %v5793_v34, 0.0  ;;  %v5640_v25 = vadd.f32 %v13687_v41, %v15707_v36 }
 0x3c6   :  { %v6155_v21 = vadd.f32 %v6153_v54, %v15826_v32  ;;  %v13797_v46 = vpop.f32.mrf.mxu0  ;;  %v13689_v24 = vpop.f32.mrf.mxu1  ;;  %v15842_v54 = vand.u32 15, %v5902_v39 }
 0x3c7   :  { %v4045_v24 = vld [vmem:[#allocation3 + $0x3d0] sm:$0xff] }
 0x3c8   :  { %v13798_v63 = vpop.f32.mrf.mxu0  ;;  %v13691_v31 = vpop.f32.mrf.mxu1  ;;  %vm5966_vm15 = vcmp.lt.s32.totalorder %v15842_v54, 7 }
 0x3c9   :  { %v13799_v30 = vadd.f32 %v13798_v63, %v13797_v46  ;;  %v4049_v63 = vld [vmem:[#allocation3 + $0x3f0] sm:$0xff] }
 0x3ca   :  { %v13800_v35 = vpop.f32.mrf.mxu0  ;;  %v13692_v42 = vpop.f32.mrf.mxu1 }
 0x3cb   :  { %v5801_v40 = vadd.f32 %v13799_v30, %v5640_v25  ;;  %v13693_v48 = vadd.f32 %v13692_v42, %v13691_v31  ;;  %v13999_v30 = vld [vmem:[%s17154_s3 + $0x70] ss:$8 sps:$4 sm:$0xff]   ;;  %v12249_v31 = vcombine.low %v4045_v24, %v4049_v63  ;;  %v12250_v35 = vcombine.high %v4045_v24, %v4049_v63  ;;  %v14016_v63 = vld [vmem:[%s17154_s3 + $0x154] ss:$8 sps:$4 sm:$0xff]  }
 0x3cc   :  { %v13801_v38 = vpop.f32.mrf.mxu0  ;;  %v13694_v37 = vpop.f32.mrf.mxu1  ;;  %v14011_v24 = vld [vmem:[%s17154_s3 + $0x50] ss:$8 sps:$4 sm:$0xff]  }
 0x3cd   :  { %v15838_v47 = vsel %vm15832_vm14, %v5801_v40, 0.0  ;;  %v5648_v61 = vadd.f32 %v13693_v48, %v15709_v45  ;;  %v14001_v48 = vld [vmem:[%s17154_s3 + $0x74] ss:$8 sps:$4 sm:$0xff]   ;;  %5677 = vmatprep.mubr.bf16.mxu1 %v12250_v35  ;;  %v14019_v35 = vld [vmem:[%s17154_s3 + $0x44] ss:$8 sps:$4 sm:$0xff]  }
 0x3ce   :  { %v6157_v36 = vadd.f32 %v6155_v21, %v15838_v47  ;;  %v13803_v52 = vpop.f32.mrf.mxu0  ;;  %v13695_v58 = vpop.f32.mrf.mxu1  ;;  %v5936_v21 = vand.u32 15, %v15845_v6  ;;  %9338 = vmatprep.subr.bf16.mxu1 %v14001_v48  ;;  %5678 = vmatmul.mubr.bf16.gmra.mxu1 %v12249_v31  ;;  %v14022_v48 = vld [vmem:[%s17154_s3 + $0x144] ss:$8 sps:$4 sm:$0xff]  }
 0x3cf   :  { %9339 = vmatpush1.bf16.msra.mxu1 %v13999_v30 }
 0x3d0   :  { %v13804_v53 = vpop.f32.mrf.mxu0  ;;  %v13697_v3 = vpop.f32.mrf.mxu1  ;;  %vm15859_vm0 = vcmp.lt.s32.totalorder %v5936_v21, 7  ;;  %v15889_v21 = vand.u32 15, %v5906_v51 }
 0x3d1   :  { %v13805_v2 = vadd.f32 %v13804_v53, %v13803_v52  ;;  %v14005_v53 = vld [vmem:[%s17154_s3 + $0x60] ss:$8 sps:$4 sm:$0xff]  }
 0x3d2   :  { %v13806_v7 = vpop.f32.mrf.mxu0  ;;  %v13698_v34 = vpop.f32.mrf.mxu1  ;;  %vm5970_vm1 = vcmp.lt.s32.totalorder %v15889_v21, 7  ;;  %v14151_v21 = vld [vmem:[%s17154_s3 + $0x274] ss:$8 sps:$4 sm:$0xff]  }
 0x3d3   :  { %v5809_v10 = vadd.f32 %v13805_v2, %v5648_v61  ;;  %v13699_v41 = vadd.f32 %v13698_v34, %v13697_v3  ;;  %v14007_v61 = vld [vmem:[%s17154_s3 + $0x64] ss:$8 sps:$4 sm:$0xff]   ;;  %v14008_v3 = vld [vmem:[%s17154_s3 + $0x160] ss:$8 sps:$4 sm:$0xff]  }
 0x3d4   :  { %v13807_v29 = vpop.f32.mrf.mxu0  ;;  %v13700_v18 = vpop.f32.mrf.mxu1  ;;  %9340 = vmatprep.subr.bf16.mxu1 %v14007_v61 }
 0x3d5   :  { %v15850_v17 = vsel %vm5966_vm15, %v5809_v10, 0.0  ;;  %v5656_v39 = vadd.f32 %v13699_v41, %v15711_v0  ;;  %v14004_v0 = vld [vmem:[%s17154_s3 + $0x174] ss:$8 sps:$4 sm:$0xff]   ;;  %v14010_v29 = vld [vmem:[%s17154_s3 + $0x164] ss:$8 sps:$4 sm:$0xff]   ;;  %9341 = vmatpush1.bf16.msra.mxu1 %v14005_v53 }
 0x3d6   :  { %v6159_v45 = vadd.f32 %v6157_v36, %v15850_v17  ;;  %v13809_v46 = vpop.f32.mrf.mxu0  ;;  %v13701_v22 = vpop.f32.mrf.mxu1  ;;  %v14002_v36 = vld [vmem:[%s17154_s3 + $0x170] ss:$8 sps:$4 sm:$0xff]   ;;  %9531 = vmatprep.subr.bf16.mxu0 %v14004_v0  ;;  %9342 = vmatprep.subr.bf16.mxu1 %v14013_v14  ;;  %v14020_v0 = vld [vmem:[%s17154_s3 + $0x140] ss:$8 sps:$4 sm:$0xff]   ;;  %v14025_v53 = vld [vmem:[%s17154_s3 + $0x34] ss:$8 sps:$4 sm:$0xff]  }
 0x3d7   :  { %9532 = vmatpush1.bf16.msra.mxu0 %v14002_v36 }
 0x3d8   :  { %v13810_v25 = vpop.f32.mrf.mxu0  ;;  %v13703_v38 = vpop.f32.mrf.mxu1  ;;  %9533 = vmatprep.subr.bf16.mxu0 %v14010_v29  ;;  %v14023_v29 = vld [vmem:[%s17154_s3 + $0x30] ss:$8 sps:$4 sm:$0xff]  }
 0x3d9   :  { %v13811_v40 = vadd.f32 %v13810_v25, %v13809_v46  ;;  %v5876_v46 = vadd.s32 224, %v15718_v20  ;;  %v14014_v25 = vld [vmem:[%s17154_s3 + $0x150] ss:$8 sps:$4 sm:$0xff]   ;;  %9343 = vmatpush1.bf16.msra.mxu1 %v14011_v24  ;;  %v14031_v24 = vld [vmem:[%s17154_s3 + $0x24] ss:$8 sps:$4 sm:$0xff]  }
 0x3da   :  { %v13812_v37 = vpop.f32.mrf.mxu0  ;;  %v13704_v58 = vpop.f32.mrf.mxu1  ;;  %9344 = vmatprep.subr.bf16.mxu1 %v14019_v35 }
 0x3db   :  { %v5817_v52 = vadd.f32 %v13811_v40, %v5656_v39  ;;  %v13705_v10 = vadd.f32 %v13704_v58, %v13703_v38  ;;  %9534 = vmatpush1.bf16.msra.mxu0 %v14008_v3  ;;  %v5908_v38 = vand.u32 127, %v5876_v46 }
 0x3dc   :  { %v13813_v2 = vpop.f32.mrf.mxu0  ;;  %v13706_v34 = vpop.f32.mrf.mxu1  ;;  %9535 = vmatprep.subr.bf16.mxu0 %v14016_v63 }
 0x3dd   :  { %v15883_v7 = vsel %vm15859_vm0, %v5817_v52, 0.0  ;;  %v5664_v30 = vadd.f32 %v13705_v10, %v15713_v12  ;;  %v14017_v12 = vld [vmem:[%s17154_s3 + $0x40] ss:$8 sps:$4 sm:$0xff]   ;;  %v15926_v10 = vand.u32 15, %v5908_v38  ;;  %v14028_v34 = vld [vmem:[%s17154_s3 + $0x134] ss:$8 sps:$4 sm:$0xff]  }
 0x3de   :  { %v6161_v41 = vadd.f32 %v6159_v45, %v15883_v7  ;;  %v13815_v18 = vpop.f32.mrf.mxu0  ;;  %v13707_v22 = vpop.f32.mrf.mxu1  ;;  %9345 = vmatpush1.bf16.msra.mxu1 %v14017_v12  ;;  %v14040_v38 = vld [vmem:[%s17154_s3 + $0x114] ss:$8 sps:$4 sm:$0xff]   ;;  %v14038_v12 = vld [vmem:[%s17154_s3 + $0x110] ss:$8 sps:$4 sm:$0xff]  }
 0x3df   :  { %9536 = vmatpush1.bf16.msra.mxu0 %v14014_v25  ;;  %9346 = vmatprep.subr.bf16.mxu1 %v14025_v53  ;;  %vm5972_vm3 = vcmp.lt.s32.totalorder %v15926_v10, 7 }
 0x3e0   :  { %v13816_v45 = vpop.f32.mrf.mxu0  ;;  %9537 = vmatprep.subr.bf16.mxu0 %v14022_v48  ;;  %v14035_v48 = vld [vmem:[%s17154_s3 + $0x10] ss:$8 sps:$4 sm:$0xff]  }
 0x3e1   :  { %v13817_v31 = vadd.f32 %v13816_v45, %v13815_v18  ;;  %v14034_v45 = vld [vmem:[%s17154_s3 + $0x124] ss:$8 sps:$4 sm:$0xff]  }
 0x3e2   :  { %v13709_v39 = vpop.f32.mrf.mxu1  ;;  %v13818_v40 = vpop.f32.mrf.mxu0  ;;  %9347 = vmatpush1.bf16.msra.mxu1 %v14023_v29  ;;  %v14047_v29 = vld [vmem:[%s17154_s3 + $0xf0] ss:$8 sps:$4 sm:$0xff]  }
 0x3e3   :  { %v5825_v37 = vadd.f32 %v13817_v31, %v5664_v30  ;;  %9538 = vmatpush1.bf16.msra.mxu0 %v14020_v0  ;;  %v14032_v31 = vld [vmem:[%s17154_s3 + $0x120] ss:$8 sps:$4 sm:$0xff]   ;;  %9348 = vmatprep.subr.bf16.mxu1 %v14031_v24  ;;  %v14046_v0 = vld [vmem:[%s17154_s3 + $0x104] ss:$8 sps:$4 sm:$0xff]  }
 0x3e4   :  { %v13710_v51 = vpop.f32.mrf.mxu1  ;;  %v13819_v36 = vpop.f32.mrf.mxu0  ;;  %9539 = vmatprep.subr.bf16.mxu0 %v14028_v34  ;;  %v14052_v34 = vld [vmem:[%s17154_s3 + $0x1f4] ss:$8 sps:$4 sm:$0xff]  }
 0x3e5   :  { %v15920_v52 = vsel %vm5970_vm1, %v5825_v37, 0.0  ;;  %v13711_v58 = vadd.f32 %v13710_v51, %v13709_v39  ;;  %v14037_v39 = vld [vmem:[%s17154_s3 + $0x14] ss:$8 sps:$4 sm:$0xff]   ;;  %v14043_v51 = vld [vmem:[%s17154_s3 + $0x4] ss:$8 sps:$4 sm:$0xff]  }
 0x3e6   :  { %v6163_v61 = vadd.f32 %v6161_v41, %v15920_v52  ;;  %v13712_v2 = vpop.f32.mrf.mxu1  ;;  %v13821_v3 = vpop.f32.mrf.mxu0  ;;  %v14026_v41 = vld [vmem:[%s17154_s3 + $0x130] ss:$8 sps:$4 sm:$0xff]  }
 0x3e7   :  { %v5672_v14 = vadd.f32 %v13711_v58, %v15715_v4  ;;  %v14029_v4 = vld [vmem:[%s17154_s3 + $0x20] ss:$8 sps:$4 sm:$0xff]   ;;  %9540 = vmatpush1.bf16.msra.mxu0 %v14026_v41  ;;  %v14049_v2 = vld [vmem:[%s17154_s3 + $0xf4] ss:$8 sps:$4 sm:$0xff]   ;;  %v14055_v41 = vld [vmem:[%s17154_s3 + $0xe4] ss:$8 sps:$4 sm:$0xff]  }
 0x3e8   :  { %v13713_v18 = vpop.f32.mrf.mxu1  ;;  %v13822_v46 = vpop.f32.mrf.mxu0  ;;  %9541 = vmatprep.subr.bf16.mxu0 %v14034_v45  ;;  %9349 = vmatpush1.bf16.msra.mxu1 %v14029_v4  ;;  %v14041_v58 = vld [vmem:[%s17154_s3] ss:$8 sps:$4 sm:$0xff]  }
 0x3e9   :  { %v13823_v22 = vadd.f32 %v13822_v46, %v13821_v3  ;;  %9350 = vmatprep.subr.bf16.mxu1 %v14037_v39  ;;  %v14050_v46 = vld [vmem:[%s17154_s3 + $0x1f0] ss:$8 sps:$4 sm:$0xff]   ;;  %v14056_v45 = vld [vmem:[%s17154_s3 + $0x1e0] ss:$8 sps:$4 sm:$0xff]   ;;  %v14064_v39 = vld [vmem:[%s17154_s3 + $0x1d4] ss:$8 sps:$4 sm:$0xff]  }
 0x3ea   :  { %v13824_v63 = vpop.f32.mrf.mxu0 }
 0x3eb   :  { %v5833_v25 = vadd.f32 %v13823_v22, %v5672_v14  ;;  %9542 = vmatpush1.bf16.msra.mxu0 %v14032_v31  ;;  %v14058_v22 = vld [vmem:[%s17154_s3 + $0x1e4] ss:$8 sps:$4 sm:$0xff]   ;;  %v14053_v63 = vld [vmem:[%s17154_s3 + $0xe0] ss:$8 sps:$4 sm:$0xff]  }
 0x3ec   :  { %v13825_v30 = vpop.f32.mrf.mxu0  ;;  %9543 = vmatprep.subr.bf16.mxu0 %v14040_v38  ;;  %9351 = vmatpush1.bf16.msra.mxu1 %v14035_v48  ;;  %v14067_v48 = vld [vmem:[%s17154_s3 + $0xc4] ss:$8 sps:$4 sm:$0xff]  }
 0x3ed   :  { %v6134_v35 = vsel %vm5972_vm3, %v5833_v25, 0.0  ;;  %9352 = vmatprep.subr.bf16.mxu1 %v14043_v51  ;;  %v14061_v25 = vld [vmem:[%s17154_s3 + $0xd4] ss:$8 sps:$4 sm:$0xff]  }
 0x3ee   :  { %v6165_v40 = vadd.f32 %v6163_v61, %v6134_v35  ;;  %v14044_v61 = vld [vmem:[%s17154_s3 + $0x100] ss:$8 sps:$4 sm:$0xff]  }
 0x3ef   :  { %9544 = vmatpush1.bf16.msra.mxu0 %v14038_v12  ;;  %v4046_v12 = vld [vmem:[#allocation3 + $0x3d8] sm:$0xff] }
 0x3f0   :  { %v6169_v37 = vrot.slane %v6165_v40, 4  ;;  %9545 = vmatprep.subr.bf16.mxu0 %v14046_v0  ;;  %9353 = vmatpush1.bf16.msra.mxu1 %v14041_v58  ;;  %v14073_v0 = vld [vmem:[%s17154_s3 + $0xb4] ss:$8 sps:$4 sm:$0xff]   ;;  %v14071_v58 = vld [vmem:[%s17154_s3 + $0xb0] ss:$8 sps:$4 sm:$0xff]  }
 0x3f1   :  { %9354 = vmatprep.subr.bf16.mxu1 %v14049_v2 }
 0x3f2   :  { %v6170_v36 = vadd.f32 %v6169_v37, %v6165_v40  ;;  %v14065_v37 = vld [vmem:[%s17154_s3 + $0xc0] ss:$8 sps:$4 sm:$0xff]  }
 0x3f3   :  { %9546 = vmatpush1.bf16.msra.mxu0 %v14044_v61 }
 0x3f4   :  { %v6171_v53 = vrot.slane %v6170_v36, 2  ;;  %9547 = vmatprep.subr.bf16.mxu0 %v14052_v34  ;;  %9355 = vmatpush2.bf16.msra.mxu1 %v14047_v29  ;;  %v14074_v29 = vld [vmem:[%s17154_s3 + $0x1b0] ss:$8 sps:$4 sm:$0xff]  }
 0x3f5   :  { %9356 = vmatprep.subr.bf16.mxu1 %v14055_v41 }
 0x3f6   :  { %v6172_v3 = vadd.f32 %v6171_v53, %v6170_v36  ;;  %v4050_v53 = vld [vmem:[#allocation3 + $0x3f8] sm:$0xff] }
 0x3f7   :  { %9548 = vmatpush2.bf16.msra.mxu0 %v14050_v46  ;;  %v12251_v46 = vcombine.low %v4046_v12, %v4050_v53  ;;  %v12252_v43 = vcombine.high %v4046_v12, %v4050_v53 }
 0x3f8   :  { %v6173_v18 = vrot.slane %v6172_v3, 1  ;;  %9549 = vmatprep.subr.bf16.mxu0 %v14058_v22  ;;  %9357 = vmatpush2.bf16.msra.mxu1 %v14053_v63  ;;  %v14082_v22 = vld [vmem:[%s17154_s3 + $0x1a4] ss:$8 sps:$4 sm:$0xff]  }
 0x3f9   :  { %9358 = vmatprep.subr.bf16.mxu1 %v14061_v25  ;;  %5838 = vmatprep.mubr.bf16.mxu0 %v12252_v43  ;;  %v14085_v25 = vld [vmem:[%s17154_s3 + $0x94] ss:$8 sps:$4 sm:$0xff]  }
 0x3fa   :  { %v6174_v14 = vadd.f32 %v6173_v18, %v6172_v3  ;;  %v14079_v18 = vld [vmem:[%s17154_s3 + $0xa4] ss:$8 sps:$4 sm:$0xff]   ;;  %5839 = vmatmul.mubr.bf16.gmra.mxu0 %v12251_v46 }
 0x3fb   :  { %9550 = vmatpush2.bf16.msra.mxu0 %v14056_v45  ;;  %v14080_v45 = vld [vmem:[%s17154_s3 + $0x1a0] ss:$8 sps:$4 sm:$0xff]  }
 0x3fc   :  { %v15995_v24 = vmul.f32 0.010204081, %v6174_v14  ;;  %9551 = vmatprep.subr.bf16.mxu0 %v14064_v39 }
 0x3fe   :  { %v16008_v4 = vsub.f32 %v15739_v15, %v15995_v24  ;;  %v16012_v30 = vsub.f32 %v15743_v16, %v15995_v24  ;;  %v16016_v31 = vsub.f32 %v15756_v44, %v15995_v24  ;;  %v16023_v40 = vsub.f32 %v15768_v1, %v15995_v24 }
 0x3ff   :  { %v16027_v15 = vsub.f32 %v15780_v55, %v15995_v24  ;;  %v16031_v16 = vsub.f32 %v15790_v23, %v15995_v24  ;;  %v16035_v44 = vsub.f32 %v15799_v8, %v15995_v24  ;;  %v16039_v38 = vsub.f32 %v15814_v50, %v15995_v24  ;;  %v14059_v8 = vld [vmem:[%s17154_s3 + $0xd0] ss:$8 sps:$4 sm:$0xff]  }
 0x400   :  { %v16043_v1 = vsub.f32 %v15826_v32, %v15995_v24  ;;  %v16047_v55 = vsub.f32 %v15838_v47, %v15995_v24  ;;  %v16051_v23 = vsub.f32 %v15850_v17, %v15995_v24  ;;  %v16058_v50 = vsub.f32 %v15883_v7, %v15995_v24  ;;  %v14062_v17 = vld [vmem:[%s17154_s3 + $0x1d0] ss:$8 sps:$4 sm:$0xff]   ;;  %9359 = vmatpush2.bf16.msra.mxu1 %v14059_v8 }
 0x401   :  { %v16062_v32 = vsub.f32 %v15920_v52, %v15995_v24  ;;  %v16065_v47 = vsub.f32 %v6134_v35, %v15995_v24  ;;  %v6209_v7 = vsel %vm15730_vm8, %v16008_v4, 0.0  ;;  %v6211_v52 = vsel %vm5946_vm4, %v16012_v30, 0.0  ;;  %v14070_v35 = vld [vmem:[%s17154_s3 + $0x1c4] ss:$8 sps:$4 sm:$0xff]   ;;  %9552 = vmatpush2.bf16.msra.mxu0 %v14062_v17  ;;  %9360 = vmatprep.subr.bf16.mxu1 %v14067_v48  ;;  %v14088_v17 = vld [vmem:[%s17154_s3 + $0x194] ss:$8 sps:$4 sm:$0xff]  }
 0x402   :  { %v6213_v9 = vsel %vm15750_vm7, %v16016_v31, 0.0  ;;  %v6241_v51 = vmul.f32 %v6209_v7, %v6209_v7  ;;  %v6243_v36 = vmul.f32 %v6211_v52, %v6211_v52  ;;  %9553 = vmatprep.subr.bf16.mxu0 %v14070_v35  ;;  %v6215_v61 = vsel %vm5950_vm6, %v16023_v40, 0.0  ;;  %v14083_v52 = vld [vmem:[%s17154_s3 + $0x90] ss:$8 sps:$4 sm:$0xff]  }
 0x403   :  { %v6245_v2 = vmul.f32 %v6213_v9, %v6213_v9  ;;  %v6217_v34 = vsel %vm15774_vm9, %v16027_v15, 0.0  ;;  %v6247_v41 = vmul.f32 %v6215_v61, %v6215_v61  ;;  %v6219_v63 = vsel %vm5954_vm10, %v16031_v16, 0.0  ;;  %v14086_v9 = vld [vmem:[%s17154_s3 + $0x190] ss:$8 sps:$4 sm:$0xff]  }
 0x404   :  { %v6274_v3 = vadd.f32 %v6243_v36, %v6241_v51  ;;  %9361 = vmatpush2.bf16.msra.mxu1 %v14065_v37  ;;  %v6249_v39 = vmul.f32 %v6217_v34, %v6217_v34  ;;  %v6221_v28 = vsel %vm5956_vm11, %v16035_v44, 0.0  ;;  %v6251_v48 = vmul.f32 %v6219_v63, %v6219_v63  ;;  %v14091_v51 = vld [vmem:[%s17154_s3 + $0x84] ss:$8 sps:$4 sm:$0xff]  }
 0x405   :  { %9554 = vmatpush2.bf16.msra.mxu0 %v14068_v62  ;;  %9362 = vmatprep.subr.bf16.mxu1 %v14073_v0  ;;  %v6225_v35 = vsel %vm15808_vm12, %v16039_v38, 0.0  ;;  %v6253_v37 = vmul.f32 %v6221_v28, %v6221_v28  ;;  %v6227_v56 = vsel %vm5962_vm13, %v16043_v1, 0.0  ;;  %v14089_v62 = vld [vmem:[%s17154_s3 + $0x80] ss:$8 sps:$4 sm:$0xff]   ;;  %v6229_v0 = vsel %vm15832_vm14, %v16047_v55, 0.0 }
 0x406   :  { %v6276_v14 = vadd.f32 %v6274_v3, %v6245_v2  ;;  %9555 = vmatprep.subr.bf16.mxu0 %v14076_v26  ;;  %v6257_v36 = vmul.f32 %v6225_v35, %v6225_v35  ;;  %v6259_v26 = vmul.f32 %v6227_v56, %v6227_v56  ;;  %v6231_v61 = vsel %vm5966_vm15, %v16051_v23, 0.0  ;;  %v12317_v35 = vld [vmem:[%s17155_s5] ss:$0 sm:$0xff] }
 0x407   :  { %v6261_v2 = vmul.f32 %v6229_v0, %v6229_v0  ;;  %v6233_v33 = vsel %vm15859_vm0, %v16058_v50, 0.0  ;;  %v6263_v34 = vmul.f32 %v6231_v61, %v6231_v61  ;;  %v6237_v43 = vsel %vm5972_vm3, %v16065_v47, 0.0 }
 0x408   :  { %v6278_v8 = vadd.f32 %v6276_v14, %v6247_v41  ;;  %9363 = vmatpush2.bf16.msra.mxu1 %v14071_v58  ;;  %v14092_v58 = vld [vmem:[%s17154_s3 + $0x180] ss:$8 sps:$4 sm:$0xff]   ;;  %v6265_v46 = vmul.f32 %v6233_v33, %v6233_v33  ;;  %vm6603_vm3 = vcmask 1042432  }
 0x409   :  { %9556 = vmatpush2.bf16.msra.mxu0 %v14074_v29  ;;  %9364 = vmatprep.subr.bf16.mxu1 %v14079_v18  ;;  %v6235_v18 = vsel %vm5970_vm1, %v16062_v32, 0.0 }
 0x40a   :  { %v6280_v7 = vadd.f32 %v6278_v8, %v6249_v39  ;;  %9557 = vmatprep.subr.bf16.mxu0 %v14082_v22  ;;  %v6267_v41 = vmul.f32 %v6235_v18, %v6235_v18 }
 0x40c   :  { %v6282_v12 = vadd.f32 %v6280_v7, %v6251_v48  ;;  %9365 = vmatpush2.bf16.msra.mxu1 %v14077_v57  ;;  %v6269_v57 = vmul.f32 %v6237_v43, %v6237_v43  ;;  %v6178_v7 = vsub.f32 0.0, %v15995_v24 }
 0x40d   :  { %9558 = vmatpush2.bf16.msra.mxu0 %v14080_v45  ;;  %9366 = vmatprep.subr.bf16.mxu1 %v14085_v25 }
 0x40e   :  { %v6284_v5 = vadd.f32 %v6282_v12, %v6253_v37  ;;  %9559 = vmatprep.subr.bf16.mxu0 %v14088_v17  ;;  %v14154_v17 = vld [vmem:[%s17154_s3 + $0x374] ss:$8 sps:$4 sm:$0xff]  }
 0x410   :  { %v6288_v53 = vadd.f32 %v6284_v5, %v6257_v36  ;;  %9367 = vmatpush2.bf16.msra.mxu1 %v14083_v52 }
 0x411   :  { %9560 = vmatpush2.bf16.msra.mxu0 %v14086_v9  ;;  %9368 = vmatprep.subr.bf16.mxu1 %v14091_v51 }
 0x412   :  { %v6290_v3 = vadd.f32 %v6288_v53, %v6259_v26  ;;  %9561 = vmatprep.subr.bf16.mxu0 %v14094_v60 }
 0x414   :  { %v6292_v29 = vadd.f32 %v6290_v3, %v6261_v2  ;;  %9369 = vmatpush2.bf16.msra.mxu1 %v14089_v62 }
 0x415   :  { %9562 = vmatpush2.bf16.msra.mxu0 %v14092_v58  ;;  %9724 = vmatprep.subr.bf16.mxu1 %v14151_v21 }
 0x416   :  { %v6294_v54 = vadd.f32 %v6292_v29, %v6263_v34  ;;  %9917 = vmatprep.subr.bf16.mxu0 %v14154_v17 }
 0x418   :  { %v6296_v14 = vadd.f32 %v6294_v54, %v6265_v46 }
 0x41a   :  { %v6298_v22 = vadd.f32 %v6296_v14, %v6267_v41 }
 0x41c   :  { %v6300_v42 = vadd.f32 %v6298_v22, %v6269_v57 }
 0x41e   :  { %v6304_v63 = vrot.slane %v6300_v42, 4 }
 0x420   :  { %v6305_v45 = vadd.f32 %v6304_v63, %v6300_v42 }
 0x422   :  { %v6306_v25 = vrot.slane %v6305_v45, 2 }
 0x424   :  { %v6307_v39 = vadd.f32 %v6306_v25, %v6305_v45 }
 0x426   :  { %v6308_v8 = vrot.slane %v6307_v39, 1 }
 0x428   :  { %v6309_v10 = vadd.f32 %v6308_v8, %v6307_v39 }
 0x42a   :  { %v6310_v28 = vmul.f32 0.010204081, %v6309_v10 }
 0x42c   :  { %v6311_v48 = vadd.f32 1e-05, %v6310_v28 }
 0x42e   :  { %14423 = vrsqrt.f32 %v6311_v48 }
 0x43b   :  { %v14424_v52 = vpop.eup %14423 }
 0x43c   :  { %v6313_v37 = vmul.f32 %v14424_v52, %v16008_v4  ;;  %v6314_v12 = vmul.f32 %v14424_v52, %v6178_v7  ;;  %v6315_v56 = vmul.f32 %v14424_v52, %v16012_v30  ;;  %v6317_v9 = vmul.f32 %v14424_v52, %v16016_v31 }
 0x43d   :  { %v6319_v51 = vmul.f32 %v14424_v52, %v16023_v40  ;;  %v6321_v36 = vmul.f32 %v14424_v52, %v16027_v15  ;;  %v6323_v5 = vmul.f32 %v14424_v52, %v16031_v16  ;;  %v6325_v24 = vmul.f32 %v14424_v52, %v16035_v44  ;;  %v12318_v15 = vld [vmem:[%s17156_s6] ss:$0 sm:$0xff] }
 0x43e   :  { %v6329_v62 = vmul.f32 %v14424_v52, %v16039_v38  ;;  %v6331_v60 = vmul.f32 %v14424_v52, %v16043_v1  ;;  %v6333_v0 = vmul.f32 %v14424_v52, %v16047_v55  ;;  %v6335_v4 = vmul.f32 %v14424_v52, %v16051_v23 }
 0x43f   :  { %v6337_v30 = vmul.f32 %v14424_v52, %v16058_v50  ;;  %v6339_v31 = vmul.f32 %v14424_v52, %v16062_v32  ;;  %v6341_v40 = vmul.f32 %v14424_v52, %v16065_v47  ;;  %v6351_v58 = vmul.f32 %v12317_v35, %v6313_v37 }
 0x440   :  { %v6352_v16 = vmul.f32 %v12317_v35, %v6314_v12  ;;  %v6353_v44 = vmul.f32 %v12317_v35, %v6315_v56  ;;  %v6355_v38 = vmul.f32 %v12317_v35, %v6317_v9  ;;  %v6357_v26 = vmul.f32 %v12317_v35, %v6319_v51 }
 0x441   :  { %v6359_v1 = vmul.f32 %v12317_v35, %v6321_v36  ;;  %v6361_v53 = vmul.f32 %v12317_v35, %v6323_v5  ;;  %v6363_v55 = vmul.f32 %v12317_v35, %v6325_v24  ;;  %v6367_v61 = vmul.f32 %v12317_v35, %v6329_v62 }
 0x442   :  { %v6369_v23 = vmul.f32 %v12317_v35, %v6331_v60  ;;  %v6371_v2 = vmul.f32 %v12317_v35, %v6333_v0  ;;  %v6373_v50 = vmul.f32 %v12317_v35, %v6335_v4  ;;  %v6375_v3 = vmul.f32 %v12317_v35, %v6337_v30 }
 0x443   :  { %v6377_v32 = vmul.f32 %v12317_v35, %v6339_v31  ;;  %v6379_v33 = vmul.f32 %v12317_v35, %v6341_v40  ;;  %v6389_v47 = vadd.f32 %v12318_v15, %v6351_v58  ;;  %v6390_v34 = vadd.f32 %v12318_v15, %v6352_v16 }
 0x444   :  { %v6391_v29 = vadd.f32 %v12318_v15, %v6353_v44  ;;  %v6393_v18 = vadd.f32 %v12318_v15, %v6355_v38  ;;  %v6395_v46 = vadd.f32 %v12318_v15, %v6357_v26  ;;  %v6397_v54 = vadd.f32 %v12318_v15, %v6359_v1 }
 0x445   :  { %v6399_v43 = vadd.f32 %v12318_v15, %v6361_v53  ;;  %v6401_v41 = vadd.f32 %v12318_v15, %v6363_v55  ;;  %v6405_v14 = vadd.f32 %v12318_v15, %v6367_v61  ;;  %v6407_v57 = vadd.f32 %v12318_v15, %v6369_v23 }
 0x446   :  { %v6409_v22 = vadd.f32 %v12318_v15, %v6371_v2  ;;  %v16199_v42 = vadd.f32 %v12318_v15, %v6373_v50  ;;  %v16201_v63 = vadd.f32 %v12318_v15, %v6375_v3  ;;  %v16203_v45 = vadd.f32 %v12318_v15, %v6377_v32 }
 0x447   :  { %v16205_v25 = vadd.f32 %v12318_v15, %v6379_v33  ;;  %vm6422_vm2 = vcmp.gt.f32.partialorder %v6390_v34, 0.0  ;;  %vm6423_vm8 = vcmp.gt.f32.partialorder %v6391_v29, 0.0  ;;  %vm6425_vm4 = vcmp.gt.f32.partialorder %v6393_v18, 0.0 }
 0x448   :  { %vm6427_vm7 = vcmp.gt.f32.partialorder %v6395_v46, 0.0  ;;  %vm6429_vm6 = vcmp.gt.f32.partialorder %v6397_v54, 0.0  ;;  %vm6431_vm9 = vcmp.gt.f32.partialorder %v6399_v43, 0.0  ;;  %vm6433_vm10 = vcmp.gt.f32.partialorder %v6401_v41, 0.0 }
 0x449   :  { %vm6437_vm11 = vcmp.gt.f32.partialorder %v6405_v14, 0.0  ;;  %vm6439_vm12 = vcmp.gt.f32.partialorder %v6407_v57, 0.0  ;;  %vm6443_vm14 = vcmp.gt.f32.partialorder %v16199_v42, 0.0  ;;  %vm6445_vm15 = vcmp.gt.f32.partialorder %v16201_v63, 0.0 }
 0x44a   :  { %vm6447_vm0 = vcmp.gt.f32.partialorder %v16203_v45, 0.0  ;;  %vm6449_vm1 = vcmp.gt.f32.partialorder %v16205_v25, 0.0  ;;  %v6453_v39 = vmul.f32 0.2, %v6389_v47  ;;  %v6454_v21 = vmul.f32 0.2, %v6390_v34 }
 0x44b   :  { %v6455_v8 = vmul.f32 0.2, %v6391_v29  ;;  %v6457_v17 = vmul.f32 0.2, %v6393_v18  ;;  %v6459_v10 = vmul.f32 0.2, %v6395_v46 }
 0x44c   :  { %v6461_v28 = vmul.f32 0.2, %v6397_v54  ;;  %v6463_v48 = vmul.f32 0.2, %v6399_v43  ;;  %v6465_v7 = vmul.f32 0.2, %v6401_v41  ;;  %v6486_v9 = vsel %vm6422_vm2, %v6390_v34, %v6454_v21 }
 0x44d   :  { %v6469_v52 = vmul.f32 0.2, %v6405_v14  ;;  %vm17177_vm13 = vcmp.gt.f32.partialorder %v6389_v47, 0.0  ;;  %v6471_v37 = vmul.f32 0.2, %v6407_v57  ;;  %v6487_v24 = vsel %vm6423_vm8, %v6391_v29, %v6455_v8  ;;  %6518 = vst [vmem:[#allocation4 + $0x8] sm:$0xff] %v6486_v9  ;;  %vm16240_vm8 = vmand %vm6603_vm3, %vm6604_vm5 }
 0x44e   :  { %v6485_v35 = vsel %vm17177_vm13, %v6389_v47, %v6453_v39  ;;  %v6473_v12 = vmul.f32 0.2, %v6409_v22  ;;  %v6475_v56 = vmul.f32 0.2, %v16199_v42  ;;  %v6477_v51 = vmul.f32 0.2, %v16201_v63 }
 0x44f   :  { %6517 = vst [vmem:[#allocation4] sm:$0xff] %v6485_v35  ;;  %v6479_v36 = vmul.f32 0.2, %v16203_v45  ;;  %v6481_v5 = vmul.f32 0.2, %v16205_v25  ;;  %6520 = vst [vmem:[#allocation4 + $0x18] sm:$0xff] %v6486_v9  ;;  %v6489_v62 = vsel %vm6425_vm4, %v6393_v18, %v6457_v17  ;;  %v6491_v60 = vsel %vm6427_vm7, %v6395_v46, %v6459_v10 }
 0x450   :  { %6522 = vst [vmem:[#allocation4 + $0x28] sm:$0xff] %v6486_v9  ;;  %6524 = vst [vmem:[#allocation4 + $0x38] sm:$0xff] %v6486_v9  ;;  %v6493_v0 = vsel %vm6429_vm6, %v6397_v54, %v6461_v28  ;;  %v6495_v4 = vsel %vm6431_vm9, %v6399_v43, %v6463_v48  ;;  %v6497_v30 = vsel %vm6433_vm10, %v6401_v41, %v6465_v7  ;;  %vm17178_vm2 = vcmp.gt.f32.partialorder %v6409_v22, 0.0  ;;  %v6606_v28 = vld [vmem:[#allocation5 + $0x120] sm:$0x7] }
 0x451   :  { %6526 = vst [vmem:[#allocation4 + $0x48] sm:$0xff] %v6486_v9  ;;  %6528 = vst [vmem:[#allocation4 + $0x58] sm:$0xff] %v6486_v9  ;;  %v6501_v31 = vsel %vm6437_vm11, %v6405_v14, %v6469_v52  ;;  %v6503_v40 = vsel %vm6439_vm12, %v6407_v57, %v6471_v37  ;;  %v6505_v58 = vsel %vm17178_vm2, %v6409_v22, %v6473_v12 }
 0x452   :  { %6534 = vst [vmem:[#allocation4 + $0x88] sm:$0xff] %v6486_v9  ;;  %6536 = vst [vmem:[#allocation4 + $0x98] sm:$0xff] %v6486_v9  ;;  %v6507_v15 = vsel %vm6443_vm14, %v16199_v42, %v6475_v56  ;;  %v6509_v16 = vsel %vm6445_vm15, %v16201_v63, %v6477_v51  ;;  %v6511_v44 = vsel %vm6447_vm0, %v16203_v45, %v6479_v36  ;;  %v6720_v56 = vld [vmem:[#allocation5 + $0x124] sm:$0x7]  ;;  %v6948_v51 = vld [vmem:[#allocation5 + $0x12c] sm:$0x7] }
 0x453   :  { %6538 = vst [vmem:[#allocation4 + $0xa8] sm:$0xff] %v6486_v9  ;;  %6540 = vst [vmem:[#allocation4 + $0xb8] sm:$0xff] %v6486_v9  ;;  %v6513_v38 = vsel %vm6449_vm1, %v16205_v25, %v6481_v5  ;;  %v13190_v26 = vpack.c.bf16 %v6485_v35, %v6485_v35  ;;  %v13191_v1 = vpack.c.bf16 %v6486_v9, %v6486_v9 }
 0x454   :  { %6542 = vst [vmem:[#allocation4 + $0xc8] sm:$0xff] %v6486_v9  ;;  %6544 = vst [vmem:[#allocation4 + $0xd8] sm:$0xff] %v6486_v9  ;;  %v13244_v53 = vpack.c.bf16 %v6487_v24, %v6487_v24  ;;  %v13246_v55 = vpack.c.bf16 %v6489_v62, %v6489_v62  ;;  %v13248_v61 = vpack.c.bf16 %v6491_v60, %v6491_v60  ;;  %v6834_v9 = vld [vmem:[#allocation5 + $0x128] sm:$0x7] }
 0x455   :  { %6519 = vst [vmem:[#allocation4 + $0x10] sm:$0xff] %v6487_v24  ;;  %6521 = vst [vmem:[#allocation4 + $0x20] sm:$0xff] %v6489_v62  ;;  %v13250_v23 = vpack.c.bf16 %v6493_v0, %v6493_v0  ;;  %v13199_v2 = vpack.c.bf16 %v6501_v31, %v6501_v31  ;;  %v13253_v50 = vpack.c.bf16 %v6503_v40, %v6503_v40 }
 0x456   :  { %6523 = vst [vmem:[#allocation4 + $0x30] sm:$0xff] %v6491_v60  ;;  %6525 = vst [vmem:[#allocation4 + $0x40] sm:$0xff] %v6493_v0  ;;  %v13255_v32 = vpack.c.bf16 %v6505_v58, %v6505_v58  ;;  %v6666_v33 = vld [vmem:[#allocation4 + $0x1] sm:$0xff] }
 0x457   :  { %6527 = vst [vmem:[#allocation4 + $0x50] sm:$0xff] %v6495_v4  ;;  %6529 = vst [vmem:[#allocation4 + $0x60] sm:$0xff] %v6497_v30  ;;  %v6780_v47 = vld [vmem:[#allocation4 + $0x2] sm:$0xff]  ;;  %v13208_v18 = vpack.c.bf16 %v6666_v33, %v6666_v33 }
 0x458   :  { %6533 = vst [vmem:[#allocation4 + $0x80] sm:$0xff] %v6501_v31  ;;  %6535 = vst [vmem:[#allocation4 + $0x90] sm:$0xff] %v6503_v40  ;;  %v13226_v54 = vpack.c.bf16 %v6780_v47, %v6780_v47 }
 0x459   :  { %6537 = vst [vmem:[#allocation4 + $0xa0] sm:$0xff] %v6505_v58  ;;  %6539 = vst [vmem:[#allocation4 + $0xb0] sm:$0xff] %v6507_v15 }
 0x45a   :  { %6541 = vst [vmem:[#allocation4 + $0xc0] sm:$0xff] %v6509_v16  ;;  %6543 = vst [vmem:[#allocation4 + $0xd0] sm:$0xff] %v6511_v44  ;;  %v6614_v34 = vld [vmem:[#allocation4 + $0xa8] sm:$0xff] }
 0x45b   :  { %6545 = vst [vmem:[#allocation4 + $0xe0] sm:$0xff] %v6513_v38  ;;  %6595 = vst [vmem:[#allocation5] sm:$0xf] %v13190_v26  ;;  %v13204_v41 = vpack.c.bf16 %v6614_v34, %v6614_v34 }
 0x45c   :  { %6596 = vst [vmem:[#allocation5 + $0x24] sm:$0xf] %v13191_v1  ;;  %6940 = vst [vmem:[#allocation5 + $0xc] sm:$0xf] %v13244_v53  ;;  %v6667_v29 = vld [vmem:[#allocation4 + $0x9] sm:$0xff]  ;;  %v6668_v43 = vld [vmem:[#allocation4 + $0x11] sm:$0xff] }
 0x45d   :  { %6941 = vst [vmem:[#allocation5 + $0x30] sm:$0xf] %v13191_v1  ;;  %6597 = vst [vmem:[#allocation5 + $0x48] sm:$0xf] %v13244_v53  ;;  %v6781_v46 = vld [vmem:[#allocation4 + $0xa] sm:$0xff]  ;;  %v13209_v14 = vpack.c.bf16 %v6667_v29, %v6667_v29  ;;  %v6669_v22 = vld [vmem:[#allocation4 + $0x19] sm:$0xff]  ;;  %v13210_v42 = vpack.c.bf16 %v6668_v43, %v6668_v43 }
 0x45e   :  { %6598 = vst [vmem:[#allocation5 + $0x6c] sm:$0xf] %v13191_v1  ;;  %6942 = vst [vmem:[#allocation5 + $0x54] sm:$0xf] %v13246_v55  ;;  %v13227_v57 = vpack.c.bf16 %v6781_v46, %v6781_v46  ;;  %v6782_v63 = vld [vmem:[#allocation4 + $0x12] sm:$0xff]  ;;  %v6783_v45 = vld [vmem:[#allocation4 + $0x1a] sm:$0xff]  ;;  %v13211_v25 = vpack.c.bf16 %v6669_v22, %v6669_v22 }
 0x45f   :  { %6943 = vst [vmem:[#allocation5 + $0x78] sm:$0xf] %v13191_v1  ;;  %6599 = vst [vmem:[#allocation5 + $0x90] sm:$0xf] %v13246_v55  ;;  %v13228_v39 = vpack.c.bf16 %v6782_v63, %v6782_v63  ;;  %v13229_v21 = vpack.c.bf16 %v6783_v45, %v6783_v45  ;;  %v6670_v8 = vld [vmem:[#allocation4 + $0x21] sm:$0xff]  ;;  %v6671_v17 = vld [vmem:[#allocation4 + $0x29] sm:$0xff] }
 0x460   :  { %6600 = vst [vmem:[#allocation5 + $0xb4] sm:$0xf] %v13191_v1  ;;  %6945 = vst [vmem:[#allocation5 + $0xc0] sm:$0xf] %v13191_v1  ;;  %v6784_v10 = vld [vmem:[#allocation4 + $0x22] sm:$0xff]  ;;  %v13212_v48 = vpack.c.bf16 %v6670_v8, %v6670_v8  ;;  %v13213_v7 = vpack.c.bf16 %v6671_v17, %v6671_v17  ;;  %v6785_v52 = vld [vmem:[#allocation4 + $0x2a] sm:$0xff] }
 0x461   :  { %6602 = vst [vmem:[#allocation5 + $0xfc] sm:$0xf] %v13191_v1  ;;  %6947 = vst [vmem:[#allocation5 + $0x108] sm:$0xf] %v13191_v1  ;;  %v13230_v35 = vpack.c.bf16 %v6784_v10, %v6784_v10  ;;  %v6672_v37 = vld [vmem:[#allocation4 + $0x31] sm:$0xff]  ;;  %v6673_v12 = vld [vmem:[#allocation4 + $0x39] sm:$0xff]  ;;  %v13231_v36 = vpack.c.bf16 %v6785_v52, %v6785_v52 }
 0x462   :  { %6656 = vst [vmem:[#allocation5 + $0x264] sm:$0xf] %v13191_v1  ;;  %6998 = vst [vmem:[#allocation5 + $0x270] sm:$0xf] %v13191_v1  ;;  %v13214_v5 = vpack.c.bf16 %v6672_v37, %v6672_v37  ;;  %v13215_v24 = vpack.c.bf16 %v6673_v12, %v6673_v12  ;;  %v6786_v62 = vld [vmem:[#allocation4 + $0x32] sm:$0xff]  ;;  %v6787_v60 = vld [vmem:[#allocation4 + $0x3a] sm:$0xff] }
 0x463   :  { %6658 = vst [vmem:[#allocation5 + $0x2ac] sm:$0xf] %v13191_v1  ;;  %7000 = vst [vmem:[#allocation5 + $0x2b8] sm:$0xf] %v13191_v1  ;;  %v6557_v0 = vld [vmem:[#allocation4 + $0x40] sm:$0x1f]  ;;  %v13232_v4 = vpack.c.bf16 %v6786_v62, %v6786_v62  ;;  %v13233_v30 = vpack.c.bf16 %v6787_v60, %v6787_v60 }
 0x464   :  { %6944 = vst [vmem:[#allocation5 + $0x9c] sm:$0xf] %v13248_v61  ;;  %6601 = vst [vmem:[#allocation5 + $0xd8] sm:$0xf] %v13248_v61  ;;  %v13198_v31 = vpack.c.bf16 %v6557_v0, %v6557_v0  ;;  %v6674_v40 = vld [vmem:[#allocation4 + $0x41] sm:$0x1f] }
 0x465   :  { %6946 = vst [vmem:[#allocation5 + $0xe4] sm:$0xf] %v13250_v23  ;;  %6655 = vst [vmem:[#allocation5 + $0x240] sm:$0xf] %v13199_v2  ;;  %v6788_v58 = vld [vmem:[#allocation4 + $0x42] sm:$0x1f]  ;;  %v13216_v16 = vpack.c.bf16 %v6674_v40, %v6674_v40 }
 0x466   :  { %6997 = vst [vmem:[#allocation5 + $0x24c] sm:$0xf] %v13253_v50  ;;  %6657 = vst [vmem:[#allocation5 + $0x288] sm:$0xf] %v13253_v50  ;;  %v6902_v15 = vld [vmem:[#allocation4 + $0x50] sm:$0x1f]  ;;  %v13234_v44 = vpack.c.bf16 %v6788_v58, %v6788_v58  ;;  %v6607_v55 = vsel %vm16240_vm8, %v13198_v31, %v6606_v28 }
 0x467   :  { %6999 = vst [vmem:[#allocation5 + $0x294] sm:$0xf] %v13255_v32  ;;  %6712 = vst [vmem:[#allocation5 + $0x4] sm:$0xf] %v13208_v18  ;;  %v13252_v38 = vpack.c.bf16 %v6902_v15, %v6902_v15  ;;  %v6723_v26 = vld [vmem:[#allocation4 + $0x81] sm:$0xff]  ;;  %v6724_v1 = vld [vmem:[#allocation4 + $0x89] sm:$0xff]  ;;  %v6721_v47 = vsel %vm16240_vm8, %v13216_v16, %v6720_v56 }
 0x468   :  { %6826 = vst [vmem:[#allocation5 + $0x8] sm:$0xf] %v13226_v54  ;;  %6660 = vst [vmem:[#allocation5 + $0x2f4] sm:$0xf] %v13204_v41  ;;  %v6837_v53 = vld [vmem:[#allocation4 + $0x82] sm:$0xff]  ;;  %v13217_v61 = vpack.c.bf16 %v6723_v26, %v6723_v26  ;;  %v13218_v23 = vpack.c.bf16 %v6724_v1, %v6724_v1  ;;  %v6838_v2 = vld [vmem:[#allocation4 + $0x8a] sm:$0xff]  ;;  %v6835_v34 = vsel %vm16240_vm8, %v13234_v44, %v6834_v9 }
 0x469   :  { %6713 = vst [vmem:[#allocation5 + $0x28] sm:$0xf] %v13209_v14  ;;  %6827 = vst [vmem:[#allocation5 + $0x2c] sm:$0xf] %v13227_v57  ;;  %v13235_v50 = vpack.c.bf16 %v6837_v53, %v6837_v53  ;;  %v6725_v32 = vld [vmem:[#allocation4 + $0x91] sm:$0xff]  ;;  %v6726_v33 = vld [vmem:[#allocation4 + $0x99] sm:$0xff]  ;;  %v6949_v29 = vsel %vm16240_vm8, %v13252_v38, %v6948_v51  ;;  %v13236_v18 = vpack.c.bf16 %v6838_v2, %v6838_v2 }
 0x46a   :  { %6714 = vst [vmem:[#allocation5 + $0x4c] sm:$0xf] %v13210_v42  ;;  %6715 = vst [vmem:[#allocation5 + $0x70] sm:$0xf] %v13211_v25  ;;  %v14149_v46 = vld [vmem:[%s17154_s3 + $0x270] ss:$8 sps:$4 sm:$0xff]   ;;  %v13219_v57 = vpack.c.bf16 %v6725_v32, %v6725_v32  ;;  %v13220_v22 = vpack.c.bf16 %v6726_v33, %v6726_v33 }
 0x46b   :  { %6828 = vst [vmem:[#allocation5 + $0x50] sm:$0xf] %v13228_v39  ;;  %6829 = vst [vmem:[#allocation5 + $0x74] sm:$0xf] %v13229_v21  ;;  %v6839_v54 = vld [vmem:[#allocation4 + $0x92] sm:$0xff]  ;;  %v6840_v43 = vld [vmem:[#allocation4 + $0x9a] sm:$0xff] }
 0x46c   :  { %6716 = vst [vmem:[#allocation5 + $0x94] sm:$0xf] %v13212_v48  ;;  %6717 = vst [vmem:[#allocation5 + $0xb8] sm:$0xf] %v13213_v7  ;;  %v6613_v41 = vld [vmem:[#allocation4 + $0xa0] sm:$0xff]  ;;  %v13237_v42 = vpack.c.bf16 %v6839_v54, %v6839_v54  ;;  %v13238_v63 = vpack.c.bf16 %v6840_v43, %v6840_v43  ;;  %v6728_v53 = vld [vmem:[#allocation4 + $0xa9] sm:$0xff] }
 0x46d   :  { %6830 = vst [vmem:[#allocation5 + $0x98] sm:$0xf] %v13230_v35  ;;  %6831 = vst [vmem:[#allocation5 + $0xbc] sm:$0xf] %v13231_v36  ;;  %v14152_v14 = vld [vmem:[%s17154_s3 + $0x370] ss:$8 sps:$4 sm:$0xff]   ;;  %v13203_v8 = vpack.c.bf16 %v6613_v41, %v6613_v41 }
 0x46e   :  { %6718 = vst [vmem:[#allocation5 + $0xdc] sm:$0xf] %v13214_v5  ;;  %6719 = vst [vmem:[#allocation5 + $0x100] sm:$0xf] %v13215_v24  ;;  %v6727_v45 = vld [vmem:[#allocation4 + $0xa1] sm:$0xff]  ;;  %v6842_v2 = vld [vmem:[#allocation4 + $0xaa] sm:$0xff] }
 0x46f   :  { %6832 = vst [vmem:[#allocation5 + $0xe0] sm:$0xf] %v13232_v4  ;;  %6833 = vst [vmem:[#allocation5 + $0x104] sm:$0xf] %v13233_v30  ;;  %v14095_v25 = vld [vmem:[#allocation5] ss:$36 sps:$4 sm:$0xff]   ;;  %v13221_v17 = vpack.c.bf16 %v6727_v45, %v6727_v45  ;;  %v13240_v33 = vpack.c.bf16 %v6842_v2, %v6842_v2 }
 0x470   :  { %6608 = vst [vmem:[#allocation5 + $0x120] sm:$0x7] %v6607_v55  ;;  %6722 = vst [vmem:[#allocation5 + $0x124] sm:$0x7] %v6721_v47  ;;  %v14097_v39 = vld [vmem:[#allocation5 + $0x4] ss:$36 sps:$4 sm:$0xff]  }
 0x471   :  { %6836 = vst [vmem:[#allocation5 + $0x128] sm:$0x7] %v6835_v34  ;;  %6950 = vst [vmem:[#allocation5 + $0x12c] sm:$0x7] %v6949_v29  ;;  %v14163_v21 = vld [vmem:[%s17154_s3 + $0x264] ss:$8 sps:$4 sm:$0xff]   ;;  %9370 = vmatprep.mubr.bf16.mxu1 %v14097_v39 }
 0x472   :  { %6769 = vst [vmem:[#allocation5 + $0x244] sm:$0xf] %v13217_v61  ;;  %6770 = vst [vmem:[#allocation5 + $0x268] sm:$0xf] %v13218_v23  ;;  %v14098_v10 = vld [vmem:[#allocation5 + $0x8] ss:$36 sps:$4 sm:$0xff]   ;;  %9371 = vmatmul.mubr.bf16.vlgmr.msra.gmra.mxu1 %v14095_v25  ;;  %v13222_v61 = vpack.c.bf16 %v6728_v53, %v6728_v53 }
 0x473   :  { %6883 = vst [vmem:[#allocation5 + $0x248] sm:$0xf] %v13235_v50  ;;  %6884 = vst [vmem:[#allocation5 + $0x26c] sm:$0xf] %v13236_v18  ;;  %v14100_v28 = vld [vmem:[#allocation5 + $0xc] ss:$36 sps:$4 sm:$0xff]   ;;  %9725 = vmatpush1.bf16.msra.mxu1 %v14149_v46 }
 0x474   :  { %6771 = vst [vmem:[#allocation5 + $0x28c] sm:$0xf] %v13219_v57  ;;  %6772 = vst [vmem:[#allocation5 + $0x2b0] sm:$0xf] %v13220_v22  ;;  %v14166_v48 = vld [vmem:[%s17154_s3 + $0x364] ss:$8 sps:$4 sm:$0xff]   ;;  %9563 = vmatprep.mubr.bf16.mxu0 %v14100_v28  ;;  %9726 = vmatprep.subr.bf16.mxu1 %v14163_v21 }
 0x475   :  { %6885 = vst [vmem:[#allocation5 + $0x290] sm:$0xf] %v13237_v42  ;;  %6886 = vst [vmem:[#allocation5 + $0x2b4] sm:$0xf] %v13238_v63  ;;  %v14103_v7 = vld [vmem:[#allocation5 + $0x4c] ss:$36 sps:$4 sm:$0xff]   ;;  %9564 = vmatmul.mubr.bf16.vlgmr.msra.gmra.mxu0 %v14098_v10 }
 0x476   :  { %6659 = vst [vmem:[#allocation5 + $0x2d0] sm:$0xf] %v13203_v8  ;;  %6773 = vst [vmem:[#allocation5 + $0x2d4] sm:$0xf] %v13221_v17  ;;  %v14106_v52 = vld [vmem:[#allocation5 + $0x54] ss:$36 sps:$4 sm:$0xff]   ;;  %9380 = vmatprep.mubr.bf16.mxu1 %v14103_v7  ;;  %9918 = vmatpush1.bf16.msra.mxu0 %v14152_v14 }
 0x477   :  { %v14161_v35 = vld [vmem:[%s17154_s3 + $0x260] ss:$8 sps:$4 sm:$0xff]   ;;  %v14169_v12 = vld [vmem:[%s17154_s3 + $0x254] ss:$8 sps:$4 sm:$0xff]   ;;  %9573 = vmatprep.mubr.bf16.mxu0 %v14106_v52  ;;  %9919 = vmatprep.subr.bf16.mxu0 %v14166_v48  ;;  %v14167_v9 = vld [vmem:[%s17154_s3 + $0x250] ss:$8 sps:$4 sm:$0xff]  }
 0x478   :  { %v14164_v37 = vld [vmem:[%s17154_s3 + $0x360] ss:$8 sps:$4 sm:$0xff]   ;;  %v14172_v56 = vld [vmem:[%s17154_s3 + $0x354] ss:$8 sps:$4 sm:$0xff]   ;;  %9727 = vmatpush1.bf16.msra.mxu1 %v14161_v35  ;;  %v14170_v51 = vld [vmem:[%s17154_s3 + $0x350] ss:$8 sps:$4 sm:$0xff]  }
 0x479   :  { %v14101_v36 = vld [vmem:[#allocation5 + $0x48] ss:$36 sps:$4 sm:$0xff]   ;;  %9728 = vmatprep.subr.bf16.mxu1 %v14169_v12  ;;  %v14104_v24 = vld [vmem:[#allocation5 + $0x50] ss:$36 sps:$4 sm:$0xff]   ;;  %v14112_v60 = vld [vmem:[#allocation5 + $0x9c] ss:$36 sps:$4 sm:$0xff]  }
 0x47a   :  { %9920 = vmatpush1.bf16.msra.mxu0 %v14164_v37  ;;  %v14181_v5 = vld [vmem:[%s17154_s3 + $0x244] ss:$8 sps:$4 sm:$0xff]   ;;  %v14109_v62 = vld [vmem:[#allocation5 + $0x94] ss:$36 sps:$4 sm:$0xff]   ;;  %9381 = vmatmul.mubr.bf16.gmra.mxu1 %v14101_v36  ;;  %v14179_v4 = vld [vmem:[%s17154_s3 + $0x240] ss:$8 sps:$4 sm:$0xff]  }
 0x47b   :  { %9921 = vmatprep.subr.bf16.mxu0 %v14172_v56  ;;  %v14184_v0 = vld [vmem:[%s17154_s3 + $0x344] ss:$8 sps:$4 sm:$0xff]   ;;  %9390 = vmatprep.mubr.bf16.mxu1 %v14109_v62  ;;  %v14182_v30 = vld [vmem:[%s17154_s3 + $0x340] ss:$8 sps:$4 sm:$0xff]   ;;  %v14187_v31 = vld [vmem:[%s17154_s3 + $0x234] ss:$8 sps:$4 sm:$0xff]  }
 0x47c   :  { %9729 = vmatpush1.bf16.msra.mxu1 %v14167_v9  ;;  %v14107_v40 = vld [vmem:[#allocation5 + $0x90] ss:$36 sps:$4 sm:$0xff]   ;;  %v14110_v16 = vld [vmem:[#allocation5 + $0x98] ss:$36 sps:$4 sm:$0xff]   ;;  %v14199_v26 = vld [vmem:[%s17154_s3 + $0x224] ss:$8 sps:$4 sm:$0xff]  }
 0x47d   :  { %9574 = vmatmul.mubr.bf16.gmra.mxu0 %v14104_v24  ;;  %9730 = vmatprep.subr.bf16.mxu1 %v14181_v5  ;;  %v14185_v58 = vld [vmem:[%s17154_s3 + $0x230] ss:$8 sps:$4 sm:$0xff]   ;;  %v14190_v15 = vld [vmem:[%s17154_s3 + $0x334] ss:$8 sps:$4 sm:$0xff]   ;;  %v14118_v1 = vld [vmem:[#allocation5 + $0xe4] ss:$36 sps:$4 sm:$0xff]  }
 0x47e   :  { %9583 = vmatprep.mubr.bf16.mxu0 %v14112_v60  ;;  %9922 = vmatpush1.bf16.msra.mxu0 %v14170_v51  ;;  %v14115_v44 = vld [vmem:[#allocation5 + $0xdc] ss:$36 sps:$4 sm:$0xff]   ;;  %v14188_v38 = vld [vmem:[%s17154_s3 + $0x330] ss:$8 sps:$4 sm:$0xff]   ;;  %v14202_v55 = vld [vmem:[%s17154_s3 + $0x324] ss:$8 sps:$4 sm:$0xff]  }
 0x47f   :  { %9923 = vmatprep.subr.bf16.mxu0 %v14184_v0  ;;  %v6841_v23 = vld [vmem:[#allocation4 + $0xa2] sm:$0xff]  ;;  %v6955_v50 = vld [vmem:[#allocation4 + $0xb0] sm:$0xff]  ;;  %v6956_v47 = vld [vmem:[#allocation4 + $0xb8] sm:$0xff]  ;;  %6774 = vst [vmem:[#allocation5 + $0x2f8] sm:$0xf] %v13222_v61 }
 0x480   :  { %9731 = vmatpush1.bf16.msra.mxu1 %v14179_v4  ;;  %v13239_v32 = vpack.c.bf16 %v6841_v23, %v6841_v23  ;;  %v13257_v34 = vpack.c.bf16 %v6955_v50, %v6955_v50  ;;  %v6729_v29 = vld [vmem:[#allocation4 + $0xb1] sm:$0xff]  ;;  %v6730_v18 = vld [vmem:[#allocation4 + $0xb9] sm:$0xff]  ;;  %v6777_v43 = vld [vmem:[#allocation5 + $0x364] sm:$0x7]  ;;  %v13258_v41 = vpack.c.bf16 %v6956_v47, %v6956_v47  ;;  %6888 = vst [vmem:[#allocation5 + $0x2fc] sm:$0xf] %v13240_v33 }
 0x481   :  { %9732 = vmatprep.subr.bf16.mxu1 %v14187_v31  ;;  %v14197_v46 = vld [vmem:[%s17154_s3 + $0x220] ss:$8 sps:$4 sm:$0xff]   ;;  %v13223_v14 = vpack.c.bf16 %v6729_v29, %v6729_v29  ;;  %v13224_v57 = vpack.c.bf16 %v6730_v18, %v6730_v18  ;;  %v6843_v22 = vld [vmem:[#allocation4 + $0xb2] sm:$0xff]  ;;  %v7005_v39 = vld [vmem:[#allocation5 + $0x36c] sm:$0x7] }
 0x482   :  { %9924 = vmatpush1.bf16.msra.mxu0 %v14182_v30  ;;  %9391 = vmatmul.mubr.bf16.gmra.mxu1 %v14107_v40  ;;  %v6663_v54 = vld [vmem:[#allocation5 + $0x360] sm:$0x7]  ;;  %v6891_v25 = vld [vmem:[#allocation5 + $0x368] sm:$0x7]  ;;  %6887 = vst [vmem:[#allocation5 + $0x2d8] sm:$0xf] %v13239_v32  ;;  %v13241_v21 = vpack.c.bf16 %v6843_v22, %v6843_v22 }
 0x483   :  { %9925 = vmatprep.subr.bf16.mxu0 %v14190_v15  ;;  %9400 = vmatprep.mubr.bf16.mxu1 %v14115_v44  ;;  %v6844_v42 = vld [vmem:[#allocation4 + $0xba] sm:$0xff]  ;;  %7001 = vst [vmem:[#allocation5 + $0x2dc] sm:$0xf] %v13257_v34  ;;  %6661 = vst [vmem:[#allocation5 + $0x318] sm:$0xf] %v13257_v34  ;;  %v6958_v17 = vld [vmem:[#allocation4 + $0xc8] sm:$0xff] }
 0x484   :  { %v6957_v63 = vld [vmem:[#allocation4 + $0xc0] sm:$0xff]  ;;  %v13242_v8 = vpack.c.bf16 %v6844_v42, %v6844_v42  ;;  %9733 = vmatpush1.bf16.msra.mxu1 %v14185_v58  ;;  %7002 = vst [vmem:[#allocation5 + $0x300] sm:$0xf] %v13258_v41  ;;  %6662 = vst [vmem:[#allocation5 + $0x33c] sm:$0xf] %v13258_v41  ;;  %v13260_v7 = vpack.c.bf16 %v6958_v17, %v6958_v17  ;;  %v7008_v44 = vld [vmem:[#allocation4 + $0x11] sm:$0xff] }
 0x485   :  { %9584 = vmatmul.mubr.bf16.gmra.mxu0 %v14110_v16  ;;  %v14200_v45 = vld [vmem:[%s17154_s3 + $0x320] ss:$8 sps:$4 sm:$0xff]   ;;  %v13259_v10 = vpack.c.bf16 %v6957_v63, %v6957_v63  ;;  %6775 = vst [vmem:[#allocation5 + $0x31c] sm:$0xf] %v13223_v14  ;;  %6776 = vst [vmem:[#allocation5 + $0x340] sm:$0xf] %v13224_v57  ;;  %9734 = vmatprep.subr.bf16.mxu1 %v14199_v26  ;;  %v13262_v53 = vpack.c.bf16 %v7008_v44, %v7008_v44 }
 0x486   :  { %9593 = vmatprep.mubr.bf16.mxu0 %v14118_v1  ;;  %v6617_v28 = vld [vmem:[#allocation4 + $0xc0] sm:$0x1f]  ;;  %9926 = vmatpush1.bf16.msra.mxu0 %v14188_v38  ;;  %v14205_v52 = vld [vmem:[%s17154_s3 + $0x214] ss:$8 sps:$4 sm:$0xff]   ;;  %6889 = vst [vmem:[#allocation5 + $0x320] sm:$0xf] %v13241_v21 }
 0x487   :  { %v6731_v48 = vld [vmem:[#allocation4 + $0xc1] sm:$0x1f]  ;;  %v13207_v35 = vpack.c.bf16 %v6617_v28, %v6617_v28  ;;  %v6959_v56 = vld [vmem:[#allocation4 + $0xd0] sm:$0x1f]  ;;  %6890 = vst [vmem:[#allocation5 + $0x344] sm:$0xf] %v13242_v8  ;;  %9927 = vmatprep.subr.bf16.mxu0 %v14202_v55 }
 0x488   :  { %v13225_v37 = vpack.c.bf16 %v6731_v48, %v6731_v48  ;;  %v6845_v12 = vld [vmem:[#allocation4 + $0xc2] sm:$0x1f]  ;;  %7003 = vst [vmem:[#allocation5 + $0x324] sm:$0xf] %v13259_v10  ;;  %v14208_v9 = vld [vmem:[%s17154_s3 + $0x314] ss:$8 sps:$4 sm:$0xff]   ;;  %v13261_v36 = vpack.c.bf16 %v6959_v56, %v6959_v56  ;;  %9735 = vmatpush1.bf16.msra.mxu1 %v14197_v46 }
 0x489   :  { %v13243_v51 = vpack.c.bf16 %v6845_v12, %v6845_v12  ;;  %7004 = vst [vmem:[#allocation5 + $0x348] sm:$0xf] %v13260_v7  ;;  %v6664_v5 = vsel %vm16240_vm8, %v13207_v35, %v6663_v54  ;;  %v14113_v62 = vld [vmem:[#allocation5 + $0xd8] ss:$36 sps:$4 sm:$0xff]   ;;  %v14116_v31 = vld [vmem:[#allocation5 + $0xe0] ss:$36 sps:$4 sm:$0xff]   ;;  %9736 = vmatprep.subr.bf16.mxu1 %v14205_v52 }
 0x48a   :  { %v6778_v24 = vsel %vm16240_vm8, %v13225_v37, %v6777_v43  ;;  %v14203_v60 = vld [vmem:[%s17154_s3 + $0x210] ss:$8 sps:$4 sm:$0xff]   ;;  %6665 = vst [vmem:[#allocation5 + $0x360] sm:$0x7] %v6664_v5  ;;  %v7006_v30 = vsel %vm16240_vm8, %v13261_v36, %v7005_v39  ;;  %v14121_v40 = vld [vmem:[#allocation5 + $0x124] ss:$36 sps:$4 sm:$0xff]   ;;  %9928 = vmatpush1.bf16.msra.mxu0 %v14200_v45  ;;  %9401 = vmatmul.mubr.bf16.gmra.mxu1 %v14113_v62 }
 0x48b   :  { %v14206_v0 = vld [vmem:[%s17154_s3 + $0x310] ss:$8 sps:$4 sm:$0xff]   ;;  %6779 = vst [vmem:[#allocation5 + $0x364] sm:$0x7] %v6778_v24  ;;  %v6892_v4 = vsel %vm16240_vm8, %v13243_v51, %v6891_v25  ;;  %7007 = vst [vmem:[#allocation5 + $0x36c] sm:$0x7] %v7006_v30  ;;  %9929 = vmatprep.subr.bf16.mxu0 %v14208_v9  ;;  %9410 = vmatprep.mubr.bf16.mxu1 %v14121_v40 }
 0x48c   :  { %6893 = vst [vmem:[#allocation5 + $0x368] sm:$0x7] %v6892_v4  ;;  %v14217_v58 = vld [vmem:[%s17154_s3 + $0x204] ss:$8 sps:$4 sm:$0xff]   ;;  %v7009_v38 = vld [vmem:[#allocation4 + $0x19] sm:$0xff]  ;;  %9737 = vmatpush1.bf16.msra.mxu1 %v14203_v60  ;;  %v7238_v37 = vld [vmem:[#allocation4 + $0x30] sm:$0xff] }
 0x48d   :  { %v14124_v15 = vld [vmem:[#allocation5 + $0x12c] ss:$36 sps:$4 sm:$0xff]   ;;  %9594 = vmatmul.mubr.bf16.gmra.mxu0 %v14116_v31  ;;  %v14215_v26 = vld [vmem:[%s17154_s3 + $0x200] ss:$8 sps:$4 sm:$0xff]   ;;  %v13263_v55 = vpack.c.bf16 %v7009_v38, %v7009_v38  ;;  %9738 = vmatprep.subr.bf16.mxu1 %v14217_v58  ;;  %v14223_v23 = vld [vmem:[%s17154_s3 + $0x2f4] ss:$8 sps:$4 sm:$0xff]   ;;  %v13300_v5 = vpack.c.bf16 %v7238_v37, %v7238_v37 }
 0x48e   :  { %v14220_v16 = vld [vmem:[%s17154_s3 + $0x304] ss:$8 sps:$4 sm:$0xff]   ;;  %9603 = vmatprep.mubr.bf16.mxu0 %v14124_v15  ;;  %v14218_v1 = vld [vmem:[%s17154_s3 + $0x300] ss:$8 sps:$4 sm:$0xff]   ;;  %9930 = vmatpush1.bf16.msra.mxu0 %v14206_v0  ;;  %v14130_v2 = vld [vmem:[#allocation5 + $0x174] ss:$36 sps:$4 sm:$0xff]  }
 0x48f   :  { %v14127_v61 = vld [vmem:[#allocation5 + $0x16c] ss:$36 sps:$4 sm:$0xff]   ;;  %9931 = vmatprep.subr.bf16.mxu0 %v14220_v16  ;;  %v14226_v50 = vld [vmem:[%s17154_s3 + $0x3f4] ss:$8 sps:$4 sm:$0xff]   ;;  %7054 = vst [vmem:[#allocation5 + $0x10] sm:$0xf] %v13262_v53 }
 0x490   :  { %7055 = vst [vmem:[#allocation5 + $0x34] sm:$0xf] %v13263_v55  ;;  %v14221_v32 = vld [vmem:[%s17154_s3 + $0x2f0] ss:$8 sps:$4 sm:$0xff]   ;;  %v14119_v47 = vld [vmem:[#allocation5 + $0x120] ss:$36 sps:$4 sm:$0xff]   ;;  %9739 = vmatpush1.bf16.msra.mxu1 %v14215_v26 }
 0x491   :  { %v14224_v33 = vld [vmem:[%s17154_s3 + $0x3f0] ss:$8 sps:$4 sm:$0xff]   ;;  %v14229_v34 = vld [vmem:[%s17154_s3 + $0x2e4] ss:$8 sps:$4 sm:$0xff]   ;;  %9740 = vmatprep.subr.bf16.mxu1 %v14223_v23  ;;  %v14227_v57 = vld [vmem:[%s17154_s3 + $0x2e0] ss:$8 sps:$4 sm:$0xff]  }
 0x492   :  { %v14122_v29 = vld [vmem:[#allocation5 + $0x128] ss:$36 sps:$4 sm:$0xff]   ;;  %9932 = vmatpush1.bf16.msra.mxu0 %v14218_v1  ;;  %v7122_v46 = vld [vmem:[#allocation4 + $0x12] sm:$0xff]  ;;  %9411 = vmatmul.mubr.bf16.gmra.mxu1 %v14119_v47  ;;  %v7123_v54 = vld [vmem:[#allocation4 + $0x1a] sm:$0xff]  ;;  %7284 = vst [vmem:[#allocation5 + $0x60] sm:$0xf] %v13300_v5 }
 0x493   :  { %v14232_v18 = vld [vmem:[%s17154_s3 + $0x3e4] ss:$8 sps:$4 sm:$0xff]   ;;  %9933 = vmatprep.subr.bf16.mxu0 %v14226_v50  ;;  %v13280_v43 = vpack.c.bf16 %v7122_v46, %v7122_v46  ;;  %9420 = vmatprep.mubr.bf16.mxu1 %v14127_v61  ;;  %v13281_v22 = vpack.c.bf16 %v7123_v54, %v7123_v54  ;;  %v14230_v21 = vld [vmem:[%s17154_s3 + $0x3e0] ss:$8 sps:$4 sm:$0xff]   ;;  %v14241_v8 = vld [vmem:[%s17154_s3 + $0x2d4] ss:$8 sps:$4 sm:$0xff]  }
 0x494   :  { %v7236_v41 = vld [vmem:[#allocation4 + $0x20] sm:$0xff]  ;;  %v7237_v14 = vld [vmem:[#allocation4 + $0x28] sm:$0xff]  ;;  %9741 = vmatpush2.bf16.msra.mxu1 %v14221_v32  ;;  %v16382_v17 = vld [vmem:[%s17154_s3 + $0x3d4] ss:$8 sps:$4 sm:$0xff]  }
 0x495   :  { %9604 = vmatmul.mubr.bf16.gmra.mxu0 %v14122_v29  ;;  %v13298_v42 = vpack.c.bf16 %v7236_v41, %v7236_v41  ;;  %v13299_v63 = vpack.c.bf16 %v7237_v14, %v7237_v14  ;;  %v7350_v45 = vld [vmem:[#allocation4 + $0x21] sm:$0xff]  ;;  %v7351_v25 = vld [vmem:[#allocation4 + $0x29] sm:$0xff]  ;;  %7168 = vst [vmem:[#allocation5 + $0x14] sm:$0xf] %v13280_v43  ;;  %v16386_v7 = vld [vmem:[#allocation5 + $0x1b4] ss:$36 sps:$4 sm:$0xff]   ;;  %9742 = vmatprep.subr.bf16.mxu1 %v14229_v34 }
 0x496   :  { %v16371_v39 = vld [vmem:[#allocation5 + $0x168] ss:$36 sps:$4 sm:$0xff]   ;;  %9613 = vmatprep.mubr.bf16.mxu0 %v14130_v2  ;;  %v13316_v10 = vpack.c.bf16 %v7350_v45, %v7350_v45  ;;  %v13317_v28 = vpack.c.bf16 %v7351_v25, %v7351_v25  ;;  %v16384_v48 = vld [vmem:[#allocation5 + $0x170] ss:$36 sps:$4 sm:$0xff]   ;;  %9934 = vmatpush2.bf16.msra.mxu0 %v14224_v33  ;;  %7169 = vst [vmem:[#allocation5 + $0x38] sm:$0xf] %v13281_v22 }
 0x497   :  { %7282 = vst [vmem:[#allocation5 + $0x18] sm:$0xf] %v13298_v42  ;;  %7283 = vst [vmem:[#allocation5 + $0x3c] sm:$0xf] %v13299_v63  ;;  %v7124_v52 = vld [vmem:[#allocation4 + $0x22] sm:$0xff]  ;;  %v7125_v35 = vld [vmem:[#allocation4 + $0x2a] sm:$0xff]  ;;  %9935 = vmatprep.subr.bf16.mxu0 %v14232_v18 }
 0x498   :  { %v16388_v12 = vld [vmem:[#allocation5 + $0x1bc] ss:$36 sps:$4 sm:$0xff]   ;;  %v16393_v56 = vld [vmem:[%s17154_s3 + $0x2d0] ss:$8 sps:$4 sm:$0xff]   ;;  %7396 = vst [vmem:[#allocation5 + $0x1c] sm:$0xf] %v13316_v10  ;;  %v13282_v9 = vpack.c.bf16 %v7124_v52, %v7124_v52  ;;  %v13283_v51 = vpack.c.bf16 %v7125_v35, %v7125_v35  ;;  %9743 = vmatpush2.bf16.msra.mxu1 %v14227_v57 }
 0x499   :  { %7397 = vst [vmem:[#allocation5 + $0x40] sm:$0xf] %v13317_v28  ;;  %7056 = vst [vmem:[#allocation5 + $0x58] sm:$0xf] %v13316_v10  ;;  %v7239_v36 = vld [vmem:[#allocation4 + $0x38] sm:$0xff]  ;;  %v7240_v15 = vld [vmem:[#allocation4 + $0x40] sm:$0xff]  ;;  %9744 = vmatprep.subr.bf16.mxu1 %v14241_v8 }
 0x49a   :  { %7057 = vst [vmem:[#allocation5 + $0x7c] sm:$0xf] %v13317_v28  ;;  %v7352_v24 = vld [vmem:[#allocation4 + $0x31] sm:$0xff]  ;;  %v7353_v62 = vld [vmem:[#allocation4 + $0x39] sm:$0xff]  ;;  %v16403_v0 = vld [vmem:[%s17154_s3 + $0x2c4] ss:$8 sps:$4 sm:$0xff]   ;;  %v13301_v4 = vpack.c.bf16 %v7239_v36, %v7239_v36  ;;  %v13302_v1 = vpack.c.bf16 %v7240_v15, %v7240_v15  ;;  %9936 = vmatpush2.bf16.msra.mxu0 %v14230_v21  ;;  %9421 = vmatmul.mubr.bf16.gmra.mxu1 %v16371_v39 }
 0x49b   :  { %v16398_v60 = vld [vmem:[%s17154_s3 + $0x3d0] ss:$8 sps:$4 sm:$0xff]   ;;  %v13318_v30 = vpack.c.bf16 %v7352_v24, %v7352_v24  ;;  %v13319_v31 = vpack.c.bf16 %v7353_v62, %v7353_v62  ;;  %v16408_v16 = vld [vmem:[%s17154_s3 + $0x3c4] ss:$8 sps:$4 sm:$0xff]   ;;  %7170 = vst [vmem:[#allocation5 + $0x5c] sm:$0xf] %v13282_v9  ;;  %9937 = vmatprep.subr.bf16.mxu0 %v16382_v17  ;;  %9430 = vmatprep.mubr.bf16.mxu1 %v16386_v7 }
 0x49c   :  { %v7126_v40 = vld [vmem:[#allocation4 + $0x32] sm:$0xff]  ;;  %v7127_v58 = vld [vmem:[#allocation4 + $0x3a] sm:$0xff]  ;;  %7171 = vst [vmem:[#allocation5 + $0x80] sm:$0xf] %v13283_v51  ;;  %v7241_v26 = vld [vmem:[#allocation4 + $0x48] sm:$0xff]  ;;  %9745 = vmatpush2.bf16.msra.mxu1 %v16393_v56 }
 0x49d   :  { %v13284_v44 = vpack.c.bf16 %v7126_v40, %v7126_v40  ;;  %v13285_v38 = vpack.c.bf16 %v7127_v58, %v7127_v58  ;;  %v7354_v53 = vld [vmem:[#allocation4 + $0x41] sm:$0xff]  ;;  %v7355_v55 = vld [vmem:[#allocation4 + $0x49] sm:$0xff]  ;;  %7510 = vst [vmem:[#allocation5 + $0x20] sm:$0xf] %v13282_v9  ;;  %7511 = vst [vmem:[#allocation5 + $0x44] sm:$0xf] %v13283_v51  ;;  %v13303_v61 = vpack.c.bf16 %v7241_v26, %v7241_v26  ;;  %9614 = vmatmul.mubr.bf16.gmra.mxu0 %v16384_v48  ;;  %v13715_v58 = vpop.f32.mrf.mxu1 }
 0x49e   :  { %7285 = vst [vmem:[#allocation5 + $0x84] sm:$0xf] %v13301_v4  ;;  %7398 = vst [vmem:[#allocation5 + $0x64] sm:$0xf] %v13318_v30  ;;  %v13320_v23 = vpack.c.bf16 %v7354_v53, %v7354_v53  ;;  %v13321_v2 = vpack.c.bf16 %v7355_v55, %v7355_v55  ;;  %v7128_v50 = vld [vmem:[#allocation4 + $0x42] sm:$0xff]  ;;  %v7129_v32 = vld [vmem:[#allocation4 + $0x4a] sm:$0xff]  ;;  %9623 = vmatprep.mubr.bf16.mxu0 %v16388_v12  ;;  %9938 = vmatpush2.bf16.msra.mxu0 %v16398_v60 }
 0x49f   :  { %7399 = vst [vmem:[#allocation5 + $0x88] sm:$0xf] %v13319_v31  ;;  %7058 = vst [vmem:[#allocation5 + $0xa0] sm:$0xf] %v13318_v30  ;;  %v7242_v33 = vld [vmem:[#allocation4 + $0x50] sm:$0xff]  ;;  %v13286_v29 = vpack.c.bf16 %v7128_v50, %v7128_v50  ;;  %v13287_v18 = vpack.c.bf16 %v7129_v32, %v7129_v32  ;;  %v7243_v46 = vld [vmem:[#allocation4 + $0x58] sm:$0xff]  ;;  %9746 = vmatprep.subr.bf16.mxu1 %v16403_v0  ;;  %9939 = vmatprep.subr.bf16.mxu0 %v16408_v16 }
 0x4a0   :  { %7059 = vst [vmem:[#allocation5 + $0xc4] sm:$0xf] %v13319_v31  ;;  %v7062_v47 = vld [vmem:[#allocation5 + $0x130] sm:$0x7]  ;;  %v7176_v34 = vld [vmem:[#allocation5 + $0x134] sm:$0x7]  ;;  %v13304_v54 = vpack.c.bf16 %v7242_v33, %v7242_v33  ;;  %v13305_v14 = vpack.c.bf16 %v7243_v46, %v7243_v46 }
 0x4a1   :  { %7172 = vst [vmem:[#allocation5 + $0xa4] sm:$0xf] %v13284_v44  ;;  %7173 = vst [vmem:[#allocation5 + $0xc8] sm:$0xf] %v13285_v38  ;;  %v7356_v43 = vld [vmem:[#allocation4 + $0x51] sm:$0xff]  ;;  %v7357_v41 = vld [vmem:[#allocation4 + $0x59] sm:$0xff] }
 0x4a2   :  { %7286 = vst [vmem:[#allocation5 + $0xa8] sm:$0xf] %v13302_v1  ;;  %7512 = vst [vmem:[#allocation5 + $0x68] sm:$0xf] %v13284_v44  ;;  %v13322_v57 = vpack.c.bf16 %v7356_v43, %v7356_v43  ;;  %v13323_v22 = vpack.c.bf16 %v7357_v41, %v7357_v41  ;;  %v7016_v42 = vld [vmem:[#allocation4 + $0x51] sm:$0x1f] }
 0x4a3   :  { %7513 = vst [vmem:[#allocation5 + $0x8c] sm:$0xf] %v13285_v38  ;;  %7287 = vst [vmem:[#allocation5 + $0xcc] sm:$0xf] %v13303_v61  ;;  %v7130_v63 = vld [vmem:[#allocation4 + $0x52] sm:$0x1f]  ;;  %v13270_v21 = vpack.c.bf16 %v7016_v42, %v7016_v42  ;;  %v13716_v38 = vpop.f32.mrf.mxu1 }
 0x4a4   :  { %7400 = vst [vmem:[#allocation5 + $0xac] sm:$0xf] %v13320_v23  ;;  %7401 = vst [vmem:[#allocation5 + $0xd0] sm:$0xf] %v13321_v2  ;;  %v14131_v45 = vld [vmem:[#allocation5 + $0x1b0] ss:$36 sps:$4 sm:$0xff]   ;;  %v13288_v8 = vpack.c.bf16 %v7130_v63, %v7130_v63 }
 0x4a5   :  { %7060 = vst [vmem:[#allocation5 + $0xe8] sm:$0xf] %v13320_v23  ;;  %7061 = vst [vmem:[#allocation5 + $0x10c] sm:$0xf] %v13321_v2  ;;  %v14245_v25 = vld [vmem:[%s17154_s3 + $0x2c0] ss:$8 sps:$4 sm:$0xff]   ;;  %v7063_v35 = vsel %vm16240_vm8, %v13270_v21, %v7062_v47  ;;  %9431 = vmatmul.mubr.bf16.gmra.mxu1 %v14131_v45  ;;  %v13718_v61 = vpop.f32.mrf.mxu1 }
 0x4a6   :  { %v14248_v39 = vld [vmem:[%s17154_s3 + $0x3c0] ss:$8 sps:$4 sm:$0xff]   ;;  %7174 = vst [vmem:[#allocation5 + $0xec] sm:$0xf] %v13286_v29  ;;  %7175 = vst [vmem:[#allocation5 + $0x110] sm:$0xf] %v13287_v18  ;;  %v7177_v37 = vsel %vm16240_vm8, %v13288_v8, %v7176_v34  ;;  %9747 = vmatpush2.bf16.msra.mxu1 %v14245_v25 }
 0x4a7   :  { %7288 = vst [vmem:[#allocation5 + $0xf0] sm:$0xf] %v13304_v54  ;;  %v7290_v17 = vld [vmem:[#allocation5 + $0x138] sm:$0x7]  ;;  %v7404_v10 = vld [vmem:[#allocation5 + $0x13c] sm:$0x7]  ;;  %9940 = vmatpush2.bf16.msra.mxu0 %v14248_v39  ;;  %v13719_v50 = vpop.f32.mrf.mxu1 }
 0x4a8   :  { %7514 = vst [vmem:[#allocation5 + $0xb0] sm:$0xf] %v13286_v29  ;;  %7515 = vst [vmem:[#allocation5 + $0xd4] sm:$0xf] %v13287_v18  ;;  %v14134_v28 = vld [vmem:[#allocation5 + $0x1b8] ss:$36 sps:$4 sm:$0xff]  }
 0x4a9   :  { %v14139_v48 = vld [vmem:[#allocation5 + $0x1fc] ss:$36 sps:$4 sm:$0xff]   ;;  %7289 = vst [vmem:[#allocation5 + $0x114] sm:$0xf] %v13305_v14  ;;  %7402 = vst [vmem:[#allocation5 + $0xf4] sm:$0xf] %v13322_v57  ;;  %9624 = vmatmul.mubr.bf16.gmra.mxu0 %v14134_v28 }
 0x4aa   :  { %v14259_v7 = vld [vmem:[%s17154_s3 + $0x2b4] ss:$8 sps:$4 sm:$0xff]   ;;  %7403 = vst [vmem:[#allocation5 + $0x118] sm:$0xf] %v13323_v22  ;;  %v7244_v12 = vld [vmem:[#allocation4 + $0x60] sm:$0x1f]  ;;  %9440 = vmatprep.mubr.bf16.mxu1 %v14139_v48 }
 0x4ab   :  { %v14262_v52 = vld [vmem:[%s17154_s3 + $0x3b4] ss:$8 sps:$4 sm:$0xff]   ;;  %v7358_v56 = vld [vmem:[#allocation4 + $0x61] sm:$0x1f]  ;;  %7064 = vst [vmem:[#allocation5 + $0x130] sm:$0x7] %v7063_v35  ;;  %v13306_v51 = vpack.c.bf16 %v7244_v12, %v7244_v12  ;;  %9748 = vmatprep.subr.bf16.mxu1 %v14259_v7 }
 0x4ac   :  { %v14142_v9 = vld [vmem:[#allocation5 + $0x204] ss:$36 sps:$4 sm:$0xff]   ;;  %7178 = vst [vmem:[#allocation5 + $0x134] sm:$0x7] %v7177_v37  ;;  %v13324_v36 = vpack.c.bf16 %v7358_v56, %v7358_v56  ;;  %v14257_v5 = vld [vmem:[%s17154_s3 + $0x2b0] ss:$8 sps:$4 sm:$0xff]   ;;  %9941 = vmatprep.subr.bf16.mxu0 %v14262_v52 }
 0x4ad   :  { %v14260_v24 = vld [vmem:[%s17154_s3 + $0x3b0] ss:$8 sps:$4 sm:$0xff]   ;;  %v14265_v62 = vld [vmem:[%s17154_s3 + $0x2a4] ss:$8 sps:$4 sm:$0xff]   ;;  %v7291_v60 = vsel %vm16240_vm8, %v13306_v51, %v7290_v17  ;;  %9633 = vmatprep.mubr.bf16.mxu0 %v14142_v9  ;;  %9749 = vmatpush2.bf16.msra.mxu1 %v14257_v5  ;;  %v14263_v30 = vld [vmem:[%s17154_s3 + $0x2a0] ss:$8 sps:$4 sm:$0xff]  }
 0x4ae   :  { %v7405_v0 = vsel %vm16240_vm8, %v13324_v36, %v7404_v10  ;;  %v14268_v4 = vld [vmem:[%s17154_s3 + $0x3a4] ss:$8 sps:$4 sm:$0xff]   ;;  %7292 = vst [vmem:[#allocation5 + $0x138] sm:$0x7] %v7291_v60  ;;  %9942 = vmatpush2.bf16.msra.mxu0 %v14260_v24  ;;  %9750 = vmatprep.subr.bf16.mxu1 %v14265_v62  ;;  %v14266_v31 = vld [vmem:[%s17154_s3 + $0x3a0] ss:$8 sps:$4 sm:$0xff]  }
 0x4af   :  { %7406 = vst [vmem:[#allocation5 + $0x13c] sm:$0x7] %v7405_v0  ;;  %v14277_v40 = vld [vmem:[%s17154_s3 + $0x294] ss:$8 sps:$4 sm:$0xff]   ;;  %9943 = vmatprep.subr.bf16.mxu0 %v14268_v4  ;;  %v14140_v44 = vld [vmem:[#allocation5 + $0x200] ss:$36 sps:$4 sm:$0xff]  }
 0x4b0   :  { %v14137_v15 = vld [vmem:[#allocation5 + $0x1f8] ss:$36 sps:$4 sm:$0xff]   ;;  %v14145_v26 = vld [vmem:[#allocation5 + $0x244] ss:$36 sps:$4 sm:$0xff]   ;;  %v14148_v23 = vld [vmem:[#allocation5 + $0x24c] ss:$36 sps:$4 sm:$0xff]  }
 0x4b1   :  { %v14280_v16 = vld [vmem:[%s17154_s3 + $0x394] ss:$8 sps:$4 sm:$0xff]   ;;  %9751 = vmatpush2.bf16.msra.mxu1 %v14263_v30  ;;  %v14275_v1 = vld [vmem:[%s17154_s3 + $0x290] ss:$8 sps:$4 sm:$0xff]   ;;  %v14289_v55 = vld [vmem:[%s17154_s3 + $0x284] ss:$8 sps:$4 sm:$0xff]   ;;  %9634 = vmatmul.mubr.bf16.gmra.mxu0 %v14140_v44 }
 0x4b2   :  { %9944 = vmatpush2.bf16.msra.mxu0 %v14266_v31  ;;  %9752 = vmatprep.subr.bf16.mxu1 %v14277_v40  ;;  %v14278_v53 = vld [vmem:[%s17154_s3 + $0x390] ss:$8 sps:$4 sm:$0xff]   ;;  %v14292_v2 = vld [vmem:[%s17154_s3 + $0x384] ss:$8 sps:$4 sm:$0xff]   ;;  %v14287_v32 = vld [vmem:[%s17154_s3 + $0x280] ss:$8 sps:$4 sm:$0xff]  }
 0x4b3   :  { %9441 = vmatmul.mubr.bf16.gmra.mxu1 %v14137_v15  ;;  %9945 = vmatprep.subr.bf16.mxu0 %v14280_v16  ;;  %v14290_v33 = vld [vmem:[%s17154_s3 + $0x380] ss:$8 sps:$4 sm:$0xff]   ;;  %v7065_v47 = vld [vmem:[#allocation4 + $0x91] sm:$0xff] }
 0x4b4   :  { %9450 = vmatprep.mubr.bf16.mxu1 %v14145_v26  ;;  %9643 = vmatprep.mubr.bf16.mxu0 %v14148_v23  ;;  %v7066_v34 = vld [vmem:[#allocation4 + $0x99] sm:$0xff]  ;;  %v13271_v46 = vpack.c.bf16 %v7065_v47, %v7065_v47  ;;  %v7294_v57 = vld [vmem:[#allocation4 + $0xa8] sm:$0xff]  ;;  %v7295_v52 = vld [vmem:[#allocation4 + $0xb0] sm:$0xff] }
 0x4b5   :  { %9753 = vmatpush2.bf16.msra.mxu1 %v14275_v1  ;;  %v7179_v29 = vld [vmem:[#allocation4 + $0x92] sm:$0xff]  ;;  %v14143_v18 = vld [vmem:[#allocation5 + $0x240] ss:$36 sps:$4 sm:$0xff]   ;;  %v13272_v54 = vpack.c.bf16 %v7066_v34, %v7066_v34  ;;  %v14146_v22 = vld [vmem:[#allocation5 + $0x248] ss:$36 sps:$4 sm:$0xff]   ;;  %v13308_v25 = vpack.c.bf16 %v7294_v57, %v7294_v57  ;;  %v13309_v12 = vpack.c.bf16 %v7295_v52, %v7295_v52 }
 0x4b6   :  { %9946 = vmatpush2.bf16.msra.mxu0 %v14278_v53  ;;  %9754 = vmatprep.subr.bf16.mxu1 %v14289_v55  ;;  %v7180_v43 = vld [vmem:[#allocation4 + $0x9a] sm:$0xff]  ;;  %v13289_v41 = vpack.c.bf16 %v7179_v29, %v7179_v29  ;;  %v14157_v42 = vld [vmem:[#allocation5 + $0x28c] ss:$36 sps:$4 sm:$0xff]   ;;  %v7181_v8 = vld [vmem:[#allocation4 + $0xa2] sm:$0xff]  ;;  %7111 = vst [vmem:[#allocation5 + $0x250] sm:$0xf] %v13271_v46 }
 0x4b7   :  { %9947 = vmatprep.subr.bf16.mxu0 %v14292_v2  ;;  %v7293_v14 = vld [vmem:[#allocation4 + $0xa0] sm:$0xff]  ;;  %v13290_v63 = vpack.c.bf16 %v7180_v43, %v7180_v43  ;;  %v7408_v21 = vld [vmem:[#allocation4 + $0xa9] sm:$0xff]  ;;  %v14160_v17 = vld [vmem:[#allocation5 + $0x294] ss:$36 sps:$4 sm:$0xff]   ;;  %7112 = vst [vmem:[#allocation5 + $0x274] sm:$0xf] %v13272_v54  ;;  %v13291_v7 = vpack.c.bf16 %v7181_v8, %v7181_v8 }
 0x4b8   :  { %v13307_v45 = vpack.c.bf16 %v7293_v14, %v7293_v14  ;;  %v7407_v39 = vld [vmem:[#allocation4 + $0xa1] sm:$0xff]  ;;  %7225 = vst [vmem:[#allocation5 + $0x254] sm:$0xf] %v13289_v41  ;;  %v13326_v28 = vpack.c.bf16 %v7408_v21, %v7408_v21  ;;  %v7182_v48 = vld [vmem:[#allocation4 + $0xaa] sm:$0xff]  ;;  %v7296_v35 = vld [vmem:[#allocation4 + $0xb8] sm:$0xff] }
 0x4b9   :  { %9755 = vmatpush2.bf16.msra.mxu1 %v14287_v32  ;;  %v13325_v10 = vpack.c.bf16 %v7407_v39, %v7407_v39  ;;  %7226 = vst [vmem:[#allocation5 + $0x278] sm:$0xf] %v13290_v63  ;;  %7340 = vst [vmem:[#allocation5 + $0x27c] sm:$0xf] %v13308_v25  ;;  %v13292_v37 = vpack.c.bf16 %v7182_v48, %v7182_v48  ;;  %v13310_v56 = vpack.c.bf16 %v7296_v35, %v7296_v35  ;;  %v7409_v9 = vld [vmem:[#allocation4 + $0xb1] sm:$0xff]  ;;  %v7410_v51 = vld [vmem:[#allocation4 + $0xb9] sm:$0xff] }
 0x4ba   :  { %9948 = vmatpush2.bf16.msra.mxu0 %v14290_v33  ;;  %7339 = vst [vmem:[#allocation5 + $0x258] sm:$0xf] %v13307_v45  ;;  %v7183_v36 = vld [vmem:[#allocation4 + $0xb2] sm:$0xff]  ;;  %7454 = vst [vmem:[#allocation5 + $0x280] sm:$0xf] %v13326_v28  ;;  %v13327_v5 = vpack.c.bf16 %v7409_v9, %v7409_v9  ;;  %v13328_v24 = vpack.c.bf16 %v7410_v51, %v7410_v51  ;;  %v7184_v62 = vld [vmem:[#allocation4 + $0xba] sm:$0xff] }
 0x4bb   :  { %9451 = vmatmul.mubr.bf16.gmra.mxu1 %v14143_v18  ;;  %7453 = vst [vmem:[#allocation5 + $0x25c] sm:$0xf] %v13325_v10  ;;  %7113 = vst [vmem:[#allocation5 + $0x298] sm:$0xf] %v13325_v10  ;;  %v13293_v60 = vpack.c.bf16 %v7183_v36, %v7183_v36  ;;  %v7297_v0 = vld [vmem:[#allocation4 + $0xc0] sm:$0xff]  ;;  %v7298_v4 = vld [vmem:[#allocation4 + $0xc8] sm:$0xff]  ;;  %9644 = vmatmul.mubr.bf16.gmra.mxu0 %v14146_v22  ;;  %v13294_v30 = vpack.c.bf16 %v7184_v62, %v7184_v62 }
 0x4bc   :  { %7114 = vst [vmem:[#allocation5 + $0x2bc] sm:$0xf] %v13326_v28  ;;  %7227 = vst [vmem:[#allocation5 + $0x29c] sm:$0xf] %v13291_v7  ;;  %9460 = vmatprep.mubr.bf16.mxu1 %v14157_v42  ;;  %v13311_v31 = vpack.c.bf16 %v7297_v0, %v7297_v0  ;;  %v13312_v40 = vpack.c.bf16 %v7298_v4, %v7298_v4  ;;  %v7411_v58 = vld [vmem:[#allocation4 + $0xc1] sm:$0xff]  ;;  %v7412_v15 = vld [vmem:[#allocation4 + $0xc9] sm:$0xff]  ;;  %9653 = vmatprep.mubr.bf16.mxu0 %v14160_v17 }
 0x4bd   :  { %7567 = vst [vmem:[#allocation5 + $0x260] sm:$0xf] %v13291_v7  ;;  %7228 = vst [vmem:[#allocation5 + $0x2c0] sm:$0xf] %v13292_v37  ;;  %v7185_v16 = vld [vmem:[#allocation4 + $0xc2] sm:$0xff]  ;;  %v13329_v38 = vpack.c.bf16 %v7411_v58, %v7411_v58  ;;  %v13330_v26 = vpack.c.bf16 %v7412_v15, %v7412_v15  ;;  %v7186_v1 = vld [vmem:[#allocation4 + $0xca] sm:$0xff] }
 0x4be   :  { %7341 = vst [vmem:[#allocation5 + $0x2a0] sm:$0xf] %v13309_v12  ;;  %7342 = vst [vmem:[#allocation5 + $0x2c4] sm:$0xf] %v13310_v56  ;;  %v14343_v44 = vld [vmem:[%s17154_s3 + $0x474] ss:$8 sps:$4 sm:$0xff]   ;;  %v13295_v53 = vpack.c.bf16 %v7185_v16, %v7185_v16  ;;  %v13296_v23 = vpack.c.bf16 %v7186_v1, %v7186_v1 }
 0x4bf   :  { %7568 = vst [vmem:[#allocation5 + $0x284] sm:$0xf] %v13292_v37  ;;  %7455 = vst [vmem:[#allocation5 + $0x2a4] sm:$0xf] %v13327_v5  ;;  %v7119_v55 = vld [vmem:[#allocation5 + $0x370] sm:$0x7]  ;;  %10110 = vmatprep.subr.bf16.mxu1 %v14343_v44 }
 0x4c0   :  { %7456 = vst [vmem:[#allocation5 + $0x2c8] sm:$0xf] %v13328_v24  ;;  %7115 = vst [vmem:[#allocation5 + $0x2e0] sm:$0xf] %v13327_v5  ;;  %v7233_v61 = vld [vmem:[#allocation5 + $0x374] sm:$0x7] }
 0x4c1   :  { %7116 = vst [vmem:[#allocation5 + $0x304] sm:$0xf] %v13328_v24  ;;  %7229 = vst [vmem:[#allocation5 + $0x2e4] sm:$0xf] %v13293_v60  ;;  %v7299_v2 = vld [vmem:[#allocation4 + $0xd0] sm:$0xff]  ;;  %v7300_v50 = vld [vmem:[#allocation4 + $0xd8] sm:$0xff] }
 0x4c2   :  { %7569 = vst [vmem:[#allocation5 + $0x2a8] sm:$0xf] %v13293_v60  ;;  %7230 = vst [vmem:[#allocation5 + $0x308] sm:$0xf] %v13294_v30  ;;  %v7413_v32 = vld [vmem:[#allocation4 + $0xd1] sm:$0xff]  ;;  %v13313_v34 = vpack.c.bf16 %v7299_v2, %v7299_v2  ;;  %v13314_v29 = vpack.c.bf16 %v7300_v50, %v7300_v50  ;;  %v7414_v18 = vld [vmem:[#allocation4 + $0xd9] sm:$0xff]  ;;  %v13827_v2 = vpop.f32.mrf.mxu0 }
 0x4c3   :  { %7343 = vst [vmem:[#allocation5 + $0x2e8] sm:$0xf] %v13311_v31  ;;  %7344 = vst [vmem:[#allocation5 + $0x30c] sm:$0xf] %v13312_v40  ;;  %v7347_v33 = vld [vmem:[#allocation5 + $0x378] sm:$0x7]  ;;  %v13331_v46 = vpack.c.bf16 %v7413_v32, %v7413_v32  ;;  %v13332_v41 = vpack.c.bf16 %v7414_v18, %v7414_v18 }
 0x4c4   :  { %v7461_v47 = vld [vmem:[#allocation5 + $0x37c] sm:$0x7]  ;;  %7570 = vst [vmem:[#allocation5 + $0x2cc] sm:$0xf] %v13294_v30  ;;  %7457 = vst [vmem:[#allocation5 + $0x2ec] sm:$0xf] %v13329_v38 }
 0x4c5   :  { %7458 = vst [vmem:[#allocation5 + $0x310] sm:$0xf] %v13330_v26  ;;  %7117 = vst [vmem:[#allocation5 + $0x328] sm:$0xf] %v13329_v38  ;;  %v7073_v54 = vld [vmem:[#allocation4 + $0xd1] sm:$0x1f] }
 0x4c6   :  { %7118 = vst [vmem:[#allocation5 + $0x34c] sm:$0xf] %v13330_v26  ;;  %7231 = vst [vmem:[#allocation5 + $0x32c] sm:$0xf] %v13295_v53  ;;  %v7187_v43 = vld [vmem:[#allocation4 + $0xd2] sm:$0x1f]  ;;  %v13279_v14 = vpack.c.bf16 %v7073_v54, %v7073_v54 }
 0x4c7   :  { %7571 = vst [vmem:[#allocation5 + $0x2f0] sm:$0xf] %v13295_v53  ;;  %7232 = vst [vmem:[#allocation5 + $0x350] sm:$0xf] %v13296_v23  ;;  %v13297_v57 = vpack.c.bf16 %v7187_v43, %v7187_v43  ;;  %v7301_v22 = vld [vmem:[#allocation4 + $0xe0] sm:$0x1f] }
 0x4c8   :  { %v7415_v42 = vld [vmem:[#allocation4 + $0xe1] sm:$0x1f]  ;;  %7572 = vst [vmem:[#allocation5 + $0x314] sm:$0xf] %v13296_v23  ;;  %v14155_v63 = vld [vmem:[#allocation5 + $0x288] ss:$36 sps:$4 sm:$0xff]   ;;  %v13315_v25 = vpack.c.bf16 %v7301_v22, %v7301_v22  ;;  %v7120_v8 = vsel %vm16240_vm8, %v13279_v14, %v7119_v55 }
 0x4c9   :  { %v14158_v45 = vld [vmem:[#allocation5 + $0x290] ss:$36 sps:$4 sm:$0xff]   ;;  %7345 = vst [vmem:[#allocation5 + $0x330] sm:$0xf] %v13313_v34  ;;  %7346 = vst [vmem:[#allocation5 + $0x354] sm:$0xf] %v13314_v29  ;;  %v13333_v39 = vpack.c.bf16 %v7415_v42, %v7415_v42  ;;  %v7234_v17 = vsel %vm16240_vm8, %v13297_v57, %v7233_v61  ;;  %9461 = vmatmul.mubr.bf16.gmra.mxu1 %v14155_v63 }
 0x4ca   :  { %7459 = vst [vmem:[#allocation5 + $0x334] sm:$0xf] %v13331_v46  ;;  %v14175_v21 = vld [vmem:[#allocation5 + $0x2d4] ss:$36 sps:$4 sm:$0xff]   ;;  %7460 = vst [vmem:[#allocation5 + $0x358] sm:$0xf] %v13332_v41  ;;  %v7348_v28 = vsel %vm16240_vm8, %v13315_v25, %v7347_v33  ;;  %9654 = vmatmul.mubr.bf16.gmra.mxu0 %v14158_v45 }
 0x4cb   :  { %v14178_v10 = vld [vmem:[#allocation5 + $0x2dc] ss:$36 sps:$4 sm:$0xff]   ;;  %7121 = vst [vmem:[#allocation5 + $0x370] sm:$0x7] %v7120_v8  ;;  %7235 = vst [vmem:[#allocation5 + $0x374] sm:$0x7] %v7234_v17  ;;  %v7462_v48 = vsel %vm16240_vm8, %v13333_v39, %v7461_v47  ;;  %9470 = vmatprep.mubr.bf16.mxu1 %v14175_v21  ;;  %v13828_v47 = vpop.f32.mrf.mxu0 }
 0x4cc   :  { %7349 = vst [vmem:[#allocation5 + $0x378] sm:$0x7] %v7348_v28  ;;  %7463 = vst [vmem:[#allocation5 + $0x37c] sm:$0x7] %v7462_v48  ;;  %9663 = vmatprep.mubr.bf16.mxu0 %v14178_v10  ;;  %v14173_v7 = vld [vmem:[#allocation5 + $0x2d0] ss:$36 sps:$4 sm:$0xff]  }
 0x4cd   :  { %v14176_v52 = vld [vmem:[#allocation5 + $0x2d8] ss:$36 sps:$4 sm:$0xff]   ;;  %v14196_v37 = vld [vmem:[#allocation5 + $0x324] ss:$36 sps:$4 sm:$0xff]   ;;  %v7518_v56 = vld [vmem:[#allocation5 + $0x140] sm:$0x7]  ;;  %v13830_v34 = vpop.f32.mrf.mxu0 }
 0x4ce   :  { %v14193_v35 = vld [vmem:[#allocation5 + $0x31c] ss:$36 sps:$4 sm:$0xff]   ;;  %v7470_v51 = vld [vmem:[#allocation4 + $0x52] sm:$0xff]  ;;  %v14211_v24 = vld [vmem:[#allocation5 + $0x364] ss:$36 sps:$4 sm:$0xff]  }
 0x4cf   :  { %v14191_v12 = vld [vmem:[#allocation5 + $0x318] ss:$36 sps:$4 sm:$0xff]   ;;  %v14194_v9 = vld [vmem:[#allocation5 + $0x320] ss:$36 sps:$4 sm:$0xff]   ;;  %v13340_v62 = vpack.c.bf16 %v7470_v51, %v7470_v51  ;;  %v14214_v4 = vld [vmem:[#allocation5 + $0x36c] ss:$36 sps:$4 sm:$0xff]   ;;  %v13831_v3 = vpop.f32.mrf.mxu0 }
 0x4d0   :  { %v7471_v36 = vld [vmem:[#allocation4 + $0x5a] sm:$0xff]  ;;  %v7472_v5 = vld [vmem:[#allocation4 + $0x62] sm:$0x1f]  ;;  %v7527_v40 = vld [vmem:[#allocation4 + $0xd2] sm:$0xff] }
 0x4d1   :  { %9471 = vmatmul.mubr.bf16.gmra.mxu1 %v14173_v7  ;;  %v13341_v60 = vpack.c.bf16 %v7471_v36, %v7471_v36  ;;  %v13342_v0 = vpack.c.bf16 %v7472_v5, %v7472_v5  ;;  %7516 = vst [vmem:[#allocation5 + $0xf8] sm:$0xf] %v13340_v62  ;;  %v7575_v31 = vld [vmem:[#allocation5 + $0x380] sm:$0x7]  ;;  %v13349_v16 = vpack.c.bf16 %v7527_v40, %v7527_v40  ;;  %v14235_v26 = vld [vmem:[#allocation5 + $0x3ac] ss:$36 sps:$4 sm:$0xff]  }
 0x4d2   :  { %9664 = vmatmul.mubr.bf16.gmra.mxu0 %v14176_v52  ;;  %9480 = vmatprep.mubr.bf16.mxu1 %v14193_v35  ;;  %v7528_v58 = vld [vmem:[#allocation4 + $0xda] sm:$0xff]  ;;  %v7529_v15 = vld [vmem:[#allocation4 + $0xe2] sm:$0x1f]  ;;  %v14212_v61 = vld [vmem:[#allocation5 + $0x368] ss:$36 sps:$4 sm:$0xff]  }
 0x4d3   :  { %9673 = vmatprep.mubr.bf16.mxu0 %v14196_v37  ;;  %7517 = vst [vmem:[#allocation5 + $0x11c] sm:$0xf] %v13341_v60  ;;  %v7519_v30 = vsel %vm16240_vm8, %v13342_v0, %v7518_v56  ;;  %v13350_v44 = vpack.c.bf16 %v7528_v58, %v7528_v58  ;;  %v13351_v38 = vpack.c.bf16 %v7529_v15, %v7529_v15  ;;  %7573 = vst [vmem:[#allocation5 + $0x338] sm:$0xf] %v13349_v16  ;;  %v14209_v53 = vld [vmem:[#allocation5 + $0x360] ss:$36 sps:$4 sm:$0xff]  }
 0x4d4   :  { %7520 = vst [vmem:[#allocation5 + $0x140] sm:$0x7] %v7519_v30  ;;  %v14238_v55 = vld [vmem:[#allocation5 + $0x3b4] ss:$36 sps:$4 sm:$0xff]   ;;  %v14233_v23 = vld [vmem:[#allocation5 + $0x3a8] ss:$36 sps:$4 sm:$0xff]  }
 0x4d5   :  { %7574 = vst [vmem:[#allocation5 + $0x35c] sm:$0xf] %v13350_v44  ;;  %v7576_v1 = vsel %vm16240_vm8, %v13351_v38, %v7575_v31  ;;  %v14236_v50 = vld [vmem:[#allocation5 + $0x3b0] ss:$36 sps:$4 sm:$0xff]   ;;  %v14256_v33 = vld [vmem:[#allocation5 + $0x3fc] ss:$36 sps:$4 sm:$0xff]  }
 0x4d6   :  { %7577 = vst [vmem:[#allocation5 + $0x380] sm:$0x7] %v7576_v1  ;;  %v14253_v32 = vld [vmem:[#allocation5 + $0x3f4] ss:$36 sps:$4 sm:$0xff]   ;;  %v14271_v46 = vld [vmem:[#allocation5 + $0x43c] ss:$36 sps:$4 sm:$0xff]  }
 0x4d7   :  { %v14251_v29 = vld [vmem:[#allocation5 + $0x3f0] ss:$36 sps:$4 sm:$0xff]   ;;  %v14254_v18 = vld [vmem:[#allocation5 + $0x3f8] ss:$36 sps:$4 sm:$0xff]   ;;  %v14274_v54 = vld [vmem:[#allocation5 + $0x444] ss:$36 sps:$4 sm:$0xff]  }
 0x4d8   :  { %v14269_v43 = vld [vmem:[#allocation5 + $0x438] ss:$36 sps:$4 sm:$0xff]   ;;  %v14272_v41 = vld [vmem:[#allocation5 + $0x440] ss:$36 sps:$4 sm:$0xff]   ;;  %v14281_v22 = vld [vmem:[#allocation5 + $0x10] ss:$36 sps:$4 sm:$0xff]  }
 0x4d9   :  { %9481 = vmatmul.mubr.bf16.gmra.mxu1 %v14191_v12  ;;  %v14283_v14 = vld [vmem:[#allocation5 + $0x14] ss:$36 sps:$4 sm:$0xff]   ;;  %v14286_v57 = vld [vmem:[#allocation5 + $0x1c] ss:$36 sps:$4 sm:$0xff]   ;;  %v14358_v25 = vld [vmem:[%s17154_s3 + $0x464] ss:$8 sps:$4 sm:$0xff]  }
 0x4da   :  { %9674 = vmatmul.mubr.bf16.gmra.mxu0 %v14194_v9  ;;  %9490 = vmatprep.mubr.bf16.mxu1 %v14211_v24  ;;  %v14341_v42 = vld [vmem:[%s17154_s3 + $0x470] ss:$8 sps:$4 sm:$0xff]   ;;  %v14295_v45 = vld [vmem:[#allocation5 + $0x5c] ss:$36 sps:$4 sm:$0xff]   ;;  %v14298_v39 = vld [vmem:[#allocation5 + $0x64] ss:$36 sps:$4 sm:$0xff]  }
 0x4db   :  { %9683 = vmatprep.mubr.bf16.mxu0 %v14214_v4  ;;  %v14284_v63 = vld [vmem:[#allocation5 + $0x18] ss:$36 sps:$4 sm:$0xff]   ;;  %v14356_v21 = vld [vmem:[%s17154_s3 + $0x460] ss:$8 sps:$4 sm:$0xff]   ;;  %v14379_v7 = vld [vmem:[%s17154_s3 + $0x444] ss:$8 sps:$4 sm:$0xff]  }
 0x4dc   :  { %v14373_v8 = vld [vmem:[%s17154_s3 + $0x454] ss:$8 sps:$4 sm:$0xff]   ;;  %v14371_v10 = vld [vmem:[%s17154_s3 + $0x450] ss:$8 sps:$4 sm:$0xff]   ;;  %v14296_v28 = vld [vmem:[#allocation5 + $0x60] ss:$36 sps:$4 sm:$0xff]  }
 0x4dd   :  { %v14293_v17 = vld [vmem:[#allocation5 + $0x58] ss:$36 sps:$4 sm:$0xff]   ;;  %v14301_v48 = vld [vmem:[#allocation5 + $0xa4] ss:$36 sps:$4 sm:$0xff]   ;;  %v14304_v52 = vld [vmem:[#allocation5 + $0xac] ss:$36 sps:$4 sm:$0xff]  }
 0x4de   :  { %v14377_v35 = vld [vmem:[%s17154_s3 + $0x440] ss:$8 sps:$4 sm:$0xff]   ;;  %v14385_v37 = vld [vmem:[%s17154_s3 + $0x434] ss:$8 sps:$4 sm:$0xff]   ;;  %v14383_v56 = vld [vmem:[%s17154_s3 + $0x430] ss:$8 sps:$4 sm:$0xff]  }
 0x4df   :  { %v14299_v12 = vld [vmem:[#allocation5 + $0xa0] ss:$36 sps:$4 sm:$0xff]   ;;  %v14302_v9 = vld [vmem:[#allocation5 + $0xa8] ss:$36 sps:$4 sm:$0xff]   ;;  %v14310_v5 = vld [vmem:[#allocation5 + $0xf4] ss:$36 sps:$4 sm:$0xff]  }
 0x4e0   :  { %v14307_v51 = vld [vmem:[#allocation5 + $0xec] ss:$36 sps:$4 sm:$0xff]   ;;  %v14386_v24 = vld [vmem:[%s17154_s3 + $0x420] ss:$8 sps:$4 sm:$0xff]   ;;  %v14394_v62 = vld [vmem:[%s17154_s3 + $0x414] ss:$8 sps:$4 sm:$0xff]  }
 0x4e1   :  { %9491 = vmatmul.mubr.bf16.gmra.mxu1 %v14209_v53  ;;  %v14388_v36 = vld [vmem:[%s17154_s3 + $0x424] ss:$8 sps:$4 sm:$0xff]   ;;  %v14392_v0 = vld [vmem:[%s17154_s3 + $0x410] ss:$8 sps:$4 sm:$0xff]   ;;  %v14316_v40 = vld [vmem:[#allocation5 + $0x13c] ss:$36 sps:$4 sm:$0xff]  }
 0x4e2   :  { %9684 = vmatmul.mubr.bf16.gmra.mxu0 %v14212_v61  ;;  %9500 = vmatprep.mubr.bf16.mxu1 %v14235_v26  ;;  %v14305_v60 = vld [vmem:[#allocation5 + $0xe8] ss:$36 sps:$4 sm:$0xff]   ;;  %v14308_v4 = vld [vmem:[#allocation5 + $0xf0] ss:$36 sps:$4 sm:$0xff]   ;;  %v14319_v15 = vld [vmem:[#allocation5 + $0x17c] ss:$36 sps:$4 sm:$0xff]  }
 0x4e3   :  { %9693 = vmatprep.mubr.bf16.mxu0 %v14238_v55  ;;  %v14313_v30 = vld [vmem:[#allocation5 + $0x134] ss:$36 sps:$4 sm:$0xff]   ;;  %v14397_v31 = vld [vmem:[%s17154_s3 + $0x404] ss:$8 sps:$4 sm:$0xff]   ;;  %v14395_v58 = vld [vmem:[%s17154_s3 + $0x400] ss:$8 sps:$4 sm:$0xff]  }
 0x4e4   :  { %v14311_v16 = vld [vmem:[#allocation5 + $0x130] ss:$36 sps:$4 sm:$0xff]   ;;  %v14322_v44 = vld [vmem:[#allocation5 + $0x184] ss:$36 sps:$4 sm:$0xff]   ;;  %v14314_v38 = vld [vmem:[#allocation5 + $0x138] ss:$36 sps:$4 sm:$0xff]  }
 0x4e5   :  { %v14317_v26 = vld [vmem:[#allocation5 + $0x178] ss:$36 sps:$4 sm:$0xff]   ;;  %v14320_v1 = vld [vmem:[#allocation5 + $0x180] ss:$36 sps:$4 sm:$0xff]   ;;  %v14328_v55 = vld [vmem:[#allocation5 + $0x1cc] ss:$36 sps:$4 sm:$0xff]  }
 0x4e6   :  { %v14325_v53 = vld [vmem:[#allocation5 + $0x1c4] ss:$36 sps:$4 sm:$0xff]   ;;  %v14331_v2 = vld [vmem:[#allocation5 + $0x20c] ss:$36 sps:$4 sm:$0xff]   ;;  %v14337_v47 = vld [vmem:[#allocation5 + $0x254] ss:$36 sps:$4 sm:$0xff]  }
 0x4e7   :  { %v14323_v61 = vld [vmem:[#allocation5 + $0x1c0] ss:$36 sps:$4 sm:$0xff]   ;;  %v14335_v3 = vld [vmem:[#allocation5 + $0x250] ss:$36 sps:$4 sm:$0xff]  }
 0x4e8   :  { %v14340_v34 = vld [vmem:[#allocation5 + $0x25c] ss:$36 sps:$4 sm:$0xff]  }
 0x4e9   :  { %9501 = vmatmul.mubr.bf16.gmra.mxu1 %v14233_v23  ;;  %v14326_v23 = vld [vmem:[#allocation5 + $0x1c8] ss:$36 sps:$4 sm:$0xff]  }
 0x4ea   :  { %9694 = vmatmul.mubr.bf16.gmra.mxu0 %v14236_v50  ;;  %9510 = vmatprep.mubr.bf16.mxu1 %v14253_v32  ;;  %v14334_v50 = vld [vmem:[#allocation5 + $0x214] ss:$36 sps:$4 sm:$0xff]   ;;  %v14329_v32 = vld [vmem:[#allocation5 + $0x208] ss:$36 sps:$4 sm:$0xff]  }
 0x4eb   :  { %9703 = vmatprep.mubr.bf16.mxu0 %v14256_v33  ;;  %v14332_v33 = vld [vmem:[#allocation5 + $0x210] ss:$36 sps:$4 sm:$0xff]  }
 0x4f1   :  { %9511 = vmatmul.mubr.bf16.gmra.mxu1 %v14251_v29  ;;  %v14338_v29 = vld [vmem:[#allocation5 + $0x258] ss:$36 sps:$4 sm:$0xff]  }
 0x4f2   :  { %9704 = vmatmul.mubr.bf16.gmra.mxu0 %v14254_v18  ;;  %9520 = vmatprep.mubr.bf16.mxu1 %v14271_v46  ;;  %v14346_v18 = vld [vmem:[#allocation5 + $0x29c] ss:$36 sps:$4 sm:$0xff]  }
 0x4f3   :  { %9713 = vmatprep.mubr.bf16.mxu0 %v14274_v54  ;;  %v14349_v54 = vld [vmem:[#allocation5 + $0x2a4] ss:$36 sps:$4 sm:$0xff]  }
 0x4f9   :  { %9521 = vmatmul.mubr.bf16.gmra.mxu1 %v14269_v43 }
 0x4fa   :  { %9714 = vmatmul.mubr.bf16.gmra.mxu0 %v14272_v41  ;;  %9756 = vmatprep.mubr.bf16.mxu1 %v14283_v14 }
 0x4fb   :  { %9949 = vmatprep.mubr.bf16.mxu0 %v14286_v57 }
 0x501   :  { %9757 = vmatmul.mubr.bf16.vlgmr.msra.gmra.mxu1 %v14281_v22 }
 0x502   :  { %9950 = vmatmul.mubr.bf16.vlgmr.msra.gmra.mxu0 %v14284_v63  ;;  %9766 = vmatprep.mubr.bf16.mxu1 %v14295_v45  ;;  %v14344_v45 = vld [vmem:[#allocation5 + $0x298] ss:$36 sps:$4 sm:$0xff]  }
 0x503   :  { %9959 = vmatprep.mubr.bf16.mxu0 %v14298_v39  ;;  %10111 = vmatpush1.bf16.msra.mxu1 %v14341_v42  ;;  %v14347_v39 = vld [vmem:[#allocation5 + $0x2a0] ss:$36 sps:$4 sm:$0xff]  }
 0x504   :  { %10112 = vmatprep.subr.bf16.mxu1 %v14358_v25 }
 0x507   :  { %10113 = vmatpush1.bf16.msra.mxu1 %v14356_v21 }
 0x508   :  { %10114 = vmatprep.subr.bf16.mxu1 %v14373_v8  ;;  %v14352_v8 = vld [vmem:[#allocation5 + $0x2e4] ss:$36 sps:$4 sm:$0xff]  }
 0x509   :  { %9767 = vmatmul.mubr.bf16.gmra.mxu1 %v14293_v17 }
 0x50a   :  { %9960 = vmatmul.mubr.bf16.gmra.mxu0 %v14296_v28  ;;  %9776 = vmatprep.mubr.bf16.mxu1 %v14301_v48 }
 0x50b   :  { %9969 = vmatprep.mubr.bf16.mxu0 %v14304_v52  ;;  %10115 = vmatpush1.bf16.msra.mxu1 %v14371_v10  ;;  %v14355_v10 = vld [vmem:[#allocation5 + $0x2ec] ss:$36 sps:$4 sm:$0xff]  }
 0x50c   :  { %10116 = vmatprep.subr.bf16.mxu1 %v14379_v7 }
 0x50f   :  { %10117 = vmatpush1.bf16.msra.mxu1 %v14377_v35 }
 0x510   :  { %10118 = vmatprep.subr.bf16.mxu1 %v14385_v37  ;;  %v14350_v37 = vld [vmem:[#allocation5 + $0x2e0] ss:$36 sps:$4 sm:$0xff]  }
 0x511   :  { %9777 = vmatmul.mubr.bf16.gmra.mxu1 %v14299_v12 }
 0x512   :  { %9970 = vmatmul.mubr.bf16.gmra.mxu0 %v14302_v9  ;;  %9786 = vmatprep.mubr.bf16.mxu1 %v14307_v51  ;;  %v14361_v51 = vld [vmem:[#allocation5 + $0x32c] ss:$36 sps:$4 sm:$0xff]  }
 0x513   :  { %9979 = vmatprep.mubr.bf16.mxu0 %v14310_v5  ;;  %10119 = vmatpush1.bf16.msra.mxu1 %v14383_v56  ;;  %v14353_v56 = vld [vmem:[#allocation5 + $0x2e8] ss:$36 sps:$4 sm:$0xff]   ;;  %v14364_v5 = vld [vmem:[#allocation5 + $0x334] ss:$36 sps:$4 sm:$0xff]  }
 0x514   :  { %10120 = vmatprep.subr.bf16.mxu1 %v14388_v36 }
 0x517   :  { %10121 = vmatpush1.bf16.msra.mxu1 %v14386_v24 }
 0x518   :  { %10122 = vmatprep.subr.bf16.mxu1 %v14394_v62 }
 0x519   :  { %9787 = vmatmul.mubr.bf16.gmra.mxu1 %v14305_v60 }
 0x51a   :  { %9980 = vmatmul.mubr.bf16.gmra.mxu0 %v14308_v4  ;;  %9796 = vmatprep.mubr.bf16.mxu1 %v14313_v30 }
 0x51b   :  { %9989 = vmatprep.mubr.bf16.mxu0 %v14316_v40  ;;  %10123 = vmatpush1.bf16.msra.mxu1 %v14392_v0  ;;  %v14359_v40 = vld [vmem:[#allocation5 + $0x328] ss:$36 sps:$4 sm:$0xff]  }
 0x51c   :  { %10124 = vmatprep.subr.bf16.mxu1 %v14397_v31 }
 0x51f   :  { %10125 = vmatpush1.bf16.msra.mxu1 %v14395_v58 }
 0x521   :  { %9797 = vmatmul.mubr.bf16.gmra.mxu1 %v14311_v16 }
 0x522   :  { %9990 = vmatmul.mubr.bf16.gmra.mxu0 %v14314_v38  ;;  %9806 = vmatprep.mubr.bf16.mxu1 %v14319_v15  ;;  %v14362_v15 = vld [vmem:[#allocation5 + $0x330] ss:$36 sps:$4 sm:$0xff]  }
 0x523   :  { %9999 = vmatprep.mubr.bf16.mxu0 %v14322_v44  ;;  %v14367_v44 = vld [vmem:[#allocation5 + $0x374] ss:$36 sps:$4 sm:$0xff]  }
 0x529   :  { %9807 = vmatmul.mubr.bf16.gmra.mxu1 %v14317_v26  ;;  %v14370_v26 = vld [vmem:[#allocation5 + $0x37c] ss:$36 sps:$4 sm:$0xff]  }
 0x52a   :  { %10000 = vmatmul.mubr.bf16.gmra.mxu0 %v14320_v1  ;;  %9816 = vmatprep.mubr.bf16.mxu1 %v14325_v53 }
 0x52b   :  { %10009 = vmatprep.mubr.bf16.mxu0 %v14328_v55 }
 0x531   :  { %9817 = vmatmul.mubr.bf16.gmra.mxu1 %v14323_v61 }
 0x532   :  { %10010 = vmatmul.mubr.bf16.gmra.mxu0 %v14326_v23  ;;  %9826 = vmatprep.mubr.bf16.mxu1 %v14331_v2  ;;  %v9372_v46 = vpop.f32.mrf.mxu1  ;;  %v14376_v2 = vld [vmem:[#allocation5 + $0x3bc] ss:$36 sps:$4 sm:$0xff]  }
 0x533   :  { %10019 = vmatprep.mubr.bf16.mxu0 %v14334_v50  ;;  %v14365_v50 = vld [vmem:[#allocation5 + $0x370] ss:$36 sps:$4 sm:$0xff]  }
 0x534   :  { %v9374_v14 = vpop.f32.mrf.mxu1 }
 0x535   :  { %v9565_v43 = vpop.f32.mrf.mxu0 }
 0x536   :  { %v16541_v41 = vadd.f32 %v9565_v43, %v9372_v46  ;;  %v9376_v42 = vpop.f32.mrf.mxu1  ;;  %v14374_v43 = vld [vmem:[#allocation5 + $0x3b8] ss:$36 sps:$4 sm:$0xff]  }
 0x537   :  { %v9567_v57 = vpop.f32.mrf.mxu0 }
 0x538   :  { %v16543_v22 = vadd.f32 %v9567_v57, %v9374_v14  ;;  %v9378_v25 = vpop.f32.mrf.mxu1  ;;  %v14382_v57 = vld [vmem:[#allocation5 + $0x404] ss:$36 sps:$4 sm:$0xff]  }
 0x539   :  { %9827 = vmatmul.mubr.bf16.gmra.mxu1 %v14329_v32  ;;  %v9569_v63 = vpop.f32.mrf.mxu0 }
 0x53a   :  { %10020 = vmatmul.mubr.bf16.gmra.mxu0 %v14332_v33  ;;  %9836 = vmatprep.mubr.bf16.mxu1 %v14337_v47  ;;  %v9382_v17 = vpop.f32.mrf.mxu1  ;;  %v14368_v33 = vld [vmem:[#allocation5 + $0x378] ss:$36 sps:$4 sm:$0xff]  }
 0x53b   :  { %10029 = vmatprep.mubr.bf16.mxu0 %v14340_v34  ;;  %v9571_v21 = vpop.f32.mrf.mxu0  ;;  %v14380_v17 = vld [vmem:[#allocation5 + $0x400] ss:$36 sps:$4 sm:$0xff]  }
 0x53c   :  { %v9384_v48 = vpop.f32.mrf.mxu1 }
 0x53d   :  { %v9575_v28 = vpop.f32.mrf.mxu0 }
 0x53e   :  { %v9386_v52 = vpop.f32.mrf.mxu1  ;;  %v14391_v28 = vld [vmem:[#allocation5 + $0x44c] ss:$36 sps:$4 sm:$0xff]  }
 0x53f   :  { %v9577_v7 = vpop.f32.mrf.mxu0 }
 0x540   :  { %v9388_v12 = vpop.f32.mrf.mxu1 }
 0x541   :  { %9837 = vmatmul.mubr.bf16.gmra.mxu1 %v14335_v3  ;;  %v9579_v35 = vpop.f32.mrf.mxu0 }
 0x542   :  { %10030 = vmatmul.mubr.bf16.gmra.mxu0 %v14338_v29  ;;  %9846 = vmatprep.mubr.bf16.mxu1 %v14346_v18  ;;  %v9392_v36 = vpop.f32.mrf.mxu1 }
 0x543   :  { %10039 = vmatprep.mubr.bf16.mxu0 %v14349_v54  ;;  %v9581_v9 = vpop.f32.mrf.mxu0 }
 0x544   :  { %v9394_v60 = vpop.f32.mrf.mxu1  ;;  %v14389_v9 = vld [vmem:[#allocation5 + $0x448] ss:$36 sps:$4 sm:$0xff]  }
 0x545   :  { %v9585_v24 = vpop.f32.mrf.mxu0 }
 0x546   :  { %v16545_v62 = vadd.f32 %v9585_v24, %v9392_v36  ;;  %v9396_v30 = vpop.f32.mrf.mxu1 }
 0x547   :  { %v9587_v0 = vpop.f32.mrf.mxu0 }
 0x548   :  { %v16547_v4 = vadd.f32 %v9587_v0, %v9394_v60  ;;  %v9398_v58 = vpop.f32.mrf.mxu1  ;;  %v14434_v0 = vmov 0  }
 0x549   :  { %9847 = vmatmul.mubr.bf16.gmra.mxu1 %v14344_v45  ;;  %v9589_v31 = vpop.f32.mrf.mxu0 }
 0x54a   :  { %10040 = vmatmul.mubr.bf16.gmra.mxu0 %v14347_v39  ;;  %9856 = vmatprep.mubr.bf16.mxu1 %v14352_v8  ;;  %v9402_v38 = vpop.f32.mrf.mxu1 }
 0x54b   :  { %10049 = vmatprep.mubr.bf16.mxu0 %v14355_v10  ;;  %v9591_v16 = vpop.f32.mrf.mxu0 }
 0x54c   :  { %v9404_v53 = vpop.f32.mrf.mxu1  ;;  %v14398_v16 = vld [vmem:[#allocation5 + $0x20] ss:$36 sps:$4 sm:$0xff]  }
 0x54d   :  { %v9595_v1 = vpop.f32.mrf.mxu0 }
 0x54e   :  { %v9406_v61 = vpop.f32.mrf.mxu1 }
 0x54f   :  { %v9597_v55 = vpop.f32.mrf.mxu0 }
 0x550   :  { %v9408_v32 = vpop.f32.mrf.mxu1 }
 0x551   :  { %9857 = vmatmul.mubr.bf16.gmra.mxu1 %v14350_v37  ;;  %v9599_v23 = vpop.f32.mrf.mxu0  ;;  %v14399_v32 = vld [vmem:[#allocation5 + $0x68] ss:$36 sps:$4 sm:$0xff]  }
 0x552   :  { %10050 = vmatmul.mubr.bf16.gmra.mxu0 %v14353_v56  ;;  %9866 = vmatprep.mubr.bf16.mxu1 %v14361_v51  ;;  %v9412_v34 = vpop.f32.mrf.mxu1 }
 0x553   :  { %10059 = vmatprep.mubr.bf16.mxu0 %v14364_v5  ;;  %v9601_v47 = vpop.f32.mrf.mxu0 }
 0x554   :  { %v16551_v18 = vpop.f32.mrf.mxu1 }
 0x555   :  { %v9605_v3 = vpop.f32.mrf.mxu0 }
 0x556   :  { %v16549_v29 = vadd.f32 %v9605_v3, %v9412_v34  ;;  %v9416_v54 = vpop.f32.mrf.mxu1 }
 0x557   :  { %v16553_v46 = vpop.f32.mrf.mxu0 }
 0x558   :  { %v9418_v42 = vpop.f32.mrf.mxu1 }
 0x559   :  { %9867 = vmatmul.mubr.bf16.gmra.mxu1 %v14359_v40  ;;  %v9609_v14 = vpop.f32.mrf.mxu0  ;;  %v14400_v42 = vld [vmem:[#allocation5 + $0xb0] ss:$36 sps:$4 sm:$0xff]  }
 0x55a   :  { %10060 = vmatmul.mubr.bf16.gmra.mxu0 %v14362_v15  ;;  %9876 = vmatprep.mubr.bf16.mxu1 %v14367_v44  ;;  %v9422_v45 = vpop.f32.mrf.mxu1 }
 0x55b   :  { %10069 = vmatprep.mubr.bf16.mxu0 %v14370_v26  ;;  %v9611_v63 = vpop.f32.mrf.mxu0 }
 0x55c   :  { %v9424_v39 = vpop.f32.mrf.mxu1 }
 0x55d   :  { %v9615_v25 = vpop.f32.mrf.mxu0 }
 0x55e   :  { %v9426_v8 = vpop.f32.mrf.mxu1 }
 0x55f   :  { %v9617_v21 = vpop.f32.mrf.mxu0 }
 0x560   :  { %v9428_v48 = vpop.f32.mrf.mxu1 }
 0x561   :  { %9877 = vmatmul.mubr.bf16.gmra.mxu1 %v14365_v50  ;;  %v9619_v10 = vpop.f32.mrf.mxu0 }
 0x562   :  { %10070 = vmatmul.mubr.bf16.gmra.mxu0 %v14368_v33  ;;  %9886 = vmatprep.mubr.bf16.mxu1 %v14376_v2 }
 0x563   :  { %v9621_v7 = vpop.f32.mrf.mxu0 }
 0x564   :  { %v14401_v7 = vld [vmem:[#allocation5 + $0xf8] ss:$36 sps:$4 sm:$0xff]  }
 0x565   :  { %v9432_v52 = vpop.f32.mrf.mxu1 }
 0x567   :  { %v9434_v37 = vpop.f32.mrf.mxu1 }
 0x569   :  { %9887 = vmatmul.mubr.bf16.gmra.mxu1 %v14374_v43  ;;  %v9625_v35 = vpop.f32.mrf.mxu0  ;;  %v9436_v56 = vpop.f32.mrf.mxu1 }
 0x56a   :  { %9896 = vmatprep.mubr.bf16.mxu1 %v14382_v57 }
 0x56b   :  { %v9627_v12 = vpop.f32.mrf.mxu0  ;;  %v9438_v36 = vpop.f32.mrf.mxu1 }
 0x56d   :  { %v9629_v51 = vpop.f32.mrf.mxu0 }
 0x56f   :  { %v9631_v5 = vpop.f32.mrf.mxu0 }
 0x570   :  { %v14402_v5 = vld [vmem:[#allocation5 + $0x140] ss:$36 sps:$4 sm:$0xff]  }
 0x571   :  { %9897 = vmatmul.mubr.bf16.gmra.mxu1 %v14380_v17  ;;  %v9635_v60 = vpop.f32.mrf.mxu0 }
 0x572   :  { %9906 = vmatprep.mubr.bf16.mxu1 %v14391_v28 }
 0x573   :  { %v9442_v24 = vpop.f32.mrf.mxu1  ;;  %v9637_v31 = vpop.f32.mrf.mxu0 }
 0x575   :  { %v9444_v30 = vpop.f32.mrf.mxu1  ;;  %v9639_v58 = vpop.f32.mrf.mxu0 }
 0x577   :  { %v9446_v40 = vpop.f32.mrf.mxu1  ;;  %v9641_v44 = vpop.f32.mrf.mxu0 }
 0x578   :  { %v14403_v44 = vld [vmem:[#allocation5 + $0x188] ss:$36 sps:$4 sm:$0xff]  }
 0x579   :  { %9907 = vmatmul.mubr.bf16.gmra.mxu1 %v14389_v9  ;;  %v9448_v15 = vpop.f32.mrf.mxu1 }
 0x57a   :  { %10142 = vmatprep.mubr.bf16.mxu1 %v14434_v0 }
 0x57b   :  { %v9452_v38 = vpop.f32.mrf.mxu1  ;;  %v9645_v26 = vpop.f32.mrf.mxu0 }
 0x57c   :  { %v16557_v1 = vadd.f32 %v9645_v26, %v9452_v38 }
 0x57d   :  { %v9454_v53 = vpop.f32.mrf.mxu1  ;;  %v9647_v55 = vpop.f32.mrf.mxu0 }
 0x57e   :  { %v16559_v61 = vadd.f32 %v9647_v55, %v9454_v53 }
 0x57f   :  { %v9456_v23 = vpop.f32.mrf.mxu1  ;;  %v9649_v2 = vpop.f32.mrf.mxu0 }
 0x581   :  { %10143 = vmatmul.mubr.bf16.vlgmr.msra.gmra.mxu1 %v14398_v16  ;;  %v9458_v50 = vpop.f32.mrf.mxu1  ;;  %v9651_v33 = vpop.f32.mrf.mxu0 }
 0x582   :  { %10152 = vmatprep.mubr.bf16.mxu1 %v14434_v0  ;;  %v14404_v33 = vld [vmem:[#allocation5 + $0x1d0] ss:$36 sps:$4 sm:$0xff]  }
 0x589   :  { %v9462_v47 = vpop.f32.mrf.mxu1  ;;  %10153 = vmatmul.mubr.bf16.gmra.mxu1 %v14399_v32 }
 0x58a   :  { %v9655_v34 = vpop.f32.mrf.mxu0  ;;  %10162 = vmatprep.mubr.bf16.mxu1 %v14434_v0 }
 0x58b   :  { %v9464_v3 = vpop.f32.mrf.mxu1 }
 0x58c   :  { %v9657_v54 = vpop.f32.mrf.mxu0 }
 0x58d   :  { %v9466_v43 = vpop.f32.mrf.mxu1 }
 0x58e   :  { %v9659_v14 = vpop.f32.mrf.mxu0 }
 0x58f   :  { %v9468_v57 = vpop.f32.mrf.mxu1 }
 0x590   :  { %v9661_v63 = vpop.f32.mrf.mxu0 }
 0x591   :  { %v9472_v45 = vpop.f32.mrf.mxu1  ;;  %10163 = vmatmul.mubr.bf16.gmra.mxu1 %v14400_v42  ;;  %v14405_v63 = vld [vmem:[#allocation5 + $0x218] ss:$36 sps:$4 sm:$0xff]  }
 0x592   :  { %v9665_v25 = vpop.f32.mrf.mxu0  ;;  %10172 = vmatprep.mubr.bf16.mxu1 %v14434_v0 }
 0x593   :  { %v16563_v39 = vadd.f32 %v9665_v25, %v9472_v45  ;;  %v9474_v21 = vpop.f32.mrf.mxu1 }
 0x594   :  { %v9667_v8 = vpop.f32.mrf.mxu0 }
 0x595   :  { %v16565_v17 = vadd.f32 %v9667_v8, %v9474_v21  ;;  %v9476_v10 = vpop.f32.mrf.mxu1 }
 0x596   :  { %v9669_v28 = vpop.f32.mrf.mxu0 }
 0x597   :  { %v9478_v48 = vpop.f32.mrf.mxu1 }
 0x598   :  { %v9671_v52 = vpop.f32.mrf.mxu0 }
 0x599   :  { %v9482_v35 = vpop.f32.mrf.mxu1  ;;  %10173 = vmatmul.mubr.bf16.gmra.mxu1 %v14401_v7 }
 0x59a   :  { %v9675_v37 = vpop.f32.mrf.mxu0  ;;  %10182 = vmatprep.mubr.bf16.mxu1 %v14434_v0 }
 0x59b   :  { %v9484_v12 = vpop.f32.mrf.mxu1  ;;  %v14406_v37 = vld [vmem:[#allocation5 + $0x260] ss:$36 sps:$4 sm:$0xff]  }
 0x59c   :  { %v9677_v56 = vpop.f32.mrf.mxu0 }
 0x59d   :  { %v9486_v9 = vpop.f32.mrf.mxu1 }
 0x59e   :  { %v9679_v51 = vpop.f32.mrf.mxu0 }
 0x59f   :  { %v9488_v36 = vpop.f32.mrf.mxu1 }
 0x5a0   :  { %v9681_v24 = vpop.f32.mrf.mxu0 }
 0x5a1   :  { %v9492_v60 = vpop.f32.mrf.mxu1  ;;  %10183 = vmatmul.mubr.bf16.gmra.mxu1 %v14402_v5 }
 0x5a2   :  { %v9685_v30 = vpop.f32.mrf.mxu0  ;;  %10192 = vmatprep.mubr.bf16.mxu1 %v14434_v0 }
 0x5a3   :  { %v16569_v31 = vadd.f32 %v9685_v30, %v9492_v60  ;;  %v9494_v40 = vpop.f32.mrf.mxu1 }
 0x5a4   :  { %v9687_v58 = vpop.f32.mrf.mxu0 }
 0x5a5   :  { %v16571_v15 = vadd.f32 %v9687_v58, %v9494_v40  ;;  %v9496_v16 = vpop.f32.mrf.mxu1 }
 0x5a6   :  { %v9689_v38 = vpop.f32.mrf.mxu0 }
 0x5a7   :  { %v9498_v26 = vpop.f32.mrf.mxu1 }
 0x5a8   :  { %v9691_v53 = vpop.f32.mrf.mxu0 }
 0x5a9   :  { %v9502_v55 = vpop.f32.mrf.mxu1  ;;  %10193 = vmatmul.mubr.bf16.gmra.mxu1 %v14403_v44  ;;  %v14407_v44 = vld [vmem:[#allocation5 + $0x2a8] ss:$36 sps:$4 sm:$0xff]  }
 0x5aa   :  { %v9695_v23 = vpop.f32.mrf.mxu0  ;;  %10202 = vmatprep.mubr.bf16.mxu1 %v14434_v0 }
 0x5ab   :  { %v9504_v2 = vpop.f32.mrf.mxu1 }
 0x5ac   :  { %v9697_v50 = vpop.f32.mrf.mxu0 }
 0x5ad   :  { %v9506_v32 = vpop.f32.mrf.mxu1 }
 0x5ae   :  { %v9699_v47 = vpop.f32.mrf.mxu0  ;;  %v14408_v32 = vld [vmem:[#allocation5 + $0x2f0] ss:$36 sps:$4 sm:$0xff]  }
 0x5af   :  { %v9508_v34 = vpop.f32.mrf.mxu1 }
 0x5b0   :  { %v9701_v3 = vpop.f32.mrf.mxu0 }
 0x5b1   :  { %v9512_v54 = vpop.f32.mrf.mxu1  ;;  %10203 = vmatmul.mubr.bf16.gmra.mxu1 %v14404_v33 }
 0x5b2   :  { %v9705_v43 = vpop.f32.mrf.mxu0  ;;  %10212 = vmatprep.mubr.bf16.mxu1 %v14434_v0 }
 0x5b3   :  { %v9514_v14 = vpop.f32.mrf.mxu1 }
 0x5b4   :  { %v9707_v57 = vpop.f32.mrf.mxu0 }
 0x5b5   :  { %v9516_v42 = vpop.f32.mrf.mxu1 }
 0x5b6   :  { %v9709_v45 = vpop.f32.mrf.mxu0 }
 0x5b7   :  { %v9518_v25 = vpop.f32.mrf.mxu1 }
 0x5b8   :  { %v9711_v21 = vpop.f32.mrf.mxu0  ;;  %v14409_v25 = vld [vmem:[#allocation5 + $0x338] ss:$36 sps:$4 sm:$0xff]  }
 0x5b9   :  { %v9522_v8 = vpop.f32.mrf.mxu1  ;;  %10213 = vmatmul.mubr.bf16.gmra.mxu1 %v14405_v63 }
 0x5ba   :  { %v9715_v10 = vpop.f32.mrf.mxu0  ;;  %10222 = vmatprep.mubr.bf16.mxu1 %v14434_v0 }
 0x5bb   :  { %v9524_v28 = vpop.f32.mrf.mxu1 }
 0x5bc   :  { %v9717_v48 = vpop.f32.mrf.mxu0 }
 0x5bd   :  { %v9526_v7 = vpop.f32.mrf.mxu1 }
 0x5be   :  { %v9719_v52 = vpop.f32.mrf.mxu0 }
 0x5bf   :  { %v9528_v35 = vpop.f32.mrf.mxu1 }
 0x5c0   :  { %v9721_v12 = vpop.f32.mrf.mxu0  ;;  %v14410_v35 = vld [vmem:[#allocation5 + $0x380] ss:$36 sps:$4 sm:$0xff]  }
 0x5c1   :  { %v9758_v56 = vpop.f32.mrf.mxu1  ;;  %10223 = vmatmul.mubr.bf16.gmra.mxu1 %v14406_v37  ;;  %v9608_v12 = vadd.f32 %v16553_v46, %v16551_v18 }
 0x5c2   :  { %v9759_v9 = vadd.f32 %v9758_v56, %v16541_v41  ;;  %v9951_v51 = vpop.f32.mrf.mxu0  ;;  %10232 = vmatprep.mubr.bf16.mxu1 %v14434_v0 }
 0x5c3   :  { %v9760_v36 = vpop.f32.mrf.mxu1 }
 0x5c4   :  { %v16578_v5 = vadd.f32 %v9951_v51, %v9759_v9  ;;  %v9761_v24 = vadd.f32 %v9760_v36, %v16543_v22  ;;  %v9953_v60 = vpop.f32.mrf.mxu0 }
 0x5c5   :  { %v9762_v30 = vpop.f32.mrf.mxu1 }
 0x5c6   :  { %v16581_v40 = vadd.f32 %v9953_v60, %v9761_v24  ;;  %v9955_v58 = vpop.f32.mrf.mxu0 }
 0x5c7   :  { %v9764_v16 = vpop.f32.mrf.mxu1 }
 0x5c8   :  { %v9957_v38 = vpop.f32.mrf.mxu0 }
 0x5c9   :  { %v9768_v26 = vpop.f32.mrf.mxu1  ;;  %10233 = vmatmul.mubr.bf16.gmra.mxu1 %v14407_v44 }
 0x5ca   :  { %v9961_v53 = vpop.f32.mrf.mxu0  ;;  %10242 = vmatprep.mubr.bf16.mxu1 %v14434_v0 }
 0x5cb   :  { %v9770_v41 = vpop.f32.mrf.mxu1 }
 0x5cc   :  { %v9963_v55 = vpop.f32.mrf.mxu0 }
 0x5cd   :  { %v9772_v23 = vpop.f32.mrf.mxu1 }
 0x5ce   :  { %v9965_v2 = vpop.f32.mrf.mxu0 }
 0x5cf   :  { %v9774_v50 = vpop.f32.mrf.mxu1 }
 0x5d0   :  { %v9967_v22 = vpop.f32.mrf.mxu0 }
 0x5d1   :  { %v9778_v33 = vpop.f32.mrf.mxu1  ;;  %10243 = vmatmul.mubr.bf16.gmra.mxu1 %v14408_v32 }
 0x5d2   :  { %v9779_v47 = vadd.f32 %v9778_v33, %v16545_v62  ;;  %v9971_v34 = vpop.f32.mrf.mxu0  ;;  %10252 = vmatprep.mubr.bf16.mxu1 %v14434_v0 }
 0x5d3   :  { %v9780_v3 = vpop.f32.mrf.mxu1 }
 0x5d4   :  { %v16586_v54 = vadd.f32 %v9971_v34, %v9779_v47  ;;  %v9781_v43 = vadd.f32 %v9780_v3, %v16547_v4  ;;  %v9973_v14 = vpop.f32.mrf.mxu0 }
 0x5d5   :  { %v9782_v57 = vpop.f32.mrf.mxu1 }
 0x5d6   :  { %v16589_v42 = vadd.f32 %v9973_v14, %v9781_v43  ;;  %v9975_v63 = vpop.f32.mrf.mxu0 }
 0x5d7   :  { %v9784_v45 = vpop.f32.mrf.mxu1 }
 0x5d8   :  { %v9977_v21 = vpop.f32.mrf.mxu0 }
 0x5d9   :  { %v9788_v8 = vpop.f32.mrf.mxu1  ;;  %10253 = vmatmul.mubr.bf16.gmra.mxu1 %v14409_v25 }
 0x5da   :  { %v9981_v10 = vpop.f32.mrf.mxu0  ;;  %10262 = vmatprep.mubr.bf16.mxu1 %v14434_v0 }
 0x5db   :  { %v9790_v62 = vpop.f32.mrf.mxu1 }
 0x5dc   :  { %v9983_v28 = vpop.f32.mrf.mxu0 }
 0x5dd   :  { %v9792_v48 = vpop.f32.mrf.mxu1 }
 0x5de   :  { %v9985_v7 = vpop.f32.mrf.mxu0 }
 0x5df   :  { %v9794_v52 = vpop.f32.mrf.mxu1 }
 0x5e0   :  { %v9987_v4 = vpop.f32.mrf.mxu0 }
 0x5e1   :  { %v9798_v37 = vpop.f32.mrf.mxu1  ;;  %10263 = vmatmul.mubr.bf16.gmra.mxu1 %v14410_v35 }
 0x5e2   :  { %v9799_v56 = vadd.f32 %v9798_v37, %v16549_v29  ;;  %v9991_v9 = vpop.f32.mrf.mxu0  ;;  %10272 = vmatprep.mubr.bf16.mxu1 %v14434_v0 }
 0x5e3   :  { %v9800_v51 = vpop.f32.mrf.mxu1 }
 0x5e4   :  { %v16596_v36 = vadd.f32 %v9991_v9, %v9799_v56  ;;  %v9801_v24 = vadd.f32 %v9800_v51, %v9608_v12  ;;  %v9993_v60 = vpop.f32.mrf.mxu0 }
 0x5e5   :  { %v9802_v30 = vpop.f32.mrf.mxu1 }
 0x5e6   :  { %v16598_v58 = vadd.f32 %v9993_v60, %v9801_v24  ;;  %v9995_v16 = vpop.f32.mrf.mxu0 }
 0x5e7   :  { %v9804_v44 = vpop.f32.mrf.mxu1 }
 0x5e8   :  { %v9997_v38 = vpop.f32.mrf.mxu0 }
 0x5e9   :  { %v9808_v26 = vpop.f32.mrf.mxu1 }
 0x5ea   :  { %v10001_v53 = vpop.f32.mrf.mxu0 }
 0x5eb   :  { %v9810_v41 = vpop.f32.mrf.mxu1 }
 0x5ec   :  { %v10003_v18 = vpop.f32.mrf.mxu0 }
 0x5ed   :  { %v9812_v46 = vpop.f32.mrf.mxu1 }
 0x5ee   :  { %v10005_v29 = vpop.f32.mrf.mxu0 }
 0x5ef   :  { %v9814_v55 = vpop.f32.mrf.mxu1 }
 0x5f0   :  { %v10007_v23 = vpop.f32.mrf.mxu0 }
 0x5f1   :  { %v9818_v2 = vpop.f32.mrf.mxu1 }
 0x5f2   :  { %v10011_v50 = vpop.f32.mrf.mxu0 }
 0x5f3   :  { %v9820_v32 = vpop.f32.mrf.mxu1 }
 0x5f4   :  { %v10013_v22 = vpop.f32.mrf.mxu0 }
 0x5f5   :  { %v9822_v33 = vpop.f32.mrf.mxu1 }
 0x5f6   :  { %v10015_v47 = vpop.f32.mrf.mxu0 }
 0x5f7   :  { %v9824_v34 = vpop.f32.mrf.mxu1 }
 0x5f8   :  { %v10017_v3 = vpop.f32.mrf.mxu0 }
 0x5f9   :  { %v9828_v43 = vpop.f32.mrf.mxu1 }
 0x5fa   :  { %v10021_v14 = vpop.f32.mrf.mxu0 }
 0x5fb   :  { %v9830_v57 = vpop.f32.mrf.mxu1 }
 0x5fc   :  { %v10023_v63 = vpop.f32.mrf.mxu0 }
 0x5fd   :  { %v9832_v45 = vpop.f32.mrf.mxu1 }
 0x5fe   :  { %v10025_v25 = vpop.f32.mrf.mxu0 }
 0x5ff   :  { %v9834_v21 = vpop.f32.mrf.mxu1 }
 0x600   :  { %v10027_v8 = vpop.f32.mrf.mxu0 }
 0x601   :  { %v9838_v10 = vpop.f32.mrf.mxu1 }
 0x602   :  { %v9839_v62 = vadd.f32 %v9838_v10, %v16557_v1  ;;  %v10031_v28 = vpop.f32.mrf.mxu0 }
 0x603   :  { %v9840_v48 = vpop.f32.mrf.mxu1 }
 0x604   :  { %v16601_v7 = vadd.f32 %v10031_v28, %v9839_v62  ;;  %v9841_v52 = vadd.f32 %v9840_v48, %v16559_v61  ;;  %v10033_v35 = vpop.f32.mrf.mxu0 }
 0x605   :  { %v9842_v4 = vpop.f32.mrf.mxu1 }
 0x606   :  { %v16604_v37 = vadd.f32 %v10033_v35, %v9841_v52  ;;  %v10035_v12 = vpop.f32.mrf.mxu0 }
 0x607   :  { %v9844_v56 = vpop.f32.mrf.mxu1 }
 0x608   :  { %v10037_v9 = vpop.f32.mrf.mxu0 }
 0x609   :  { %v9848_v51 = vpop.f32.mrf.mxu1 }
 0x60a   :  { %v10041_v24 = vpop.f32.mrf.mxu0 }
 0x60b   :  { %v9850_v60 = vpop.f32.mrf.mxu1 }
 0x60c   :  { %v10043_v30 = vpop.f32.mrf.mxu0 }
 0x60d   :  { %v9852_v16 = vpop.f32.mrf.mxu1 }
 0x60e   :  { %v10045_v44 = vpop.f32.mrf.mxu0 }
 0x60f   :  { %v9854_v1 = vpop.f32.mrf.mxu1 }
 0x610   :  { %v10047_v38 = vpop.f32.mrf.mxu0 }
 0x611   :  { %v9858_v26 = vpop.f32.mrf.mxu1 }
 0x612   :  { %v9859_v53 = vadd.f32 %v9858_v26, %v16563_v39  ;;  %v10051_v41 = vpop.f32.mrf.mxu0 }
 0x613   :  { %v9860_v61 = vpop.f32.mrf.mxu1 }
 0x614   :  { %v16607_v18 = vadd.f32 %v10051_v41, %v9859_v53  ;;  %v9861_v46 = vadd.f32 %v9860_v61, %v16565_v17  ;;  %v10053_v29 = vpop.f32.mrf.mxu0  ;;  %v10303_v61 = vand.u32 1, %v15723_v49 }
 0x615   :  { %v9862_v55 = vpop.f32.mrf.mxu1 }
 0x616   :  { %v16610_v23 = vadd.f32 %v10053_v29, %v9861_v46  ;;  %v10055_v2 = vpop.f32.mrf.mxu0  ;;  %v10367_v46 = vand.u32 31, %v15723_v49  ;;  %v10307_v55 = vand.u32 1, %v15735_v11  ;;  %vm10335_vm5 = vcmp.eq.s32.totalorder %v10303_v61, 0 }
 0x617   :  { %v9864_v50 = vpop.f32.mrf.mxu1  ;;  %v10371_v2 = vand.u32 31, %v15735_v11 }
 0x618   :  { %v10057_v32 = vpop.f32.mrf.mxu0  ;;  %vm10399_vm4 = vcmp.lt.s32.totalorder %v10367_v46, 6  ;;  %vm10339_vm7 = vcmp.eq.s32.totalorder %v10307_v55, 0 }
 0x619   :  { %v9868_v22 = vpop.f32.mrf.mxu1  ;;  %vm10403_vm6 = vcmp.lt.s32.totalorder %v10371_v2, 6  ;;  %vm16624_vm9 = vmand %vm10335_vm5, %vm10399_vm4 }
 0x61a   :  { %v10061_v33 = vpop.f32.mrf.mxu0  ;;  %vm16628_vm10 = vmand %vm10339_vm7, %vm10403_vm6 }
 0x61b   :  { %v9870_v47 = vpop.f32.mrf.mxu1 }
 0x61c   :  { %v10063_v34 = vpop.f32.mrf.mxu0 }
 0x61d   :  { %v9872_v3 = vpop.f32.mrf.mxu1 }
 0x61e   :  { %v10065_v43 = vpop.f32.mrf.mxu0 }
 0x61f   :  { %v9874_v39 = vpop.f32.mrf.mxu1 }
 0x620   :  { %v10067_v14 = vpop.f32.mrf.mxu0 }
 0x621   :  { %v9878_v57 = vpop.f32.mrf.mxu1 }
 0x622   :  { %v9879_v63 = vadd.f32 %v9878_v57, %v16569_v31  ;;  %v10071_v45 = vpop.f32.mrf.mxu0 }
 0x623   :  { %v9880_v17 = vpop.f32.mrf.mxu1 }
 0x624   :  { %v16613_v25 = vadd.f32 %v10071_v45, %v9879_v63  ;;  %v9881_v21 = vadd.f32 %v9880_v17, %v16571_v15  ;;  %v10073_v8 = vpop.f32.mrf.mxu0  ;;  %v10311_v17 = vand.u32 1, %v15764_v13 }
 0x625   :  { %v9882_v10 = vpop.f32.mrf.mxu1 }
 0x626   :  { %v16616_v62 = vadd.f32 %v10073_v8, %v9881_v21  ;;  %v10075_v28 = vpop.f32.mrf.mxu0  ;;  %vm10343_vm11 = vcmp.eq.s32.totalorder %v10311_v17, 0 }
 0x627   :  { %v9884_v48 = vpop.f32.mrf.mxu1 }
 0x628   :  { %v10077_v52 = vpop.f32.mrf.mxu0 }
 0x629   :  { %v9888_v35 = vpop.f32.mrf.mxu1 }
 0x62b   :  { %v9890_v4 = vpop.f32.mrf.mxu1 }
 0x62d   :  { %v9892_v12 = vpop.f32.mrf.mxu1 }
 0x62f   :  { %v9894_v56 = vpop.f32.mrf.mxu1 }
 0x631   :  { %v9898_v9 = vpop.f32.mrf.mxu1 }
 0x633   :  { %v9900_v51 = vpop.f32.mrf.mxu1 }
 0x635   :  { %v9902_v31 = vpop.f32.mrf.mxu1 }
 0x637   :  { %v9904_v24 = vpop.f32.mrf.mxu1 }
 0x639   :  { %v9908_v60 = vpop.f32.mrf.mxu1 }
 0x63b   :  { %v9910_v30 = vpop.f32.mrf.mxu1 }
 0x63d   :  { %v9912_v16 = vpop.f32.mrf.mxu1 }
 0x63f   :  { %v9914_v44 = vpop.f32.mrf.mxu1 }
 0x641   :  { %v10144_v15 = vpop.f32.mrf.mxu1 }
 0x642   :  { %v10145_v1 = vadd.f32 %v10144_v15, %v16578_v5 }
 0x643   :  { %v10146_v38 = vpop.f32.mrf.mxu1 }
 0x644   :  { %v10147_v26 = vadd.f32 %v10146_v38, %v16581_v40  ;;  %v16635_v11 = vsel %vm16624_vm9, %v10145_v1, 0.0 }
 0x645   :  { %v10148_v53 = vpop.f32.mrf.mxu1 }
 0x646   :  { %v16646_v14 = vsel %vm16624_vm9, %v10147_v26, 0.0  ;;  %v10383_v26 = vand.u32 31, %v15803_v19 }
 0x647   :  { %v10150_v41 = vpop.f32.mrf.mxu1 }
 0x648   :  { %vm10415_vm15 = vcmp.lt.s32.totalorder %v10383_v26, 6 }
 0x649   :  { %v10154_v29 = vpop.f32.mrf.mxu1 }
 0x64b   :  { %v10156_v50 = vpop.f32.mrf.mxu1 }
 0x64d   :  { %v10158_v32 = vpop.f32.mrf.mxu1 }
 0x64f   :  { %v10160_v5 = vpop.f32.mrf.mxu1 }
 0x651   :  { %v10164_v22 = vpop.f32.mrf.mxu1 }
 0x652   :  { %v10165_v49 = vadd.f32 %v10164_v22, %v16586_v54 }
 0x653   :  { %v10166_v47 = vpop.f32.mrf.mxu1 }
 0x654   :  { %v16639_v34 = vsel %vm16628_vm10, %v10165_v49, 0.0  ;;  %v10167_v3 = vadd.f32 %v10166_v47, %v16589_v42  ;;  %v10375_v42 = vand.u32 31, %v15764_v13 }
 0x655   :  { %v10660_v43 = vadd.f32 %v16639_v34, %v16635_v11  ;;  %v10168_v39 = vpop.f32.mrf.mxu1 }
 0x656   :  { %v16650_v54 = vsel %vm16628_vm10, %v10167_v3, 0.0  ;;  %vm10407_vm12 = vcmp.lt.s32.totalorder %v10375_v42, 6 }
 0x657   :  { %v10697_v57 = vadd.f32 %v16650_v54, %v16646_v14  ;;  %v10170_v63 = vpop.f32.mrf.mxu1  ;;  %vm16656_vm13 = vmand %vm10343_vm11, %vm10407_vm12 }
 0x659   :  { %v10174_v45 = vpop.f32.mrf.mxu1 }
 0x65b   :  { %v10176_v21 = vpop.f32.mrf.mxu1 }
 0x65d   :  { %v10178_v8 = vpop.f32.mrf.mxu1 }
 0x65f   :  { %v10180_v10 = vpop.f32.mrf.mxu1 }
 0x661   :  { %v10184_v28 = vpop.f32.mrf.mxu1 }
 0x662   :  { %v10185_v52 = vadd.f32 %v10184_v28, %v16596_v36 }
 0x663   :  { %v10186_v35 = vpop.f32.mrf.mxu1 }
 0x664   :  { %v16663_v4 = vsel %vm16656_vm13, %v10185_v52, 0.0  ;;  %v10187_v12 = vadd.f32 %v10186_v35, %v16598_v58  ;;  %v10319_v58 = vand.u32 1, %v15803_v19 }
 0x665   :  { %v10664_v13 = vadd.f32 %v10660_v43, %v16663_v4  ;;  %v10188_v56 = vpop.f32.mrf.mxu1  ;;  %v10387_v43 = vand.u32 31, %v15822_v59 }
 0x666   :  { %v16669_v9 = vsel %vm16656_vm13, %v10187_v12, 0.0  ;;  %vm10351_vm14 = vcmp.eq.s32.totalorder %v10319_v58, 0 }
 0x667   :  { %v10701_v51 = vadd.f32 %v10697_v57, %v16669_v9  ;;  %v10190_v31 = vpop.f32.mrf.mxu1  ;;  %vm16674_vm0 = vmand %vm10351_vm14, %vm10415_vm15  ;;  %vm10419_vm3 = vcmp.lt.s32.totalorder %v10387_v43, 6 }
 0x669   :  { %v10194_v24 = vpop.f32.mrf.mxu1 }
 0x66b   :  { %v10196_v60 = vpop.f32.mrf.mxu1 }
 0x66d   :  { %v10198_v36 = vpop.f32.mrf.mxu1 }
 0x66f   :  { %v10200_v30 = vpop.f32.mrf.mxu1 }
 0x671   :  { %v10204_v16 = vpop.f32.mrf.mxu1 }
 0x673   :  { %v10206_v44 = vpop.f32.mrf.mxu1 }
 0x675   :  { %v10208_v15 = vpop.f32.mrf.mxu1 }
 0x677   :  { %v10210_v1 = vpop.f32.mrf.mxu1 }
 0x679   :  { %v10214_v38 = vpop.f32.mrf.mxu1 }
 0x67b   :  { %v10216_v53 = vpop.f32.mrf.mxu1 }
 0x67d   :  { %v10218_v41 = vpop.f32.mrf.mxu1 }
 0x67f   :  { %v10220_v61 = vpop.f32.mrf.mxu1 }
 0x681   :  { %v10224_v46 = vpop.f32.mrf.mxu1 }
 0x682   :  { %v10225_v55 = vadd.f32 %v10224_v46, %v16601_v7  ;;  %v10323_v7 = vand.u32 1, %v15822_v59 }
 0x683   :  { %v10226_v2 = vpop.f32.mrf.mxu1 }
 0x684   :  { %v16681_v50 = vsel %vm16674_vm0, %v10225_v55, 0.0  ;;  %v10227_v32 = vadd.f32 %v10226_v2, %v16604_v37  ;;  %vm10355_vm1 = vcmp.eq.s32.totalorder %v10323_v7, 0 }
 0x685   :  { %v10672_v19 = vadd.f32 %v10664_v13, %v16681_v50  ;;  %v10228_v5 = vpop.f32.mrf.mxu1  ;;  %vm16692_vm2 = vmand %vm10355_vm1, %vm10419_vm3  ;;  %v10327_v13 = vand.u32 1, %v15845_v6 }
 0x686   :  { %v16687_v22 = vsel %vm16674_vm0, %v10227_v32, 0.0  ;;  %v14411_v5 = vld [vmem:[#allocation5 + $0x3c0] ss:$36 sps:$4 sm:$0xff]  }
 0x687   :  { %v10709_v49 = vadd.f32 %v10701_v51, %v16687_v22  ;;  %v10230_v47 = vpop.f32.mrf.mxu1  ;;  %vm10359_vm8 = vcmp.eq.s32.totalorder %v10327_v13, 0 }
 0x689   :  { %v10234_v3 = vpop.f32.mrf.mxu1 }
 0x68a   :  { %v14416_v3 = vld [vmem:[#allocation5 + $0x40c] ss:$36 sps:$4 sm:$0xff]  }
 0x68b   :  { %v10236_v39 = vpop.f32.mrf.mxu1 }
 0x68d   :  { %v10238_v57 = vpop.f32.mrf.mxu1 }
 0x68e   :  { %v14420_v57 = vld [vmem:[#allocation5 + $0x3c8] ss:$36 sps:$4 sm:$0xff]  }
 0x68f   :  { %v10240_v37 = vpop.f32.mrf.mxu1  ;;  %10273 = vmatmul.mubr.bf16.gmra.mxu1 %v14420_v57 }
 0x690   :  { %10282 = vmatprep.mubr.bf16.mxu1 %v14434_v0 }
 0x691   :  { %v10244_v63 = vpop.f32.mrf.mxu1 }
 0x692   :  { %v10245_v17 = vadd.f32 %v10244_v63, %v16607_v18  ;;  %v10391_v18 = vand.u32 31, %v15845_v6 }
 0x693   :  { %v10246_v42 = vpop.f32.mrf.mxu1 }
 0x694   :  { %v10633_v21 = vsel %vm16692_vm2, %v10245_v17, 0.0  ;;  %v10247_v8 = vadd.f32 %v10246_v42, %v16610_v23  ;;  %vm10423_vm5 = vcmp.lt.s32.totalorder %v10391_v18, 6 }
 0x695   :  { %v10676_v10 = vadd.f32 %v10672_v19, %v10633_v21  ;;  %v10248_v59 = vpop.f32.mrf.mxu1  ;;  %vm16707_vm4 = vmand %vm10359_vm8, %vm10423_vm5 }
 0x696   :  { %v16702_v28 = vsel %vm16692_vm2, %v10247_v8, 0.0  ;;  %v11541_v59 = vand.u32 127, %v5847_v27 }
 0x697   :  { %v10713_v52 = vadd.f32 %v10709_v49, %v16702_v28  ;;  %v10250_v35 = vpop.f32.mrf.mxu1 }
 0x699   :  { %v10254_v12 = vpop.f32.mrf.mxu1 }
 0x69b   :  { %v10256_v56 = vpop.f32.mrf.mxu1 }
 0x69c   :  { %v14419_v56 = vld [vmem:[#allocation5 + $0x454] ss:$36 sps:$4 sm:$0xff]  }
 0x69d   :  { %v10258_v51 = vpop.f32.mrf.mxu1 }
 0x69f   :  { %v10260_v31 = vpop.f32.mrf.mxu1 }
 0x6a1   :  { %v10264_v23 = vpop.f32.mrf.mxu1 }
 0x6a2   :  { %v10265_v60 = vadd.f32 %v10264_v23, %v16613_v25 }
 0x6a3   :  { %v10266_v36 = vpop.f32.mrf.mxu1 }
 0x6a4   :  { %v10641_v30 = vsel %vm16707_vm4, %v10265_v60, 0.0  ;;  %v10267_v16 = vadd.f32 %v10266_v36, %v16616_v62  ;;  %v14413_v62 = vld [vmem:[#allocation5 + $0x3c4] ss:$36 sps:$4 sm:$0xff]  }
 0x6a5   :  { %v10680_v44 = vadd.f32 %v10676_v10, %v10641_v30  ;;  %v10268_v6 = vpop.f32.mrf.mxu1  ;;  %10079 = vmatprep.mubr.bf16.mxu0 %v14413_v62  ;;  %v14414_v10 = vld [vmem:[#allocation5 + $0x408] ss:$36 sps:$4 sm:$0xff]  }
 0x6a6   :  { %v10642_v15 = vsel %vm16707_vm4, %v10267_v16, 0.0  ;;  %10080 = vmatmul.mubr.bf16.gmra.mxu0 %v14411_v5  ;;  %v14435_v5 = vmov 1.0  }
 0x6a7   :  { %v10688_v1 = vrot.slane %v10680_v44, 4  ;;  %v10717_v38 = vadd.f32 %v10713_v52, %v10642_v15  ;;  %v10270_v58 = vpop.f32.mrf.mxu1  ;;  %10089 = vmatprep.mubr.bf16.mxu0 %v14416_v3  ;;  %v11543_v52 = vmul.u32 128, %v15718_v20 }
 0x6a9   :  { %v10689_v26 = vadd.f32 %v10688_v1, %v10680_v44  ;;  %v10725_v53 = vrot.slane %v10717_v38, 4  ;;  %vm11544_vm7 = vcmp.ge.s32.totalorder %v11541_v59, %v11543_v52  ;;  %v11546_v48 = vadd.s32 128, %v11543_v52 }
 0x6ab   :  { %v10690_v41 = vrot.slane %v10689_v26, 2  ;;  %v10726_v61 = vadd.f32 %v10725_v53, %v10717_v38 }
 0x6ad   :  { %v10691_v46 = vadd.f32 %v10690_v41, %v10689_v26  ;;  %v10727_v25 = vrot.slane %v10726_v61, 2  ;;  %v14417_v41 = vld [vmem:[#allocation5 + $0x450] ss:$36 sps:$4 sm:$0xff]  }
 0x6ae   :  { %10090 = vmatmul.mubr.bf16.gmra.mxu0 %v14414_v10 }
 0x6af   :  { %v10692_v55 = vrot.slane %v10691_v46, 1  ;;  %v10728_v2 = vadd.f32 %v10727_v25, %v10726_v61  ;;  %10099 = vmatprep.mubr.bf16.mxu0 %v14419_v56  ;;  %v11073_v56 = vsub.s32 0, %v15718_v20 }
 0x6b1   :  { %v10693_v32 = vadd.f32 %v10692_v55, %v10691_v46  ;;  %v10729_v19 = vrot.slane %v10728_v2, 1 }
 0x6b3   :  { %v16717_v49 = vmul.f32 0.055555556, %v10693_v32  ;;  %v10730_v47 = vadd.f32 %v10729_v19, %v10728_v2 }
 0x6b5   :  { %v16721_v7 = vsub.f32 %v16635_v11, %v16717_v49  ;;  %v16725_v43 = vsub.f32 %v16639_v34, %v16717_v49  ;;  %v16729_v39 = vsub.f32 %v16663_v4, %v16717_v49  ;;  %v16733_v37 = vsub.f32 %v16681_v50, %v16717_v49 }
 0x6b6   :  { %v16736_v63 = vsub.f32 %v10633_v21, %v16717_v49  ;;  %v16739_v11 = vsub.f32 %v10641_v30, %v16717_v49  ;;  %v16741_v17 = vmul.f32 0.055555556, %v10730_v47  ;;  %v11542_v30 = vadd.s32 128, %v11541_v59  ;;  %10100 = vmatmul.mubr.bf16.gmra.mxu0 %v14417_v41 }
 0x6b7   :  { %v10798_v34 = vsel %vm16624_vm9, %v16721_v7, 0.0  ;;  %v10806_v4 = vsel %vm16628_vm10, %v16725_v43, 0.0  ;;  %v10814_v50 = vsel %vm16656_vm13, %v16729_v39, 0.0  ;;  %v10830_v21 = vsel %vm16674_vm0, %v16733_v37, 0.0 }
 0x6b8   :  { %v10862_v42 = vmul.f32 %v10798_v34, %v10798_v34  ;;  %v10870_v8 = vmul.f32 %v10806_v4, %v10806_v4  ;;  %v10838_v35 = vsel %vm16692_vm2, %v16736_v63, 0.0  ;;  %v10878_v12 = vmul.f32 %v10814_v50, %v10814_v50 }
 0x6b9   :  { %v16763_v13 = vsub.f32 %v16646_v14, %v16741_v17  ;;  %v16767_v18 = vsub.f32 %v16650_v54, %v16741_v17  ;;  %v16771_v27 = vsub.f32 %v16669_v9, %v16741_v17  ;;  %v16775_v31 = vsub.f32 %v16687_v22, %v16741_v17  ;;  %v14421_v14 = vld [vmem:[#allocation5 + $0x410] ss:$36 sps:$4 sm:$0xff]  }
 0x6ba   :  { %v10929_v51 = vadd.f32 %v10870_v8, %v10862_v42  ;;  %v16779_v23 = vsub.f32 %v16702_v28, %v16741_v17  ;;  %v16782_v60 = vsub.f32 %v10642_v15, %v16741_v17  ;;  %v10894_v36 = vmul.f32 %v10830_v21, %v10830_v21  ;;  %10283 = vmatmul.mubr.bf16.gmra.mxu1 %v14421_v14  ;;  %v10528_v14 = vld [vmem:[%s17158_s8] sm:$0x3] }
 0x6bb   :  { %v10799_v54 = vsel %vm16624_vm9, %v16763_v13, 0.0  ;;  %v10807_v9 = vsel %vm16628_vm10, %v16767_v18, 0.0  ;;  %v10815_v28 = vsel %vm16656_vm13, %v16771_v27, 0.0  ;;  %v10846_v16 = vsel %vm16707_vm4, %v16739_v11, 0.0  ;;  %10292 = vmatprep.mubr.bf16.mxu1 %v14434_v0 }
 0x6bc   :  { %v10933_v22 = vadd.f32 %v10929_v51, %v10878_v12  ;;  %v10863_v44 = vmul.f32 %v10799_v54, %v10799_v54  ;;  %v10871_v40 = vmul.f32 %v10807_v9, %v10807_v9  ;;  %v10902_v6 = vmul.f32 %v10838_v35, %v10838_v35  ;;  %v10527_v51 = vld [vmem:[%s17157_s7] sm:$0x3] }
 0x6bd   :  { %v10831_v33 = vsel %vm16674_vm0, %v16775_v31, 0.0  ;;  %v10879_v1 = vmul.f32 %v10815_v28, %v10815_v28  ;;  %v10910_v58 = vmul.f32 %v10846_v16, %v10846_v16  ;;  %v10839_v53 = vsel %vm16692_vm2, %v16779_v23, 0.0 }
 0x6be   :  { %v10941_v15 = vadd.f32 %v10933_v22, %v10894_v36  ;;  %v10966_v38 = vadd.f32 %v10871_v40, %v10863_v44  ;;  %vm11545_vm6 = vcmp.ge.s32.totalorder %v11542_v30, %v11543_v52  ;;  %v10895_v61 = vmul.f32 %v10831_v33, %v10831_v33 }
 0x6bf   :  { %vm11547_vm9 = vcmp.lt.s32.totalorder %v11541_v59, %v11546_v48  ;;  %vm11548_vm10 = vcmp.lt.s32.totalorder %v11542_v30, %v11546_v48  ;;  %v10847_v25 = vsel %vm16707_vm4, %v16782_v60, 0.0  ;;  %v10903_v55 = vmul.f32 %v10839_v53, %v10839_v53 }
 0x6c0   :  { %v10945_v26 = vadd.f32 %v10941_v15, %v10902_v6  ;;  %v10970_v46 = vadd.f32 %v10966_v38, %v10879_v1  ;;  %vm16807_vm11 = vmand %vm11544_vm7, %vm11547_vm9  ;;  %v10911_v32 = vmul.f32 %v10847_v25, %v10847_v25  ;;  %v10736_v54 = vsub.f32 0.0, %v16717_v49 }
 0x6c1   :  { %vm11550_vm12 = vmand %vm11545_vm6, %vm11548_vm10  ;;  %v16820_v9 = vrot.slane %v10527_v51, %v11073_v56  ;;  %v16822_v22 = vrot.slane %v10528_v14, %v11073_v56  ;;  %v11077_v28 = vsub.s32 1, %v15718_v20  ;;  %v10737_v20 = vsub.f32 0.0, %v16741_v17 }
 0x6c2   :  { %v10949_v29 = vadd.f32 %v10945_v26, %v10910_v58  ;;  %v10978_v2 = vadd.f32 %v10970_v46, %v10895_v61  ;;  %12771 = vmatprep.mubr.msk.f32.mxu0 %vm11550_vm12, %v14435_v5  ;;  %vm11638_vm12 = vcmask 1024  }
 0x6c3   :  { %v16841_v1 = vrot.slane %v10527_v51, %v11077_v28  ;;  %v16846_v38 = vrot.slane %v10528_v14, %v11077_v28  ;;  %v11430_v28 = vld [vmem:[%s17159_s4 + $0x90] sm:$0xff] }
 0x6c4   :  { %v10957_v45 = vrot.slane %v10949_v29, 4  ;;  %v10982_v19 = vadd.f32 %v10978_v2, %v10903_v55  ;;  %v11439_v2 = vld [vmem:[%s17159_s4 + $0xd8] sm:$0xff] }
 0x6c6   :  { %v10958_v62 = vadd.f32 %v10957_v45, %v10949_v29  ;;  %v10986_v47 = vadd.f32 %v10982_v19, %v10911_v32  ;;  %v11440_v29 = vld [vmem:[%s17159_s4 + $0xe0] sm:$0xff]  ;;  %v11438_v32 = vld [vmem:[%s17159_s4 + $0xd0] sm:$0xff] }
 0x6c8   :  { %v10959_v3 = vrot.slane %v10958_v62, 2  ;;  %v10994_v24 = vrot.slane %v10986_v47, 4 }
 0x6ca   :  { %v10960_v57 = vadd.f32 %v10959_v3, %v10958_v62  ;;  %v10995_v34 = vadd.f32 %v10994_v24, %v10986_v47  ;;  %v11437_v62 = vld [vmem:[%s17159_s4 + $0xc8] sm:$0xff]  ;;  %v11436_v24 = vld [vmem:[%s17159_s4 + $0xc0] sm:$0xff] }
 0x6cc   :  { %v10961_v4 = vrot.slane %v10960_v57, 1  ;;  %v10996_v50 = vrot.slane %v10995_v34, 2 }
 0x6ce   :  { %v10962_v42 = vadd.f32 %v10961_v4, %v10960_v57  ;;  %v10997_v21 = vadd.f32 %v10996_v50, %v10995_v34  ;;  %v11435_v4 = vld [vmem:[%s17159_s4 + $0xb8] sm:$0xff] }
 0x6d0   :  { %v11000_v8 = vmul.f32 0.055555556, %v10962_v42  ;;  %v10998_v10 = vrot.slane %v10997_v21, 1  ;;  %v11434_v42 = vld [vmem:[%s17159_s4 + $0xb0] sm:$0xff] }
 0x6d2   :  { %v11002_v59 = vadd.f32 1e-05, %v11000_v8  ;;  %v10999_v52 = vadd.f32 %v10998_v10, %v10997_v21  ;;  %v14422_v21 = vld [vmem:[#allocation5 + $0x458] ss:$36 sps:$4 sm:$0xff]   ;;  %v11433_v10 = vld [vmem:[%s17159_s4 + $0xa8] sm:$0xff] }
 0x6d3   :  { %10293 = vmatmul.mubr.bf16.gmra.mxu1 %v14422_v21 }
 0x6d4   :  { %14425 = vrsqrt.f32 %v11002_v59  ;;  %v11001_v35 = vmul.f32 0.055555556, %v10999_v52 }
 0x6d6   :  { %v11003_v12 = vadd.f32 1e-05, %v11001_v35 }
 0x6d8   :  { %14427 = vrsqrt.f32 %v11003_v12  ;;  %v11432_v12 = vld [vmem:[%s17159_s4 + $0xa0] sm:$0xff] }
 0x6e1   :  { %v14426_v36 = vpop.eup %14425 }
 0x6e2   :  { %v11008_v30 = vmul.f32 %v14426_v36, %v10736_v54  ;;  %v16826_v16 = vmul.f32 %v14426_v36, %v16736_v63  ;;  %v16829_v44 = vmul.f32 %v14426_v36, %v16739_v11  ;;  %v11022_v40 = vmul.f32 %v14426_v36, %v16729_v39  ;;  %v11431_v54 = vld [vmem:[%s17159_s4 + $0x98] sm:$0xff] }
 0x6e3   :  { %v11014_v6 = vmul.f32 %v14426_v36, %v16725_v43  ;;  %v16834_v49 = vmul.f32 %v14426_v36, %v16721_v7  ;;  %v16837_v15 = vmul.f32 %v14426_v36, %v16733_v37 }
 0x6e4   :  { %v11083_v33 = vmul.f32 %v16820_v9, %v11008_v30  ;;  %v11097_v25 = vmul.f32 %v16820_v9, %v11022_v40 }
 0x6e5   :  { %v16843_v63 = vpop.eup %14427  ;;  %v11089_v51 = vmul.f32 %v16820_v9, %v11014_v6  ;;  %v11429_v6 = vld [vmem:[%s17159_s4 + $0x88] sm:$0xff] }
 0x6e6   :  { %v11158_v11 = vadd.f32 %v16822_v22, %v11083_v33  ;;  %v11009_v43 = vmul.f32 %v16843_v63, %v10737_v20  ;;  %v16851_v7 = vmul.f32 %v16843_v63, %v16782_v60  ;;  %v11023_v39 = vmul.f32 %v16843_v63, %v16771_v27  ;;  %v11443_v60 = vld [vmem:[%s17159_s4 + $0xf8] sm:$0xff] }
 0x6e7   :  { %v11015_v37 = vmul.f32 %v16843_v63, %v16767_v18  ;;  %v16860_v58 = vmul.f32 %v16843_v63, %v16763_v13  ;;  %v11442_v18 = vld [vmem:[%s17159_s4 + $0xf0] sm:$0xff]  ;;  %v11441_v13 = vld [vmem:[%s17159_s4 + $0xe8] sm:$0xff]  ;;  %v11172_v57 = vadd.f32 %v16822_v22, %v11097_v25  ;;  %v11081_v25 = vmul.f32 %v16820_v9, %v16834_v49 }
 0x6e8   :  { %v11084_v17 = vmul.f32 %v16841_v1, %v11009_v43  ;;  %v11286_v48 = vmul.f32 0.2, %v11158_v11  ;;  %vm11222_vm13 = vcmp.gt.f32.partialorder %v11158_v11, 0.0  ;;  %v11098_v61 = vmul.f32 %v16841_v1, %v11023_v39  ;;  %v11428_v43 = vld [vmem:[%s17159_s4 + $0x80] sm:$0xff]  ;;  %v11421_v49 = vld [vmem:[%s17159_s4 + $0x48] sm:$0xff] }
 0x6e9   :  { %v11090_v52 = vmul.f32 %v16841_v1, %v11015_v37  ;;  %v11300_v56 = vmul.f32 0.2, %v11172_v57  ;;  %vm11236_vm0 = vcmp.gt.f32.partialorder %v11172_v57, 0.0  ;;  %v11164_v39 = vadd.f32 %v16822_v22, %v11089_v51 }
 0x6ea   :  { %v11159_v26 = vadd.f32 %v16846_v38, %v11084_v17  ;;  %v16866_v27 = vsel %vm11222_vm13, %v11158_v11, %v11286_v48  ;;  %v11173_v47 = vadd.f32 %v16846_v38, %v11098_v61  ;;  %v11427_v17 = vld [vmem:[%s17159_s4 + $0x78] sm:$0xff] }
 0x6eb   :  { %v11506_v55 = vmul.f32 %v11442_v18, %v16866_v27  ;;  %v11504_v19 = vmul.f32 %v11440_v29, %v16866_v27  ;;  %v11502_v34 = vmul.f32 %v11438_v32, %v16866_v27  ;;  %v11500_v8 = vmul.f32 %v11436_v24, %v16866_v27  ;;  %v11420_v24 = vld [vmem:[%s17159_s4 + $0x40] sm:$0xff] }
 0x6ec   :  { %vm11223_vm14 = vcmp.gt.f32.partialorder %v11159_v26, 0.0  ;;  %v11287_v53 = vmul.f32 0.2, %v11159_v26  ;;  %v11301_v59 = vmul.f32 0.2, %v11173_v47  ;;  %vm11237_vm15 = vcmp.gt.f32.partialorder %v11173_v47, 0.0 }
 0x6ed   :  { %v11498_v14 = vmul.f32 %v11434_v42, %v16866_v27  ;;  %v11496_v30 = vmul.f32 %v11432_v12, %v16866_v27  ;;  %v11165_v33 = vadd.f32 %v16846_v38, %v11090_v52  ;;  %v11364_v11 = vsel %vm11236_vm0, %v11172_v57, %v11300_v56  ;;  %v11418_v42 = vld [vmem:[%s17159_s4 + $0x30] sm:$0xff]  ;;  %v11416_v52 = vld [vmem:[%s17159_s4 + $0x20] sm:$0xff]  ;;  %v11415_v56 = vld [vmem:[%s17159_s4 + $0x18] sm:$0xff] }
 0x6ee   :  { %v16871_v41 = vsel %vm11223_vm14, %v11159_v26, %v11287_v53  ;;  %v11365_v40 = vsel %vm11237_vm15, %v11173_v47, %v11301_v59  ;;  %v11494_v37 = vmul.f32 %v11430_v28, %v16866_v27  ;;  %v11426_v26 = vld [vmem:[%s17159_s4 + $0x70] sm:$0xff]  ;;  %v11492_v53 = vmul.f32 %v11428_v43, %v11364_v11  ;;  %v11413_v28 = vld [vmem:[%s17159_s4 + $0x8] sm:$0xff] }
 0x6ef   :  { %v11507_v46 = vmul.f32 %v11443_v60, %v16871_v41  ;;  %v11505_v45 = vmul.f32 %v11441_v13, %v16871_v41  ;;  %v11503_v3 = vmul.f32 %v11439_v2, %v16871_v41  ;;  %v11501_v50 = vmul.f32 %v11437_v62, %v16871_v41  ;;  %v11425_v60 = vld [vmem:[%s17159_s4 + $0x68] sm:$0xff]  ;;  %v11423_v2 = vld [vmem:[%s17159_s4 + $0x58] sm:$0xff]  ;;  %v11474_v43 = vld [vmem:[%s17159_s4 + $0x1f0] sm:$0xff] }
 0x6f0   :  { %v11499_v35 = vmul.f32 %v11435_v4, %v16871_v41  ;;  %v11497_v36 = vmul.f32 %v11433_v10, %v16871_v41  ;;  %v11495_v20 = vmul.f32 %v11431_v54, %v16871_v41  ;;  %v11493_v48 = vmul.f32 %v11429_v6, %v11365_v40  ;;  %v11419_v4 = vld [vmem:[%s17159_s4 + $0x38] sm:$0xff]  ;;  %v11412_v6 = vld [vmem:[%s17159_s4] sm:$0xff] }
 0x6f1   :  { %11555 = vmatprep.subr.mxu0 %v11507_v46  ;;  %v11293_v18 = vmul.f32 0.2, %v11165_v33  ;;  %v11082_v13 = vmul.f32 %v16841_v1, %v16860_v58  ;;  %v11491_v61 = vmul.f32 %v11427_v17, %v16871_v41  ;;  %v11424_v46 = vld [vmem:[%s17159_s4 + $0x60] sm:$0xff]  ;;  %vm11229_vm1 = vcmp.gt.f32.partialorder %v11165_v33, 0.0  ;;  %v11473_v17 = vld [vmem:[%s17159_s4 + $0x1e8] sm:$0xff] }
 0x6f2   :  { %11556 = vmatpush1.msra.mxu0 %v11506_v55  ;;  %v11292_v29 = vmul.f32 0.2, %v11164_v39  ;;  %v11490_v55 = vmul.f32 %v11426_v26, %v16866_v27  ;;  %vm11228_vm3 = vcmp.gt.f32.partialorder %v11164_v39, 0.0  ;;  %v11489_v58 = vmul.f32 %v11425_v60, %v16871_v41 }
 0x6f3   :  { %11557 = vmatprep.subr.mxu0 %v11505_v45  ;;  %v11422_v45 = vld [vmem:[%s17159_s4 + $0x50] sm:$0xff]  ;;  %v11488_v32 = vmul.f32 %v11424_v46, %v16866_v27  ;;  %v11157_v62 = vadd.f32 %v16846_v38, %v11082_v13  ;;  %v11487_v47 = vmul.f32 %v11423_v2, %v16871_v41  ;;  %v11156_v57 = vadd.f32 %v16822_v22, %v11081_v25  ;;  %v11468_v2 = vld [vmem:[%s17159_s4 + $0x1c0] sm:$0xff] }
 0x6f4   :  { %11558 = vmatpush1.msra.mxu0 %v11504_v19  ;;  %v11357_v19 = vsel %vm11229_vm1, %v11165_v33, %v11293_v18  ;;  %v11483_v59 = vmul.f32 %v11419_v4, %v16871_v41  ;;  %v11482_v12 = vmul.f32 %v11418_v42, %v16866_v27  ;;  %v11480_v54 = vmul.f32 %v11416_v52, %v16866_v27 }
 0x6f5   :  { %11559 = vmatprep.subr.mxu0 %v11503_v3  ;;  %v11356_v3 = vsel %vm11228_vm3, %v11164_v39, %v11292_v29  ;;  %v11285_v10 = vmul.f32 0.2, %v11157_v62  ;;  %vm11221_vm2 = vcmp.gt.f32.partialorder %v11157_v62, 0.0  ;;  %vm11220_vm8 = vcmp.gt.f32.partialorder %v11156_v57, 0.0 }
 0x6f6   :  { %11560 = vmatpush1.msra.mxu0 %v11502_v34  ;;  %v11486_v34 = vmul.f32 %v11422_v45, %v16866_v27  ;;  %v11484_v21 = vmul.f32 %v11420_v24, %v11356_v3  ;;  %v11130_v39 = vmul.f32 %v16841_v1, %v16851_v7  ;;  %v11538_v60 = vmul.f32 %v11474_v43, %v16866_v27  ;;  %v11471_v7 = vld [vmem:[%s17159_s4 + $0x1d8] sm:$0xff]  ;;  %v11464_v24 = vld [vmem:[%s17159_s4 + $0x1a0] sm:$0xff] }
 0x6f7   :  { %11561 = vmatprep.subr.mxu0 %v11501_v50  ;;  %v11485_v50 = vmul.f32 %v11421_v49, %v11357_v19  ;;  %v11537_v18 = vmul.f32 %v11473_v17, %v16871_v41  ;;  %v11047_v29 = vmul.f32 %v16843_v63, %v16779_v23  ;;  %v11467_v45 = vld [vmem:[%s17159_s4 + $0x1b8] sm:$0xff]  ;;  %v11466_v23 = vld [vmem:[%s17159_s4 + $0x1b0] sm:$0xff]  ;;  %v11532_v19 = vmul.f32 %v11468_v2, %v16866_v27  ;;  %v11465_v49 = vld [vmem:[%s17159_s4 + $0x1a8] sm:$0xff] }
 0x6f8   :  { %11562 = vmatpush1.msra.mxu0 %v11500_v8  ;;  %v11417_v8 = vld [vmem:[%s17159_s4 + $0x28] sm:$0xff]  ;;  %v11205_v46 = vadd.f32 %v16846_v38, %v11130_v39  ;;  %v11531_v3 = vmul.f32 %v11467_v45, %v16871_v41  ;;  %v11530_v4 = vmul.f32 %v11466_v23, %v16866_v27  ;;  %v11529_v42 = vmul.f32 %v11465_v49, %v16871_v41  ;;  %v11455_v39 = vld [vmem:[%s17159_s4 + $0x158] sm:$0xff] }
 0x6f9   :  { %11563 = vmatprep.subr.mxu0 %v11499_v35  ;;  %v11284_v35 = vmul.f32 0.2, %v11156_v57  ;;  %v11481_v51 = vmul.f32 %v11417_v8, %v16871_v41  ;;  %v11528_v8 = vmul.f32 %v11464_v24, %v16866_v27  ;;  %v11039_v52 = vmul.f32 %v16843_v63, %v16775_v31  ;;  %v11458_v31 = vld [vmem:[%s17159_s4 + $0x170] sm:$0xff]  ;;  %v11445_v49 = vld [vmem:[%s17159_s4 + $0x108] sm:$0xff] }
 0x6fa   :  { %11564 = vmatpush1.msra.mxu0 %v11498_v14  ;;  %v11414_v14 = vld [vmem:[%s17159_s4 + $0x10] sm:$0xff]  ;;  %vm11269_vm5 = vcmp.gt.f32.partialorder %v11205_v46, 0.0  ;;  %v11522_v43 = vmul.f32 %v11458_v31, %v16866_v27 }
 0x6fb   :  { %11565 = vmatprep.subr.mxu0 %v11497_v36  ;;  %v11349_v36 = vsel %vm11221_vm2, %v11157_v62, %v11285_v10  ;;  %v11348_v40 = vsel %vm11220_vm8, %v11156_v57, %v11284_v35  ;;  %v11478_v33 = vmul.f32 %v11414_v14, %v16866_v27  ;;  %v11333_v62 = vmul.f32 0.2, %v11205_v46 }
 0x6fc   :  { %11566 = vmatpush1.msra.mxu0 %v11496_v30  ;;  %v11479_v30 = vmul.f32 %v11415_v56, %v16871_v41  ;;  %v11477_v11 = vmul.f32 %v11413_v28, %v11349_v36  ;;  %v11460_v56 = vld [vmem:[%s17159_s4 + $0x180] sm:$0xff]  ;;  %v11457_v28 = vld [vmem:[%s17159_s4 + $0x168] sm:$0xff] }
 0x6fd   :  { %11567 = vmatprep.subr.mxu0 %v11495_v20  ;;  %v11475_v20 = vld [vmem:[%s17159_s4 + $0x1f8] sm:$0xff]  ;;  %v11397_v10 = vsel %vm11269_vm5, %v11205_v46, %v11333_v62  ;;  %v11449_v46 = vld [vmem:[%s17159_s4 + $0x128] sm:$0xff] }
 0x6fe   :  { %11568 = vmatpush1.msra.mxu0 %v11494_v37  ;;  %v11476_v37 = vmul.f32 %v11412_v6, %v11348_v40  ;;  %v11539_v26 = vmul.f32 %v11475_v20, %v16871_v41  ;;  %v11114_v40 = vmul.f32 %v16841_v1, %v11039_v52  ;;  %v11513_v45 = vmul.f32 %v11449_v46, %v16871_v41 }
 0x6ff   :  { %11569 = vmatprep.subr.mxu0 %v11493_v48  ;;  %v11129_v48 = vmul.f32 %v16820_v9, %v16829_v44  ;;  %v11470_v44 = vld [vmem:[%s17159_s4 + $0x1d0] sm:$0xff] }
 0x700   :  { %11570 = vmatpush1.msra.mxu0 %v11492_v53  ;;  %v11472_v53 = vld [vmem:[%s17159_s4 + $0x1e0] sm:$0xff] }
 0x701   :  { %11571 = vmatprep.subr.mxu0 %v11491_v61  ;;  %v11536_v13 = vmul.f32 %v11472_v53, %v16866_v27  ;;  %v11469_v61 = vld [vmem:[%s17159_s4 + $0x1c8] sm:$0xff]  ;;  %v11204_v25 = vadd.f32 %v16822_v22, %v11129_v48 }
 0x702   :  { %11572 = vmatpush1.msra.mxu0 %v11490_v55  ;;  %v11535_v55 = vmul.f32 %v11471_v7, %v16871_v41 }
 0x703   :  { %11573 = vmatprep.subr.mxu0 %v11489_v58  ;;  %v11534_v58 = vmul.f32 %v11470_v44, %v16866_v27  ;;  %v11332_v57 = vmul.f32 0.2, %v11204_v25  ;;  %vm11268_vm4 = vcmp.gt.f32.partialorder %v11204_v25, 0.0  ;;  %v11451_v44 = vld [vmem:[%s17159_s4 + $0x138] sm:$0xff] }
 0x704   :  { %11574 = vmatpush1.msra.mxu0 %v11488_v32  ;;  %v11533_v32 = vmul.f32 %v11469_v61, %v16871_v41 }
 0x705   :  { %11575 = vmatprep.subr.mxu0 %v11487_v47  ;;  %v11122_v47 = vmul.f32 %v16841_v1, %v11047_v29  ;;  %v11521_v1 = vmul.f32 %v11457_v28, %v16871_v41  ;;  %v11515_v29 = vmul.f32 %v11451_v44, %v16871_v41 }
 0x706   :  { %11576 = vmatpush1.msra.mxu0 %v11486_v34  ;;  %v11121_v34 = vmul.f32 %v16820_v9, %v16826_v16  ;;  %v11461_v16 = vld [vmem:[%s17159_s4 + $0x188] sm:$0xff] }
 0x707   :  { %11577 = vmatprep.subr.mxu0 %v11485_v50  ;;  %v11463_v50 = vld [vmem:[%s17159_s4 + $0x198] sm:$0xff]  ;;  %v11525_v36 = vmul.f32 %v11461_v16, %v11397_v10 }
 0x708   :  { %11578 = vmatpush1.msra.mxu0 %v11484_v21  ;;  %v11462_v21 = vld [vmem:[%s17159_s4 + $0x190] sm:$0xff]  ;;  %v11527_v35 = vmul.f32 %v11463_v50, %v16871_v41 }
 0x709   :  { %11579 = vmatprep.subr.mxu0 %v11483_v59  ;;  %v11197_v59 = vadd.f32 %v16846_v38, %v11122_v47  ;;  %v11526_v14 = vmul.f32 %v11462_v21, %v16866_v27 }
 0x70a   :  { %11580 = vmatpush1.msra.mxu0 %v11482_v12  ;;  %v11396_v12 = vsel %vm11268_vm4, %v11204_v25, %v11332_v57  ;;  %v11448_v25 = vld [vmem:[%s17159_s4 + $0x120] sm:$0xff] }
 0x70b   :  { %11581 = vmatprep.subr.mxu0 %v11481_v51  ;;  %v11196_v51 = vadd.f32 %v16822_v22, %v11121_v34  ;;  %v11524_v63 = vmul.f32 %v11460_v56, %v11396_v12  ;;  %vm11261_vm7 = vcmp.gt.f32.partialorder %v11197_v59, 0.0  ;;  %v11512_v23 = vmul.f32 %v11448_v25, %v16866_v27 }
 0x70c   :  { %11582 = vmatpush1.msra.mxu0 %v11480_v54  ;;  %v11459_v54 = vld [vmem:[%s17159_s4 + $0x178] sm:$0xff] }
 0x70d   :  { %11583 = vmatprep.subr.mxu0 %v11479_v30  ;;  %v11325_v30 = vmul.f32 0.2, %v11197_v59  ;;  %v11523_v6 = vmul.f32 %v11459_v54, %v16871_v41  ;;  %v11324_v20 = vmul.f32 0.2, %v11196_v51  ;;  %vm11260_vm6 = vcmp.gt.f32.partialorder %v11196_v51, 0.0 }
 0x70e   :  { %11584 = vmatpush1.msra.mxu0 %v11478_v33  ;;  %v11456_v33 = vld [vmem:[%s17159_s4 + $0x160] sm:$0xff] }
 0x70f   :  { %11585 = vmatprep.subr.mxu0 %v11477_v11  ;;  %v11113_v11 = vmul.f32 %v16820_v9, %v16837_v15  ;;  %v11520_v17 = vmul.f32 %v11456_v33, %v16866_v27  ;;  %v11389_v48 = vsel %vm11261_vm7, %v11197_v59, %v11325_v30  ;;  %v11453_v9 = vld [vmem:[%s17159_s4 + $0x148] sm:$0xff]  ;;  %v11189_v15 = vadd.f32 %v16846_v38, %v11114_v40  ;;  %v11450_v38 = vld [vmem:[%s17159_s4 + $0x130] sm:$0xff] }
 0x710   :  { %11586 = vmatpush1.msra.mxu0 %v11476_v37  ;;  %v11454_v37 = vld [vmem:[%s17159_s4 + $0x150] sm:$0xff]  ;;  %v11388_v53 = vsel %vm11260_vm6, %v11196_v51, %v11324_v20  ;;  %v11514_v2 = vmul.f32 %v11450_v38, %v16866_v27 }
 0x711   :  { %11587 = vmatprep.subr.mxu0 %v11539_v26  ;;  %v11519_v26 = vmul.f32 %v11455_v39, %v16871_v41  ;;  %v11188_v7 = vadd.f32 %v16822_v22, %v11113_v11  ;;  %v11317_v22 = vmul.f32 0.2, %v11189_v15  ;;  %vm11253_vm9 = vcmp.gt.f32.partialorder %v11189_v15, 0.0 }
 0x712   :  { %11588 = vmatpush2.msra.mxu0 %v11538_v60  ;;  %v11452_v60 = vld [vmem:[%s17159_s4 + $0x140] sm:$0xff] }
 0x713   :  { %11589 = vmatprep.subr.mxu0 %v11537_v18  ;;  %v11518_v18 = vmul.f32 %v11454_v37, %v16866_v27  ;;  %v11516_v61 = vmul.f32 %v11452_v60, %v11388_v53  ;;  %vm11252_vm10 = vcmp.gt.f32.partialorder %v11188_v7, 0.0 }
 0x714   :  { %11590 = vmatpush2.msra.mxu0 %v11536_v13  ;;  %v11517_v13 = vmul.f32 %v11453_v9, %v11389_v48 }
 0x715   :  { %11591 = vmatprep.subr.mxu0 %v11535_v55  ;;  %v11316_v55 = vmul.f32 0.2, %v11188_v7 }
 0x716   :  { %11592 = vmatpush2.msra.mxu0 %v11534_v58  ;;  %v11447_v58 = vld [vmem:[%s17159_s4 + $0x118] sm:$0xff] }
 0x717   :  { %11593 = vmatprep.subr.mxu0 %v11533_v32  ;;  %v11446_v32 = vld [vmem:[%s17159_s4 + $0x110] sm:$0xff]  ;;  %v11511_v62 = vmul.f32 %v11447_v58, %v16871_v41  ;;  %v11380_v47 = vsel %vm11252_vm10, %v11188_v7, %v11316_v55 }
 0x718   :  { %11594 = vmatpush2.msra.mxu0 %v11532_v19  ;;  %v11381_v19 = vsel %vm11253_vm9, %v11189_v15, %v11317_v22  ;;  %v11510_v24 = vmul.f32 %v11446_v32, %v16866_v27 }
 0x719   :  { %11595 = vmatprep.subr.mxu0 %v11531_v3  ;;  %v11444_v3 = vld [vmem:[%s17159_s4 + $0x100] sm:$0xff]  ;;  %v11509_v57 = vmul.f32 %v11445_v49, %v11381_v19 }
 0x71a   :  { %11596 = vmatpush2.msra.mxu0 %v11530_v4  ;;  %v11508_v34 = vmul.f32 %v11444_v3, %v11380_v47 }
 0x71b   :  { %11597 = vmatprep.subr.mxu0 %v11529_v42 }
 0x71c   :  { %11598 = vmatpush2.msra.mxu0 %v11528_v8 }
 0x71d   :  { %11599 = vmatprep.subr.mxu0 %v11527_v35 }
 0x71e   :  { %11600 = vmatpush2.msra.mxu0 %v11526_v14 }
 0x71f   :  { %11601 = vmatprep.subr.mxu0 %v11525_v36 }
 0x720   :  { %11602 = vmatpush2.msra.mxu0 %v11524_v63 }
 0x721   :  { %11603 = vmatprep.subr.mxu0 %v11523_v6 }
 0x722   :  { %11604 = vmatpush2.msra.mxu0 %v11522_v43 }
 0x723   :  { %11605 = vmatprep.subr.mxu0 %v11521_v1 }
 0x724   :  { %11606 = vmatpush2.msra.mxu0 %v11520_v17 }
 0x725   :  { %11607 = vmatprep.subr.mxu0 %v11519_v26 }
 0x726   :  { %11608 = vmatpush2.msra.mxu0 %v11518_v18 }
 0x727   :  { %11609 = vmatprep.subr.mxu0 %v11517_v13 }
 0x728   :  { %11610 = vmatpush2.msra.mxu0 %v11516_v61 }
 0x729   :  { %11611 = vmatprep.subr.mxu0 %v11515_v29 }
 0x72a   :  { %11612 = vmatpush2.msra.mxu0 %v11514_v2 }
 0x72b   :  { %11613 = vmatprep.subr.mxu0 %v11513_v45 }
 0x72c   :  { %11614 = vmatpush2.msra.mxu0 %v11512_v23 }
 0x72d   :  { %11615 = vmatprep.subr.mxu0 %v11511_v62 }
 0x72e   :  { %11616 = vmatpush2.msra.mxu0 %v11510_v24 }
 0x72f   :  { %11617 = vmatprep.subr.mxu0 %v11509_v57 }
 0x730   :  { %11618 = vmatpush2.msra.mxu0 %v11508_v34 }
 0x731   :  { %12772 = vmatmul.mubr.msk.f32.vlgmr.msra.gmra.mxu0 %vm16807_vm11, %v14435_v5  ;;  %vm11626_vm11 = vcmask 1041408  }
 0x74f   :  { %v10274_v50 = vpop.f32.mrf.mxu1 }
 0x751   :  { %v10276_v21 = vpop.f32.mrf.mxu1 }
 0x753   :  { %v10278_v10 = vpop.f32.mrf.mxu1 }
 0x755   :  { %v10280_v59 = vpop.f32.mrf.mxu1 }
 0x766   :  { %v10081_v4 = vpop.f32.mrf.mxu0 }
 0x768   :  { %v10083_v41 = vpop.f32.mrf.mxu0 }
 0x76a   :  { %v10085_v42 = vpop.f32.mrf.mxu0 }
 0x76c   :  { %v10087_v8 = vpop.f32.mrf.mxu0 }
 0x76e   :  { %v10091_v16 = vpop.f32.mrf.mxu0 }
 0x770   :  { %v10093_v27 = vpop.f32.mrf.mxu0 }
 0x772   :  { %v10095_v35 = vpop.f32.mrf.mxu0 }
 0x774   :  { %v10097_v56 = vpop.f32.mrf.mxu0 }
 0x776   :  { %v10101_v14 = vpop.f32.mrf.mxu0 }
 0x778   :  { %v10103_v36 = vpop.f32.mrf.mxu0 }
 0x77a   :  { %v10284_v52 = vpop.f32.mrf.mxu1  ;;  %v10105_v0 = vpop.f32.mrf.mxu0 }
 0x77c   :  { %v10286_v12 = vpop.f32.mrf.mxu1  ;;  %v10107_v5 = vpop.f32.mrf.mxu0 }
 0x77e   :  { %v10288_v51 = vpop.f32.mrf.mxu1 }
 0x780   :  { %v10290_v54 = vpop.f32.mrf.mxu1 }
 0x793   :  { %v10294_v31 = vpop.f32.mrf.mxu1 }
 0x795   :  { %v10296_v63 = vpop.f32.mrf.mxu1 }
 0x797   :  { %v10298_v28 = vpop.f32.mrf.mxu1 }
 0x799   :  { %v10300_v30 = vpop.f32.mrf.mxu1 }
 0x7f1   :  { %v11621_v40 = vpop.f32.mrf.mxu0 }
 0x7f2   :  { %v11627_v33 = vsel %vm11626_vm11, %v11621_v40, 0.0 }
 0x7f3   :  { %v11623_v6 = vpop.f32.mrf.mxu0 }
 0x7f4   :  { %v11628_v20 = vsel %vm11626_vm11, %v11623_v6, 0.0 }
 0x7f5   :  { %v11629_v11 = vadd.f32 %v11628_v20, %v11627_v33 }
 0x7f7   :  { %11630 = vadd.xlane.f32.xlu0 %v11629_v11 }
 0x880   :  { %v11631_v43 = vpop.xlane.xlu0 %11630 }
 0x881   :  { %v12773_v39 = vmul.f32 -1.442695, %v11631_v43 }
 0x883   :  { %14429 = vpow2.f32 %v12773_v39 }
 0x890   :  { %v14430_v1 = vpop.eup %14429 }
 0x891   :  { %v11635_v37 = vadd.f32 1.0, %v14430_v1 }
 0x893   :  { %14431 = vrcp.f32 %v11635_v37 }
 0x8a0   :  { %v14432_v17 = vpop.eup %14431 }
 0x8a1   :  { %11639 = vst.msk [vmem:[%s17160_s9] sm:$0x3] %vm11638_vm12, %v14432_v17 }

</bundles_post_ra>
